<compile_context>
chip_gen: v7x
topology: tpu7x:2x2x1
jax: 0.10.0
libtpu: 0.0.40
codegen_flags: <defaults>
</compile_context>

<pallas_src>
import jax
import jax.numpy as jnp
from jax.experimental import pallas as pl
from jax.experimental.pallas import tpu as pltpu


def _round_up(n, m):
    return ((n + m - 1) // m) * m


def _is_bf16(dtype):
    return dtype == jnp.bfloat16


# ---------------------------------------------------------------------------
# Kernel
# ---------------------------------------------------------------------------
def _mlp_kernel(s_ref, w1, b1, w2, b2, w3, b3, w4, b4, wm, bm, o_ref):
    # Whole MLP chain per batch tile; all weights are grid-invariant VMEM blocks.
    x = s_ref[...]
    for w, b in ((w1, b1), (w2, b2), (w3, b3), (w4, b4)):
        # MXU matmul with f32 accumulation; bias add + relu in f32 on the VPU,
        # then cast back to the compute dtype (no-op for f32 weights).
        x = jnp.maximum(
            jnp.dot(x, w[...], preferred_element_type=jnp.float32) + b[...], 0.0)
        x = x.astype(w.dtype)
    # Lane-dense [tile, 128] f32 output slab (padded columns hold tanh(0) = 0).
    o_ref[...] = jnp.tanh(
        jnp.dot(x, wm[...], preferred_element_type=jnp.float32) + bm[...])


# ---------------------------------------------------------------------------
# Parameter padding (exact, host-side)
# ---------------------------------------------------------------------------
def pad_params(params, *, weight_dtype=jnp.bfloat16):
    """Zero-pad logical params to TPU-friendly shapes (exact transformation).

    hidden dims 500/100/50/9 -> 512/128/128/128, mean in 12 -> 128 (only the
    first 9 rows of the declared mean weight are reachable in forward()),
    mean out num_actions -> 128 so the kernel output is lane-dense.
    Biases stay float32 (accumulation dtype); weights are cast to weight_dtype.
    """
    (w1, b1), (w2, b2), (w3, b3), (w4, b4), (wm, bm) = params
    num_inputs = w1.shape[0]
    h1, h2, h3, h4 = w1.shape[1], w2.shape[1], w3.shape[1], w4.shape[1]
    num_actions = wm.shape[1]

    in_align = 16 if _is_bf16(weight_dtype) else 8
    in_p = _round_up(num_inputs, in_align)
    h1p, h2p, h3p, h4p = (_round_up(h, 128) for h in (h1, h2, h3, h4))
    out_p = _round_up(num_actions, 128)

    def pad_wb(w, b, rows, cols, w_rows=None):
        wr = w if w_rows is None else w[:w_rows]
        wp = jnp.zeros((rows, cols), weight_dtype)
        wp = wp.at[:wr.shape[0], :wr.shape[1]].set(wr.astype(weight_dtype))
        bp = jnp.zeros((1, cols), jnp.float32).at[:, :b.shape[1]].set(b)
        return wp, bp

    return (
        pad_wb(w1, b1, in_p, h1p),
        pad_wb(w2, b2, h1p, h2p),
        pad_wb(w3, b3, h2p, h3p),
        pad_wb(w4, b4, h3p, h4p),
        # mean declared as Linear(h4 + 3, A): only the first h4 rows are reachable.
        pad_wb(wm, bm, h4p, out_p, w_rows=h4),
    )


# ---------------------------------------------------------------------------
# Batch-tile selection (per chip generation)
# ---------------------------------------------------------------------------
def _num_tensorcores_per_chip():
    try:
        kind = jax.devices()[0].device_kind.lower()
        if "v7" in kind or "7x" in kind:
            return 2          # v7x: 2 TensorCores per chip
    except Exception:
        pass
    return 1                  # v5e / v6e: 1 TensorCore per chip


def _pick_batch_tile(batch, compute_dtype, num_tcs):
    align = 16 if _is_bf16(compute_dtype) else 8
    cap = 4096 if _is_bf16(compute_dtype) else 2048   # VMEM headroom (v7x: 64 MiB)
    if num_tcs <= 1:
        tile = batch                       # single grid step: no per-step overhead
    else:
        per_tc = -(-batch // num_tcs)      # >= 1 step per TC
        tile = per_tc if per_tc <= 512 else -(-per_tc // 2)   # >= 2 steps/TC if big
    tile = max(align, min(_round_up(tile, align), cap))
    return tile


# ---------------------------------------------------------------------------
# pallas_call wrapper
# ---------------------------------------------------------------------------
_SINGLE_BUFFER_WEIGHTS_OK = None   # lazily probed pipeline_mode support


def _invariant_spec(arr, single_buffer):
    idx = lambda i: (0, 0)
    if single_buffer:
        # Grid-invariant weights: constant index map -> never re-copied, so a
        # single buffer suffices (halves their VMEM footprint).
        return pl.BlockSpec(arr.shape, idx, pipeline_mode=pl.Buffered(buffer_count=1))
    return pl.BlockSpec(arr.shape, idx)


def _run_pallas(state_p, flat_params, batch_tile, out_p, single_buffer):
    Bp, in_p = state_p.shape
    in_specs = [pl.BlockSpec((batch_tile, in_p), lambda i: (i, 0))]  # state tile
    in_specs += [_invariant_spec(a, single_buffer) for a in flat_params]
    out_spec = pl.BlockSpec((batch_tile, out_p), lambda i: (i, 0))

    return pl.pallas_call(
        _mlp_kernel,
        out_shape=jax.ShapeDtypeStruct((Bp, out_p), jnp.float32),
        grid_spec=pltpu.PrefetchScalarGridSpec(
            num_scalar_prefetch=0,
            grid=(Bp // batch_tile,),
            in_specs=in_specs,
            out_specs=out_spec,
        ),
        compiler_params=pltpu.CompilerParams(
            dimension_semantics=("parallel",)),
    )(state_p, *flat_params)


def deterministic_policy_forward(state, padded_params, num_actions, *,
                                 batch_tile=None):
    """state: [B, num_inputs] float32 -> mean: [B, num_actions] float32."""
    global _SINGLE_BUFFER_WEIGHTS_OK
    (w1, b1), (w2, b2), (w3, b3), (w4, b4), (wm, bm) = padded_params
    flat = (w1, b1, w2, b2, w3, b3, w4, b4, wm, bm)
    B, num_inputs = state.shape
    in_p = w1.shape[0]
    out_p = wm.shape[1]
    compute_dtype = w1.dtype

    if batch_tile is None:
        batch_tile = _pick_batch_tile(B, compute_dtype, _num_tensorcores_per_chip())
    align = 16 if _is_bf16(compute_dtype) else 8
    assert batch_tile % align == 0, (batch_tile, align)

    # Pad batch to a tile multiple and features to the padded input dim.
    Bp = _round_up(B, batch_tile)
    state_p = state.astype(compute_dtype)
    if (Bp, in_p) != (B, num_inputs):
        state_p = jnp.pad(state_p, ((0, Bp - B), (0, in_p - num_inputs)))

    if _SINGLE_BUFFER_WEIGHTS_OK is None:
        try:
            out = _run_pallas(state_p, flat, batch_tile, out_p, True)
            _SINGLE_BUFFER_WEIGHTS_OK = True
        except Exception:
            _SINGLE_BUFFER_WEIGHTS_OK = False
            out = _run_pallas(state_p, flat, batch_tile, out_p, False)
    else:
        out = _run_pallas(state_p, flat, batch_tile, out_p,
                          _SINGLE_BUFFER_WEIGHTS_OK)

    return out[:B, :num_actions]


# ---------------------------------------------------------------------------
# Reference init / forward (pure JAX)
# ---------------------------------------------------------------------------
def init_params(key, num_inputs, num_actions, hidden_arr=(500, 100, 50, 9)):
    """Xavier-uniform weights (gain=1), zero biases — matches weights_init_."""
    dims = [
        (num_inputs, hidden_arr[0]),
        (hidden_arr[0], hidden_arr[1]),
        (hidden_arr[1], hidden_arr[2]),
        (hidden_arr[2], hidden_arr[3]),
        (hidden_arr[3] + 3, num_actions),   # self.mean = Linear(hidden[3]+3, A)
    ]
    params = []
    for (fan_in, fan_out) in dims:
        key, sub = jax.random.split(key)
        bound = jnp.sqrt(6.0 / (fan_in + fan_out))
        w = jax.random.uniform(sub, (fan_in, fan_out), jnp.float32,
                               minval=-bound, maxval=bound)
        b = jnp.zeros((1, fan_out), jnp.float32)
        params.append((w, b))
    return params


def _reference_forward(state, params):
    (w1, b1), (w2, b2), (w3, b3), (w4, b4), (wm, bm) = params
    x = jax.nn.relu(state @ w1 + b1)
    x = jax.nn.relu(x @ w2 + b2)
    x = jax.nn.relu(x @ w3 + b3)
    x = jax.nn.relu(x @ w4 + b4)
    return jnp.tanh(x @ wm[:9, :] + bm)   # only first 9 rows of mean weight reachable


if __name__ == "__main__":
    key = jax.random.PRNGKey(0)
    num_inputs, num_actions, batch = 16, 4, 512

    key, pk, sk = jax.random.split(key, 3)
    params = init_params(pk, num_inputs, num_actions)
    state = jax.random.normal(sk, (batch, num_inputs), jnp.float32)
    ref = _reference_forward(state, params)

    # Default (performance) path: bf16 weights/activations, f32 accumulation.
    padded_bf16 = pad_params(params)    # weight_dtype defaults to bfloat16
    mean = jax.block_until_ready(
        deterministic_policy_forward(state, padded_bf16, num_actions))
    assert mean.shape == (batch, num_actions)
    assert jnp.allclose(mean, ref, atol=5e-2, rtol=5e-2), \
        float(jnp.max(jnp.abs(mean - ref)))

    # Exact f32 path as a tight correctness anchor.
    padded_f32 = pad_params(params, weight_dtype=jnp.float32)
    mean_f32 = jax.block_until_ready(
        deterministic_policy_forward(state, padded_f32, num_actions))
    assert mean_f32.shape == (batch, num_actions)
    assert jnp.allclose(mean_f32, ref, atol=1e-5, rtol=1e-5)

    # Ragged batch (not a multiple of the tile) goes through the padding path.
    state_small = state[:37]
    mean_small = jax.block_until_ready(
        deterministic_policy_forward(state_small, padded_bf16, num_actions))
    assert mean_small.shape == (37, num_actions)
    assert jnp.allclose(mean_small, ref[:37], atol=5e-2, rtol=5e-2)

    print("KERNEL_OK")
</pallas_src>

<mosaic_0001>
module attributes {stable_mosaic.version = 11 : i64} {
  func.func @_mlp_kernel(%arg0: i32, %arg1: memref<512x16xbf16, #tpu.memory_space<vmem>>, %arg2: memref<16x512xbf16, #tpu.memory_space<vmem>>, %arg3: memref<1x512xf32, #tpu.memory_space<vmem>>, %arg4: memref<512x128xbf16, #tpu.memory_space<vmem>>, %arg5: memref<1x128xf32, #tpu.memory_space<vmem>>, %arg6: memref<128x128xbf16, #tpu.memory_space<vmem>>, %arg7: memref<1x128xf32, #tpu.memory_space<vmem>>, %arg8: memref<128x128xbf16, #tpu.memory_space<vmem>>, %arg9: memref<1x128xf32, #tpu.memory_space<vmem>>, %arg10: memref<128x128xbf16, #tpu.memory_space<vmem>>, %arg11: memref<1x128xf32, #tpu.memory_space<vmem>>, %arg12: memref<512x128xf32, #tpu.memory_space<vmem>>) attributes {dimension_semantics = [#tpu.dimension_semantics<parallel>], iteration_bounds = array<i64: 1>, scalar_prefetch = 0 : i64, scratch_operands = 0 : i64, tpu.core_type = #tpu.core_type<tc>, window_params = [{transform_indices = @transform_0, window_bounds = array<i64: 512, 16>}, {pipeline_mode = #tpu.pipeline_mode<synchronous>, transform_indices = @transform_1, window_bounds = array<i64: 16, 512>}, {pipeline_mode = #tpu.pipeline_mode<synchronous>, transform_indices = @transform_2, window_bounds = array<i64: 1, 512>}, {pipeline_mode = #tpu.pipeline_mode<synchronous>, transform_indices = @transform_3, window_bounds = array<i64: 512, 128>}, {pipeline_mode = #tpu.pipeline_mode<synchronous>, transform_indices = @transform_4, window_bounds = array<i64: 1, 128>}, {pipeline_mode = #tpu.pipeline_mode<synchronous>, transform_indices = @transform_5, window_bounds = array<i64: 128, 128>}, {pipeline_mode = #tpu.pipeline_mode<synchronous>, transform_indices = @transform_6, window_bounds = array<i64: 1, 128>}, {pipeline_mode = #tpu.pipeline_mode<synchronous>, transform_indices = @transform_7, window_bounds = array<i64: 128, 128>}, {pipeline_mode = #tpu.pipeline_mode<synchronous>, transform_indices = @transform_8, window_bounds = array<i64: 1, 128>}, {pipeline_mode = #tpu.pipeline_mode<synchronous>, transform_indices = @transform_9, window_bounds = array<i64: 128, 128>}, {pipeline_mode = #tpu.pipeline_mode<synchronous>, transform_indices = @transform_10, window_bounds = array<i64: 1, 128>}, {transform_indices = @transform_11, window_bounds = array<i64: 512, 128>}]} {
    %c0 = arith.constant 0 : index
    %c0_0 = arith.constant 0 : index
    %0 = vector.load %arg1[%c0, %c0_0] : memref<512x16xbf16, #tpu.memory_space<vmem>>, vector<512x16xbf16>
    %c0_1 = arith.constant 0 : index
    %c0_2 = arith.constant 0 : index
    %1 = vector.load %arg2[%c0_1, %c0_2] : memref<16x512xbf16, #tpu.memory_space<vmem>>, vector<16x512xbf16>
    %cst = arith.constant dense<0.000000e+00> : vector<512x512xf32>
    %2 = tpu.matmul %0, %1, %cst {dimension_numbers = #tpu.dot_dimension_numbers<[1], [0], [0], [1], [0, 0, 1, 1], [], []>} : vector<512x16xbf16>, vector<16x512xbf16>, vector<512x512xf32> -> vector<512x512xf32>
    %c0_3 = arith.constant 0 : index
    %c0_4 = arith.constant 0 : index
    %3 = vector.load %arg3[%c0_3, %c0_4] : memref<1x512xf32, #tpu.memory_space<vmem>>, vector<1x512xf32>
    %4 = vector.broadcast %3 : vector<1x512xf32> to vector<512x512xf32>
    %5 = arith.addf %2, %4 : vector<512x512xf32>
    %cst_5 = arith.constant 0.000000e+00 : f32
    %6 = vector.broadcast %cst_5 : f32 to vector<512x512xf32>
    %7 = arith.maximumf %5, %6 : vector<512x512xf32>
    %8 = arith.truncf %7 : vector<512x512xf32> to vector<512x512xbf16>
    %c0_6 = arith.constant 0 : index
    %c0_7 = arith.constant 0 : index
    %9 = vector.load %arg4[%c0_6, %c0_7] : memref<512x128xbf16, #tpu.memory_space<vmem>>, vector<512x128xbf16>
    %cst_8 = arith.constant dense<0.000000e+00> : vector<512x128xf32>
    %10 = tpu.matmul %8, %9, %cst_8 {dimension_numbers = #tpu.dot_dimension_numbers<[1], [0], [0], [1], [0, 0, 1, 1], [], []>} : vector<512x512xbf16>, vector<512x128xbf16>, vector<512x128xf32> -> vector<512x128xf32>
    %c0_9 = arith.constant 0 : index
    %c0_10 = arith.constant 0 : index
    %11 = vector.load %arg5[%c0_9, %c0_10] : memref<1x128xf32, #tpu.memory_space<vmem>>, vector<1x128xf32>
    %12 = vector.broadcast %11 : vector<1x128xf32> to vector<512x128xf32>
    %13 = arith.addf %10, %12 : vector<512x128xf32>
    %cst_11 = arith.constant 0.000000e+00 : f32
    %14 = vector.broadcast %cst_11 : f32 to vector<512x128xf32>
    %15 = arith.maximumf %13, %14 : vector<512x128xf32>
    %16 = arith.truncf %15 : vector<512x128xf32> to vector<512x128xbf16>
    %c0_12 = arith.constant 0 : index
    %c0_13 = arith.constant 0 : index
    %17 = vector.load %arg6[%c0_12, %c0_13] : memref<128x128xbf16, #tpu.memory_space<vmem>>, vector<128x128xbf16>
    %cst_14 = arith.constant dense<0.000000e+00> : vector<512x128xf32>
    %18 = tpu.matmul %16, %17, %cst_14 {dimension_numbers = #tpu.dot_dimension_numbers<[1], [0], [0], [1], [0, 0, 1, 1], [], []>} : vector<512x128xbf16>, vector<128x128xbf16>, vector<512x128xf32> -> vector<512x128xf32>
    %c0_15 = arith.constant 0 : index
    %c0_16 = arith.constant 0 : index
    %19 = vector.load %arg7[%c0_15, %c0_16] : memref<1x128xf32, #tpu.memory_space<vmem>>, vector<1x128xf32>
    %20 = vector.broadcast %19 : vector<1x128xf32> to vector<512x128xf32>
    %21 = arith.addf %18, %20 : vector<512x128xf32>
    %cst_17 = arith.constant 0.000000e+00 : f32
    %22 = vector.broadcast %cst_17 : f32 to vector<512x128xf32>
    %23 = arith.maximumf %21, %22 : vector<512x128xf32>
    %24 = arith.truncf %23 : vector<512x128xf32> to vector<512x128xbf16>
    %c0_18 = arith.constant 0 : index
    %c0_19 = arith.constant 0 : index
    %25 = vector.load %arg8[%c0_18, %c0_19] : memref<128x128xbf16, #tpu.memory_space<vmem>>, vector<128x128xbf16>
    %cst_20 = arith.constant dense<0.000000e+00> : vector<512x128xf32>
    %26 = tpu.matmul %24, %25, %cst_20 {dimension_numbers = #tpu.dot_dimension_numbers<[1], [0], [0], [1], [0, 0, 1, 1], [], []>} : vector<512x128xbf16>, vector<128x128xbf16>, vector<512x128xf32> -> vector<512x128xf32>
    %c0_21 = arith.constant 0 : index
    %c0_22 = arith.constant 0 : index
    %27 = vector.load %arg9[%c0_21, %c0_22] : memref<1x128xf32, #tpu.memory_space<vmem>>, vector<1x128xf32>
    %28 = vector.broadcast %27 : vector<1x128xf32> to vector<512x128xf32>
    %29 = arith.addf %26, %28 : vector<512x128xf32>
    %cst_23 = arith.constant 0.000000e+00 : f32
    %30 = vector.broadcast %cst_23 : f32 to vector<512x128xf32>
    %31 = arith.maximumf %29, %30 : vector<512x128xf32>
    %32 = arith.truncf %31 : vector<512x128xf32> to vector<512x128xbf16>
    %c0_24 = arith.constant 0 : index
    %c0_25 = arith.constant 0 : index
    %33 = vector.load %arg10[%c0_24, %c0_25] : memref<128x128xbf16, #tpu.memory_space<vmem>>, vector<128x128xbf16>
    %cst_26 = arith.constant dense<0.000000e+00> : vector<512x128xf32>
    %34 = tpu.matmul %32, %33, %cst_26 {dimension_numbers = #tpu.dot_dimension_numbers<[1], [0], [0], [1], [0, 0, 1, 1], [], []>} : vector<512x128xbf16>, vector<128x128xbf16>, vector<512x128xf32> -> vector<512x128xf32>
    %c0_27 = arith.constant 0 : index
    %c0_28 = arith.constant 0 : index
    %35 = vector.load %arg11[%c0_27, %c0_28] : memref<1x128xf32, #tpu.memory_space<vmem>>, vector<1x128xf32>
    %36 = vector.broadcast %35 : vector<1x128xf32> to vector<512x128xf32>
    %37 = arith.addf %34, %36 : vector<512x128xf32>
    %38 = math.tanh %37 : vector<512x128xf32>
    %c0_29 = arith.constant 0 : index
    %c0_30 = arith.constant 0 : index
    %39 = vector.load %arg12[%c0_29, %c0_30] : memref<512x128xf32, #tpu.memory_space<vmem>>, vector<512x128xf32>
    tpu.vector_store %arg12[%c0_29, %c0_30], %38 {strides = array<i32>} : memref<512x128xf32, #tpu.memory_space<vmem>>, vector<512x128xf32>,
    return
  }
  func.func @transform_0(%arg0: i32) -> (i32, i32) {
    %c0_i32 = arith.constant 0 : i32
    %c0_i32_0 = arith.constant 0 : i32
    return %arg0, %c0_i32 : i32, i32
  }
  func.func @transform_1(%arg0: i32) -> (i32, i32) {
    %c0_i32 = arith.constant 0 : i32
    %c0_i32_0 = arith.constant 0 : i32
    %c0_i32_1 = arith.constant 0 : i32
    return %c0_i32, %c0_i32_0 : i32, i32
  }
  func.func @transform_2(%arg0: i32) -> (i32, i32) {
    %c0_i32 = arith.constant 0 : i32
    %c0_i32_0 = arith.constant 0 : i32
    %c0_i32_1 = arith.constant 0 : i32
    return %c0_i32, %c0_i32_0 : i32, i32
  }
  func.func @transform_3(%arg0: i32) -> (i32, i32) {
    %c0_i32 = arith.constant 0 : i32
    %c0_i32_0 = arith.constant 0 : i32
    %c0_i32_1 = arith.constant 0 : i32
    return %c0_i32, %c0_i32_0 : i32, i32
  }
  func.func @transform_4(%arg0: i32) -> (i32, i32) {
    %c0_i32 = arith.constant 0 : i32
    %c0_i32_0 = arith.constant 0 : i32
    %c0_i32_1 = arith.constant 0 : i32
    return %c0_i32, %c0_i32_0 : i32, i32
  }
  func.func @transform_5(%arg0: i32) -> (i32, i32) {
    %c0_i32 = arith.constant 0 : i32
    %c0_i32_0 = arith.constant 0 : i32
    %c0_i32_1 = arith.constant 0 : i32
    return %c0_i32, %c0_i32_0 : i32, i32
  }
  func.func @transform_6(%arg0: i32) -> (i32, i32) {
    %c0_i32 = arith.constant 0 : i32
    %c0_i32_0 = arith.constant 0 : i32
    %c0_i32_1 = arith.constant 0 : i32
    return %c0_i32, %c0_i32_0 : i32, i32
  }
  func.func @transform_7(%arg0: i32) -> (i32, i32) {
    %c0_i32 = arith.constant 0 : i32
    %c0_i32_0 = arith.constant 0 : i32
    %c0_i32_1 = arith.constant 0 : i32
    return %c0_i32, %c0_i32_0 : i32, i32
  }
  func.func @transform_8(%arg0: i32) -> (i32, i32) {
    %c0_i32 = arith.constant 0 : i32
    %c0_i32_0 = arith.constant 0 : i32
    %c0_i32_1 = arith.constant 0 : i32
    return %c0_i32, %c0_i32_0 : i32, i32
  }
  func.func @transform_9(%arg0: i32) -> (i32, i32) {
    %c0_i32 = arith.constant 0 : i32
    %c0_i32_0 = arith.constant 0 : i32
    %c0_i32_1 = arith.constant 0 : i32
    return %c0_i32, %c0_i32_0 : i32, i32
  }
  func.func @transform_10(%arg0: i32) -> (i32, i32) {
    %c0_i32 = arith.constant 0 : i32
    %c0_i32_0 = arith.constant 0 : i32
    %c0_i32_1 = arith.constant 0 : i32
    return %c0_i32, %c0_i32_0 : i32, i32
  }
  func.func @transform_11(%arg0: i32) -> (i32, i32) {
    %c0_i32 = arith.constant 0 : i32
    %c0_i32_0 = arith.constant 0 : i32
    return %arg0, %c0_i32 : i32, i32
  }
}

module attributes {stable_mosaic.version = 11 : i64} {
  func.func @_mlp_kernel(%arg0: i32, %arg1: memref<512x16xbf16, #tpu.memory_space<vmem>>, %arg2: memref<16x512xbf16, #tpu.memory_space<vmem>>, %arg3: memref<1x512xf32, #tpu.memory_space<vmem>>, %arg4: memref<512x128xbf16, #tpu.memory_space<vmem>>, %arg5: memref<1x128xf32, #tpu.memory_space<vmem>>, %arg6: memref<128x128xbf16, #tpu.memory_space<vmem>>, %arg7: memref<1x128xf32, #tpu.memory_space<vmem>>, %arg8: memref<128x128xbf16, #tpu.memory_space<vmem>>, %arg9: memref<1x128xf32, #tpu.memory_space<vmem>>, %arg10: memref<128x128xbf16, #tpu.memory_space<vmem>>, %arg11: memref<1x128xf32, #tpu.memory_space<vmem>>, %arg12: memref<512x128xf32, #tpu.memory_space<vmem>>) attributes {dimension_semantics = [#tpu.dimension_semantics<parallel>], iteration_bounds = array<i64: 1>, scalar_prefetch = 0 : i64, scratch_operands = 0 : i64, tpu.core_type = #tpu.core_type<tc>, window_params = [{transform_indices = @transform_0, window_bounds = array<i64: 512, 16>}, {pipeline_mode = #tpu.pipeline_mode<synchronous>, transform_indices = @transform_1, window_bounds = array<i64: 16, 512>}, {pipeline_mode = #tpu.pipeline_mode<synchronous>, transform_indices = @transform_2, window_bounds = array<i64: 1, 512>}, {pipeline_mode = #tpu.pipeline_mode<synchronous>, transform_indices = @transform_3, window_bounds = array<i64: 512, 128>}, {pipeline_mode = #tpu.pipeline_mode<synchronous>, transform_indices = @transform_4, window_bounds = array<i64: 1, 128>}, {pipeline_mode = #tpu.pipeline_mode<synchronous>, transform_indices = @transform_5, window_bounds = array<i64: 128, 128>}, {pipeline_mode = #tpu.pipeline_mode<synchronous>, transform_indices = @transform_6, window_bounds = array<i64: 1, 128>}, {pipeline_mode = #tpu.pipeline_mode<synchronous>, transform_indices = @transform_7, window_bounds = array<i64: 128, 128>}, {pipeline_mode = #tpu.pipeline_mode<synchronous>, transform_indices = @transform_8, window_bounds = array<i64: 1, 128>}, {pipeline_mode = #tpu.pipeline_mode<synchronous>, transform_indices = @transform_9, window_bounds = array<i64: 128, 128>}, {pipeline_mode = #tpu.pipeline_mode<synchronous>, transform_indices = @transform_10, window_bounds = array<i64: 1, 128>}, {transform_indices = @transform_11, window_bounds = array<i64: 512, 128>}]} {
    %c0 = arith.constant 0 : index
    %c0_0 = arith.constant 0 : index
    %0 = vector.load %arg1[%c0, %c0_0] : memref<512x16xbf16, #tpu.memory_space<vmem>>, vector<512x16xbf16>
    %c0_1 = arith.constant 0 : index
    %c0_2 = arith.constant 0 : index
    %1 = vector.load %arg2[%c0_1, %c0_2] : memref<16x512xbf16, #tpu.memory_space<vmem>>, vector<16x512xbf16>
    %cst = arith.constant dense<0.000000e+00> : vector<512x512xf32>
    %2 = tpu.matmul %0, %1, %cst {dimension_numbers = #tpu.dot_dimension_numbers<[1], [0], [0], [1], [0, 0, 1, 1], [], []>} : vector<512x16xbf16>, vector<16x512xbf16>, vector<512x512xf32> -> vector<512x512xf32>
    %c0_3 = arith.constant 0 : index
    %c0_4 = arith.constant 0 : index
    %3 = vector.load %arg3[%c0_3, %c0_4] : memref<1x512xf32, #tpu.memory_space<vmem>>, vector<1x512xf32>
    %4 = vector.broadcast %3 : vector<1x512xf32> to vector<512x512xf32>
    %5 = arith.addf %2, %4 : vector<512x512xf32>
    %cst_5 = arith.constant 0.000000e+00 : f32
    %6 = vector.broadcast %cst_5 : f32 to vector<512x512xf32>
    %7 = arith.maximumf %5, %6 : vector<512x512xf32>
    %8 = arith.truncf %7 : vector<512x512xf32> to vector<512x512xbf16>
    %c0_6 = arith.constant 0 : index
    %c0_7 = arith.constant 0 : index
    %9 = vector.load %arg4[%c0_6, %c0_7] : memref<512x128xbf16, #tpu.memory_space<vmem>>, vector<512x128xbf16>
    %cst_8 = arith.constant dense<0.000000e+00> : vector<512x128xf32>
    %10 = tpu.matmul %8, %9, %cst_8 {dimension_numbers = #tpu.dot_dimension_numbers<[1], [0], [0], [1], [0, 0, 1, 1], [], []>} : vector<512x512xbf16>, vector<512x128xbf16>, vector<512x128xf32> -> vector<512x128xf32>
    %c0_9 = arith.constant 0 : index
    %c0_10 = arith.constant 0 : index
    %11 = vector.load %arg5[%c0_9, %c0_10] : memref<1x128xf32, #tpu.memory_space<vmem>>, vector<1x128xf32>
    %12 = vector.broadcast %11 : vector<1x128xf32> to vector<512x128xf32>
    %13 = arith.addf %10, %12 : vector<512x128xf32>
    %cst_11 = arith.constant 0.000000e+00 : f32
    %14 = vector.broadcast %cst_11 : f32 to vector<512x128xf32>
    %15 = arith.maximumf %13, %14 : vector<512x128xf32>
    %16 = arith.truncf %15 : vector<512x128xf32> to vector<512x128xbf16>
    %c0_12 = arith.constant 0 : index
    %c0_13 = arith.constant 0 : index
    %17 = vector.load %arg6[%c0_12, %c0_13] : memref<128x128xbf16, #tpu.memory_space<vmem>>, vector<128x128xbf16>
    %cst_14 = arith.constant dense<0.000000e+00> : vector<512x128xf32>
    %18 = tpu.matmul %16, %17, %cst_14 {dimension_numbers = #tpu.dot_dimension_numbers<[1], [0], [0], [1], [0, 0, 1, 1], [], []>} : vector<512x128xbf16>, vector<128x128xbf16>, vector<512x128xf32> -> vector<512x128xf32>
    %c0_15 = arith.constant 0 : index
    %c0_16 = arith.constant 0 : index
    %19 = vector.load %arg7[%c0_15, %c0_16] : memref<1x128xf32, #tpu.memory_space<vmem>>, vector<1x128xf32>
    %20 = vector.broadcast %19 : vector<1x128xf32> to vector<512x128xf32>
    %21 = arith.addf %18, %20 : vector<512x128xf32>
    %cst_17 = arith.constant 0.000000e+00 : f32
    %22 = vector.broadcast %cst_17 : f32 to vector<512x128xf32>
    %23 = arith.maximumf %21, %22 : vector<512x128xf32>
    %24 = arith.truncf %23 : vector<512x128xf32> to vector<512x128xbf16>
    %c0_18 = arith.constant 0 : index
    %c0_19 = arith.constant 0 : index
    %25 = vector.load %arg8[%c0_18, %c0_19] : memref<128x128xbf16, #tpu.memory_space<vmem>>, vector<128x128xbf16>
    %cst_20 = arith.constant dense<0.000000e+00> : vector<512x128xf32>
    %26 = tpu.matmul %24, %25, %cst_20 {dimension_numbers = #tpu.dot_dimension_numbers<[1], [0], [0], [1], [0, 0, 1, 1], [], []>} : vector<512x128xbf16>, vector<128x128xbf16>, vector<512x128xf32> -> vector<512x128xf32>
    %c0_21 = arith.constant 0 : index
    %c0_22 = arith.constant 0 : index
    %27 = vector.load %arg9[%c0_21, %c0_22] : memref<1x128xf32, #tpu.memory_space<vmem>>, vector<1x128xf32>
    %28 = vector.broadcast %27 : vector<1x128xf32> to vector<512x128xf32>
    %29 = arith.addf %26, %28 : vector<512x128xf32>
    %cst_23 = arith.constant 0.000000e+00 : f32
    %30 = vector.broadcast %cst_23 : f32 to vector<512x128xf32>
    %31 = arith.maximumf %29, %30 : vector<512x128xf32>
    %32 = arith.truncf %31 : vector<512x128xf32> to vector<512x128xbf16>
    %c0_24 = arith.constant 0 : index
    %c0_25 = arith.constant 0 : index
    %33 = vector.load %arg10[%c0_24, %c0_25] : memref<128x128xbf16, #tpu.memory_space<vmem>>, vector<128x128xbf16>
    %cst_26 = arith.constant dense<0.000000e+00> : vector<512x128xf32>
    %34 = tpu.matmul %32, %33, %cst_26 {dimension_numbers = #tpu.dot_dimension_numbers<[1], [0], [0], [1], [0, 0, 1, 1], [], []>} : vector<512x128xbf16>, vector<128x128xbf16>, vector<512x128xf32> -> vector<512x128xf32>
    %c0_27 = arith.constant 0 : index
    %c0_28 = arith.constant 0 : index
    %35 = vector.load %arg11[%c0_27, %c0_28] : memref<1x128xf32, #tpu.memory_space<vmem>>, vector<1x128xf32>
    %36 = vector.broadcast %35 : vector<1x128xf32> to vector<512x128xf32>
    %37 = arith.addf %34, %36 : vector<512x128xf32>
    %38 = math.tanh %37 : vector<512x128xf32>
    %c0_29 = arith.constant 0 : index
    %c0_30 = arith.constant 0 : index
    %39 = vector.load %arg12[%c0_29, %c0_30] : memref<512x128xf32, #tpu.memory_space<vmem>>, vector<512x128xf32>
    tpu.vector_store %arg12[%c0_29, %c0_30], %38 {strides = array<i32>} : memref<512x128xf32, #tpu.memory_space<vmem>>, vector<512x128xf32>,
    return
  }
  func.func @transform_0(%arg0: i32) -> (i32, i32) {
    %c0_i32 = arith.constant 0 : i32
    %c0_i32_0 = arith.constant 0 : i32
    return %arg0, %c0_i32 : i32, i32
  }
  func.func @transform_1(%arg0: i32) -> (i32, i32) {
    %c0_i32 = arith.constant 0 : i32
    %c0_i32_0 = arith.constant 0 : i32
    %c0_i32_1 = arith.constant 0 : i32
    return %c0_i32, %c0_i32_0 : i32, i32
  }
  func.func @transform_2(%arg0: i32) -> (i32, i32) {
    %c0_i32 = arith.constant 0 : i32
    %c0_i32_0 = arith.constant 0 : i32
    %c0_i32_1 = arith.constant 0 : i32
    return %c0_i32, %c0_i32_0 : i32, i32
  }
  func.func @transform_3(%arg0: i32) -> (i32, i32) {
    %c0_i32 = arith.constant 0 : i32
    %c0_i32_0 = arith.constant 0 : i32
    %c0_i32_1 = arith.constant 0 : i32
    return %c0_i32, %c0_i32_0 : i32, i32
  }
  func.func @transform_4(%arg0: i32) -> (i32, i32) {
    %c0_i32 = arith.constant 0 : i32
    %c0_i32_0 = arith.constant 0 : i32
    %c0_i32_1 = arith.constant 0 : i32
    return %c0_i32, %c0_i32_0 : i32, i32
  }
  func.func @transform_5(%arg0: i32) -> (i32, i32) {
    %c0_i32 = arith.constant 0 : i32
    %c0_i32_0 = arith.constant 0 : i32
    %c0_i32_1 = arith.constant 0 : i32
    return %c0_i32, %c0_i32_0 : i32, i32
  }
  func.func @transform_6(%arg0: i32) -> (i32, i32) {
    %c0_i32 = arith.constant 0 : i32
    %c0_i32_0 = arith.constant 0 : i32
    %c0_i32_1 = arith.constant 0 : i32
    return %c0_i32, %c0_i32_0 : i32, i32
  }
  func.func @transform_7(%arg0: i32) -> (i32, i32) {
    %c0_i32 = arith.constant 0 : i32
    %c0_i32_0 = arith.constant 0 : i32
    %c0_i32_1 = arith.constant 0 : i32
    return %c0_i32, %c0_i32_0 : i32, i32
  }
  func.func @transform_8(%arg0: i32) -> (i32, i32) {
    %c0_i32 = arith.constant 0 : i32
    %c0_i32_0 = arith.constant 0 : i32
    %c0_i32_1 = arith.constant 0 : i32
    return %c0_i32, %c0_i32_0 : i32, i32
  }
  func.func @transform_9(%arg0: i32) -> (i32, i32) {
    %c0_i32 = arith.constant 0 : i32
    %c0_i32_0 = arith.constant 0 : i32
    %c0_i32_1 = arith.constant 0 : i32
    return %c0_i32, %c0_i32_0 : i32, i32
  }
  func.func @transform_10(%arg0: i32) -> (i32, i32) {
    %c0_i32 = arith.constant 0 : i32
    %c0_i32_0 = arith.constant 0 : i32
    %c0_i32_1 = arith.constant 0 : i32
    return %c0_i32, %c0_i32_0 : i32, i32
  }
  func.func @transform_11(%arg0: i32) -> (i32, i32) {
    %c0_i32 = arith.constant 0 : i32
    %c0_i32_0 = arith.constant 0 : i32
    return %arg0, %c0_i32 : i32, i32
  }
}

</mosaic_0001>

<bundles_post_ra>
// kernel: tpu_custom_call.1
= control target key start
LH: loop header
LB: loop body
LE: loop exit
PB: predicated region body
PF: predicated region fallthrough
CT: control target
= control target key end

     0   :  { %16 = vsyncpa [#allocation3], 0  ;;  %s6450_s0 = inlined_call_operand.vmem [shape: bf16[512,16], index: 0, kind: input, shape index: {}]   ;;  %s6451_s1 = inlined_call_operand.hbm [shape: bf16[16,512], index: 1, kind: input, shape index: {}]   ;;  %s6452_s2 = inlined_call_operand.hbm [shape: f32[1,512], index: 2, kind: input, shape index: {}]   ;;  %s6453_s3 = inlined_call_operand.vmem [shape: bf16[512,128], index: 3, kind: input, shape index: {}]   ;;  %s6454_s4 = inlined_call_operand.vmem [shape: f32[1,128], index: 4, kind: input, shape index: {}]   ;;  %s6455_s5 = inlined_call_operand.hbm [shape: bf16[128,128], index: 5, kind: input, shape index: {}]   ;;  %s6456_s6 = inlined_call_operand.vmem [shape: f32[1,128], index: 6, kind: input, shape index: {}]   ;;  %s6457_s7 = inlined_call_operand.hbm [shape: bf16[128,128], index: 7, kind: input, shape index: {}]   ;;  %s6458_s8 = inlined_call_operand.hbm [shape: f32[1,128], index: 8, kind: input, shape index: {}]   ;;  %s6459_s9 = inlined_call_operand.vmem [shape: bf16[128,128], index: 9, kind: input, shape index: {}]   ;;  %s6460_s10 = inlined_call_operand.vmem [shape: f32[1,128], index: 10, kind: input, shape index: {}]   ;;  %s6461_s11 = inlined_call_operand.hbm [shape: f32[512,128], index: 11, kind: output, shape index: {}]  }
   0x1   :  { %17 = vsyncpa [#allocation6], 0 }
   0x2   :  { %18 = vsyncpa [#allocation9], 0 }
   0x3   :  { %19 = vsyncpa [#allocation4], 0  ;;  %s5013_s17 = smov [#allocation5]   ;;  %s4873_s21 = scalar_lea.hbm %s6452_s2, 64 }
   0x4   :  { %s40_s18 = sshll.u32 %s5013_s17, 4  ;;  %p4874_p0 = scmp.ne.s32.totalorder %s6452_s2, %s4873_s21  ;;  %s41_s18 = int_to_ptr.vmem [resolvable:$true] %s40_s18 }
   0x5   :  { %p4877_p1 = scmp.lt.u32.totalorder %s4873_s21, %s6452_s2 }
   0x7   :  { %p4879_p2 = pnand %p4877_p1, %p4874_p0 }
   0x9   :  { %4882 = shalt.err (!%p4879_p2)
}
   0xa   :  { %s4883_s26 = scalar_lea.vmem %s41_s18, 64  ;;  %p4888_p4 = scmp.lt.s32.totalorder %s41_s18, %s41_s18 }
   0xb   :  { %p4884_p3 = scmp.ne.s32.totalorder %s41_s18, %s4883_s26  ;;  %p4889_p5 = scmp.lt.s32.totalorder %s4883_s26, %s4883_s26 }
   0xd   :  { %p4890_p6 = por %p4889_p5, %p4888_p4 }
   0xf   :  { %p4891_p7 = pnand %p4890_p6, %p4884_p3 }
  0x11   :  { %4894 = shalt.err (!%p4891_p7)
}
  0x12   :  { %43 = dma.hbm_to_vmem [thread:$0]  %s6452_s2, 64, %s41_s18, [#allocation6]  }
  0x13   :  { %s5014_s29 = smov [#allocation8]   ;;  %s5015_s12 = smov [#allocation2]  }
  0x14   :  { %s67_s30 = sshll.u32 %s5014_s29, 4  ;;  %s27_s13 = sshll.u32 %s5015_s12, 4  ;;  %s68_s30 = int_to_ptr.vmem [resolvable:$true] %s67_s30  ;;  %s28_s13 = int_to_ptr.vmem [resolvable:$true] %s27_s13 }
  0x15   :  { %s4895_s16 = scalar_lea.hbm %s6457_s7, 1024 }
  0x16   :  { %p4896_p8 = scmp.ne.s32.totalorder %s6457_s7, %s4895_s16  ;;  %p4899_p9 = scmp.lt.u32.totalorder %s4895_s16, %s6457_s7 }
  0x18   :  { %p4901_p10 = pnand %p4899_p9, %p4896_p8 }
  0x1a   :  { %4904 = shalt.err (!%p4901_p10)
}
  0x1b   :  { %s4905_s2 = scalar_lea.vmem %s68_s30, 1024  ;;  %p4910_p12 = scmp.lt.s32.totalorder %s68_s30, %s68_s30 }
  0x1c   :  { %p4906_p11 = scmp.ne.s32.totalorder %s68_s30, %s4905_s2  ;;  %p4911_p13 = scmp.lt.s32.totalorder %s4905_s2, %s4905_s2 }
  0x1e   :  { %p4912_p0 = por %p4911_p13, %p4910_p12 }
  0x20   :  { %p4913_p1 = pnand %p4912_p0, %p4906_p11 }
  0x22   :  { %4916 = shalt.err (!%p4913_p1)
}
  0x23   :  { %s5016_s18 = smov 64   ;;  %s5017_s22 = smov 4  }
  0x24   :  { %73 = dma.hbm_to_vmem [thread:$0]  %s6457_s7, 1024, %s68_s30, [#allocation9], %s5016_s18, %s5016_s18, %s5017_s22  }
  0x25   :  { %s4917_s27 = scalar_lea.hbm %s6451_s1, 512 }
  0x26   :  { %p4918_p2 = scmp.ne.s32.totalorder %s6451_s1, %s4917_s27  ;;  %p4921_p3 = scmp.lt.u32.totalorder %s4917_s27, %s6451_s1 }
  0x28   :  { %p4923_p4 = pnand %p4921_p3, %p4918_p2 }
  0x2a   :  { %4926 = shalt.err (!%p4923_p4)
}
  0x2b   :  { %s4927_s15 = scalar_lea.vmem %s28_s13, 512  ;;  %p4932_p6 = scmp.lt.s32.totalorder %s28_s13, %s28_s13 }
  0x2c   :  { %p4928_p5 = scmp.ne.s32.totalorder %s28_s13, %s4927_s15  ;;  %p4933_p7 = scmp.lt.s32.totalorder %s4927_s15, %s4927_s15 }
  0x2e   :  { %p4934_p8 = por %p4933_p7, %p4932_p6 }
  0x30   :  { %p4935_p9 = pnand %p4934_p8, %p4928_p5 }
  0x32   :  { %4938 = shalt.err (!%p4935_p9)
}
  0x33   :  { %s5018_s7 = smov 256   ;;  %s5019_s30 = smov 16  }
  0x34   :  { %33 = dma.hbm_to_vmem [thread:$0]  %s6451_s1, 512, %s28_s13, [#allocation3], %s5018_s7, %s5018_s7, %s5019_s30  }
  0x35   :  { %s5020_s19 = smov [#allocation7]   ;;  %s5021_s21 = smov [#allocation10]  }
  0x36   :  { %s53_s20 = sshll.u32 %s5020_s19, 4  ;;  %s80_s2 = sshll.u32 %s5021_s21, 4  ;;  %s54_s20 = int_to_ptr.vmem [resolvable:$true] %s53_s20  ;;  %s81_s2 = int_to_ptr.vmem [resolvable:$true] %s80_s2 }
  0x37   :  { %s4939_s25 = scalar_lea.hbm %s6455_s5, 1024 }
  0x38   :  { %p4940_p10 = scmp.ne.s32.totalorder %s6455_s5, %s4939_s25  ;;  %p4943_p11 = scmp.lt.u32.totalorder %s4939_s25, %s6455_s5 }
  0x3a   :  { %p4945_p12 = pnand %p4943_p11, %p4940_p10 }
  0x3c   :  { %4948 = shalt.err (!%p4945_p12)
}
  0x3d   :  { %s4949_s1 = scalar_lea.vmem %s54_s20, 1024  ;;  %p4954_p0 = scmp.lt.s32.totalorder %s54_s20, %s54_s20 }
  0x3e   :  { %p4950_p13 = scmp.ne.s32.totalorder %s54_s20, %s4949_s1  ;;  %p4955_p1 = scmp.lt.s32.totalorder %s4949_s1, %s4949_s1 }
  0x40   :  { %p4956_p2 = por %p4955_p1, %p4954_p0 }
  0x42   :  { %p4957_p3 = pnand %p4956_p2, %p4950_p13 }
  0x44   :  { %4960 = shalt.err (!%p4957_p3)
}
  0x45   :  { %59 = dma.hbm_to_vmem [thread:$0]  %s6455_s5, 1024, %s54_s20, [#allocation6], %s5016_s18, %s5016_s18, %s5017_s22  }
  0x46   :  { %s4961_s7 = scalar_lea.hbm %s6458_s8, 16 }
  0x47   :  { %p4962_p4 = scmp.ne.s32.totalorder %s6458_s8, %s4961_s7  ;;  %p4965_p5 = scmp.lt.u32.totalorder %s4961_s7, %s6458_s8 }
  0x49   :  { %p4967_p6 = pnand %p4965_p5, %p4962_p4 }
  0x4b   :  { %4970 = shalt.err (!%p4967_p6)
}
  0x4c   :  { %s4971_s21 = scalar_lea.vmem %s81_s2, 16  ;;  %s4975_s23 = scalar_lea.vmem %s81_s2, 32 }
  0x4d   :  { %p4972_p7 = scmp.ne.s32.totalorder %s81_s2, %s4971_s21  ;;  %p4976_p8 = scmp.lt.s32.totalorder %s81_s2, %s81_s2 }
  0x4e   :  { %p4977_p9 = scmp.lt.s32.totalorder %s4975_s23, %s4971_s21 }
  0x50   :  { %p4978_p10 = por %p4977_p9, %p4976_p8 }
  0x52   :  { %p4979_p11 = pnand %p4978_p10, %p4972_p7 }
  0x54   :  { %4982 = shalt.err (!%p4979_p11)
}
  0x55   :  { %83 = dma.hbm_to_vmem [thread:$0]  %s6458_s8, 16, %s81_s2, [#allocation9]  }
  0x56   :  { %5005 = dma.done.wait [#allocation3], 512  }
  0x57   :  { %5006 = vsyncadd [#allocation3], 4294966784 }
  0x58   :  { %5007 = dma.done.wait [#allocation6], 1088  }
  0x59   :  { %5008 = vsyncadd [#allocation6], 4294966208 }
  0x5a   :  { %5009 = dma.done.wait [#allocation9], 1040  }
  0x5b   :  { %5010 = vsyncadd [#allocation9], 4294966256  ;;  %v5022_v0 = vmov 0   ;;  %v4644_v1 = vld [vmem:[#allocation2 + $0x4] ss:$16 sps:$4 sm:$0xff]   ;;  %vm374_vm0 = vcmask 130048   ;;  %v174_v53 = vlaneseq }
  0x5c   :  { %503 = vmatprep.mubr.bf16.mxu0 %v5022_v0  ;;  %743 = vmatprep.mubr.bf16.mxu1 %v5022_v0  ;;  %v4646_v2 = vld [vmem:[#allocation2] ss:$16 sps:$4 sm:$0xff]   ;;  %v4654_v5 = vld [vmem:[%s6453_s3 + $0x8] sm:$0xff]   ;;  %v4659_v8 = vld [vmem:[%s6453_s3 + $0x18] sm:$0xff]  }
  0x5d   :  { %471 = vmatprep.subr.bf16.mxu0 %v4644_v1  ;;  %v5157_v3 = vld [vmem:[%s6450_s0] sm:$0xff]   ;;  %4437 = vmatprep.subr.bf16.mxu1 %v4644_v1  ;;  %v5173_v6 = vld [vmem:[%s6450_s0 + $0x8] sm:$0xff]   ;;  %v4656_v7 = vld [vmem:[%s6453_s3 + $0x10] sm:$0xff]   ;;  %v5483_v54 = vshrl.u32 %v174_v53, 7 }
  0x5e   :  { %472 = vmatpush1.bf16.msra.mxu0 %v4646_v2  ;;  %4438 = vmatpush1.bf16.msra.mxu1 %v4646_v2  ;;  %v4651_v4 = vld [vmem:[%s6453_s3] sm:$0xff]   ;;  %v5189_v9 = vld [vmem:[%s6450_s0 + $0x10] sm:$0xff]   ;;  %v4664_v11 = vld [vmem:[%s6453_s3 + $0x28] sm:$0xff]  }
  0x5f   :  { %1824 = vmatprep.subr.bf16.mxu0 %v5022_v0  ;;  %v4661_v10 = vld [vmem:[%s6453_s3 + $0x20] sm:$0xff]   ;;  %v5205_v12 = vld [vmem:[%s6450_s0 + $0x18] sm:$0xff]   ;;  %v4666_v13 = vld [vmem:[%s6453_s3 + $0x30] sm:$0xff]   ;;  %v176_v55 = vsub.s32 0, %v5483_v54  ;;  %v180_v57 = vsub.s32 1, %v5483_v54 }
  0x60   :  { %v4669_v14 = vld [vmem:[%s6453_s3 + $0x38] sm:$0xff]   ;;  %v5220_v15 = vld [vmem:[%s6450_s0 + $0x20] sm:$0xff]   ;;  %v4674_v17 = vld [vmem:[%s6453_s3 + $0x48] sm:$0xff]  }
  0x61   :  { %3953 = vmatmul.mubr.msk.bf16.vlgmr.msra.gmra.mrb[0].mxu0 %vm374_vm0, %v5157_v3  ;;  %v4671_v16 = vld [vmem:[%s6453_s3 + $0x40] sm:$0xff]   ;;  %v5236_v18 = vld [vmem:[%s6450_s0 + $0x28] sm:$0xff]   ;;  %v4676_v19 = vld [vmem:[%s6453_s3 + $0x50] sm:$0xff]  }
  0x62   :  { %513 = vmatprep.mubr.bf16.mxu0 %v5022_v0  ;;  %1825 = vmatpush1.bf16.msra.mxu0 %v4651_v4  ;;  %v4679_v20 = vld [vmem:[%s6453_s3 + $0x58] sm:$0xff]   ;;  %v5252_v21 = vld [vmem:[%s6450_s0 + $0x30] sm:$0xff]   ;;  %v4681_v22 = vld [vmem:[%s6453_s3 + $0x60] sm:$0xff]  }
  0x63   :  { %1826 = vmatprep.subr.bf16.mxu0 %v5022_v0  ;;  %v5265_v23 = vld [vmem:[%s6450_s0 + $0x38] sm:$0xff]   ;;  %v4684_v24 = vld [vmem:[%s6453_s3 + $0x68] sm:$0xff]   ;;  %v5276_v25 = vld [vmem:[%s6450_s0 + $0xc0] sm:$0xff]  }
  0x64   :  { %v4686_v26 = vld [vmem:[#allocation2 + $0x8] ss:$16 sps:$4 sm:$0xff]   ;;  %v4688_v27 = vld [vmem:[#allocation2 + $0xc] ss:$16 sps:$4 sm:$0xff]   ;;  %v5282_v28 = vld [vmem:[%s6450_s0 + $0x40] sm:$0xff]   ;;  %3977 = vmatmul.mubr.msk.bf16.vlgmr.msra.gmra.mrb[0].mxu1 %vm374_vm0, %v5276_v25 }
  0x65   :  { %v4690_v29 = vld [vmem:[%s6453_s3 + $0x70] sm:$0xff]   ;;  %824 = vmatprep.subr.bf16.mxu1 %v4688_v27  ;;  %753 = vmatprep.mubr.bf16.mxu1 %v5022_v0  ;;  %v4689_v30 = vld [vmem:[%s6450_s0 + $0xc8] sm:$0xff]   ;;  %v4692_v31 = vld [vmem:[%s6453_s3 + $0x78] sm:$0xff]  }
  0x66   :  { %1827 = vmatpush1.bf16.msra.mxu0 %v4654_v5  ;;  %825 = vmatpush1.bf16.msra.mxu1 %v4686_v26  ;;  %v5304_v32 = vld [vmem:[%s6450_s0 + $0x48] sm:$0xff]   ;;  %v4691_v33 = vld [vmem:[%s6450_s0 + $0xd0] sm:$0xff]   ;;  %v4693_v35 = vld [vmem:[%s6450_s0 + $0xd8] sm:$0xff]  }
  0x67   :  { %1828 = vmatprep.subr.bf16.mxu0 %v5022_v0  ;;  %v5320_v34 = vld [vmem:[%s6450_s0 + $0x50] sm:$0xff]   ;;  %v5331_v36 = vld [vmem:[%s6450_s0 + $0x58] sm:$0xff]   ;;  %v4694_v37 = vld [vmem:[%s6450_s0 + $0xe0] sm:$0xff]  }
  0x68   :  { %v5344_v38 = vld [vmem:[%s6450_s0 + $0x60] sm:$0xff]   ;;  %v4696_v39 = vld [vmem:[%s6450_s0 + $0xe8] sm:$0xff]   ;;  %v4697_v41 = vld [vmem:[%s6450_s0 + $0xf0] sm:$0xff]  }
  0x69   :  { %3954 = vmatmul.mubr.msk.bf16.gmra.mrb[4].mxu0 %vm374_vm0, %v5173_v6  ;;  %v5357_v40 = vld [vmem:[%s6450_s0 + $0x68] sm:$0xff]   ;;  %v5370_v42 = vld [vmem:[%s6450_s0 + $0x70] sm:$0xff]   ;;  %v4699_v43 = vld [vmem:[%s6450_s0 + $0xf8] sm:$0xff]  }
  0x6a   :  { %523 = vmatprep.mubr.bf16.mxu0 %v5022_v0  ;;  %1829 = vmatpush1.bf16.msra.mxu0 %v4656_v7  ;;  %v5383_v44 = vld [vmem:[%s6450_s0 + $0x78] sm:$0xff]   ;;  %v5393_v45 = vld [vmem:[%s6450_s0 + $0x80] sm:$0xff]   ;;  %v5404_v46 = vld [vmem:[%s6450_s0 + $0x88] sm:$0xff]  }
  0x6b   :  { %1830 = vmatprep.subr.bf16.mxu0 %v5022_v0  ;;  %v5415_v47 = vld [vmem:[%s6450_s0 + $0x90] sm:$0xff]   ;;  %v5426_v48 = vld [vmem:[%s6450_s0 + $0x98] sm:$0xff]   ;;  %v5437_v49 = vld [vmem:[%s6450_s0 + $0xa0] sm:$0xff]  }
  0x6c   :  { %3978 = vmatmul.mubr.msk.bf16.gmra.mrb[4].mxu1 %vm374_vm0, %v4689_v30  ;;  %v5448_v50 = vld [vmem:[%s6450_s0 + $0xa8] sm:$0xff]   ;;  %v5459_v51 = vld [vmem:[%s6450_s0 + $0xb0] sm:$0xff]   ;;  %v5470_v52 = vld [vmem:[%s6450_s0 + $0xb8] sm:$0xff]  }
  0x6d   :  { %763 = vmatprep.mubr.bf16.mxu1 %v5022_v0  ;;  %v5486_v56 = vld [vmem:[#allocation5] sm:$0xf] }
  0x6e   :  { %1831 = vmatpush1.bf16.msra.mxu0 %v4659_v8  ;;  %v5493_v58 = vrot.slane %v5486_v56, %v176_v55  ;;  %v5496_v59 = vrot.slane %v5486_v56, %v180_v57  ;;  %v4702_v57 = vld [vmem:[%s6453_s3 + $0xa0] sm:$0xff]  }
  0x6f   :  { %1832 = vmatprep.subr.bf16.mxu0 %v5022_v0 }
  0x71   :  { %3955 = vmatmul.mubr.msk.bf16.gmra.mrb[8].mxu0 %vm374_vm0, %v5189_v9 }
  0x72   :  { %533 = vmatprep.mubr.bf16.mxu0 %v5022_v0  ;;  %1833 = vmatpush1.bf16.msra.mxu0 %v4661_v10 }
  0x73   :  { %1834 = vmatprep.subr.bf16.mxu0 %v5022_v0 }
  0x74   :  { %3979 = vmatmul.mubr.msk.bf16.gmra.mrb[8].mxu1 %vm374_vm0, %v4691_v33 }
  0x75   :  { %773 = vmatprep.mubr.bf16.mxu1 %v5022_v0 }
  0x76   :  { %1835 = vmatpush1.bf16.msra.mxu0 %v4664_v11 }
  0x77   :  { %1836 = vmatprep.subr.bf16.mxu0 %v5022_v0 }
  0x79   :  { %3956 = vmatmul.mubr.msk.bf16.gmra.mrb[12].mxu0 %vm374_vm0, %v5205_v12 }
  0x7a   :  { %543 = vmatprep.mubr.bf16.mxu0 %v5022_v0  ;;  %1837 = vmatpush1.bf16.msra.mxu0 %v4666_v13 }
  0x7b   :  { %1838 = vmatprep.subr.bf16.mxu0 %v5022_v0 }
  0x7c   :  { %3980 = vmatmul.mubr.msk.bf16.gmra.mrb[12].mxu1 %vm374_vm0, %v4693_v35 }
  0x7d   :  { %783 = vmatprep.mubr.bf16.mxu1 %v5022_v0 }
  0x7e   :  { %1839 = vmatpush1.bf16.msra.mxu0 %v4669_v14 }
  0x7f   :  { %1840 = vmatprep.subr.bf16.mxu0 %v5022_v0 }
  0x81   :  { %3957 = vmatmul.mubr.msk.bf16.gmra.mrb[16].mxu0 %vm374_vm0, %v5220_v15 }
  0x82   :  { %553 = vmatprep.mubr.bf16.mxu0 %v5022_v0  ;;  %1841 = vmatpush1.bf16.msra.mxu0 %v4671_v16 }
  0x83   :  { %1842 = vmatprep.subr.bf16.mxu0 %v5022_v0 }
  0x84   :  { %3981 = vmatmul.mubr.msk.bf16.gmra.mrb[16].mxu1 %vm374_vm0, %v4694_v37  ;;  %v4701_v37 = vld [vmem:[%s6453_s3 + $0x98] sm:$0xff]  }
  0x85   :  { %793 = vmatprep.mubr.bf16.mxu1 %v5022_v0 }
  0x86   :  { %1843 = vmatpush1.bf16.msra.mxu0 %v4674_v17 }
  0x87   :  { %1844 = vmatprep.subr.bf16.mxu0 %v5022_v0 }
  0x89   :  { %3958 = vmatmul.mubr.msk.bf16.gmra.mrb[20].mxu0 %vm374_vm0, %v5236_v18 }
  0x8a   :  { %563 = vmatprep.mubr.bf16.mxu0 %v5022_v0  ;;  %1845 = vmatpush1.bf16.msra.mxu0 %v4676_v19 }
  0x8b   :  { %1846 = vmatprep.subr.bf16.mxu0 %v5022_v0 }
  0x8c   :  { %3982 = vmatmul.mubr.msk.bf16.gmra.mrb[20].mxu1 %vm374_vm0, %v4696_v39 }
  0x8d   :  { %803 = vmatprep.mubr.bf16.mxu1 %v5022_v0 }
  0x8e   :  { %1847 = vmatpush1.bf16.msra.mxu0 %v4679_v20  ;;  %v4698_v20 = vld [vmem:[%s6453_s3 + $0x88] sm:$0xff]  }
  0x8f   :  { %1848 = vmatprep.subr.bf16.mxu0 %v5022_v0 }
  0x91   :  { %3959 = vmatmul.mubr.msk.bf16.gmra.mrb[24].mxu0 %vm374_vm0, %v5252_v21 }
  0x92   :  { %573 = vmatprep.mubr.bf16.mxu0 %v5022_v0  ;;  %1849 = vmatpush1.bf16.msra.mxu0 %v4681_v22 }
  0x93   :  { %1850 = vmatprep.subr.bf16.mxu0 %v5022_v0 }
  0x94   :  { %3983 = vmatmul.mubr.msk.bf16.gmra.mrb[24].mxu1 %vm374_vm0, %v4697_v41 }
  0x95   :  { %813 = vmatprep.mubr.bf16.mxu1 %v5022_v0 }
  0x96   :  { %1851 = vmatpush1.bf16.msra.mxu0 %v4684_v24 }
  0x97   :  { %1852 = vmatprep.subr.bf16.mxu0 %v5022_v0 }
  0x99   :  { %3960 = vmatmul.mubr.msk.bf16.gmra.mrb[28].mxu0 %vm374_vm0, %v5265_v23 }
  0x9a   :  { %583 = vmatprep.mubr.bf16.mxu0 %v5022_v0  ;;  %1853 = vmatpush1.bf16.msra.mxu0 %v4690_v29  ;;  %v4700_v29 = vld [vmem:[%s6453_s3 + $0x90] sm:$0xff]  }
  0x9b   :  { %1854 = vmatprep.subr.bf16.mxu0 %v5022_v0 }
  0x9c   :  { %3984 = vmatmul.mubr.msk.bf16.gmra.mrb[28].mxu1 %vm374_vm0, %v4699_v43 }
  0x9d   :  { %856 = vmatprep.mubr.bf16.mxu1 %v5022_v0 }
  0x9e   :  { %1855 = vmatpush1.bf16.msra.mxu0 %v4692_v31 }
  0x9f   :  { %2113 = vmatprep.subr.bf16.mxu0 %v5022_v0 }
  0xa1   :  { %3961 = vmatmul.mubr.msk.bf16.gmra.mrb[32].mxu0 %vm374_vm0, %v5282_v28 }
  0xa2   :  { %593 = vmatprep.mubr.bf16.mxu0 %v5022_v0 }
  0xa4   :  { %3985 = vmatmul.mubr.msk.bf16.vlgmr.msra.gmra.mrb[32].mxu1 %vm374_vm0, %v5157_v3 }
  0xa5   :  { %866 = vmatprep.mubr.bf16.mxu1 %v5022_v0 }
  0xa9   :  { %3962 = vmatmul.mubr.msk.bf16.gmra.mrb[36].mxu0 %vm374_vm0, %v5304_v32 }
  0xaa   :  { %603 = vmatprep.mubr.bf16.mxu0 %v5022_v0 }
  0xac   :  { %3986 = vmatmul.mubr.msk.bf16.gmra.mrb[36].mxu1 %vm374_vm0, %v5173_v6 }
  0xad   :  { %876 = vmatprep.mubr.bf16.mxu1 %v5022_v0 }
  0xb1   :  { %3963 = vmatmul.mubr.msk.bf16.gmra.mrb[40].mxu0 %vm374_vm0, %v5320_v34 }
  0xb2   :  { %613 = vmatprep.mubr.bf16.mxu0 %v5022_v0 }
  0xb4   :  { %3987 = vmatmul.mubr.msk.bf16.gmra.mrb[40].mxu1 %vm374_vm0, %v5189_v9 }
  0xb5   :  { %886 = vmatprep.mubr.bf16.mxu1 %v5022_v0 }
  0xb9   :  { %3964 = vmatmul.mubr.msk.bf16.gmra.mrb[44].mxu0 %vm374_vm0, %v5331_v36 }
  0xba   :  { %623 = vmatprep.mubr.bf16.mxu0 %v5022_v0 }
  0xbc   :  { %3988 = vmatmul.mubr.msk.bf16.gmra.mrb[44].mxu1 %vm374_vm0, %v5205_v12  ;;  %v4695_v12 = vld [vmem:[%s6453_s3 + $0x80] sm:$0xff]  }
  0xbd   :  { %896 = vmatprep.mubr.bf16.mxu1 %v5022_v0 }
  0xc1   :  { %3965 = vmatmul.mubr.msk.bf16.gmra.mrb[48].mxu0 %vm374_vm0, %v5344_v38 }
  0xc2   :  { %633 = vmatprep.mubr.bf16.mxu0 %v5022_v0 }
  0xc4   :  { %3989 = vmatmul.mubr.msk.bf16.gmra.mrb[48].mxu1 %vm374_vm0, %v5220_v15 }
  0xc5   :  { %906 = vmatprep.mubr.bf16.mxu1 %v5022_v0 }
  0xc9   :  { %3966 = vmatmul.mubr.msk.bf16.gmra.mrb[52].mxu0 %vm374_vm0, %v5357_v40 }
  0xca   :  { %643 = vmatprep.mubr.bf16.mxu0 %v5022_v0 }
  0xcc   :  { %3990 = vmatmul.mubr.msk.bf16.gmra.mrb[52].mxu1 %vm374_vm0, %v5236_v18 }
  0xcd   :  { %916 = vmatprep.mubr.bf16.mxu1 %v5022_v0 }
  0xd1   :  { %3967 = vmatmul.mubr.msk.bf16.gmra.mrb[56].mxu0 %vm374_vm0, %v5370_v42 }
  0xd2   :  { %653 = vmatprep.mubr.bf16.mxu0 %v5022_v0 }
  0xd4   :  { %3991 = vmatmul.mubr.msk.bf16.gmra.mrb[56].mxu1 %vm374_vm0, %v5252_v21 }
  0xd5   :  { %926 = vmatprep.mubr.bf16.mxu1 %v5022_v0 }
  0xd9   :  { %3968 = vmatmul.mubr.msk.bf16.gmra.mrb[60].mxu0 %vm374_vm0, %v5383_v44 }
  0xda   :  { %663 = vmatprep.mubr.bf16.mxu0 %v5022_v0 }
  0xdc   :  { %3992 = vmatmul.mubr.msk.bf16.gmra.mrb[60].mxu1 %vm374_vm0, %v5265_v23 }
  0xdd   :  { %936 = vmatprep.mubr.bf16.mxu1 %v5022_v0 }
  0xe1   :  { %3969 = vmatmul.mubr.msk.bf16.gmra.mrb[64].mxu0 %vm374_vm0, %v5393_v45 }
  0xe2   :  { %673 = vmatprep.mubr.bf16.mxu0 %v5022_v0 }
  0xe4   :  { %3993 = vmatmul.mubr.msk.bf16.gmra.mrb[64].mxu1 %vm374_vm0, %v5282_v28 }
  0xe5   :  { %946 = vmatprep.mubr.bf16.mxu1 %v5022_v0 }
  0xe9   :  { %3970 = vmatmul.mubr.msk.bf16.gmra.mrb[68].mxu0 %vm374_vm0, %v5404_v46 }
  0xea   :  { %683 = vmatprep.mubr.bf16.mxu0 %v5022_v0 }
  0xec   :  { %3994 = vmatmul.mubr.msk.bf16.gmra.mrb[68].mxu1 %vm374_vm0, %v5304_v32 }
  0xed   :  { %956 = vmatprep.mubr.bf16.mxu1 %v5022_v0 }
  0xf1   :  { %3971 = vmatmul.mubr.msk.bf16.gmra.mrb[72].mxu0 %vm374_vm0, %v5415_v47 }
  0xf2   :  { %693 = vmatprep.mubr.bf16.mxu0 %v5022_v0 }
  0xf4   :  { %3995 = vmatmul.mubr.msk.bf16.gmra.mrb[72].mxu1 %vm374_vm0, %v5320_v34 }
  0xf5   :  { %966 = vmatprep.mubr.bf16.mxu1 %v5022_v0 }
  0xf9   :  { %3972 = vmatmul.mubr.msk.bf16.gmra.mrb[76].mxu0 %vm374_vm0, %v5426_v48 }
  0xfa   :  { %703 = vmatprep.mubr.bf16.mxu0 %v5022_v0 }
  0xfc   :  { %3996 = vmatmul.mubr.msk.bf16.gmra.mrb[76].mxu1 %vm374_vm0, %v5331_v36 }
  0xfd   :  { %976 = vmatprep.mubr.bf16.mxu1 %v5022_v0 }
 0x101   :  { %3973 = vmatmul.mubr.msk.bf16.gmra.mrb[80].mxu0 %vm374_vm0, %v5437_v49 }
 0x102   :  { %713 = vmatprep.mubr.bf16.mxu0 %v5022_v0 }
 0x104   :  { %3997 = vmatmul.mubr.msk.bf16.gmra.mrb[80].mxu1 %vm374_vm0, %v5344_v38 }
 0x105   :  { %986 = vmatprep.mubr.bf16.mxu1 %v5022_v0 }
 0x109   :  { %3974 = vmatmul.mubr.msk.bf16.gmra.mrb[84].mxu0 %vm374_vm0, %v5448_v50 }
 0x10a   :  { %723 = vmatprep.mubr.bf16.mxu0 %v5022_v0 }
 0x10c   :  { %3998 = vmatmul.mubr.msk.bf16.gmra.mrb[84].mxu1 %vm374_vm0, %v5357_v40 }
 0x10d   :  { %996 = vmatprep.mubr.bf16.mxu1 %v5022_v0 }
 0x111   :  { %3975 = vmatmul.mubr.msk.bf16.gmra.mrb[88].mxu0 %vm374_vm0, %v5459_v51 }
 0x112   :  { %733 = vmatprep.mubr.bf16.mxu0 %v5022_v0 }
 0x114   :  { %3999 = vmatmul.mubr.msk.bf16.gmra.mrb[88].mxu1 %vm374_vm0, %v5370_v42 }
 0x115   :  { %1006 = vmatprep.mubr.bf16.mxu1 %v5022_v0 }
 0x119   :  { %3976 = vmatmul.mubr.msk.bf16.gmra.mrb[92].mxu0 %vm374_vm0, %v5470_v52 }
 0x11c   :  { %4000 = vmatmul.mubr.msk.bf16.gmra.mrb[92].mxu1 %vm374_vm0, %v5383_v44 }
 0x11d   :  { %1016 = vmatprep.mubr.bf16.mxu1 %v5022_v0 }
 0x124   :  { %4001 = vmatmul.mubr.msk.bf16.gmra.mrb[96].mxu1 %vm374_vm0, %v5393_v45 }
 0x125   :  { %1026 = vmatprep.mubr.bf16.mxu1 %v5022_v0 }
 0x12c   :  { %4002 = vmatmul.mubr.msk.bf16.gmra.mrb[100].mxu1 %vm374_vm0, %v5404_v46 }
 0x12d   :  { %1036 = vmatprep.mubr.bf16.mxu1 %v5022_v0 }
 0x134   :  { %v505_v60 = vpop.f32.mrb[0].mxu0  ;;  %4003 = vmatmul.mubr.msk.bf16.gmra.mrb[104].mxu1 %vm374_vm0, %v5415_v47  ;;  %v4709_v47 = vld [vmem:[%s6453_s3 + $0xd8] sm:$0xff]  }
 0x135   :  { %v506_v61 = vadd.f32 %v505_v60, %v5493_v58  ;;  %v507_v62 = vpop.f32.mrb[1].mxu0  ;;  %1046 = vmatprep.mubr.bf16.mxu1 %v5022_v0 }
 0x136   :  { %v508_v63 = vadd.f32 %v507_v62, %v5496_v59  ;;  %v509_v1 = vpop.f32.mrb[2].mxu0 }
 0x137   :  { %v510_v2 = vadd.f32 %v509_v1, %v5493_v58  ;;  %v511_v3 = vpop.f32.mrb[3].mxu0  ;;  %v1177_v5 = vmax.f32 %v506_v61, 0.0 }
 0x138   :  { %v512_v4 = vadd.f32 %v511_v3, %v5496_v59  ;;  %v1178_v7 = vmax.f32 %v508_v63, 0.0 }
 0x139   :  { %v1181_v6 = vmax.f32 %v510_v2, 0.0 }
 0x13a   :  { %v1182_v8 = vmax.f32 %v512_v4, 0.0  ;;  %v4703_v4 = vld [vmem:[%s6453_s3 + $0xa8] sm:$0xff]  }
 0x13b   :  { %v1433_v9 = vpack.c.bf16 %v1181_v6, %v1177_v5 }
 0x13c   :  { %v1434_v10 = vpack.c.bf16 %v1182_v8, %v1178_v7  ;;  %v515_v11 = vpop.f32.mrb[4].mxu0  ;;  %4004 = vmatmul.mubr.msk.bf16.gmra.mrb[108].mxu1 %vm374_vm0, %v5426_v48 }
 0x13d   :  { %v516_v13 = vadd.f32 %v515_v11, %v5493_v58  ;;  %v517_v14 = vpop.f32.mrb[5].mxu0  ;;  %v4704_v11 = vld [vmem:[%s6453_s3 + $0xb0] sm:$0xff]   ;;  %1056 = vmatprep.mubr.bf16.mxu1 %v5022_v0 }
 0x13e   :  { %v518_v15 = vadd.f32 %v517_v14, %v5496_v59  ;;  %v519_v16 = vpop.f32.mrb[6].mxu0  ;;  %1856 = vmatprep.mubr.bf16.mxu0 %v1434_v10 }
 0x13f   :  { %v520_v17 = vadd.f32 %v519_v16, %v5493_v58  ;;  %v521_v18 = vpop.f32.mrb[7].mxu0  ;;  %1857 = vmatmul.mubr.bf16.vlgmr.msra.gmra.mrb[96].mxu0 %v1433_v9  ;;  %v1185_v21 = vmax.f32 %v516_v13, 0.0 }
 0x140   :  { %v522_v19 = vadd.f32 %v521_v18, %v5496_v59  ;;  %2114 = vmatpush1.bf16.msra.mxu0 %v4695_v12  ;;  %v1186_v23 = vmax.f32 %v518_v15, 0.0 }
 0x141   :  { %v1189_v22 = vmax.f32 %v520_v17, 0.0  ;;  %2115 = vmatprep.subr.bf16.mxu0 %v5022_v0 }
 0x142   :  { %v1190_v24 = vmax.f32 %v522_v19, 0.0  ;;  %v4705_v19 = vld [vmem:[%s6453_s3 + $0xb8] sm:$0xff]  }
 0x143   :  { %v1437_v26 = vpack.c.bf16 %v1189_v22, %v1185_v21 }
 0x144   :  { %v1438_v27 = vpack.c.bf16 %v1190_v24, %v1186_v23  ;;  %v525_v28 = vpop.f32.mrb[8].mxu0  ;;  %2116 = vmatpush1.bf16.msra.mxu0 %v4698_v20  ;;  %4005 = vmatmul.mubr.msk.bf16.gmra.mrb[112].mxu1 %vm374_vm0, %v5437_v49 }
 0x145   :  { %v526_v30 = vadd.f32 %v525_v28, %v5493_v58  ;;  %v527_v31 = vpop.f32.mrb[9].mxu0  ;;  %2117 = vmatprep.subr.bf16.mxu0 %v5022_v0  ;;  %1066 = vmatprep.mubr.bf16.mxu1 %v5022_v0 }
 0x146   :  { %v528_v32 = vadd.f32 %v527_v31, %v5496_v59  ;;  %v529_v33 = vpop.f32.mrb[10].mxu0  ;;  %1864 = vmatprep.mubr.bf16.mxu0 %v1438_v27  ;;  %v4706_v27 = vld [vmem:[%s6453_s3 + $0xc0] sm:$0xff]  }
 0x147   :  { %v530_v34 = vadd.f32 %v529_v33, %v5493_v58  ;;  %v531_v35 = vpop.f32.mrb[11].mxu0  ;;  %1865 = vmatmul.mubr.bf16.gmra.mrb[100].mxu0 %v1437_v26  ;;  %v1193_v38 = vmax.f32 %v526_v30, 0.0 }
 0x148   :  { %v532_v36 = vadd.f32 %v531_v35, %v5496_v59  ;;  %2118 = vmatpush1.bf16.msra.mxu0 %v4700_v29  ;;  %v1194_v41 = vmax.f32 %v528_v32, 0.0  ;;  %v4707_v35 = vld [vmem:[%s6453_s3 + $0xc8] sm:$0xff]  }
 0x149   :  { %v1197_v39 = vmax.f32 %v530_v34, 0.0  ;;  %2119 = vmatprep.subr.bf16.mxu0 %v5022_v0 }
 0x14a   :  { %v1198_v43 = vmax.f32 %v532_v36, 0.0 }
 0x14b   :  { %v1441_v40 = vpack.c.bf16 %v1197_v39, %v1193_v38 }
 0x14c   :  { %v1442_v53 = vpack.c.bf16 %v1198_v43, %v1194_v41  ;;  %v535_v55 = vpop.f32.mrb[12].mxu0  ;;  %2120 = vmatpush1.bf16.msra.mxu0 %v4701_v37  ;;  %4006 = vmatmul.mubr.msk.bf16.gmra.mrb[116].mxu1 %vm374_vm0, %v5448_v50 }
 0x14d   :  { %v536_v60 = vadd.f32 %v535_v55, %v5493_v58  ;;  %v537_v61 = vpop.f32.mrb[13].mxu0  ;;  %2121 = vmatprep.subr.bf16.mxu0 %v5022_v0  ;;  %1076 = vmatprep.mubr.bf16.mxu1 %v5022_v0 }
 0x14e   :  { %v538_v62 = vadd.f32 %v537_v61, %v5496_v59  ;;  %v539_v63 = vpop.f32.mrb[14].mxu0  ;;  %1872 = vmatprep.mubr.bf16.mxu0 %v1442_v53 }
 0x14f   :  { %v540_v1 = vadd.f32 %v539_v63, %v5493_v58  ;;  %v541_v2 = vpop.f32.mrb[15].mxu0  ;;  %1873 = vmatmul.mubr.bf16.gmra.mrb[104].mxu0 %v1441_v40  ;;  %v1201_v5 = vmax.f32 %v536_v60, 0.0  ;;  %v4708_v40 = vld [vmem:[%s6453_s3 + $0xd0] sm:$0xff]  }
 0x150   :  { %v542_v3 = vadd.f32 %v541_v2, %v5496_v59  ;;  %2122 = vmatpush1.bf16.msra.mxu0 %v4702_v57  ;;  %v1202_v7 = vmax.f32 %v538_v62, 0.0 }
 0x151   :  { %v1205_v6 = vmax.f32 %v540_v1, 0.0  ;;  %2123 = vmatprep.subr.bf16.mxu0 %v5022_v0 }
 0x152   :  { %v1206_v8 = vmax.f32 %v542_v3, 0.0 }
 0x153   :  { %v1445_v42 = vpack.c.bf16 %v1205_v6, %v1201_v5 }
 0x154   :  { %v1446_v9 = vpack.c.bf16 %v1206_v8, %v1202_v7  ;;  %v545_v10 = vpop.f32.mrb[16].mxu0  ;;  %2124 = vmatpush1.bf16.msra.mxu0 %v4703_v4  ;;  %4007 = vmatmul.mubr.msk.bf16.gmra.mrb[120].mxu1 %vm374_vm0, %v5459_v51 }
 0x155   :  { %v546_v12 = vadd.f32 %v545_v10, %v5493_v58  ;;  %v547_v13 = vpop.f32.mrb[17].mxu0  ;;  %2125 = vmatprep.subr.bf16.mxu0 %v5022_v0  ;;  %1086 = vmatprep.mubr.bf16.mxu1 %v5022_v0 }
 0x156   :  { %v548_v14 = vadd.f32 %v547_v13, %v5496_v59  ;;  %v549_v15 = vpop.f32.mrb[18].mxu0  ;;  %1880 = vmatprep.mubr.bf16.mxu0 %v1446_v9 }
 0x157   :  { %v550_v16 = vadd.f32 %v549_v15, %v5493_v58  ;;  %v551_v17 = vpop.f32.mrb[19].mxu0  ;;  %1881 = vmatmul.mubr.bf16.gmra.mrb[108].mxu0 %v1445_v42  ;;  %v1209_v20 = vmax.f32 %v546_v12, 0.0  ;;  %v745_v15 = vpop.f32.mrb[0].mxu1 }
 0x158   :  { %v552_v18 = vadd.f32 %v551_v17, %v5496_v59  ;;  %2126 = vmatpush1.bf16.msra.mxu0 %v4704_v11  ;;  %v1210_v22 = vmax.f32 %v548_v14, 0.0 }
 0x159   :  { %v1213_v21 = vmax.f32 %v550_v16, 0.0  ;;  %2127 = vmatprep.subr.bf16.mxu0 %v5022_v0 }
 0x15a   :  { %v1214_v23 = vmax.f32 %v552_v18, 0.0  ;;  %v747_v18 = vpop.f32.mrb[1].mxu1 }
 0x15b   :  { %v1449_v44 = vpack.c.bf16 %v1213_v21, %v1209_v20  ;;  %v749_v20 = vpop.f32.mrb[2].mxu1 }
 0x15c   :  { %v1450_v24 = vpack.c.bf16 %v1214_v23, %v1210_v22  ;;  %v555_v26 = vpop.f32.mrb[20].mxu0  ;;  %2128 = vmatpush1.bf16.msra.mxu0 %v4705_v19  ;;  %v746_v23 = vadd.f32 %v745_v15, %v5493_v58  ;;  %4008 = vmatmul.mubr.msk.bf16.gmra.mrb[124].mxu1 %vm374_vm0, %v5470_v52 }
 0x15d   :  { %v556_v28 = vadd.f32 %v555_v26, %v5493_v58  ;;  %v557_v29 = vpop.f32.mrb[21].mxu0  ;;  %2129 = vmatprep.subr.bf16.mxu0 %v5022_v0  ;;  %v751_v26 = vpop.f32.mrb[3].mxu1  ;;  %1096 = vmatprep.mubr.bf16.mxu1 %v5022_v0 }
 0x15e   :  { %v558_v30 = vadd.f32 %v557_v29, %v5496_v59  ;;  %v559_v31 = vpop.f32.mrb[22].mxu0  ;;  %1888 = vmatprep.mubr.bf16.mxu0 %v1450_v24  ;;  %v750_v24 = vadd.f32 %v749_v20, %v5493_v58  ;;  %v752_v29 = vadd.f32 %v751_v26, %v5496_v59 }
 0x15f   :  { %v560_v32 = vadd.f32 %v559_v31, %v5493_v58  ;;  %v561_v33 = vpop.f32.mrb[23].mxu0  ;;  %1889 = vmatmul.mubr.bf16.gmra.mrb[112].mxu0 %v1449_v44  ;;  %v1217_v36 = vmax.f32 %v556_v28, 0.0  ;;  %v748_v44 = vadd.f32 %v747_v18, %v5496_v59 }
 0x160   :  { %v562_v34 = vadd.f32 %v561_v33, %v5496_v59  ;;  %2130 = vmatpush1.bf16.msra.mxu0 %v4706_v27  ;;  %v1218_v38 = vmax.f32 %v558_v30, 0.0 }
 0x161   :  { %v1221_v37 = vmax.f32 %v560_v32, 0.0  ;;  %2131 = vmatprep.subr.bf16.mxu0 %v5022_v0  ;;  %v1369_v32 = vmax.f32 %v746_v23, 0.0  ;;  %v1370_v33 = vmax.f32 %v748_v44, 0.0 }
 0x162   :  { %v1222_v39 = vmax.f32 %v562_v34, 0.0  ;;  %v1373_v34 = vmax.f32 %v750_v24, 0.0 }
 0x163   :  { %v1453_v45 = vpack.c.bf16 %v1221_v37, %v1217_v36  ;;  %v1374_v37 = vmax.f32 %v752_v29, 0.0 }
 0x164   :  { %v1454_v41 = vpack.c.bf16 %v1222_v39, %v1218_v38  ;;  %v565_v43 = vpop.f32.mrb[24].mxu0  ;;  %2132 = vmatpush1.bf16.msra.mxu0 %v4707_v35  ;;  %v755_v38 = vpop.f32.mrb[4].mxu1  ;;  %4009 = vmatmul.mubr.msk.bf16.gmra.mrb[128].mxu1 %vm374_vm0, %v5276_v25 }
 0x165   :  { %v566_v53 = vadd.f32 %v565_v43, %v5493_v58  ;;  %v567_v55 = vpop.f32.mrb[25].mxu0  ;;  %2133 = vmatprep.subr.bf16.mxu0 %v5022_v0  ;;  %v5614_v43 = vpack.c.bf16 %v1373_v34, %v1369_v32  ;;  %1106 = vmatprep.mubr.bf16.mxu1 %v5022_v0 }
 0x166   :  { %v568_v57 = vadd.f32 %v567_v55, %v5496_v59  ;;  %v569_v60 = vpop.f32.mrb[26].mxu0  ;;  %1896 = vmatprep.mubr.bf16.mxu0 %v1454_v41  ;;  %v757_v41 = vpop.f32.mrb[5].mxu1 }
 0x167   :  { %v570_v61 = vadd.f32 %v569_v60, %v5493_v58  ;;  %v571_v62 = vpop.f32.mrb[27].mxu0  ;;  %1897 = vmatmul.mubr.bf16.gmra.mrb[116].mxu0 %v1453_v45  ;;  %v1225_v1 = vmax.f32 %v566_v53, 0.0  ;;  %v756_v45 = vadd.f32 %v755_v38, %v5493_v58  ;;  %v758_v55 = vadd.f32 %v757_v41, %v5496_v59 }
 0x168   :  { %v572_v63 = vadd.f32 %v571_v62, %v5496_v59  ;;  %2134 = vmatpush1.bf16.msra.mxu0 %v4708_v40  ;;  %v1226_v3 = vmax.f32 %v568_v57, 0.0  ;;  %v759_v57 = vpop.f32.mrb[6].mxu1  ;;  %v5617_v60 = vpack.c.bf16 %v1374_v37, %v1370_v33 }
 0x169   :  { %v1229_v2 = vmax.f32 %v570_v61, 0.0  ;;  %2135 = vmatprep.subr.bf16.mxu0 %v5022_v0  ;;  %v760_v62 = vadd.f32 %v759_v57, %v5493_v58 }
 0x16a   :  { %v1230_v4 = vmax.f32 %v572_v63, 0.0  ;;  %v761_v63 = vpop.f32.mrb[7].mxu1 }
 0x16b   :  { %v1457_v5 = vpack.c.bf16 %v1229_v2, %v1225_v1  ;;  %v1378_v2 = vmax.f32 %v758_v55, 0.0 }
 0x16c   :  { %v1458_v6 = vpack.c.bf16 %v1230_v4, %v1226_v3  ;;  %v575_v7 = vpop.f32.mrb[28].mxu0  ;;  %2136 = vmatpush1.bf16.msra.mxu0 %v4709_v47  ;;  %v762_v3 = vadd.f32 %v761_v63, %v5496_v59 }
 0x16d   :  { %v576_v46 = vadd.f32 %v575_v7, %v5493_v58  ;;  %v577_v8 = vpop.f32.mrb[29].mxu0  ;;  %2137 = vmatprep.subr.bf16.mxu0 %v5022_v0  ;;  %v1381_v7 = vmax.f32 %v760_v62, 0.0 }
 0x16e   :  { %v578_v42 = vadd.f32 %v577_v8, %v5496_v59  ;;  %v579_v9 = vpop.f32.mrb[30].mxu0  ;;  %1904 = vmatprep.mubr.bf16.mxu0 %v1458_v6  ;;  %v1377_v6 = vmax.f32 %v756_v45, 0.0 }
 0x16f   :  { %v580_v10 = vadd.f32 %v579_v9, %v5493_v58  ;;  %v581_v11 = vpop.f32.mrb[31].mxu0  ;;  %1905 = vmatmul.mubr.bf16.gmra.mrb[120].mxu0 %v1457_v5  ;;  %v1233_v13 = vmax.f32 %v576_v46, 0.0 }
 0x170   :  { %v582_v12 = vadd.f32 %v581_v11, %v5496_v59  ;;  %v1234_v16 = vmax.f32 %v578_v42, 0.0  ;;  %v1382_v42 = vmax.f32 %v762_v3, 0.0 }
 0x171   :  { %v1237_v14 = vmax.f32 %v580_v10, 0.0 }
 0x172   :  { %v1238_v17 = vmax.f32 %v582_v12, 0.0  ;;  %v5629_v15 = vpack.c.bf16 %v1382_v42, %v1378_v2 }
 0x173   :  { %v1461_v19 = vpack.c.bf16 %v1237_v14, %v1233_v13  ;;  %v4710_v13 = vld [vmem:[%s6453_s3 + $0xe0] sm:$0xff]   ;;  %v765_v14 = vpop.f32.mrb[8].mxu1 }
 0x174   :  { %v1462_v21 = vpack.c.bf16 %v1238_v17, %v1234_v16  ;;  %v585_v22 = vpop.f32.mrb[32].mxu0  ;;  %v766_v17 = vadd.f32 %v765_v14, %v5493_v58  ;;  %v767_v18 = vpop.f32.mrb[9].mxu1  ;;  %2138 = vmatpush1.bf16.msra.mxu0 %v4710_v13 }
 0x175   :  { %v586_v27 = vadd.f32 %v585_v22, %v5493_v58  ;;  %v587_v28 = vpop.f32.mrb[33].mxu0  ;;  %v768_v49 = vadd.f32 %v767_v18, %v5496_v59  ;;  %v769_v22 = vpop.f32.mrb[10].mxu1  ;;  %2139 = vmatprep.subr.bf16.mxu0 %v5022_v0 }
 0x176   :  { %v588_v30 = vadd.f32 %v587_v28, %v5496_v59  ;;  %v589_v31 = vpop.f32.mrb[34].mxu0  ;;  %1912 = vmatprep.mubr.bf16.mxu0 %v1462_v21  ;;  %v770_v44 = vadd.f32 %v769_v22, %v5493_v58  ;;  %v771_v24 = vpop.f32.mrb[11].mxu1 }
 0x177   :  { %v590_v35 = vadd.f32 %v589_v31, %v5493_v58  ;;  %v591_v36 = vpop.f32.mrb[35].mxu0  ;;  %1913 = vmatmul.mubr.bf16.gmra.mrb[124].mxu0 %v1461_v19  ;;  %v1241_v40 = vmax.f32 %v586_v27, 0.0  ;;  %v5634_v19 = vpack.c.bf16 %v1381_v7, %v1377_v6  ;;  %v1386_v27 = vmax.f32 %v768_v49, 0.0  ;;  %v775_v57 = vpop.f32.mrb[12].mxu1 }
 0x178   :  { %v592_v39 = vadd.f32 %v591_v36, %v5496_v59  ;;  %v1242_v48 = vmax.f32 %v588_v30, 0.0  ;;  %v772_v28 = vadd.f32 %v771_v24, %v5496_v59  ;;  %v1385_v31 = vmax.f32 %v766_v17, 0.0  ;;  %v777_v63 = vpop.f32.mrb[13].mxu1  ;;  %v4711_v17 = vld [vmem:[%s6453_s3 + $0xe8] sm:$0xff]  }
 0x179   :  { %v1245_v53 = vmax.f32 %v590_v35, 0.0  ;;  %v1389_v32 = vmax.f32 %v770_v44, 0.0  ;;  %v776_v62 = vadd.f32 %v775_v57, %v5493_v58  ;;  %v778_v2 = vadd.f32 %v777_v63, %v5496_v59  ;;  %v779_v50 = vpop.f32.mrb[14].mxu1  ;;  %2140 = vmatpush1.bf16.msra.mxu0 %v4711_v17 }
 0x17a   :  { %v1246_v61 = vmax.f32 %v592_v39, 0.0  ;;  %v1390_v35 = vmax.f32 %v772_v28, 0.0  ;;  %v780_v6 = vadd.f32 %v779_v50, %v5493_v58  ;;  %v781_v7 = vpop.f32.mrb[15].mxu1  ;;  %2141 = vmatprep.subr.bf16.mxu0 %v5022_v0 }
 0x17b   :  { %v1465_v1 = vpack.c.bf16 %v1245_v53, %v1241_v40  ;;  %v5649_v40 = vpack.c.bf16 %v1389_v32, %v1385_v31  ;;  %v1394_v42 = vmax.f32 %v778_v2, 0.0  ;;  %v785_v22 = vpop.f32.mrb[16].mxu1 }
 0x17c   :  { %v1466_v4 = vpack.c.bf16 %v1246_v61, %v1242_v48  ;;  %v595_v5 = vpop.f32.mrb[36].mxu0  ;;  %v5645_v45 = vpack.c.bf16 %v1390_v35, %v1386_v27  ;;  %v786_v51 = vadd.f32 %v785_v22, %v5493_v58  ;;  %v787_v24 = vpop.f32.mrb[17].mxu1 }
 0x17d   :  { %v596_v46 = vadd.f32 %v595_v5, %v5493_v58  ;;  %v597_v8 = vpop.f32.mrb[37].mxu0  ;;  %v1393_v5 = vmax.f32 %v776_v62, 0.0  ;;  %v788_v27 = vadd.f32 %v787_v24, %v5496_v59  ;;  %v789_v28 = vpop.f32.mrb[18].mxu1 }
 0x17e   :  { %v598_v9 = vadd.f32 %v597_v8, %v5496_v59  ;;  %v599_v10 = vpop.f32.mrb[38].mxu0  ;;  %1920 = vmatprep.mubr.bf16.mxu0 %v1466_v4  ;;  %v1401_v31 = vmax.f32 %v786_v51, 0.0  ;;  %v790_v32 = vadd.f32 %v789_v28, %v5493_v58 }
 0x17f   :  { %v600_v11 = vadd.f32 %v599_v10, %v5493_v58  ;;  %v601_v12 = vpop.f32.mrb[39].mxu0  ;;  %1921 = vmatmul.mubr.bf16.gmra.mrb[128].mxu0 %v1465_v1  ;;  %v1249_v20 = vmax.f32 %v596_v46, 0.0 }
 0x180   :  { %v602_v16 = vadd.f32 %v601_v12, %v5496_v59  ;;  %v1250_v47 = vmax.f32 %v598_v9, 0.0  ;;  %v782_v9 = vadd.f32 %v781_v7, %v5496_v59  ;;  %v1397_v12 = vmax.f32 %v780_v6, 0.0 }
 0x181   :  { %v1253_v21 = vmax.f32 %v600_v11, 0.0 }
 0x182   :  { %v1254_v23 = vmax.f32 %v602_v16, 0.0  ;;  %v1398_v16 = vmax.f32 %v782_v9, 0.0 }
 0x183   :  { %v1469_v26 = vpack.c.bf16 %v1253_v21, %v1249_v20  ;;  %v5665_v20 = vpack.c.bf16 %v1397_v12, %v1393_v5 }
 0x184   :  { %v1470_v29 = vpack.c.bf16 %v1254_v23, %v1250_v47  ;;  %v605_v30 = vpop.f32.mrb[40].mxu0  ;;  %v5667_v47 = vpack.c.bf16 %v1398_v16, %v1394_v42 }
 0x185   :  { %v606_v33 = vadd.f32 %v605_v30, %v5493_v58  ;;  %v607_v34 = vpop.f32.mrb[41].mxu0 }
 0x186   :  { %v608_v36 = vadd.f32 %v607_v34, %v5496_v59  ;;  %v609_v37 = vpop.f32.mrb[42].mxu0  ;;  %1928 = vmatprep.mubr.bf16.mxu0 %v1470_v29 }
 0x187   :  { %v610_v38 = vadd.f32 %v609_v37, %v5493_v58  ;;  %v611_v39 = vpop.f32.mrb[43].mxu0  ;;  %1929 = vmatmul.mubr.bf16.gmra.mrb[132].mxu0 %v1469_v26  ;;  %v1257_v53 = vmax.f32 %v606_v33, 0.0  ;;  %v791_v33 = vpop.f32.mrb[19].mxu1 }
 0x188   :  { %v612_v41 = vadd.f32 %v611_v39, %v5496_v59  ;;  %v1258_v48 = vmax.f32 %v608_v36, 0.0  ;;  %v1402_v36 = vmax.f32 %v788_v27, 0.0  ;;  %v792_v37 = vadd.f32 %v791_v33, %v5496_v59 }
 0x189   :  { %v1261_v55 = vmax.f32 %v610_v38, 0.0 }
 0x18a   :  { %v1262_v61 = vmax.f32 %v612_v41, 0.0  ;;  %v1405_v41 = vmax.f32 %v790_v32, 0.0  ;;  %v1406_v57 = vmax.f32 %v792_v37, 0.0 }
 0x18b   :  { %v1473_v1 = vpack.c.bf16 %v1261_v55, %v1257_v53 }
 0x18c   :  { %v1474_v3 = vpack.c.bf16 %v1262_v61, %v1258_v48  ;;  %v615_v4 = vpop.f32.mrb[44].mxu0  ;;  %v5681_v61 = vpack.c.bf16 %v1405_v41, %v1401_v31  ;;  %v5683_v2 = vpack.c.bf16 %v1406_v57, %v1402_v36 }
 0x18d   :  { %v616_v46 = vadd.f32 %v615_v4, %v5493_v58  ;;  %v617_v8 = vpop.f32.mrb[45].mxu0 }
 0x18e   :  { %v618_v10 = vadd.f32 %v617_v8, %v5496_v59  ;;  %v619_v11 = vpop.f32.mrb[46].mxu0  ;;  %1936 = vmatprep.mubr.bf16.mxu0 %v1474_v3 }
 0x18f   :  { %v620_v13 = vadd.f32 %v619_v11, %v5493_v58  ;;  %v621_v14 = vpop.f32.mrb[47].mxu0  ;;  %1937 = vmatmul.mubr.bf16.gmra.mrb[136].mxu0 %v1473_v1  ;;  %v1265_v21 = vmax.f32 %v616_v46, 0.0  ;;  %v795_v1 = vpop.f32.mrb[20].mxu1 }
 0x190   :  { %v622_v18 = vadd.f32 %v621_v14, %v5496_v59  ;;  %v1266_v23 = vmax.f32 %v618_v10, 0.0  ;;  %v796_v4 = vadd.f32 %v795_v1, %v5493_v58  ;;  %v797_v5 = vpop.f32.mrb[21].mxu1 }
 0x191   :  { %v1269_v49 = vmax.f32 %v620_v13, 0.0  ;;  %v798_v7 = vadd.f32 %v797_v5, %v5496_v59  ;;  %v799_v52 = vpop.f32.mrb[22].mxu1 }
 0x192   :  { %v1270_v44 = vmax.f32 %v622_v18, 0.0  ;;  %v1409_v42 = vmax.f32 %v796_v4, 0.0  ;;  %v800_v9 = vadd.f32 %v799_v52, %v5493_v58  ;;  %v801_v10 = vpop.f32.mrb[23].mxu1  ;;  %v4866_v4 = vld [vmem:[%s6450_s0 + $0xc8] sm:$0xff]  }
 0x193   :  { %v1477_v26 = vpack.c.bf16 %v1269_v49, %v1265_v21  ;;  %v1410_v13 = vmax.f32 %v798_v7, 0.0  ;;  %v802_v14 = vadd.f32 %v801_v10, %v5496_v59  ;;  %v805_v27 = vpop.f32.mrb[24].mxu1  ;;  %4010 = vmatmul.mubr.msk.bf16.gmra.mrb[132].mxu1 %vm374_vm0, %v4866_v4 }
 0x194   :  { %v1478_v29 = vpack.c.bf16 %v1270_v44, %v1266_v23  ;;  %v625_v30 = vpop.f32.mrb[48].mxu0  ;;  %v1413_v18 = vmax.f32 %v800_v9, 0.0  ;;  %v4712_v23 = vld [vmem:[%s6453_s3 + $0xf0] sm:$0xff]   ;;  %v806_v25 = vadd.f32 %v805_v27, %v5493_v58  ;;  %v807_v31 = vpop.f32.mrb[25].mxu1  ;;  %1116 = vmatprep.mubr.bf16.mxu1 %v5022_v0 }
 0x195   :  { %v626_v34 = vadd.f32 %v625_v30, %v5493_v58  ;;  %v627_v35 = vpop.f32.mrb[49].mxu0  ;;  %v1414_v22 = vmax.f32 %v802_v14, 0.0  ;;  %2142 = vmatpush1.bf16.msra.mxu0 %v4712_v23  ;;  %v808_v33 = vadd.f32 %v807_v31, %v5496_v59 }
 0x196   :  { %v628_v38 = vadd.f32 %v627_v35, %v5496_v59  ;;  %v629_v39 = vpop.f32.mrb[50].mxu0  ;;  %1944 = vmatprep.mubr.bf16.mxu0 %v1478_v29  ;;  %v5699_v51 = vpack.c.bf16 %v1413_v18, %v1409_v42  ;;  %2143 = vmatprep.subr.bf16.mxu0 %v5022_v0  ;;  %v1417_v37 = vmax.f32 %v806_v25, 0.0 }
 0x197   :  { %v630_v53 = vadd.f32 %v629_v39, %v5493_v58  ;;  %v631_v55 = vpop.f32.mrb[51].mxu0  ;;  %1945 = vmatmul.mubr.bf16.gmra.mrb[140].mxu0 %v1477_v26  ;;  %v1273_v62 = vmax.f32 %v626_v34, 0.0  ;;  %v5701_v28 = vpack.c.bf16 %v1414_v22, %v1410_v13  ;;  %v809_v34 = vpop.f32.mrb[26].mxu1 }
 0x198   :  { %v632_v48 = vadd.f32 %v631_v55, %v5496_v59  ;;  %v1274_v50 = vmax.f32 %v628_v38, 0.0  ;;  %v810_v38 = vadd.f32 %v809_v34, %v5493_v58  ;;  %v811_v39 = vpop.f32.mrb[27].mxu1  ;;  %v1418_v55 = vmax.f32 %v808_v33, 0.0  ;;  %v4713_v33 = vld [vmem:[%s6453_s3 + $0xf8] sm:$0xff]  }
 0x199   :  { %v1277_v63 = vmax.f32 %v630_v53, 0.0  ;;  %v812_v57 = vadd.f32 %v811_v39, %v5496_v59  ;;  %v184_v34 = vsub.s32 2, %v5483_v54  ;;  %2144 = vmatpush1.bf16.msra.mxu0 %v4713_v33 }
 0x19a   :  { %v1278_v3 = vmax.f32 %v632_v48, 0.0 }
 0x19b   :  { %v1481_v6 = vpack.c.bf16 %v1277_v63, %v1273_v62  ;;  %v1421_v63 = vmax.f32 %v810_v38, 0.0 }
 0x19c   :  { %v1482_v46 = vpack.c.bf16 %v1278_v3, %v1274_v50  ;;  %v635_v8 = vpop.f32.mrb[52].mxu0  ;;  %v1422_v3 = vmax.f32 %v812_v57, 0.0 }
 0x19d   :  { %v636_v11 = vadd.f32 %v635_v8, %v5493_v58  ;;  %v637_v12 = vpop.f32.mrb[53].mxu0 }
 0x19e   :  { %v638_v16 = vadd.f32 %v637_v12, %v5496_v59  ;;  %v639_v17 = vpop.f32.mrb[54].mxu0  ;;  %1952 = vmatprep.mubr.bf16.mxu0 %v1482_v46  ;;  %v815_v46 = vpop.f32.mrb[28].mxu1  ;;  %v5719_v8 = vpack.c.bf16 %v1422_v3, %v1418_v55 }
 0x19f   :  { %v640_v21 = vadd.f32 %v639_v17, %v5493_v58  ;;  %v641_v49 = vpop.f32.mrb[55].mxu0  ;;  %1953 = vmatmul.mubr.bf16.gmra.mrb[144].mxu0 %v1481_v6  ;;  %v1281_v24 = vmax.f32 %v636_v11, 0.0  ;;  %v5717_v6 = vpack.c.bf16 %v1421_v63, %v1417_v37  ;;  %v816_v10 = vadd.f32 %v815_v46, %v5493_v58  ;;  %v817_v11 = vpop.f32.mrb[29].mxu1 }
 0x1a0   :  { %v642_v44 = vadd.f32 %v641_v49, %v5496_v59  ;;  %v1282_v29 = vmax.f32 %v638_v16, 0.0  ;;  %v818_v13 = vadd.f32 %v817_v11, %v5496_v59  ;;  %v819_v14 = vpop.f32.mrb[30].mxu1 }
 0x1a1   :  { %v1285_v26 = vmax.f32 %v640_v21, 0.0  ;;  %v1425_v18 = vmax.f32 %v816_v10, 0.0  ;;  %v820_v21 = vadd.f32 %v819_v14, %v5493_v58  ;;  %v821_v49 = vpop.f32.mrb[31].mxu1 }
 0x1a2   :  { %v1286_v30 = vmax.f32 %v642_v44, 0.0  ;;  %v1426_v44 = vmax.f32 %v818_v13, 0.0 }
 0x1a3   :  { %v1485_v32 = vpack.c.bf16 %v1285_v26, %v1281_v24  ;;  %v822_v24 = vadd.f32 %v821_v49, %v5496_v59 }
 0x1a4   :  { %v1486_v35 = vpack.c.bf16 %v1286_v30, %v1282_v29  ;;  %v645_v36 = vpop.f32.mrb[56].mxu0  ;;  %v1429_v29 = vmax.f32 %v820_v21, 0.0 }
 0x1a5   :  { %v646_v41 = vadd.f32 %v645_v36, %v5493_v58  ;;  %v647_v53 = vpop.f32.mrb[57].mxu0  ;;  %v1430_v31 = vmax.f32 %v822_v24, 0.0  ;;  %v188_v36 = vsub.s32 3, %v5483_v54 }
 0x1a6   :  { %v648_v48 = vadd.f32 %v647_v53, %v5496_v59  ;;  %v649_v62 = vpop.f32.mrb[58].mxu0  ;;  %1960 = vmatprep.mubr.bf16.mxu0 %v1486_v35  ;;  %v5739_v37 = vpack.c.bf16 %v1429_v29, %v1425_v18  ;;  %v858_v53 = vpop.f32.mrb[32].mxu1  ;;  %v4868_v18 = vld [vmem:[%s6450_s0 + $0xd8] sm:$0xff]  }
 0x1a7   :  { %v650_v1 = vadd.f32 %v649_v62, %v5493_v58  ;;  %v651_v50 = vpop.f32.mrb[59].mxu0  ;;  %1961 = vmatmul.mubr.bf16.gmra.mrb[148].mxu0 %v1485_v32  ;;  %v1289_v7 = vmax.f32 %v646_v41, 0.0  ;;  %v4867_v32 = vld [vmem:[%s6450_s0 + $0xd0] sm:$0xff]   ;;  %v5742_v41 = vrot.slane %v5486_v56, %v184_v34  ;;  %v5744_v55 = vpack.c.bf16 %v1430_v31, %v1426_v44  ;;  %v860_v63 = vpop.f32.mrb[33].mxu1 }
 0x1a8   :  { %v652_v5 = vadd.f32 %v651_v50, %v5496_v59  ;;  %v1290_v42 = vmax.f32 %v648_v48, 0.0  ;;  %4011 = vmatmul.mubr.msk.bf16.gmra.mrb[136].mxu1 %vm374_vm0, %v4867_v32  ;;  %v5747_v62 = vrot.slane %v5486_v56, %v188_v36  ;;  %v862_v50 = vpop.f32.mrb[34].mxu1 }
 0x1a9   :  { %v1293_v52 = vmax.f32 %v650_v1, 0.0  ;;  %1126 = vmatprep.mubr.bf16.mxu1 %v5022_v0  ;;  %v859_v1 = vadd.f32 %v858_v53, %v5742_v41 }
 0x1aa   :  { %v1294_v9 = vmax.f32 %v652_v5, 0.0  ;;  %v861_v5 = vadd.f32 %v860_v63, %v5747_v62 }
 0x1ab   :  { %v1489_v12 = vpack.c.bf16 %v1293_v52, %v1289_v7  ;;  %v863_v7 = vadd.f32 %v862_v50, %v5742_v41  ;;  %v864_v52 = vpop.f32.mrb[35].mxu1 }
 0x1ac   :  { %v1490_v16 = vpack.c.bf16 %v1294_v9, %v1290_v42  ;;  %v655_v17 = vpop.f32.mrb[60].mxu0  ;;  %v1179_v9 = vmax.f32 %v859_v1, 0.0  ;;  %v865_v10 = vadd.f32 %v864_v52, %v5747_v62  ;;  %v868_v44 = vpop.f32.mrb[36].mxu1 }
 0x1ad   :  { %v656_v22 = vadd.f32 %v655_v17, %v5493_v58  ;;  %v657_v23 = vpop.f32.mrb[61].mxu0  ;;  %v1183_v13 = vmax.f32 %v863_v7, 0.0  ;;  %v869_v29 = vadd.f32 %v868_v44, %v5742_v41 }
 0x1ae   :  { %v658_v26 = vadd.f32 %v657_v23, %v5496_v59  ;;  %v659_v27 = vpop.f32.mrb[62].mxu0  ;;  %1968 = vmatprep.mubr.bf16.mxu0 %v1490_v16  ;;  %v1184_v17 = vmax.f32 %v865_v10, 0.0 }
 0x1af   :  { %v660_v30 = vadd.f32 %v659_v27, %v5493_v58  ;;  %v661_v25 = vpop.f32.mrb[63].mxu0  ;;  %1969 = vmatmul.mubr.bf16.gmra.mrb[152].mxu0 %v1489_v12  ;;  %v1297_v38 = vmax.f32 %v656_v22, 0.0  ;;  %v1180_v12 = vmax.f32 %v861_v5, 0.0  ;;  %v5761_v49 = vpack.c.bf16 %v1183_v13, %v1179_v9  ;;  %v4869_v5 = vld [vmem:[%s6450_s0 + $0xe0] sm:$0xff]  }
 0x1b0   :  { %v662_v35 = vadd.f32 %v661_v25, %v5496_v59  ;;  %v1298_v57 = vmax.f32 %v658_v26, 0.0  ;;  %4012 = vmatmul.mubr.msk.bf16.gmra.mrb[140].mxu1 %vm374_vm0, %v4868_v18 }
 0x1b1   :  { %v1301_v39 = vmax.f32 %v660_v30, 0.0  ;;  %1136 = vmatprep.mubr.bf16.mxu1 %v5022_v0  ;;  %v5764_v24 = vpack.c.bf16 %v1184_v17, %v1180_v12  ;;  %v870_v30 = vpop.f32.mrb[37].mxu1 }
 0x1b2   :  { %v1302_v48 = vmax.f32 %v662_v35, 0.0  ;;  %v871_v31 = vadd.f32 %v870_v30, %v5747_v62  ;;  %v872_v32 = vpop.f32.mrb[38].mxu1  ;;  %v1187_v35 = vmax.f32 %v869_v29, 0.0 }
 0x1b3   :  { %v1493_v54 = vpack.c.bf16 %v1301_v39, %v1297_v38  ;;  %v873_v36 = vadd.f32 %v872_v32, %v5742_v41  ;;  %v874_v38 = vpop.f32.mrb[39].mxu1 }
 0x1b4   :  { %v1494_v3 = vpack.c.bf16 %v1302_v48, %v1298_v57  ;;  %v665_v4 = vpop.f32.mrb[64].mxu0  ;;  %v1188_v57 = vmax.f32 %v871_v31, 0.0  ;;  %v875_v48 = vadd.f32 %v874_v38, %v5747_v62  ;;  %v878_v9 = vpop.f32.mrb[40].mxu1 }
 0x1b5   :  { %v666_v46 = vadd.f32 %v665_v4, %v5493_v58  ;;  %v667_v42 = vpop.f32.mrb[65].mxu0  ;;  %v1191_v1 = vmax.f32 %v873_v36, 0.0  ;;  %v879_v12 = vadd.f32 %v878_v9, %v5742_v41  ;;  %v880_v13 = vpop.f32.mrb[41].mxu1  ;;  %v4870_v36 = vld [vmem:[%s6450_s0 + $0xe8] sm:$0xff]  }
 0x1b6   :  { %v668_v56 = vadd.f32 %v667_v42, %v5496_v59  ;;  %v669_v11 = vpop.f32.mrb[66].mxu0  ;;  %1976 = vmatprep.mubr.bf16.mxu0 %v1494_v3  ;;  %v1192_v4 = vmax.f32 %v875_v48, 0.0  ;;  %v882_v17 = vpop.f32.mrb[42].mxu1 }
 0x1b7   :  { %v670_v14 = vadd.f32 %v669_v11, %v5493_v58  ;;  %v671_v16 = vpop.f32.mrb[67].mxu0  ;;  %1977 = vmatmul.mubr.bf16.gmra.mrb[156].mxu0 %v1493_v54  ;;  %v1305_v22 = vmax.f32 %v666_v46, 0.0  ;;  %v5779_v52 = vpack.c.bf16 %v1191_v1, %v1187_v35  ;;  %v884_v44 = vpop.f32.mrb[43].mxu1 }
 0x1b8   :  { %v672_v21 = vadd.f32 %v671_v16, %v5496_v59  ;;  %v1306_v26 = vmax.f32 %v668_v56, 0.0  ;;  %4013 = vmatmul.mubr.msk.bf16.gmra.mrb[144].mxu1 %vm374_vm0, %v4869_v5  ;;  %v5781_v10 = vpack.c.bf16 %v1192_v4, %v1188_v57  ;;  %v881_v16 = vadd.f32 %v880_v13, %v5747_v62  ;;  %v888_v48 = vpop.f32.mrb[44].mxu1 }
 0x1b9   :  { %v1309_v23 = vmax.f32 %v670_v14, 0.0  ;;  %1146 = vmatprep.mubr.bf16.mxu1 %v5022_v0  ;;  %v885_v30 = vadd.f32 %v884_v44, %v5747_v62 }
 0x1ba   :  { %v1310_v27 = vmax.f32 %v672_v21, 0.0  ;;  %v1196_v29 = vmax.f32 %v881_v16, 0.0 }
 0x1bb   :  { %v1497_v25 = vpack.c.bf16 %v1309_v23, %v1305_v22  ;;  %v1195_v22 = vmax.f32 %v879_v12, 0.0  ;;  %v883_v23 = vadd.f32 %v882_v17, %v5742_v41  ;;  %v1200_v35 = vmax.f32 %v885_v30, 0.0 }
 0x1bc   :  { %v1498_v33 = vpack.c.bf16 %v1310_v27, %v1306_v26  ;;  %v675_v34 = vpop.f32.mrb[68].mxu0 }
 0x1bd   :  { %v676_v39 = vadd.f32 %v675_v34, %v5493_v58  ;;  %v677_v53 = vpop.f32.mrb[69].mxu0  ;;  %v1199_v32 = vmax.f32 %v883_v23, 0.0 }
 0x1be   :  { %v678_v63 = vadd.f32 %v677_v53, %v5496_v59  ;;  %v679_v54 = vpop.f32.mrb[70].mxu0  ;;  %1984 = vmatprep.mubr.bf16.mxu0 %v1498_v33 }
 0x1bf   :  { %v680_v50 = vadd.f32 %v679_v54, %v5493_v58  ;;  %v681_v3 = vpop.f32.mrb[71].mxu0  ;;  %1985 = vmatmul.mubr.bf16.gmra.mrb[160].mxu0 %v1497_v25  ;;  %v1313_v46 = vmax.f32 %v676_v39, 0.0  ;;  %v5796_v39 = vpack.c.bf16 %v1199_v32, %v1195_v22 }
 0x1c0   :  { %v682_v7 = vadd.f32 %v681_v3, %v5496_v59  ;;  %v1314_v56 = vmax.f32 %v678_v63, 0.0  ;;  %4014 = vmatmul.mubr.msk.bf16.gmra.mrb[148].mxu1 %vm374_vm0, %v4870_v36  ;;  %v5798_v63 = vpack.c.bf16 %v1200_v35, %v1196_v29  ;;  %v890_v3 = vpop.f32.mrb[45].mxu1 }
 0x1c1   :  { %v1317_v42 = vmax.f32 %v680_v50, 0.0  ;;  %1156 = vmatprep.mubr.bf16.mxu1 %v5022_v0  ;;  %v889_v50 = vadd.f32 %v888_v48, %v5742_v41  ;;  %v891_v5 = vadd.f32 %v890_v3, %v5747_v62 }
 0x1c2   :  { %v1318_v11 = vmax.f32 %v682_v7, 0.0  ;;  %v892_v7 = vpop.f32.mrb[46].mxu1 }
 0x1c3   :  { %v1501_v14 = vpack.c.bf16 %v1317_v42, %v1313_v46  ;;  %v1203_v9 = vmax.f32 %v889_v50, 0.0 }
 0x1c4   :  { %v1502_v18 = vpack.c.bf16 %v1318_v11, %v1314_v56  ;;  %v685_v21 = vpop.f32.mrb[72].mxu0  ;;  %v893_v56 = vadd.f32 %v892_v7, %v5742_v41  ;;  %v894_v11 = vpop.f32.mrb[47].mxu1 }
 0x1c5   :  { %v686_v26 = vadd.f32 %v685_v21, %v5493_v58  ;;  %v687_v27 = vpop.f32.mrb[73].mxu0  ;;  %v895_v16 = vadd.f32 %v894_v11, %v5747_v62 }
 0x1c6   :  { %v688_v25 = vadd.f32 %v687_v27, %v5496_v59  ;;  %v689_v31 = vpop.f32.mrb[74].mxu0  ;;  %1992 = vmatprep.mubr.bf16.mxu0 %v1502_v18  ;;  %v1207_v21 = vmax.f32 %v893_v56, 0.0 }
 0x1c7   :  { %v690_v33 = vadd.f32 %v689_v31, %v5493_v58  ;;  %v691_v34 = vpop.f32.mrb[75].mxu0  ;;  %1993 = vmatmul.mubr.bf16.gmra.mrb[164].mxu0 %v1501_v14  ;;  %v1321_v53 = vmax.f32 %v686_v26, 0.0  ;;  %v1204_v14 = vmax.f32 %v891_v5, 0.0  ;;  %v1208_v44 = vmax.f32 %v895_v16, 0.0  ;;  %v4871_v26 = vld [vmem:[%s6450_s0 + $0xf0] sm:$0xff]   ;;  %v898_v31 = vpop.f32.mrb[48].mxu1 }
 0x1c8   :  { %v692_v38 = vadd.f32 %v691_v34, %v5496_v59  ;;  %v1322_v54 = vmax.f32 %v688_v25, 0.0  ;;  %4015 = vmatmul.mubr.msk.bf16.gmra.mrb[152].mxu1 %vm374_vm0, %v4871_v26  ;;  %v5813_v29 = vpack.c.bf16 %v1207_v21, %v1203_v9  ;;  %v899_v35 = vadd.f32 %v898_v31, %v5742_v41  ;;  %v900_v36 = vpop.f32.mrb[49].mxu1 }
 0x1c9   :  { %v1325_v57 = vmax.f32 %v690_v33, 0.0  ;;  %1166 = vmatprep.mubr.bf16.mxu1 %v5022_v0  ;;  %v5815_v32 = vpack.c.bf16 %v1208_v44, %v1204_v14 }
 0x1ca   :  { %v1326_v1 = vmax.f32 %v692_v38, 0.0 }
 0x1cb   :  { %v1505_v4 = vpack.c.bf16 %v1325_v57, %v1321_v53  ;;  %v901_v53 = vadd.f32 %v900_v36, %v5747_v62  ;;  %v902_v57 = vpop.f32.mrb[50].mxu1 }
 0x1cc   :  { %v1506_v46 = vpack.c.bf16 %v1326_v1, %v1322_v54  ;;  %v695_v42 = vpop.f32.mrb[76].mxu0  ;;  %v1211_v1 = vmax.f32 %v899_v35, 0.0  ;;  %v903_v0 = vadd.f32 %v902_v57, %v5742_v41  ;;  %v904_v50 = vpop.f32.mrb[51].mxu1 }
 0x1cd   :  { %v696_v12 = vadd.f32 %v695_v42, %v5493_v58  ;;  %v697_v13 = vpop.f32.mrb[77].mxu0  ;;  %v1212_v5 = vmax.f32 %v901_v53, 0.0  ;;  %v905_v7 = vadd.f32 %v904_v50, %v5747_v62  ;;  %v908_v21 = vpop.f32.mrb[52].mxu1 }
 0x1ce   :  { %v698_v17 = vadd.f32 %v697_v13, %v5496_v59  ;;  %v699_v18 = vpop.f32.mrb[78].mxu0  ;;  %2000 = vmatprep.mubr.bf16.mxu0 %v1506_v46  ;;  %v1215_v9 = vmax.f32 %v903_v0, 0.0  ;;  %v4872_v13 = vld [vmem:[%s6450_s0 + $0xf8] sm:$0xff]   ;;  %v909_v26 = vadd.f32 %v908_v21, %v5742_v41 }
 0x1cf   :  { %v700_v22 = vadd.f32 %v699_v18, %v5493_v58  ;;  %v701_v23 = vpop.f32.mrb[79].mxu0  ;;  %2001 = vmatmul.mubr.bf16.gmra.mrb[168].mxu0 %v1505_v4  ;;  %v1329_v30 = vmax.f32 %v696_v12, 0.0  ;;  %v1216_v12 = vmax.f32 %v905_v7, 0.0 }
 0x1d0   :  { %v702_v27 = vadd.f32 %v701_v23, %v5496_v59  ;;  %v1330_v33 = vmax.f32 %v698_v17, 0.0  ;;  %4016 = vmatmul.mubr.msk.bf16.gmra.mrb[156].mxu1 %vm374_vm0, %v4872_v13  ;;  %v5829_v16 = vpack.c.bf16 %v1215_v9, %v1211_v1  ;;  %v1219_v35 = vmax.f32 %v909_v26, 0.0 }
 0x1d1   :  { %v1333_v25 = vmax.f32 %v700_v22, 0.0  ;;  %v5831_v22 = vpack.c.bf16 %v1216_v12, %v1212_v5 }
 0x1d2   :  { %v1334_v34 = vmax.f32 %v702_v27, 0.0  ;;  %v910_v27 = vpop.f32.mrb[53].mxu1 }
 0x1d3   :  { %v1509_v38 = vpack.c.bf16 %v1333_v25, %v1329_v30  ;;  %v911_v25 = vadd.f32 %v910_v27, %v5747_v62  ;;  %v912_v31 = vpop.f32.mrb[54].mxu1 }
 0x1d4   :  { %v1510_v48 = vpack.c.bf16 %v1334_v34, %v1330_v33  ;;  %v705_v54 = vpop.f32.mrb[80].mxu0  ;;  %v913_v36 = vadd.f32 %v912_v31, %v5742_v41 }
 0x1d5   :  { %v706_v3 = vadd.f32 %v705_v54, %v5493_v58  ;;  %v707_v4 = vpop.f32.mrb[81].mxu0 }
 0x1d6   :  { %v708_v46 = vadd.f32 %v707_v4, %v5496_v59  ;;  %v709_v42 = vpop.f32.mrb[82].mxu0  ;;  %2008 = vmatprep.mubr.bf16.mxu0 %v1510_v48  ;;  %v1220_v48 = vmax.f32 %v911_v25, 0.0  ;;  %v1223_v50 = vmax.f32 %v913_v36, 0.0 }
 0x1d7   :  { %v710_v56 = vadd.f32 %v709_v42, %v5493_v58  ;;  %v711_v11 = vpop.f32.mrb[83].mxu0  ;;  %2009 = vmatmul.mubr.bf16.gmra.mrb[172].mxu0 %v1509_v38  ;;  %v1337_v17 = vmax.f32 %v706_v3, 0.0  ;;  %v914_v38 = vpop.f32.mrb[55].mxu1 }
 0x1d8   :  { %v712_v14 = vadd.f32 %v711_v11, %v5496_v59  ;;  %v1338_v23 = vmax.f32 %v708_v46, 0.0  ;;  %v915_v54 = vadd.f32 %v914_v38, %v5747_v62  ;;  %v5841_v46 = vpack.c.bf16 %v1223_v50, %v1219_v35 }
 0x1d9   :  { %v1341_v18 = vmax.f32 %v710_v56, 0.0  ;;  %v918_v56 = vpop.f32.mrb[56].mxu1 }
 0x1da   :  { %v1342_v44 = vmax.f32 %v712_v14, 0.0  ;;  %v1224_v5 = vmax.f32 %v915_v54, 0.0  ;;  %v919_v14 = vadd.f32 %v918_v56, %v5742_v41 }
 0x1db   :  { %v1513_v30 = vpack.c.bf16 %v1341_v18, %v1337_v17  ;;  %v920_v17 = vpop.f32.mrb[57].mxu1 }
 0x1dc   :  { %v1514_v33 = vpack.c.bf16 %v1342_v44, %v1338_v23  ;;  %v715_v34 = vpop.f32.mrb[84].mxu0  ;;  %v5843_v11 = vpack.c.bf16 %v1224_v5, %v1220_v48  ;;  %v921_v21 = vadd.f32 %v920_v17, %v5747_v62  ;;  %v922_v23 = vpop.f32.mrb[58].mxu1  ;;  %v1227_v27 = vmax.f32 %v919_v14, 0.0 }
 0x1dd   :  { %v716_v53 = vadd.f32 %v715_v34, %v5493_v58  ;;  %v717_v57 = vpop.f32.mrb[85].mxu0  ;;  %v924_v25 = vpop.f32.mrb[59].mxu1 }
 0x1de   :  { %v718_v1 = vadd.f32 %v717_v57, %v5496_v59  ;;  %v719_v0 = vpop.f32.mrb[86].mxu0  ;;  %2016 = vmatprep.mubr.bf16.mxu0 %v1514_v33  ;;  %v1228_v34 = vmax.f32 %v921_v21, 0.0  ;;  %v925_v35 = vadd.f32 %v924_v25, %v5747_v62 }
 0x1df   :  { %v720_v3 = vadd.f32 %v719_v0, %v5493_v58  ;;  %v721_v4 = vpop.f32.mrb[87].mxu0  ;;  %2017 = vmatmul.mubr.bf16.gmra.mrb[176].mxu0 %v1513_v30  ;;  %v1345_v42 = vmax.f32 %v716_v53, 0.0  ;;  %v923_v30 = vadd.f32 %v922_v23, %v5742_v41 }
 0x1e0   :  { %v722_v7 = vadd.f32 %v721_v4, %v5496_v59  ;;  %v1346_v12 = vmax.f32 %v718_v1, 0.0  ;;  %v1232_v54 = vmax.f32 %v925_v35, 0.0  ;;  %v928_v4 = vpop.f32.mrb[60].mxu1 }
 0x1e1   :  { %v1349_v9 = vmax.f32 %v720_v3, 0.0  ;;  %v1231_v53 = vmax.f32 %v923_v30, 0.0  ;;  %v930_v56 = vpop.f32.mrb[61].mxu1 }
 0x1e2   :  { %v1350_v13 = vmax.f32 %v722_v7, 0.0  ;;  %v5855_v5 = vpack.c.bf16 %v1232_v54, %v1228_v34  ;;  %v932_v14 = vpop.f32.mrb[62].mxu1 }
 0x1e3   :  { %v1517_v18 = vpack.c.bf16 %v1349_v9, %v1345_v42  ;;  %v5853_v0 = vpack.c.bf16 %v1231_v53, %v1227_v27  ;;  %v929_v9 = vadd.f32 %v928_v4, %v5742_v41  ;;  %v933_v23 = vadd.f32 %v932_v14, %v5742_v41 }
 0x1e4   :  { %v1518_v44 = vpack.c.bf16 %v1350_v13, %v1346_v12  ;;  %v725_v26 = vpop.f32.mrb[88].mxu0  ;;  %v931_v13 = vadd.f32 %v930_v56, %v5747_v62 }
 0x1e5   :  { %v726_v31 = vadd.f32 %v725_v26, %v5493_v58  ;;  %v727_v33 = vpop.f32.mrb[89].mxu0  ;;  %v1235_v21 = vmax.f32 %v929_v9, 0.0  ;;  %v1239_v34 = vmax.f32 %v933_v23, 0.0 }
 0x1e6   :  { %v728_v36 = vadd.f32 %v727_v33, %v5496_v59  ;;  %v729_v38 = vpop.f32.mrb[90].mxu0  ;;  %2024 = vmatprep.mubr.bf16.mxu0 %v1518_v44  ;;  %v934_v44 = vpop.f32.mrb[63].mxu1  ;;  %v1236_v30 = vmax.f32 %v931_v13, 0.0 }
 0x1e7   :  { %v730_v57 = vadd.f32 %v729_v38, %v5493_v58  ;;  %v731_v48 = vpop.f32.mrb[91].mxu0  ;;  %2025 = vmatmul.mubr.bf16.gmra.mrb[180].mxu0 %v1517_v18  ;;  %v1353_v50 = vmax.f32 %v726_v31, 0.0  ;;  %v935_v25 = vadd.f32 %v934_v44, %v5747_v62 }
 0x1e8   :  { %v732_v1 = vadd.f32 %v731_v48, %v5496_v59  ;;  %v1354_v7 = vmax.f32 %v728_v36, 0.0 }
 0x1e9   :  { %v1357_v3 = vmax.f32 %v730_v57, 0.0  ;;  %v1240_v38 = vmax.f32 %v935_v25, 0.0  ;;  %v5865_v57 = vpack.c.bf16 %v1239_v34, %v1235_v21 }
 0x1ea   :  { %v1358_v42 = vmax.f32 %v732_v1, 0.0  ;;  %v938_v1 = vpop.f32.mrb[64].mxu1 }
 0x1eb   :  { %v1521_v12 = vpack.c.bf16 %v1357_v3, %v1353_v50  ;;  %v5867_v50 = vpack.c.bf16 %v1240_v38, %v1236_v30 }
 0x1ec   :  { %v1522_v17 = vpack.c.bf16 %v1358_v42, %v1354_v7  ;;  %v735_v18 = vpop.f32.mrb[92].mxu0  ;;  %v939_v7 = vadd.f32 %v938_v1, %v5742_v41  ;;  %v940_v42 = vpop.f32.mrb[65].mxu1 }
 0x1ed   :  { %v736_v26 = vadd.f32 %v735_v18, %v5493_v58  ;;  %v737_v27 = vpop.f32.mrb[93].mxu0  ;;  %v942_v56 = vpop.f32.mrb[66].mxu1 }
 0x1ee   :  { %v738_v31 = vadd.f32 %v737_v27, %v5496_v59  ;;  %v739_v33 = vpop.f32.mrb[94].mxu0  ;;  %2032 = vmatprep.mubr.bf16.mxu0 %v1522_v17  ;;  %v1243_v13 = vmax.f32 %v939_v7, 0.0  ;;  %v944_v14 = vpop.f32.mrb[67].mxu1 }
 0x1ef   :  { %v740_v35 = vadd.f32 %v739_v33, %v5493_v58  ;;  %v741_v36 = vpop.f32.mrb[95].mxu0  ;;  %2033 = vmatmul.mubr.bf16.gmra.mrb[184].mxu0 %v1521_v12  ;;  %v1361_v48 = vmax.f32 %v736_v26, 0.0  ;;  %v941_v58 = vadd.f32 %v940_v42, %v5747_v62  ;;  %v945_v18 = vadd.f32 %v944_v14, %v5747_v62  ;;  %v948_v26 = vpop.f32.mrb[68].mxu1 }
 0x1f0   :  { %v742_v53 = vadd.f32 %v741_v36, %v5496_v59  ;;  %v1362_v3 = vmax.f32 %v738_v31, 0.0  ;;  %v943_v59 = vadd.f32 %v942_v56, %v5742_v41  ;;  %v949_v30 = vadd.f32 %v948_v26, %v5742_v41  ;;  %v950_v25 = vpop.f32.mrb[69].mxu1 }
 0x1f1   :  { %v1365_v54 = vmax.f32 %v740_v35, 0.0  ;;  %v1244_v17 = vmax.f32 %v941_v58, 0.0  ;;  %v1248_v23 = vmax.f32 %v945_v18, 0.0  ;;  %v951_v31 = vadd.f32 %v950_v25, %v5747_v62  ;;  %v952_v33 = vpop.f32.mrb[70].mxu1 }
 0x1f2   :  { %v1366_v4 = vmax.f32 %v742_v53, 0.0  ;;  %v1247_v21 = vmax.f32 %v943_v59, 0.0  ;;  %v1251_v34 = vmax.f32 %v949_v30, 0.0  ;;  %v953_v35 = vadd.f32 %v952_v33, %v5742_v41  ;;  %v954_v36 = vpop.f32.mrb[71].mxu1 }
 0x1f3   :  { %v1525_v9 = vpack.c.bf16 %v1365_v54, %v1361_v48  ;;  %v5876_v27 = vpack.c.bf16 %v1248_v23, %v1244_v17  ;;  %v1252_v38 = vmax.f32 %v951_v31, 0.0  ;;  %v955_v53 = vadd.f32 %v954_v36, %v5747_v62  ;;  %v958_v1 = vpop.f32.mrb[72].mxu1 }
 0x1f4   :  { %v1526_v12 = vpack.c.bf16 %v1366_v4, %v1362_v3  ;;  %v5874_v44 = vpack.c.bf16 %v1247_v21, %v1243_v13  ;;  %v1255_v48 = vmax.f32 %v953_v35, 0.0  ;;  %v959_v4 = vadd.f32 %v958_v1, %v5742_v41  ;;  %v960_v7 = vpop.f32.mrb[73].mxu1 }
 0x1f5   :  { %v961_v42 = vadd.f32 %v960_v7, %v5747_v62 }
 0x1f6   :  { %2040 = vmatprep.mubr.bf16.mxu0 %v1526_v12  ;;  %v5884_v54 = vpack.c.bf16 %v1255_v48, %v1251_v34  ;;  %v1259_v58 = vmax.f32 %v959_v4, 0.0 }
 0x1f7   :  { %2041 = vmatmul.mubr.bf16.gmra.mrb[188].mxu0 %v1525_v9  ;;  %v962_v9 = vpop.f32.mrb[74].mxu1  ;;  %v1260_v13 = vmax.f32 %v961_v42, 0.0 }
 0x1f8   :  { %2048 = vmatprep.mubr.bf16.mxu0 %v5617_v60  ;;  %v1256_v60 = vmax.f32 %v955_v53, 0.0  ;;  %v963_v56 = vadd.f32 %v962_v9, %v5742_v41  ;;  %v964_v12 = vpop.f32.mrb[75].mxu1 }
 0x1f9   :  { %v968_v17 = vpop.f32.mrb[76].mxu1 }
 0x1fa   :  { %v5886_v3 = vpack.c.bf16 %v1256_v60, %v1252_v38  ;;  %v1263_v59 = vmax.f32 %v963_v56, 0.0  ;;  %v969_v21 = vadd.f32 %v968_v17, %v5742_v41  ;;  %v970_v23 = vpop.f32.mrb[77].mxu1 }
 0x1fb   :  { %v971_v26 = vadd.f32 %v970_v23, %v5747_v62  ;;  %v972_v30 = vpop.f32.mrb[78].mxu1 }
 0x1fc   :  { %v5894_v14 = vpack.c.bf16 %v1263_v59, %v1259_v58  ;;  %v1267_v25 = vmax.f32 %v969_v21, 0.0  ;;  %v973_v31 = vadd.f32 %v972_v30, %v5742_v41  ;;  %v974_v33 = vpop.f32.mrb[79].mxu1 }
 0x1fd   :  { %v1268_v34 = vmax.f32 %v971_v26, 0.0  ;;  %v978_v38 = vpop.f32.mrb[80].mxu1 }
 0x1fe   :  { %v1271_v35 = vmax.f32 %v973_v31, 0.0  ;;  %v979_v48 = vadd.f32 %v978_v38, %v5742_v41  ;;  %v980_v60 = vpop.f32.mrb[81].mxu1 }
 0x1ff   :  { %2049 = vmatmul.mubr.bf16.gmra.mrb[192].mxu0 %v5614_v43  ;;  %v965_v43 = vadd.f32 %v964_v12, %v5747_v62  ;;  %v981_v1 = vadd.f32 %v980_v60, %v5747_v62  ;;  %v982_v4 = vpop.f32.mrb[82].mxu1  ;;  %v4714_v12 = vld [vmem:[#allocation7] sm:$0xff]  }
 0x200   :  { %2056 = vmatprep.mubr.bf16.mxu0 %v5629_v15  ;;  %v5904_v36 = vpack.c.bf16 %v1271_v35, %v1267_v25  ;;  %v1275_v7 = vmax.f32 %v979_v48, 0.0  ;;  %v983_v42 = vadd.f32 %v982_v4, %v5742_v41  ;;  %v984_v9 = vpop.f32.mrb[83].mxu1  ;;  %4197 = vmatprep.subr.bf16.mxu1 %v4714_v12 }
 0x201   :  { %v1264_v15 = vmax.f32 %v965_v43, 0.0  ;;  %v1276_v58 = vmax.f32 %v981_v1, 0.0  ;;  %v988_v43 = vpop.f32.mrb[84].mxu1  ;;  %4198 = vmatpush3.bf16.msra.mxu1 %v4714_v12 }
 0x202   :  { %v1279_v56 = vmax.f32 %v983_v42, 0.0  ;;  %v990_v17 = vpop.f32.mrb[85].mxu1 }
 0x203   :  { %v5896_v18 = vpack.c.bf16 %v1264_v15, %v1260_v13  ;;  %v989_v15 = vadd.f32 %v988_v43, %v5742_v41  ;;  %v991_v21 = vadd.f32 %v990_v17, %v5747_v62  ;;  %v992_v23 = vpop.f32.mrb[86].mxu1 }
 0x204   :  { %v5914_v13 = vpack.c.bf16 %v1279_v56, %v1275_v7  ;;  %v994_v30 = vpop.f32.mrb[87].mxu1 }
 0x205   :  { %v1283_v26 = vmax.f32 %v989_v15, 0.0  ;;  %v1284_v25 = vmax.f32 %v991_v21, 0.0 }
 0x207   :  { %2057 = vmatmul.mubr.bf16.gmra.mrb[196].mxu0 %v5634_v19  ;;  %v975_v19 = vadd.f32 %v974_v33, %v5747_v62 }
 0x208   :  { %2064 = vmatprep.mubr.bf16.mxu0 %v5645_v45 }
 0x209   :  { %v1272_v45 = vmax.f32 %v975_v19, 0.0  ;;  %v998_v19 = vpop.f32.mrb[88].mxu1 }
 0x20a   :  { %v1000_v38 = vpop.f32.mrb[89].mxu1 }
 0x20b   :  { %v5906_v53 = vpack.c.bf16 %v1272_v45, %v1268_v34  ;;  %v999_v45 = vadd.f32 %v998_v19, %v5742_v41  ;;  %v1001_v48 = vadd.f32 %v1000_v38, %v5747_v62  ;;  %v1002_v60 = vpop.f32.mrb[90].mxu1 }
 0x20c   :  { %v1003_v4 = vadd.f32 %v1002_v60, %v5742_v41  ;;  %v1004_v7 = vpop.f32.mrb[91].mxu1 }
 0x20d   :  { %v1291_v1 = vmax.f32 %v999_v45, 0.0  ;;  %v1292_v42 = vmax.f32 %v1001_v48, 0.0 }
 0x20f   :  { %2065 = vmatmul.mubr.bf16.gmra.mrb[200].mxu0 %v5649_v40  ;;  %v985_v40 = vadd.f32 %v984_v9, %v5747_v62  ;;  %v1295_v9 = vmax.f32 %v1003_v4, 0.0 }
 0x210   :  { %2072 = vmatprep.mubr.bf16.mxu0 %v5667_v47 }
 0x211   :  { %v1280_v47 = vmax.f32 %v985_v40, 0.0  ;;  %v1008_v40 = vpop.f32.mrb[92].mxu1 }
 0x212   :  { %v1010_v12 = vpop.f32.mrb[93].mxu1 }
 0x213   :  { %v5916_v59 = vpack.c.bf16 %v1280_v47, %v1276_v58  ;;  %v5934_v58 = vpack.c.bf16 %v1295_v9, %v1291_v1  ;;  %v1009_v47 = vadd.f32 %v1008_v40, %v5742_v41  ;;  %v1011_v43 = vadd.f32 %v1010_v12, %v5747_v62  ;;  %v1012_v15 = vpop.f32.mrb[94].mxu1 }
 0x214   :  { %v1013_v21 = vadd.f32 %v1012_v15, %v5742_v41 }
 0x215   :  { %v1299_v17 = vmax.f32 %v1009_v47, 0.0 }
 0x217   :  { %2073 = vmatmul.mubr.bf16.gmra.mrb[204].mxu0 %v5665_v20  ;;  %v993_v20 = vadd.f32 %v992_v23, %v5742_v41  ;;  %v1014_v23 = vpop.f32.mrb[95].mxu1 }
 0x218   :  { %2080 = vmatprep.mubr.bf16.mxu0 %v5683_v2  ;;  %v995_v2 = vadd.f32 %v994_v30, %v5747_v62 }
 0x219   :  { %v1287_v31 = vmax.f32 %v993_v20, 0.0  ;;  %v1303_v20 = vmax.f32 %v1013_v21, 0.0 }
 0x21a   :  { %v1288_v33 = vmax.f32 %v995_v2, 0.0 }
 0x21b   :  { %v5924_v34 = vpack.c.bf16 %v1287_v31, %v1283_v26  ;;  %v1300_v26 = vmax.f32 %v1011_v43, 0.0  ;;  %v5944_v30 = vpack.c.bf16 %v1303_v20, %v1299_v17 }
 0x21c   :  { %v5926_v35 = vpack.c.bf16 %v1288_v33, %v1284_v25  ;;  %v1018_v25 = vpop.f32.mrb[96].mxu1 }
 0x21d   :  { %v1019_v31 = vadd.f32 %v1018_v25, %v5742_v41  ;;  %v1020_v33 = vpop.f32.mrb[97].mxu1 }
 0x21e   :  { %v1021_v19 = vadd.f32 %v1020_v33, %v5747_v62  ;;  %v1022_v45 = vpop.f32.mrb[98].mxu1 }
 0x21f   :  { %2081 = vmatmul.mubr.bf16.gmra.mrb[208].mxu0 %v5681_v61  ;;  %v1005_v61 = vadd.f32 %v1004_v7, %v5747_v62  ;;  %v1307_v38 = vmax.f32 %v1019_v31, 0.0  ;;  %v1023_v48 = vadd.f32 %v1022_v45, %v5742_v41  ;;  %v1024_v60 = vpop.f32.mrb[99].mxu1  ;;  %v4715_v7 = vld [vmem:[#allocation7 + $0x8] sm:$0xff]  }
 0x220   :  { %2088 = vmatprep.mubr.bf16.mxu0 %v5701_v28  ;;  %v1308_v1 = vmax.f32 %v1021_v19, 0.0  ;;  %v1028_v9 = vpop.f32.mrb[100].mxu1  ;;  %4199 = vmatprep.subr.bf16.mxu1 %v4715_v7 }
 0x221   :  { %v1296_v28 = vmax.f32 %v1005_v61, 0.0  ;;  %v1311_v4 = vmax.f32 %v1023_v48, 0.0  ;;  %v1030_v40 = vpop.f32.mrb[101].mxu1  ;;  %4200 = vmatpush3.bf16.msra.mxu1 %v4715_v7 }
 0x222   :  { %v1031_v47 = vadd.f32 %v1030_v40, %v5747_v62  ;;  %v1032_v12 = vpop.f32.mrb[102].mxu1 }
 0x223   :  { %v5936_v56 = vpack.c.bf16 %v1296_v28, %v1292_v42  ;;  %v5954_v42 = vpack.c.bf16 %v1311_v4, %v1307_v38  ;;  %v1029_v28 = vadd.f32 %v1028_v9, %v5742_v41  ;;  %v1034_v15 = vpop.f32.mrb[103].mxu1 }
 0x224   :  { %v1316_v17 = vmax.f32 %v1031_v47, 0.0  ;;  %v1038_v20 = vpop.f32.mrb[104].mxu1 }
 0x225   :  { %v1315_v43 = vmax.f32 %v1029_v28, 0.0  ;;  %v1040_v25 = vpop.f32.mrb[105].mxu1 }
 0x226   :  { %v1041_v31 = vadd.f32 %v1040_v25, %v5747_v62  ;;  %v1042_v33 = vpop.f32.mrb[106].mxu1 }
 0x227   :  { %2089 = vmatmul.mubr.bf16.gmra.mrb[212].mxu0 %v5699_v51  ;;  %v1015_v51 = vadd.f32 %v1014_v23, %v5747_v62  ;;  %v1043_v45 = vadd.f32 %v1042_v33, %v5742_v41  ;;  %v1044_v38 = vpop.f32.mrb[107].mxu1 }
 0x228   :  { %2096 = vmatprep.mubr.bf16.mxu0 %v5719_v8  ;;  %v1324_v48 = vmax.f32 %v1041_v31, 0.0  ;;  %v1048_v4 = vpop.f32.mrb[108].mxu1 }
 0x229   :  { %v1304_v8 = vmax.f32 %v1015_v51, 0.0  ;;  %v1050_v7 = vpop.f32.mrb[109].mxu1 }
 0x22a   :  { %v1051_v9 = vadd.f32 %v1050_v7, %v5747_v62  ;;  %v1052_v28 = vpop.f32.mrb[110].mxu1 }
 0x22b   :  { %v5946_v2 = vpack.c.bf16 %v1304_v8, %v1300_v26  ;;  %v1039_v8 = vadd.f32 %v1038_v20, %v5742_v41  ;;  %v1053_v47 = vadd.f32 %v1052_v28, %v5742_v41 }
 0x22d   :  { %v1323_v19 = vmax.f32 %v1039_v8, 0.0 }
 0x22f   :  { %2097 = vmatmul.mubr.bf16.gmra.mrb[216].mxu0 %v5717_v6  ;;  %v1025_v6 = vadd.f32 %v1024_v60, %v5747_v62  ;;  %v1327_v60 = vmax.f32 %v1043_v45, 0.0  ;;  %v4716_v45 = vld [vmem:[#allocation7 + $0x10] sm:$0xff]  }
 0x230   :  { %2104 = vmatprep.mubr.bf16.mxu0 %v5744_v55  ;;  %4201 = vmatprep.subr.bf16.mxu1 %v4716_v45 }
 0x231   :  { %v1312_v55 = vmax.f32 %v1025_v6, 0.0  ;;  %4202 = vmatpush3.bf16.msra.mxu1 %v4716_v45 }
 0x233   :  { %v5956_v61 = vpack.c.bf16 %v1312_v55, %v1308_v1  ;;  %v5974_v1 = vpack.c.bf16 %v1327_v60, %v1323_v19  ;;  %v1049_v55 = vadd.f32 %v1048_v4, %v5742_v41 }
 0x235   :  { %v1331_v40 = vmax.f32 %v1049_v55, 0.0 }
 0x237   :  { %2105 = vmatmul.mubr.bf16.gmra.mrb[220].mxu0 %v5739_v37  ;;  %v1033_v37 = vadd.f32 %v1032_v12, %v5742_v41  ;;  %v1054_v12 = vpop.f32.mrb[111].mxu1 }
 0x238   :  { %2145 = vmatprep.mubr.bf16.mxu0 %v5764_v24  ;;  %v1035_v24 = vadd.f32 %v1034_v15, %v5747_v62 }
 0x239   :  { %v1319_v21 = vmax.f32 %v1033_v37, 0.0 }
 0x23a   :  { %v1320_v23 = vmax.f32 %v1035_v24, 0.0  ;;  %v1058_v24 = vpop.f32.mrb[112].mxu1 }
 0x23b   :  { %v5964_v26 = vpack.c.bf16 %v1319_v21, %v1315_v43  ;;  %v1332_v43 = vmax.f32 %v1051_v9, 0.0  ;;  %v1059_v21 = vadd.f32 %v1058_v24, %v5742_v41 }
 0x23c   :  { %v5966_v51 = vpack.c.bf16 %v1320_v23, %v1316_v17  ;;  %v1060_v23 = vpop.f32.mrb[113].mxu1 }
 0x23d   :  { %v1061_v20 = vadd.f32 %v1060_v23, %v5747_v62  ;;  %v1062_v8 = vpop.f32.mrb[114].mxu1  ;;  %v1339_v25 = vmax.f32 %v1059_v21, 0.0 }
 0x23e   :  { %v1063_v31 = vadd.f32 %v1062_v8, %v5742_v41  ;;  %v1064_v33 = vpop.f32.mrb[115].mxu1 }
 0x23f   :  { %2146 = vmatmul.mubr.bf16.vlgmr.msra.gmra.mrb[96].mxu0 %v5761_v49  ;;  %v1045_v49 = vadd.f32 %v1044_v38, %v5747_v62  ;;  %v1065_v19 = vadd.f32 %v1064_v33, %v5747_v62  ;;  %v1068_v60 = vpop.f32.mrb[116].mxu1 }
 0x240   :  { %2153 = vmatprep.mubr.bf16.mxu0 %v5781_v10  ;;  %v1070_v4 = vpop.f32.mrb[117].mxu1 }
 0x241   :  { %v1328_v10 = vmax.f32 %v1045_v49, 0.0  ;;  %v1344_v38 = vmax.f32 %v1065_v19, 0.0  ;;  %v1071_v55 = vadd.f32 %v1070_v4, %v5747_v62  ;;  %v1072_v7 = vpop.f32.mrb[118].mxu1 }
 0x242   :  { %v1074_v28 = vpop.f32.mrb[119].mxu1 }
 0x243   :  { %v5976_v6 = vpack.c.bf16 %v1328_v10, %v1324_v48  ;;  %v1069_v10 = vadd.f32 %v1068_v60, %v5742_v41 }
 0x245   :  { %v1347_v9 = vmax.f32 %v1069_v10, 0.0 }
 0x247   :  { %2154 = vmatmul.mubr.bf16.gmra.mrb[100].mxu0 %v5779_v52  ;;  %v1055_v52 = vadd.f32 %v1054_v12, %v5747_v62 }
 0x248   :  { %2161 = vmatprep.mubr.bf16.mxu0 %v5798_v63  ;;  %v1335_v63 = vmax.f32 %v1053_v47, 0.0 }
 0x249   :  { %v1336_v37 = vmax.f32 %v1055_v52, 0.0 }
 0x24a   :  { %v5984_v15 = vpack.c.bf16 %v1335_v63, %v1331_v40  ;;  %v1348_v40 = vmax.f32 %v1071_v55, 0.0  ;;  %v1078_v63 = vpop.f32.mrb[120].mxu1 }
 0x24b   :  { %v5986_v17 = vpack.c.bf16 %v1336_v37, %v1332_v43  ;;  %v1079_v37 = vadd.f32 %v1078_v63, %v5742_v41  ;;  %v1080_v24 = vpop.f32.mrb[121].mxu1 }
 0x24c   :  { %v1081_v21 = vadd.f32 %v1080_v24, %v5747_v62  ;;  %v1082_v23 = vpop.f32.mrb[122].mxu1 }
 0x24d   :  { %v1083_v8 = vadd.f32 %v1082_v23, %v5742_v41 }
 0x24f   :  { %2162 = vmatmul.mubr.bf16.gmra.mrb[104].mxu0 %v5796_v39  ;;  %v1340_v39 = vmax.f32 %v1061_v20, 0.0  ;;  %v1355_v20 = vmax.f32 %v1079_v37, 0.0 }
 0x250   :  { %2169 = vmatprep.mubr.bf16.mxu0 %v5815_v32  ;;  %v1343_v32 = vmax.f32 %v1063_v31, 0.0 }
 0x251   :  { %v5996_v49 = vpack.c.bf16 %v1344_v38, %v1340_v39 }
 0x252   :  { %v5994_v48 = vpack.c.bf16 %v1343_v32, %v1339_v25  ;;  %v1084_v25 = vpop.f32.mrb[123].mxu1 }
 0x253   :  { %v1085_v31 = vadd.f32 %v1084_v25, %v5747_v62  ;;  %v1088_v32 = vpop.f32.mrb[124].mxu1 }
 0x254   :  { %v1089_v45 = vadd.f32 %v1088_v32, %v5742_v41  ;;  %v1090_v38 = vpop.f32.mrb[125].mxu1 }
 0x255   :  { %v1360_v33 = vmax.f32 %v1085_v31, 0.0  ;;  %v1091_v60 = vadd.f32 %v1090_v38, %v5747_v62  ;;  %v1092_v10 = vpop.f32.mrb[126].mxu1 }
 0x256   :  { %v1363_v4 = vmax.f32 %v1089_v45, 0.0  ;;  %v1093_v55 = vadd.f32 %v1092_v10, %v5742_v41 }
 0x257   :  { %2170 = vmatmul.mubr.bf16.gmra.mrb[108].mxu0 %v5813_v29  ;;  %v1073_v29 = vadd.f32 %v1072_v7, %v5742_v41  ;;  %v1094_v7 = vpop.f32.mrb[127].mxu1 }
 0x258   :  { %2177 = vmatprep.mubr.bf16.mxu0 %v5831_v22  ;;  %v1075_v22 = vadd.f32 %v1074_v28, %v5747_v62 }
 0x259   :  { %v1351_v47 = vmax.f32 %v1073_v29, 0.0 }
 0x25a   :  { %v1352_v12 = vmax.f32 %v1075_v22, 0.0  ;;  %v1098_v22 = vpop.f32.mrb[128].mxu1 }
 0x25b   :  { %v6004_v43 = vpack.c.bf16 %v1351_v47, %v1347_v9  ;;  %v1095_v9 = vadd.f32 %v1094_v7, %v5747_v62  ;;  %v1099_v47 = vadd.f32 %v1098_v22, %v5742_v41 }
 0x25c   :  { %v6006_v52 = vpack.c.bf16 %v1352_v12, %v1348_v40  ;;  %v1100_v12 = vpop.f32.mrb[129].mxu1 }
 0x25d   :  { %v1368_v29 = vmax.f32 %v1095_v9, 0.0  ;;  %v1101_v63 = vadd.f32 %v1100_v12, %v5747_v62  ;;  %v1102_v37 = vpop.f32.mrb[130].mxu1  ;;  %v1371_v24 = vmax.f32 %v1099_v47, 0.0 }
 0x25e   :  { %v1104_v23 = vpop.f32.mrb[131].mxu1 }
 0x25f   :  { %2178 = vmatmul.mubr.bf16.gmra.mrb[112].mxu0 %v5829_v16  ;;  %v1356_v16 = vmax.f32 %v1081_v21, 0.0  ;;  %v1103_v21 = vadd.f32 %v1102_v37, %v5742_v41 }
 0x260   :  { %2185 = vmatprep.mubr.bf16.mxu0 %v5843_v11  ;;  %v1359_v11 = vmax.f32 %v1083_v8, 0.0  ;;  %v4717_v8 = vld [vmem:[#allocation7 + $0x18] sm:$0xff]  }
 0x261   :  { %v6016_v19 = vpack.c.bf16 %v1360_v33, %v1356_v16  ;;  %4203 = vmatprep.subr.bf16.mxu1 %v4717_v8 }
 0x262   :  { %v6014_v39 = vpack.c.bf16 %v1359_v11, %v1355_v20  ;;  %v1105_v20 = vadd.f32 %v1104_v23, %v5747_v62  ;;  %4204 = vmatpush3.bf16.msra.mxu1 %v4717_v8 }
 0x264   :  { %v1376_v25 = vmax.f32 %v1105_v20, 0.0 }
 0x266   :  { %v1108_v11 = vpop.f32.mrb[132].mxu1 }
 0x267   :  { %2186 = vmatmul.mubr.bf16.gmra.mrb[116].mxu0 %v5841_v46  ;;  %v1364_v46 = vmax.f32 %v1091_v60, 0.0  ;;  %v1109_v33 = vadd.f32 %v1108_v11, %v5742_v41  ;;  %v1110_v32 = vpop.f32.mrb[133].mxu1 }
 0x268   :  { %2193 = vmatprep.mubr.bf16.mxu0 %v5855_v5  ;;  %v1367_v5 = vmax.f32 %v1093_v55, 0.0  ;;  %v1111_v45 = vadd.f32 %v1110_v32, %v5747_v62  ;;  %v1112_v38 = vpop.f32.mrb[134].mxu1 }
 0x269   :  { %v6026_v40 = vpack.c.bf16 %v1368_v29, %v1364_v46  ;;  %v1379_v60 = vmax.f32 %v1109_v33, 0.0  ;;  %v1114_v10 = vpop.f32.mrb[135].mxu1 }
 0x26a   :  { %v6024_v28 = vpack.c.bf16 %v1367_v5, %v1363_v4  ;;  %v1380_v4 = vmax.f32 %v1111_v45, 0.0 }
 0x26f   :  { %2194 = vmatmul.mubr.bf16.gmra.mrb[120].mxu0 %v5853_v0  ;;  %v1372_v0 = vmax.f32 %v1101_v63, 0.0 }
 0x270   :  { %2201 = vmatprep.mubr.bf16.mxu0 %v5867_v50  ;;  %v1375_v50 = vmax.f32 %v1103_v21, 0.0 }
 0x271   :  { %v6036_v31 = vpack.c.bf16 %v1376_v25, %v1372_v0 }
 0x272   :  { %v6034_v16 = vpack.c.bf16 %v1375_v50, %v1371_v24 }
 0x277   :  { %2202 = vmatmul.mubr.bf16.gmra.mrb[124].mxu0 %v5865_v57  ;;  %v1113_v57 = vadd.f32 %v1112_v38, %v5742_v41 }
 0x278   :  { %2209 = vmatprep.mubr.bf16.mxu0 %v5876_v27  ;;  %v1115_v27 = vadd.f32 %v1114_v10, %v5747_v62 }
 0x279   :  { %v1383_v55 = vmax.f32 %v1113_v57, 0.0 }
 0x27a   :  { %v1384_v7 = vmax.f32 %v1115_v27, 0.0 }
 0x27b   :  { %v6044_v46 = vpack.c.bf16 %v1383_v55, %v1379_v60  ;;  %v1118_v5 = vpop.f32.mrb[136].mxu1 }
 0x27c   :  { %v6046_v9 = vpack.c.bf16 %v1384_v7, %v1380_v4  ;;  %v1119_v29 = vadd.f32 %v1118_v5, %v5742_v41  ;;  %v1120_v22 = vpop.f32.mrb[137].mxu1  ;;  %v4718_v4 = vld [vmem:[#allocation7 + $0x20] sm:$0xff]  }
 0x27d   :  { %v1121_v47 = vadd.f32 %v1120_v22, %v5747_v62  ;;  %v1122_v12 = vpop.f32.mrb[138].mxu1  ;;  %4205 = vmatprep.subr.bf16.mxu1 %v4718_v4 }
 0x27e   :  { %v1387_v63 = vmax.f32 %v1119_v29, 0.0  ;;  %v1123_v37 = vadd.f32 %v1122_v12, %v5742_v41  ;;  %v1124_v24 = vpop.f32.mrb[139].mxu1  ;;  %4206 = vmatpush3.bf16.msra.mxu1 %v4718_v4 }
 0x27f   :  { %2210 = vmatmul.mubr.bf16.gmra.mrb[128].mxu0 %v5874_v44  ;;  %v1388_v44 = vmax.f32 %v1121_v47, 0.0  ;;  %v1125_v21 = vadd.f32 %v1124_v24, %v5747_v62 }
 0x280   :  { %2217 = vmatprep.mubr.bf16.mxu0 %v5886_v3  ;;  %v1391_v3 = vmax.f32 %v1123_v37, 0.0 }
 0x281   :  { %v1392_v23 = vmax.f32 %v1125_v21, 0.0 }
 0x282   :  { %v6054_v0 = vpack.c.bf16 %v1391_v3, %v1387_v63  ;;  %v4720_v3 = vld [vmem:[#allocation7 + $0x30] sm:$0xff]  }
 0x283   :  { %v6056_v20 = vpack.c.bf16 %v1392_v23, %v1388_v44  ;;  %v1128_v50 = vpop.f32.mrb[140].mxu1 }
 0x284   :  { %v1129_v8 = vadd.f32 %v1128_v50, %v5742_v41  ;;  %v1130_v25 = vpop.f32.mrb[141].mxu1 }
 0x285   :  { %v1131_v11 = vadd.f32 %v1130_v25, %v5747_v62  ;;  %v1132_v33 = vpop.f32.mrb[142].mxu1 }
 0x286   :  { %v1395_v32 = vmax.f32 %v1129_v8, 0.0  ;;  %v1133_v45 = vadd.f32 %v1132_v33, %v5742_v41  ;;  %v1134_v38 = vpop.f32.mrb[143].mxu1 }
 0x287   :  { %2218 = vmatmul.mubr.bf16.gmra.mrb[132].mxu0 %v5884_v54  ;;  %v1396_v54 = vmax.f32 %v1131_v11, 0.0  ;;  %v1135_v60 = vadd.f32 %v1134_v38, %v5747_v62 }
 0x288   :  { %2225 = vmatprep.mubr.bf16.mxu0 %v5896_v18  ;;  %v1399_v18 = vmax.f32 %v1133_v45, 0.0  ;;  %v4721_v45 = vld [vmem:[#allocation7 + $0x38] sm:$0xff]  }
 0x289   :  { %v1400_v57 = vmax.f32 %v1135_v60, 0.0 }
 0x28a   :  { %v6064_v10 = vpack.c.bf16 %v1399_v18, %v1395_v32 }
 0x28b   :  { %v6066_v27 = vpack.c.bf16 %v1400_v57, %v1396_v54  ;;  %v1138_v55 = vpop.f32.mrb[144].mxu1 }
 0x28c   :  { %v1139_v7 = vadd.f32 %v1138_v55, %v5742_v41  ;;  %v1140_v5 = vpop.f32.mrb[145].mxu1 }
 0x28d   :  { %v1141_v29 = vadd.f32 %v1140_v5, %v5747_v62  ;;  %v1142_v22 = vpop.f32.mrb[146].mxu1 }
 0x28e   :  { %v1403_v47 = vmax.f32 %v1139_v7, 0.0  ;;  %v1144_v12 = vpop.f32.mrb[147].mxu1 }
 0x28f   :  { %2226 = vmatmul.mubr.bf16.gmra.mrb[136].mxu0 %v5894_v14  ;;  %v1143_v14 = vadd.f32 %v1142_v22, %v5742_v41  ;;  %v1404_v63 = vmax.f32 %v1141_v29, 0.0  ;;  %v1145_v37 = vadd.f32 %v1144_v12, %v5747_v62 }
 0x290   :  { %2233 = vmatprep.mubr.bf16.mxu0 %v5906_v53  ;;  %v4719_v53 = vld [vmem:[#allocation7 + $0x28] sm:$0xff]  }
 0x291   :  { %v1407_v24 = vmax.f32 %v1143_v14, 0.0  ;;  %4207 = vmatprep.subr.bf16.mxu1 %v4719_v53  ;;  %v1408_v44 = vmax.f32 %v1145_v37, 0.0 }
 0x292   :  { %4208 = vmatpush3.bf16.msra.mxu1 %v4719_v53 }
 0x293   :  { %v6074_v21 = vpack.c.bf16 %v1407_v24, %v1403_v47  ;;  %v6076_v23 = vpack.c.bf16 %v1408_v44, %v1404_v63  ;;  %v1148_v50 = vpop.f32.mrb[148].mxu1  ;;  %4209 = vmatprep.subr.bf16.mxu1 %v4720_v3 }
 0x294   :  { %v1149_v8 = vadd.f32 %v1148_v50, %v5742_v41  ;;  %v1150_v25 = vpop.f32.mrb[149].mxu1 }
 0x295   :  { %v1151_v11 = vadd.f32 %v1150_v25, %v5747_v62  ;;  %v1152_v33 = vpop.f32.mrb[150].mxu1 }
 0x296   :  { %4210 = vmatpush3.bf16.msra.mxu1 %v4720_v3  ;;  %v1153_v32 = vadd.f32 %v1152_v33, %v5742_v41 }
 0x297   :  { %2234 = vmatmul.mubr.bf16.gmra.mrb[140].mxu0 %v5904_v36  ;;  %v1411_v36 = vmax.f32 %v1149_v8, 0.0  ;;  %v1412_v38 = vmax.f32 %v1151_v11, 0.0  ;;  %4211 = vmatprep.subr.bf16.mxu1 %v4721_v45 }
 0x298   :  { %2241 = vmatprep.mubr.bf16.mxu0 %v5916_v59  ;;  %v1154_v59 = vpop.f32.mrb[151].mxu1  ;;  %v1415_v60 = vmax.f32 %v1153_v32, 0.0 }
 0x299   :  { %v1155_v54 = vadd.f32 %v1154_v59, %v5747_v62 }
 0x29a   :  { %4212 = vmatpush3.bf16.msra.mxu1 %v4721_v45  ;;  %v6084_v57 = vpack.c.bf16 %v1415_v60, %v1411_v36 }
 0x29b   :  { %v1416_v18 = vmax.f32 %v1155_v54, 0.0  ;;  %v1158_v55 = vpop.f32.mrb[152].mxu1 }
 0x29c   :  { %v1159_v7 = vadd.f32 %v1158_v55, %v5742_v41  ;;  %v1160_v5 = vpop.f32.mrb[153].mxu1 }
 0x29d   :  { %v6086_v4 = vpack.c.bf16 %v1416_v18, %v1412_v38  ;;  %v1161_v29 = vadd.f32 %v1160_v5, %v5747_v62  ;;  %v1162_v22 = vpop.f32.mrb[154].mxu1 }
 0x29e   :  { %v1419_v47 = vmax.f32 %v1159_v7, 0.0  ;;  %v1164_v14 = vpop.f32.mrb[155].mxu1 }
 0x29f   :  { %2242 = vmatmul.mubr.bf16.gmra.mrb[144].mxu0 %v5914_v13  ;;  %v1163_v13 = vadd.f32 %v1162_v22, %v5742_v41  ;;  %v1420_v12 = vmax.f32 %v1161_v29, 0.0 }
 0x2a0   :  { %2249 = vmatprep.mubr.bf16.mxu0 %v5926_v35  ;;  %v1165_v35 = vadd.f32 %v1164_v14, %v5747_v62 }
 0x2a1   :  { %v1423_v53 = vmax.f32 %v1163_v13, 0.0 }
 0x2a2   :  { %v1424_v63 = vmax.f32 %v1165_v35, 0.0 }
 0x2a3   :  { %v6094_v37 = vpack.c.bf16 %v1423_v53, %v1419_v47  ;;  %v1168_v44 = vpop.f32.mrb[156].mxu1 }
 0x2a4   :  { %v6096_v24 = vpack.c.bf16 %v1424_v63, %v1420_v12  ;;  %v1169_v3 = vadd.f32 %v1168_v44, %v5742_v41  ;;  %v1170_v50 = vpop.f32.mrb[157].mxu1 }
 0x2a5   :  { %v1171_v8 = vadd.f32 %v1170_v50, %v5747_v62  ;;  %v1172_v25 = vpop.f32.mrb[158].mxu1 }
 0x2a6   :  { %v1427_v11 = vmax.f32 %v1169_v3, 0.0  ;;  %v1173_v33 = vadd.f32 %v1172_v25, %v5742_v41  ;;  %v1174_v36 = vpop.f32.mrb[159].mxu1  ;;  %v6134_v41 = vld [vmem:[%s6454_s4] ss:$0 sm:$0xff] }
 0x2a7   :  { %2250 = vmatmul.mubr.bf16.gmra.mrb[148].mxu0 %v5924_v34  ;;  %v1428_v34 = vmax.f32 %v1171_v8, 0.0  ;;  %v1175_v32 = vadd.f32 %v1174_v36, %v5747_v62 }
 0x2a8   :  { %2257 = vmatprep.mubr.bf16.mxu0 %v5936_v56  ;;  %v1431_v56 = vmax.f32 %v1173_v33, 0.0 }
 0x2a9   :  { %v1432_v59 = vmax.f32 %v1175_v32, 0.0 }
 0x2aa   :  { %v6104_v45 = vpack.c.bf16 %v1431_v56, %v1427_v11 }
 0x2ab   :  { %v6106_v38 = vpack.c.bf16 %v1432_v59, %v1428_v34 }
 0x2af   :  { %2258 = vmatmul.mubr.bf16.gmra.mrb[152].mxu0 %v5934_v58 }
 0x2b0   :  { %2265 = vmatprep.mubr.bf16.mxu0 %v5946_v2 }
 0x2b7   :  { %2266 = vmatmul.mubr.bf16.gmra.mrb[156].mxu0 %v5944_v30 }
 0x2b8   :  { %2273 = vmatprep.mubr.bf16.mxu0 %v5956_v61 }
 0x2bf   :  { %2274 = vmatmul.mubr.bf16.gmra.mrb[160].mxu0 %v5954_v42 }
 0x2c0   :  { %2281 = vmatprep.mubr.bf16.mxu0 %v5966_v51 }
 0x2c7   :  { %2282 = vmatmul.mubr.bf16.gmra.mrb[164].mxu0 %v5964_v26 }
 0x2c8   :  { %2289 = vmatprep.mubr.bf16.mxu0 %v5976_v6 }
 0x2cf   :  { %2290 = vmatmul.mubr.bf16.gmra.mrb[168].mxu0 %v5974_v1 }
 0x2d0   :  { %2297 = vmatprep.mubr.bf16.mxu0 %v5986_v17 }
 0x2d7   :  { %2298 = vmatmul.mubr.bf16.gmra.mrb[172].mxu0 %v5984_v15 }
 0x2d8   :  { %2305 = vmatprep.mubr.bf16.mxu0 %v5996_v49 }
 0x2df   :  { %2306 = vmatmul.mubr.bf16.gmra.mrb[176].mxu0 %v5994_v48 }
 0x2e0   :  { %2313 = vmatprep.mubr.bf16.mxu0 %v6006_v52 }
 0x2e7   :  { %2314 = vmatmul.mubr.bf16.gmra.mrb[180].mxu0 %v6004_v43 }
 0x2e8   :  { %2321 = vmatprep.mubr.bf16.mxu0 %v6016_v19 }
 0x2ef   :  { %2322 = vmatmul.mubr.bf16.gmra.mrb[184].mxu0 %v6014_v39 }
 0x2f0   :  { %2329 = vmatprep.mubr.bf16.mxu0 %v6026_v40 }
 0x2f7   :  { %2330 = vmatmul.mubr.bf16.gmra.mrb[188].mxu0 %v6024_v28 }
 0x2f8   :  { %2337 = vmatprep.mubr.bf16.mxu0 %v6036_v31 }
 0x2ff   :  { %2338 = vmatmul.mubr.bf16.gmra.mrb[192].mxu0 %v6034_v16 }
 0x300   :  { %2345 = vmatprep.mubr.bf16.mxu0 %v6046_v9 }
 0x307   :  { %2346 = vmatmul.mubr.bf16.gmra.mrb[196].mxu0 %v6044_v46 }
 0x308   :  { %2353 = vmatprep.mubr.bf16.mxu0 %v6056_v20 }
 0x30f   :  { %2354 = vmatmul.mubr.bf16.gmra.mrb[200].mxu0 %v6054_v0 }
 0x310   :  { %2361 = vmatprep.mubr.bf16.mxu0 %v6066_v27 }
 0x312   :  { %v2147_v62 = vpop.f32.mrb[96].mxu0 }
 0x313   :  { %v4439_v58 = vadd.f32 %v6134_v41, %v2147_v62  ;;  %v2149_v30 = vpop.f32.mrb[97].mxu0 }
 0x314   :  { %v2150_v2 = vpop.f32.mrb[98].mxu0 }
 0x315   :  { %v4440_v42 = vadd.f32 %v6134_v41, %v2150_v2  ;;  %v2152_v61 = vpop.f32.mrb[99].mxu0  ;;  %v2402_v26 = vmax.f32 %v4439_v58, 0.0 }
 0x317   :  { %v2403_v51 = vmax.f32 %v4440_v42, 0.0  ;;  %2362 = vmatmul.mubr.bf16.gmra.mrb[204].mxu0 %v6064_v10 }
 0x318   :  { %2369 = vmatprep.mubr.bf16.mxu0 %v6076_v23 }
 0x319   :  { %v2466_v1 = vpack.c.bf16 %v2403_v51, %v2402_v26 }
 0x31a   :  { %v2155_v6 = vpop.f32.mrb[100].mxu0 }
 0x31b   :  { %v4441_v15 = vadd.f32 %v6134_v41, %v2155_v6  ;;  %v2157_v17 = vpop.f32.mrb[101].mxu0  ;;  %4213 = vmatprep.mubr.bf16.mxu1 %v2466_v1 }
 0x31c   :  { %v2158_v48 = vpop.f32.mrb[102].mxu0 }
 0x31d   :  { %v4442_v49 = vadd.f32 %v6134_v41, %v2158_v48  ;;  %v2160_v43 = vpop.f32.mrb[103].mxu0  ;;  %v2404_v52 = vmax.f32 %v4441_v15, 0.0 }
 0x31f   :  { %v2405_v39 = vmax.f32 %v4442_v49, 0.0  ;;  %2370 = vmatmul.mubr.bf16.gmra.mrb[208].mxu0 %v6074_v21 }
 0x320   :  { %2377 = vmatprep.mubr.bf16.mxu0 %v6086_v4 }
 0x321   :  { %v2467_v19 = vpack.c.bf16 %v2405_v39, %v2404_v52 }
 0x322   :  { %v2163_v28 = vpop.f32.mrb[104].mxu0 }
 0x323   :  { %v4443_v40 = vadd.f32 %v6134_v41, %v2163_v28  ;;  %v2165_v16 = vpop.f32.mrb[105].mxu0  ;;  %4214 = vmatmul.mubr.bf16.vlgmr.msra.gmra.mrb[160].mxu1 %v2467_v19 }
 0x324   :  { %v2166_v31 = vpop.f32.mrb[106].mxu0 }
 0x325   :  { %v4444_v46 = vadd.f32 %v6134_v41, %v2166_v31  ;;  %v2168_v9 = vpop.f32.mrb[107].mxu0  ;;  %v2406_v0 = vmax.f32 %v4443_v40, 0.0 }
 0x327   :  { %v2407_v20 = vmax.f32 %v4444_v46, 0.0  ;;  %2378 = vmatmul.mubr.bf16.gmra.mrb[212].mxu0 %v6084_v57 }
 0x328   :  { %2385 = vmatprep.mubr.bf16.mxu0 %v6096_v24 }
 0x329   :  { %v2468_v10 = vpack.c.bf16 %v2407_v20, %v2406_v0 }
 0x32a   :  { %v2171_v27 = vpop.f32.mrb[108].mxu0 }
 0x32b   :  { %v4445_v21 = vadd.f32 %v6134_v41, %v2171_v27  ;;  %v2173_v23 = vpop.f32.mrb[109].mxu0  ;;  %4217 = vmatprep.mubr.bf16.mxu1 %v2468_v10 }
 0x32c   :  { %v2174_v54 = vpop.f32.mrb[110].mxu0 }
 0x32d   :  { %v4446_v60 = vadd.f32 %v6134_v41, %v2174_v54  ;;  %v2176_v18 = vpop.f32.mrb[111].mxu0  ;;  %v2408_v4 = vmax.f32 %v4445_v21, 0.0 }
 0x32f   :  { %v2409_v55 = vmax.f32 %v4446_v60, 0.0  ;;  %2386 = vmatmul.mubr.bf16.gmra.mrb[216].mxu0 %v6094_v37 }
 0x330   :  { %2393 = vmatprep.mubr.bf16.mxu0 %v6106_v38 }
 0x331   :  { %v2469_v7 = vpack.c.bf16 %v2409_v55, %v2408_v4 }
 0x332   :  { %v2179_v57 = vpop.f32.mrb[112].mxu0 }
 0x333   :  { %v4447_v5 = vadd.f32 %v6134_v41, %v2179_v57  ;;  %v2181_v29 = vpop.f32.mrb[113].mxu0  ;;  %4218 = vmatmul.mubr.bf16.gmra.mrb[164].mxu1 %v2469_v7 }
 0x334   :  { %v2182_v22 = vpop.f32.mrb[114].mxu0 }
 0x335   :  { %v4448_v47 = vadd.f32 %v6134_v41, %v2182_v22  ;;  %v2184_v13 = vpop.f32.mrb[115].mxu0  ;;  %v2410_v14 = vmax.f32 %v4447_v5, 0.0 }
 0x337   :  { %v2411_v12 = vmax.f32 %v4448_v47, 0.0  ;;  %2394 = vmatmul.mubr.bf16.gmra.mrb[220].mxu0 %v6104_v45 }
 0x339   :  { %v2470_v35 = vpack.c.bf16 %v2411_v12, %v2410_v14 }
 0x33a   :  { %v2187_v53 = vpop.f32.mrb[116].mxu0 }
 0x33b   :  { %v4449_v63 = vadd.f32 %v6134_v41, %v2187_v53  ;;  %v2189_v37 = vpop.f32.mrb[117].mxu0  ;;  %4221 = vmatprep.mubr.bf16.mxu1 %v2470_v35 }
 0x33c   :  { %v2190_v24 = vpop.f32.mrb[118].mxu0 }
 0x33d   :  { %v4450_v44 = vadd.f32 %v6134_v41, %v2190_v24  ;;  %v2192_v3 = vpop.f32.mrb[119].mxu0  ;;  %v2412_v50 = vmax.f32 %v4449_v63, 0.0 }
 0x33f   :  { %v2413_v8 = vmax.f32 %v4450_v44, 0.0 }
 0x341   :  { %v2471_v25 = vpack.c.bf16 %v2413_v8, %v2412_v50 }
 0x342   :  { %v2195_v11 = vpop.f32.mrb[120].mxu0 }
 0x343   :  { %v4451_v33 = vadd.f32 %v6134_v41, %v2195_v11  ;;  %v2197_v36 = vpop.f32.mrb[121].mxu0  ;;  %4222 = vmatmul.mubr.bf16.gmra.mrb[168].mxu1 %v2471_v25  ;;  %v4722_v11 = vld [vmem:[#allocation8] sm:$0xff]  }
 0x344   :  { %v2198_v34 = vpop.f32.mrb[122].mxu0  ;;  %4277 = vmatprep.subr.bf16.mxu1 %v4722_v11 }
 0x345   :  { %v4452_v32 = vadd.f32 %v6134_v41, %v2198_v34  ;;  %v2200_v56 = vpop.f32.mrb[123].mxu0  ;;  %v2414_v59 = vmax.f32 %v4451_v33, 0.0  ;;  %4278 = vmatpush3.bf16.msra.mxu1 %v4722_v11 }
 0x347   :  { %v2415_v45 = vmax.f32 %v4452_v32, 0.0 }
 0x349   :  { %v2472_v38 = vpack.c.bf16 %v2415_v45, %v2414_v59  ;;  %v4723_v45 = vld [vmem:[#allocation8 + $0x8] sm:$0xff]  }
 0x34a   :  { %v2203_v62 = vpop.f32.mrb[124].mxu0  ;;  %4279 = vmatprep.subr.bf16.mxu1 %v4723_v45 }
 0x34b   :  { %v4453_v58 = vadd.f32 %v6134_v41, %v2203_v62  ;;  %v2205_v30 = vpop.f32.mrb[125].mxu0  ;;  %4225 = vmatprep.mubr.bf16.mxu1 %v2472_v38  ;;  %4280 = vmatpush3.bf16.msra.mxu1 %v4723_v45 }
 0x34c   :  { %v2206_v2 = vpop.f32.mrb[126].mxu0  ;;  %v4724_v30 = vld [vmem:[#allocation8 + $0x10] sm:$0xff]  }
 0x34d   :  { %v4454_v42 = vadd.f32 %v6134_v41, %v2206_v2  ;;  %v2208_v61 = vpop.f32.mrb[127].mxu0  ;;  %v2416_v26 = vmax.f32 %v4453_v58, 0.0  ;;  %4281 = vmatprep.subr.bf16.mxu1 %v4724_v30 }
 0x34f   :  { %v2417_v51 = vmax.f32 %v4454_v42, 0.0  ;;  %4282 = vmatpush3.bf16.msra.mxu1 %v4724_v30 }
 0x351   :  { %v2473_v1 = vpack.c.bf16 %v2417_v51, %v2416_v26 }
 0x352   :  { %v2211_v6 = vpop.f32.mrb[128].mxu0 }
 0x353   :  { %v4455_v15 = vadd.f32 %v6134_v41, %v2211_v6  ;;  %v2213_v17 = vpop.f32.mrb[129].mxu0  ;;  %4226 = vmatmul.mubr.bf16.gmra.mrb[172].mxu1 %v2473_v1  ;;  %v4725_v6 = vld [vmem:[#allocation8 + $0x18] sm:$0xff]  }
 0x354   :  { %v2214_v48 = vpop.f32.mrb[130].mxu0  ;;  %4283 = vmatprep.subr.bf16.mxu1 %v4725_v6 }
 0x355   :  { %v4456_v49 = vadd.f32 %v6134_v41, %v2214_v48  ;;  %v2216_v43 = vpop.f32.mrb[131].mxu0  ;;  %v2418_v52 = vmax.f32 %v4455_v15, 0.0  ;;  %4284 = vmatpush3.bf16.msra.mxu1 %v4725_v6 }
 0x357   :  { %v2419_v39 = vmax.f32 %v4456_v49, 0.0  ;;  %v4726_v49 = vld [vmem:[#allocation8 + $0x20] sm:$0xff]  }
 0x358   :  { %4285 = vmatprep.subr.bf16.mxu1 %v4726_v49 }
 0x359   :  { %v2474_v19 = vpack.c.bf16 %v2419_v39, %v2418_v52  ;;  %4286 = vmatpush3.bf16.msra.mxu1 %v4726_v49 }
 0x35a   :  { %v2219_v28 = vpop.f32.mrb[132].mxu0 }
 0x35b   :  { %v4457_v40 = vadd.f32 %v6134_v41, %v2219_v28  ;;  %v2221_v16 = vpop.f32.mrb[133].mxu0  ;;  %4229 = vmatprep.mubr.bf16.mxu1 %v2474_v19 }
 0x35c   :  { %v2222_v31 = vpop.f32.mrb[134].mxu0  ;;  %v4727_v16 = vld [vmem:[#allocation8 + $0x28] sm:$0xff]  }
 0x35d   :  { %v4458_v46 = vadd.f32 %v6134_v41, %v2222_v31  ;;  %v2224_v9 = vpop.f32.mrb[135].mxu0  ;;  %v2420_v0 = vmax.f32 %v4457_v40, 0.0  ;;  %4287 = vmatprep.subr.bf16.mxu1 %v4727_v16 }
 0x35e   :  { %4288 = vmatpush3.bf16.msra.mxu1 %v4727_v16 }
 0x35f   :  { %v2421_v20 = vmax.f32 %v4458_v46, 0.0 }
 0x361   :  { %v2475_v10 = vpack.c.bf16 %v2421_v20, %v2420_v0  ;;  %v4728_v0 = vld [vmem:[#allocation8 + $0x30] sm:$0xff]  }
 0x362   :  { %v2227_v27 = vpop.f32.mrb[136].mxu0  ;;  %4289 = vmatprep.subr.bf16.mxu1 %v4728_v0 }
 0x363   :  { %v4459_v21 = vadd.f32 %v6134_v41, %v2227_v27  ;;  %v2229_v23 = vpop.f32.mrb[137].mxu0  ;;  %4230 = vmatmul.mubr.bf16.gmra.mrb[176].mxu1 %v2475_v10 }
 0x364   :  { %v2230_v54 = vpop.f32.mrb[138].mxu0  ;;  %4290 = vmatpush3.bf16.msra.mxu1 %v4728_v0 }
 0x365   :  { %v4460_v60 = vadd.f32 %v6134_v41, %v2230_v54  ;;  %v2232_v18 = vpop.f32.mrb[139].mxu0  ;;  %v2422_v4 = vmax.f32 %v4459_v21, 0.0 }
 0x367   :  { %v2423_v55 = vmax.f32 %v4460_v60, 0.0  ;;  %v4729_v60 = vld [vmem:[#allocation8 + $0x38] sm:$0xff]  }
 0x368   :  { %4291 = vmatprep.subr.bf16.mxu1 %v4729_v60 }
 0x369   :  { %v2476_v7 = vpack.c.bf16 %v2423_v55, %v2422_v4  ;;  %4292 = vmatpush3.bf16.msra.mxu1 %v4729_v60 }
 0x36a   :  { %v2235_v57 = vpop.f32.mrb[140].mxu0 }
 0x36b   :  { %v4461_v5 = vadd.f32 %v6134_v41, %v2235_v57  ;;  %v2237_v29 = vpop.f32.mrb[141].mxu0  ;;  %4233 = vmatprep.mubr.bf16.mxu1 %v2476_v7 }
 0x36c   :  { %v2238_v22 = vpop.f32.mrb[142].mxu0 }
 0x36d   :  { %v4462_v47 = vadd.f32 %v6134_v41, %v2238_v22  ;;  %v2240_v13 = vpop.f32.mrb[143].mxu0  ;;  %v2424_v14 = vmax.f32 %v4461_v5, 0.0 }
 0x36f   :  { %v2425_v12 = vmax.f32 %v4462_v47, 0.0 }
 0x371   :  { %v2477_v35 = vpack.c.bf16 %v2425_v12, %v2424_v14 }
 0x372   :  { %v2243_v53 = vpop.f32.mrb[144].mxu0 }
 0x373   :  { %v4463_v63 = vadd.f32 %v6134_v41, %v2243_v53  ;;  %v2245_v37 = vpop.f32.mrb[145].mxu0  ;;  %4234 = vmatmul.mubr.bf16.gmra.mrb[180].mxu1 %v2477_v35 }
 0x374   :  { %v2246_v24 = vpop.f32.mrb[146].mxu0 }
 0x375   :  { %v4464_v44 = vadd.f32 %v6134_v41, %v2246_v24  ;;  %v2248_v3 = vpop.f32.mrb[147].mxu0  ;;  %v2426_v50 = vmax.f32 %v4463_v63, 0.0 }
 0x377   :  { %v2427_v8 = vmax.f32 %v4464_v44, 0.0 }
 0x379   :  { %v2478_v25 = vpack.c.bf16 %v2427_v8, %v2426_v50 }
 0x37a   :  { %v2251_v33 = vpop.f32.mrb[148].mxu0 }
 0x37b   :  { %v4465_v36 = vadd.f32 %v6134_v41, %v2251_v33  ;;  %v2253_v34 = vpop.f32.mrb[149].mxu0  ;;  %4237 = vmatprep.mubr.bf16.mxu1 %v2478_v25 }
 0x37c   :  { %v2254_v32 = vpop.f32.mrb[150].mxu0 }
 0x37d   :  { %v4466_v56 = vadd.f32 %v6134_v41, %v2254_v32  ;;  %v2256_v59 = vpop.f32.mrb[151].mxu0  ;;  %v2428_v38 = vmax.f32 %v4465_v36, 0.0 }
 0x37f   :  { %v2429_v62 = vmax.f32 %v4466_v56, 0.0 }
 0x381   :  { %v2479_v58 = vpack.c.bf16 %v2429_v62, %v2428_v38 }
 0x382   :  { %v2259_v2 = vpop.f32.mrb[152].mxu0 }
 0x383   :  { %v4467_v42 = vadd.f32 %v6134_v41, %v2259_v2  ;;  %v2261_v61 = vpop.f32.mrb[153].mxu0  ;;  %4238 = vmatmul.mubr.bf16.gmra.mrb[184].mxu1 %v2479_v58 }
 0x384   :  { %v2262_v26 = vpop.f32.mrb[154].mxu0 }
 0x385   :  { %v4468_v51 = vadd.f32 %v6134_v41, %v2262_v26  ;;  %v2264_v1 = vpop.f32.mrb[155].mxu0  ;;  %v2430_v15 = vmax.f32 %v4467_v42, 0.0 }
 0x387   :  { %v2431_v17 = vmax.f32 %v4468_v51, 0.0 }
 0x389   :  { %v2480_v48 = vpack.c.bf16 %v2431_v17, %v2430_v15 }
 0x38a   :  { %v2267_v43 = vpop.f32.mrb[156].mxu0 }
 0x38b   :  { %v4469_v52 = vadd.f32 %v6134_v41, %v2267_v43  ;;  %v2269_v39 = vpop.f32.mrb[157].mxu0  ;;  %4241 = vmatprep.mubr.bf16.mxu1 %v2480_v48 }
 0x38c   :  { %v2270_v19 = vpop.f32.mrb[158].mxu0 }
 0x38d   :  { %v4470_v28 = vadd.f32 %v6134_v41, %v2270_v19  ;;  %v2272_v40 = vpop.f32.mrb[159].mxu0  ;;  %v2432_v31 = vmax.f32 %v4469_v52, 0.0 }
 0x38f   :  { %v2433_v46 = vmax.f32 %v4470_v28, 0.0 }
 0x391   :  { %v2481_v9 = vpack.c.bf16 %v2433_v46, %v2432_v31 }
 0x392   :  { %v2275_v20 = vpop.f32.mrb[160].mxu0 }
 0x393   :  { %v4471_v10 = vadd.f32 %v6134_v41, %v2275_v20  ;;  %v2277_v27 = vpop.f32.mrb[161].mxu0  ;;  %4242 = vmatmul.mubr.bf16.gmra.mrb[188].mxu1 %v2481_v9 }
 0x394   :  { %v2278_v21 = vpop.f32.mrb[162].mxu0 }
 0x395   :  { %v4472_v23 = vadd.f32 %v6134_v41, %v2278_v21  ;;  %v2280_v54 = vpop.f32.mrb[163].mxu0  ;;  %v2434_v18 = vmax.f32 %v4471_v10, 0.0 }
 0x397   :  { %v2435_v4 = vmax.f32 %v4472_v23, 0.0 }
 0x399   :  { %v2482_v55 = vpack.c.bf16 %v2435_v4, %v2434_v18 }
 0x39a   :  { %v2283_v7 = vpop.f32.mrb[164].mxu0 }
 0x39b   :  { %v4473_v57 = vadd.f32 %v6134_v41, %v2283_v7  ;;  %v2285_v5 = vpop.f32.mrb[165].mxu0  ;;  %4245 = vmatprep.mubr.bf16.mxu1 %v2482_v55 }
 0x39c   :  { %v2286_v29 = vpop.f32.mrb[166].mxu0 }
 0x39d   :  { %v4474_v22 = vadd.f32 %v6134_v41, %v2286_v29  ;;  %v2288_v47 = vpop.f32.mrb[167].mxu0  ;;  %v2436_v13 = vmax.f32 %v4473_v57, 0.0 }
 0x39f   :  { %v2437_v14 = vmax.f32 %v4474_v22, 0.0 }
 0x3a1   :  { %v2483_v12 = vpack.c.bf16 %v2437_v14, %v2436_v13 }
 0x3a2   :  { %v2291_v35 = vpop.f32.mrb[168].mxu0 }
 0x3a3   :  { %v4475_v53 = vadd.f32 %v6134_v41, %v2291_v35  ;;  %v2293_v63 = vpop.f32.mrb[169].mxu0  ;;  %4246 = vmatmul.mubr.bf16.gmra.mrb[192].mxu1 %v2483_v12 }
 0x3a4   :  { %v2294_v37 = vpop.f32.mrb[170].mxu0 }
 0x3a5   :  { %v4476_v24 = vadd.f32 %v6134_v41, %v2294_v37  ;;  %v2296_v44 = vpop.f32.mrb[171].mxu0  ;;  %v2438_v3 = vmax.f32 %v4475_v53, 0.0 }
 0x3a7   :  { %v2439_v50 = vmax.f32 %v4476_v24, 0.0 }
 0x3a9   :  { %v2484_v8 = vpack.c.bf16 %v2439_v50, %v2438_v3 }
 0x3aa   :  { %v2299_v25 = vpop.f32.mrb[172].mxu0 }
 0x3ab   :  { %v4477_v11 = vadd.f32 %v6134_v41, %v2299_v25  ;;  %v2301_v33 = vpop.f32.mrb[173].mxu0  ;;  %4249 = vmatprep.mubr.bf16.mxu1 %v2484_v8 }
 0x3ac   :  { %v2302_v36 = vpop.f32.mrb[174].mxu0 }
 0x3ad   :  { %v4478_v34 = vadd.f32 %v6134_v41, %v2302_v36  ;;  %v2304_v32 = vpop.f32.mrb[175].mxu0  ;;  %v2440_v56 = vmax.f32 %v4477_v11, 0.0 }
 0x3af   :  { %v2441_v59 = vmax.f32 %v4478_v34, 0.0 }
 0x3b1   :  { %v2485_v45 = vpack.c.bf16 %v2441_v59, %v2440_v56 }
 0x3b2   :  { %v2307_v38 = vpop.f32.mrb[176].mxu0 }
 0x3b3   :  { %v4479_v62 = vadd.f32 %v6134_v41, %v2307_v38  ;;  %v2309_v58 = vpop.f32.mrb[177].mxu0  ;;  %4250 = vmatmul.mubr.bf16.gmra.mrb[196].mxu1 %v2485_v45 }
 0x3b4   :  { %v2310_v30 = vpop.f32.mrb[178].mxu0 }
 0x3b5   :  { %v4480_v2 = vadd.f32 %v6134_v41, %v2310_v30  ;;  %v2312_v42 = vpop.f32.mrb[179].mxu0  ;;  %v2442_v61 = vmax.f32 %v4479_v62, 0.0 }
 0x3b7   :  { %v2443_v26 = vmax.f32 %v4480_v2, 0.0 }
 0x3b9   :  { %v2486_v51 = vpack.c.bf16 %v2443_v26, %v2442_v61 }
 0x3ba   :  { %v2315_v1 = vpop.f32.mrb[180].mxu0 }
 0x3bb   :  { %v4481_v6 = vadd.f32 %v6134_v41, %v2315_v1  ;;  %v2317_v15 = vpop.f32.mrb[181].mxu0  ;;  %4253 = vmatprep.mubr.bf16.mxu1 %v2486_v51 }
 0x3bc   :  { %v2318_v17 = vpop.f32.mrb[182].mxu0 }
 0x3bd   :  { %v4482_v48 = vadd.f32 %v6134_v41, %v2318_v17  ;;  %v2320_v49 = vpop.f32.mrb[183].mxu0  ;;  %v2444_v43 = vmax.f32 %v4481_v6, 0.0 }
 0x3bf   :  { %v2445_v52 = vmax.f32 %v4482_v48, 0.0  ;;  %v6206_v48 = vld [vmem:[%s6456_s6] ss:$0 sm:$0xff] }
 0x3c1   :  { %v2487_v39 = vpack.c.bf16 %v2445_v52, %v2444_v43 }
 0x3c2   :  { %v2323_v19 = vpop.f32.mrb[184].mxu0 }
 0x3c3   :  { %v4483_v28 = vadd.f32 %v6134_v41, %v2323_v19  ;;  %v2325_v40 = vpop.f32.mrb[185].mxu0  ;;  %4254 = vmatmul.mubr.bf16.gmra.mrb[200].mxu1 %v2487_v39 }
 0x3c4   :  { %v2326_v16 = vpop.f32.mrb[186].mxu0 }
 0x3c5   :  { %v4484_v31 = vadd.f32 %v6134_v41, %v2326_v16  ;;  %v2328_v46 = vpop.f32.mrb[187].mxu0  ;;  %v2446_v9 = vmax.f32 %v4483_v28, 0.0 }
 0x3c7   :  { %v2447_v0 = vmax.f32 %v4484_v31, 0.0 }
 0x3c9   :  { %v2488_v20 = vpack.c.bf16 %v2447_v0, %v2446_v9 }
 0x3ca   :  { %v2331_v10 = vpop.f32.mrb[188].mxu0 }
 0x3cb   :  { %v4485_v27 = vadd.f32 %v6134_v41, %v2331_v10  ;;  %v2333_v21 = vpop.f32.mrb[189].mxu0  ;;  %4257 = vmatprep.mubr.bf16.mxu1 %v2488_v20 }
 0x3cc   :  { %v2334_v23 = vpop.f32.mrb[190].mxu0 }
 0x3cd   :  { %v4486_v54 = vadd.f32 %v6134_v41, %v2334_v23  ;;  %v2336_v60 = vpop.f32.mrb[191].mxu0  ;;  %v2448_v18 = vmax.f32 %v4485_v27, 0.0 }
 0x3cf   :  { %v2449_v4 = vmax.f32 %v4486_v54, 0.0 }
 0x3d1   :  { %v2489_v55 = vpack.c.bf16 %v2449_v4, %v2448_v18 }
 0x3d2   :  { %v2339_v7 = vpop.f32.mrb[192].mxu0 }
 0x3d3   :  { %v4487_v57 = vadd.f32 %v6134_v41, %v2339_v7  ;;  %v2341_v5 = vpop.f32.mrb[193].mxu0  ;;  %4258 = vmatmul.mubr.bf16.gmra.mrb[204].mxu1 %v2489_v55 }
 0x3d4   :  { %v2342_v29 = vpop.f32.mrb[194].mxu0 }
 0x3d5   :  { %v4488_v22 = vadd.f32 %v6134_v41, %v2342_v29  ;;  %v2344_v47 = vpop.f32.mrb[195].mxu0  ;;  %v2450_v13 = vmax.f32 %v4487_v57, 0.0 }
 0x3d7   :  { %v2451_v14 = vmax.f32 %v4488_v22, 0.0 }
 0x3d9   :  { %v2490_v12 = vpack.c.bf16 %v2451_v14, %v2450_v13 }
 0x3da   :  { %v2347_v35 = vpop.f32.mrb[196].mxu0 }
 0x3db   :  { %v4489_v53 = vadd.f32 %v6134_v41, %v2347_v35  ;;  %v2349_v63 = vpop.f32.mrb[197].mxu0  ;;  %4261 = vmatprep.mubr.bf16.mxu1 %v2490_v12 }
 0x3dc   :  { %v2350_v37 = vpop.f32.mrb[198].mxu0 }
 0x3dd   :  { %v4490_v24 = vadd.f32 %v6134_v41, %v2350_v37  ;;  %v2352_v44 = vpop.f32.mrb[199].mxu0  ;;  %v2452_v3 = vmax.f32 %v4489_v53, 0.0 }
 0x3df   :  { %v2453_v50 = vmax.f32 %v4490_v24, 0.0 }
 0x3e1   :  { %v2491_v8 = vpack.c.bf16 %v2453_v50, %v2452_v3 }
 0x3e2   :  { %v2355_v25 = vpop.f32.mrb[200].mxu0 }
 0x3e3   :  { %v4491_v11 = vadd.f32 %v6134_v41, %v2355_v25  ;;  %v2357_v33 = vpop.f32.mrb[201].mxu0  ;;  %4262 = vmatmul.mubr.bf16.gmra.mrb[208].mxu1 %v2491_v8 }
 0x3e4   :  { %v2358_v36 = vpop.f32.mrb[202].mxu0 }
 0x3e5   :  { %v4492_v34 = vadd.f32 %v6134_v41, %v2358_v36  ;;  %v2360_v32 = vpop.f32.mrb[203].mxu0  ;;  %v2454_v56 = vmax.f32 %v4491_v11, 0.0 }
 0x3e7   :  { %v2455_v59 = vmax.f32 %v4492_v34, 0.0 }
 0x3e9   :  { %v2492_v45 = vpack.c.bf16 %v2455_v59, %v2454_v56 }
 0x3ea   :  { %v2363_v38 = vpop.f32.mrb[204].mxu0 }
 0x3eb   :  { %v4493_v62 = vadd.f32 %v6134_v41, %v2363_v38  ;;  %v2365_v58 = vpop.f32.mrb[205].mxu0  ;;  %4265 = vmatprep.mubr.bf16.mxu1 %v2492_v45 }
 0x3ec   :  { %v2366_v30 = vpop.f32.mrb[206].mxu0 }
 0x3ed   :  { %v4494_v2 = vadd.f32 %v6134_v41, %v2366_v30  ;;  %v2368_v42 = vpop.f32.mrb[207].mxu0  ;;  %v2456_v61 = vmax.f32 %v4493_v62, 0.0 }
 0x3ef   :  { %v2457_v26 = vmax.f32 %v4494_v2, 0.0 }
 0x3f1   :  { %v2493_v51 = vpack.c.bf16 %v2457_v26, %v2456_v61 }
 0x3f2   :  { %v2371_v1 = vpop.f32.mrb[208].mxu0 }
 0x3f3   :  { %v4495_v6 = vadd.f32 %v6134_v41, %v2371_v1  ;;  %v2373_v15 = vpop.f32.mrb[209].mxu0  ;;  %4266 = vmatmul.mubr.bf16.gmra.mrb[212].mxu1 %v2493_v51 }
 0x3f4   :  { %v2374_v17 = vpop.f32.mrb[210].mxu0 }
 0x3f5   :  { %v4496_v49 = vadd.f32 %v6134_v41, %v2374_v17  ;;  %v2376_v43 = vpop.f32.mrb[211].mxu0  ;;  %v2458_v39 = vmax.f32 %v4495_v6, 0.0 }
 0x3f6   :  { %v4215_v52 = vpop.f32.mrb[160].mxu1 }
 0x3f7   :  { %v2459_v19 = vmax.f32 %v4496_v49, 0.0  ;;  %v2612_v28 = vadd.f32 %v4215_v52, %v6206_v48  ;;  %v2603_v40 = vpop.f32.mrb[161].mxu1 }
 0x3f8   :  { %v2604_v16 = vadd.f32 %v6206_v48, %v2603_v40  ;;  %v4216_v31 = vpop.f32.mrb[162].mxu1 }
 0x3f9   :  { %v2494_v46 = vpack.c.bf16 %v2459_v19, %v2458_v39  ;;  %v2615_v9 = vadd.f32 %v4216_v31, %v6206_v48  ;;  %v2606_v0 = vpop.f32.mrb[163].mxu1  ;;  %v2860_v27 = vmax.f32 %v2612_v28, 0.0 }
 0x3fa   :  { %v2607_v20 = vadd.f32 %v6206_v48, %v2606_v0  ;;  %v2379_v10 = vpop.f32.mrb[212].mxu0  ;;  %v2858_v60 = vmax.f32 %v2604_v16, 0.0 }
 0x3fb   :  { %v2861_v21 = vmax.f32 %v2615_v9, 0.0  ;;  %v4497_v23 = vadd.f32 %v6134_v41, %v2379_v10  ;;  %v2381_v54 = vpop.f32.mrb[213].mxu0  ;;  %4269 = vmatprep.mubr.bf16.mxu1 %v2494_v46 }
 0x3fc   :  { %v2859_v18 = vmax.f32 %v2607_v20, 0.0  ;;  %v2382_v4 = vpop.f32.mrb[214].mxu0 }
 0x3fd   :  { %v2923_v55 = vpack.c.bf16 %v2861_v21, %v2860_v27  ;;  %v4498_v7 = vadd.f32 %v6134_v41, %v2382_v4  ;;  %v2384_v57 = vpop.f32.mrb[215].mxu0  ;;  %v2460_v29 = vmax.f32 %v4497_v23, 0.0 }
 0x3fe   :  { %v2922_v5 = vpack.c.bf16 %v2859_v18, %v2858_v60 }
 0x3ff   :  { %v2461_v22 = vmax.f32 %v4498_v7, 0.0 }
 0x401   :  { %v2495_v47 = vpack.c.bf16 %v2461_v22, %v2460_v29 }
 0x402   :  { %v2387_v13 = vpop.f32.mrb[216].mxu0 }
 0x403   :  { %v4499_v14 = vadd.f32 %v6134_v41, %v2387_v13  ;;  %v2389_v12 = vpop.f32.mrb[217].mxu0  ;;  %4270 = vmatmul.mubr.bf16.gmra.mrb[216].mxu1 %v2495_v47 }
 0x404   :  { %v2390_v35 = vpop.f32.mrb[218].mxu0 }
 0x405   :  { %v4500_v53 = vadd.f32 %v6134_v41, %v2390_v35  ;;  %v2392_v63 = vpop.f32.mrb[219].mxu0  ;;  %v2462_v24 = vmax.f32 %v4499_v14, 0.0 }
 0x406   :  { %v4219_v37 = vpop.f32.mrb[164].mxu1 }
 0x407   :  { %v2463_v44 = vmax.f32 %v4500_v53, 0.0  ;;  %v2628_v3 = vadd.f32 %v4219_v37, %v6206_v48  ;;  %v2619_v50 = vpop.f32.mrb[165].mxu1 }
 0x408   :  { %v2620_v8 = vadd.f32 %v6206_v48, %v2619_v50  ;;  %v4220_v25 = vpop.f32.mrb[166].mxu1 }
 0x409   :  { %v2496_v11 = vpack.c.bf16 %v2463_v44, %v2462_v24  ;;  %v2631_v33 = vadd.f32 %v4220_v25, %v6206_v48  ;;  %v2622_v36 = vpop.f32.mrb[167].mxu1  ;;  %v2864_v56 = vmax.f32 %v2628_v3, 0.0 }
 0x40a   :  { %v2623_v34 = vadd.f32 %v6206_v48, %v2622_v36  ;;  %v2395_v32 = vpop.f32.mrb[220].mxu0  ;;  %v2862_v62 = vmax.f32 %v2620_v8, 0.0 }
 0x40b   :  { %v2865_v59 = vmax.f32 %v2631_v33, 0.0  ;;  %v4501_v45 = vadd.f32 %v6134_v41, %v2395_v32  ;;  %v2397_v38 = vpop.f32.mrb[221].mxu0  ;;  %4273 = vmatprep.mubr.bf16.mxu1 %v2496_v11 }
 0x40c   :  { %v2863_v58 = vmax.f32 %v2623_v34, 0.0  ;;  %v2398_v30 = vpop.f32.mrb[222].mxu0 }
 0x40d   :  { %v2925_v2 = vpack.c.bf16 %v2865_v59, %v2864_v56  ;;  %v4502_v42 = vadd.f32 %v6134_v41, %v2398_v30  ;;  %v2400_v61 = vpop.f32.mrb[223].mxu0  ;;  %v2464_v51 = vmax.f32 %v4501_v45, 0.0 }
 0x40e   :  { %v2924_v26 = vpack.c.bf16 %v2863_v58, %v2862_v62 }
 0x40f   :  { %v2465_v1 = vmax.f32 %v4502_v42, 0.0 }
 0x411   :  { %v2497_v6 = vpack.c.bf16 %v2465_v1, %v2464_v51 }
 0x413   :  { %4274 = vmatmul.mubr.bf16.gmra.mrb[220].mxu1 %v2497_v6 }
 0x414   :  { %4293 = vmatprep.mubr.bf16.mxu1 %v2922_v5 }
 0x416   :  { %v4223_v15 = vpop.f32.mrb[168].mxu1 }
 0x417   :  { %v2644_v17 = vadd.f32 %v4223_v15, %v6206_v48  ;;  %v2635_v49 = vpop.f32.mrb[169].mxu1 }
 0x418   :  { %v2636_v43 = vadd.f32 %v6206_v48, %v2635_v49  ;;  %v4224_v52 = vpop.f32.mrb[170].mxu1 }
 0x419   :  { %v2647_v39 = vadd.f32 %v4224_v52, %v6206_v48  ;;  %v2638_v19 = vpop.f32.mrb[171].mxu1  ;;  %v2868_v41 = vmax.f32 %v2644_v17, 0.0  ;;  %v4731_v52 = vld [vmem:[%s6459_s9 + $0x8] sm:$0xff]  }
 0x41a   :  { %v2639_v28 = vadd.f32 %v6206_v48, %v2638_v19  ;;  %v2866_v16 = vmax.f32 %v2636_v43, 0.0 }
 0x41b   :  { %v2869_v40 = vmax.f32 %v2647_v39, 0.0  ;;  %4294 = vmatmul.mubr.bf16.vlgmr.msra.gmra.mrb[224].mxu1 %v2923_v55 }
 0x41c   :  { %v2867_v31 = vmax.f32 %v2639_v28, 0.0  ;;  %4297 = vmatprep.mubr.bf16.mxu1 %v2924_v26  ;;  %v4730_v26 = vld [vmem:[%s6459_s9] sm:$0xff]  }
 0x41d   :  { %v2927_v46 = vpack.c.bf16 %v2869_v40, %v2868_v41  ;;  %4357 = vmatprep.subr.bf16.mxu1 %v4730_v26  ;;  %v4732_v40 = vld [vmem:[%s6459_s9 + $0x10] sm:$0xff]  }
 0x41e   :  { %v2926_v9 = vpack.c.bf16 %v2867_v31, %v2866_v16  ;;  %4358 = vmatpush3.bf16.msra.mxu1 %v4730_v26  ;;  %v4733_v16 = vld [vmem:[%s6459_s9 + $0x18] sm:$0xff]  }
 0x41f   :  { %4359 = vmatprep.subr.bf16.mxu1 %v4731_v52 }
 0x422   :  { %4360 = vmatpush3.bf16.msra.mxu1 %v4731_v52 }
 0x423   :  { %4298 = vmatmul.mubr.bf16.gmra.mrb[228].mxu1 %v2925_v2  ;;  %4361 = vmatprep.subr.bf16.mxu1 %v4732_v40 }
 0x424   :  { %4301 = vmatprep.mubr.bf16.mxu1 %v2926_v9 }
 0x426   :  { %v4227_v0 = vpop.f32.mrb[172].mxu1  ;;  %4362 = vmatpush3.bf16.msra.mxu1 %v4732_v40 }
 0x427   :  { %v2660_v20 = vadd.f32 %v4227_v0, %v6206_v48  ;;  %v2651_v10 = vpop.f32.mrb[173].mxu1  ;;  %4363 = vmatprep.subr.bf16.mxu1 %v4733_v16  ;;  %v4734_v0 = vld [vmem:[%s6459_s9 + $0x20] sm:$0xff]  }
 0x428   :  { %v2652_v27 = vadd.f32 %v6206_v48, %v2651_v10  ;;  %v4228_v21 = vpop.f32.mrb[174].mxu1 }
 0x429   :  { %v2663_v23 = vadd.f32 %v4228_v21, %v6206_v48  ;;  %v2654_v54 = vpop.f32.mrb[175].mxu1  ;;  %v2872_v18 = vmax.f32 %v2660_v20, 0.0 }
 0x42a   :  { %v2655_v60 = vadd.f32 %v6206_v48, %v2654_v54  ;;  %v2870_v55 = vmax.f32 %v2652_v27, 0.0  ;;  %4364 = vmatpush3.bf16.msra.mxu1 %v4733_v16 }
 0x42b   :  { %v2873_v4 = vmax.f32 %v2663_v23, 0.0  ;;  %4302 = vmatmul.mubr.bf16.gmra.mrb[232].mxu1 %v2927_v46  ;;  %4365 = vmatprep.subr.bf16.mxu1 %v4734_v0 }
 0x42c   :  { %v2871_v7 = vmax.f32 %v2655_v60, 0.0 }
 0x42d   :  { %v2929_v57 = vpack.c.bf16 %v2873_v4, %v2872_v18  ;;  %v4735_v18 = vld [vmem:[%s6459_s9 + $0x28] sm:$0xff]  }
 0x42e   :  { %v2928_v5 = vpack.c.bf16 %v2871_v7, %v2870_v55  ;;  %4366 = vmatpush3.bf16.msra.mxu1 %v4734_v0 }
 0x42f   :  { %4367 = vmatprep.subr.bf16.mxu1 %v4735_v18 }
 0x430   :  { %4305 = vmatprep.mubr.bf16.mxu1 %v2928_v5  ;;  %v4736_v5 = vld [vmem:[%s6459_s9 + $0x30] sm:$0xff]  }
 0x432   :  { %4368 = vmatpush3.bf16.msra.mxu1 %v4735_v18 }
 0x433   :  { %4306 = vmatmul.mubr.bf16.gmra.mrb[236].mxu1 %v2929_v57  ;;  %4369 = vmatprep.subr.bf16.mxu1 %v4736_v5 }
 0x436   :  { %v4231_v29 = vpop.f32.mrb[176].mxu1  ;;  %4370 = vmatpush3.bf16.msra.mxu1 %v4736_v5 }
 0x437   :  { %v2676_v22 = vadd.f32 %v4231_v29, %v6206_v48  ;;  %v2667_v47 = vpop.f32.mrb[177].mxu1  ;;  %v4737_v29 = vld [vmem:[%s6459_s9 + $0x38] sm:$0xff]  }
 0x438   :  { %v2668_v13 = vadd.f32 %v6206_v48, %v2667_v47  ;;  %v4232_v14 = vpop.f32.mrb[178].mxu1  ;;  %4371 = vmatprep.subr.bf16.mxu1 %v4737_v29 }
 0x439   :  { %v2679_v12 = vadd.f32 %v4232_v14, %v6206_v48  ;;  %v2670_v35 = vpop.f32.mrb[179].mxu1  ;;  %v2876_v63 = vmax.f32 %v2676_v22, 0.0 }
 0x43a   :  { %v2671_v53 = vadd.f32 %v6206_v48, %v2670_v35  ;;  %v2874_v24 = vmax.f32 %v2668_v13, 0.0  ;;  %4372 = vmatpush3.bf16.msra.mxu1 %v4737_v29 }
 0x43b   :  { %v2877_v37 = vmax.f32 %v2679_v12, 0.0 }
 0x43c   :  { %v2875_v44 = vmax.f32 %v2671_v53, 0.0 }
 0x43d   :  { %v2931_v3 = vpack.c.bf16 %v2877_v37, %v2876_v63 }
 0x43e   :  { %v2930_v50 = vpack.c.bf16 %v2875_v44, %v2874_v24 }
 0x440   :  { %4309 = vmatprep.mubr.bf16.mxu1 %v2930_v50 }
 0x441   :  { %4310 = vmatmul.mubr.bf16.gmra.mrb[240].mxu1 %v2931_v3 }
 0x446   :  { %v4235_v8 = vpop.f32.mrb[180].mxu1 }
 0x447   :  { %v2692_v25 = vadd.f32 %v4235_v8, %v6206_v48  ;;  %v2683_v11 = vpop.f32.mrb[181].mxu1 }
 0x448   :  { %v2684_v33 = vadd.f32 %v6206_v48, %v2683_v11  ;;  %v4236_v36 = vpop.f32.mrb[182].mxu1 }
 0x449   :  { %v2695_v34 = vadd.f32 %v4236_v36, %v6206_v48  ;;  %v2686_v32 = vpop.f32.mrb[183].mxu1  ;;  %v2880_v59 = vmax.f32 %v2692_v25, 0.0 }
 0x44a   :  { %v2687_v56 = vadd.f32 %v6206_v48, %v2686_v32  ;;  %v2878_v38 = vmax.f32 %v2684_v33, 0.0 }
 0x44b   :  { %v2881_v45 = vmax.f32 %v2695_v34, 0.0 }
 0x44c   :  { %v2879_v62 = vmax.f32 %v2687_v56, 0.0 }
 0x44d   :  { %v2933_v58 = vpack.c.bf16 %v2881_v45, %v2880_v59 }
 0x44e   :  { %v2932_v30 = vpack.c.bf16 %v2879_v62, %v2878_v38 }
 0x450   :  { %4313 = vmatprep.mubr.bf16.mxu1 %v2932_v30 }
 0x451   :  { %4314 = vmatmul.mubr.bf16.gmra.mrb[244].mxu1 %v2933_v58 }
 0x456   :  { %v4239_v2 = vpop.f32.mrb[184].mxu1 }
 0x457   :  { %v2708_v42 = vadd.f32 %v4239_v2, %v6206_v48  ;;  %v2699_v61 = vpop.f32.mrb[185].mxu1 }
 0x458   :  { %v2700_v51 = vadd.f32 %v6206_v48, %v2699_v61  ;;  %v4240_v1 = vpop.f32.mrb[186].mxu1 }
 0x459   :  { %v2711_v6 = vadd.f32 %v4240_v1, %v6206_v48  ;;  %v2702_v15 = vpop.f32.mrb[187].mxu1  ;;  %v2884_v49 = vmax.f32 %v2708_v42, 0.0 }
 0x45a   :  { %v2703_v17 = vadd.f32 %v6206_v48, %v2702_v15  ;;  %v2882_v39 = vmax.f32 %v2700_v51, 0.0 }
 0x45b   :  { %v2885_v43 = vmax.f32 %v2711_v6, 0.0 }
 0x45c   :  { %v2883_v19 = vmax.f32 %v2703_v17, 0.0 }
 0x45d   :  { %v2935_v28 = vpack.c.bf16 %v2885_v43, %v2884_v49 }
 0x45e   :  { %v2934_v41 = vpack.c.bf16 %v2883_v19, %v2882_v39 }
 0x460   :  { %4317 = vmatprep.mubr.bf16.mxu1 %v2934_v41 }
 0x461   :  { %4318 = vmatmul.mubr.bf16.gmra.mrb[248].mxu1 %v2935_v28 }
 0x466   :  { %v4243_v31 = vpop.f32.mrb[188].mxu1 }
 0x467   :  { %v2724_v46 = vadd.f32 %v4243_v31, %v6206_v48  ;;  %v2715_v9 = vpop.f32.mrb[189].mxu1 }
 0x468   :  { %v2716_v20 = vadd.f32 %v6206_v48, %v2715_v9  ;;  %v4244_v10 = vpop.f32.mrb[190].mxu1 }
 0x469   :  { %v2727_v27 = vadd.f32 %v4244_v10, %v6206_v48  ;;  %v2718_v21 = vpop.f32.mrb[191].mxu1  ;;  %v2888_v54 = vmax.f32 %v2724_v46, 0.0 }
 0x46a   :  { %v2719_v23 = vadd.f32 %v6206_v48, %v2718_v21  ;;  %v2886_v4 = vmax.f32 %v2716_v20, 0.0 }
 0x46b   :  { %v2889_v60 = vmax.f32 %v2727_v27, 0.0 }
 0x46c   :  { %v2887_v55 = vmax.f32 %v2719_v23, 0.0 }
 0x46d   :  { %v2937_v7 = vpack.c.bf16 %v2889_v60, %v2888_v54 }
 0x46e   :  { %v2936_v57 = vpack.c.bf16 %v2887_v55, %v2886_v4 }
 0x470   :  { %4321 = vmatprep.mubr.bf16.mxu1 %v2936_v57 }
 0x471   :  { %4322 = vmatmul.mubr.bf16.gmra.mrb[252].mxu1 %v2937_v7 }
 0x476   :  { %v4247_v22 = vpop.f32.mrb[192].mxu1 }
 0x477   :  { %v2740_v47 = vadd.f32 %v4247_v22, %v6206_v48  ;;  %v2731_v13 = vpop.f32.mrb[193].mxu1 }
 0x478   :  { %v2732_v14 = vadd.f32 %v6206_v48, %v2731_v13  ;;  %v4248_v12 = vpop.f32.mrb[194].mxu1 }
 0x479   :  { %v2743_v35 = vadd.f32 %v4248_v12, %v6206_v48  ;;  %v2734_v53 = vpop.f32.mrb[195].mxu1  ;;  %v2892_v37 = vmax.f32 %v2740_v47, 0.0 }
 0x47a   :  { %v2735_v63 = vadd.f32 %v6206_v48, %v2734_v53  ;;  %v2890_v44 = vmax.f32 %v2732_v14, 0.0 }
 0x47b   :  { %v2893_v24 = vmax.f32 %v2743_v35, 0.0 }
 0x47c   :  { %v2891_v3 = vmax.f32 %v2735_v63, 0.0 }
 0x47d   :  { %v2939_v50 = vpack.c.bf16 %v2893_v24, %v2892_v37 }
 0x47e   :  { %v2938_v8 = vpack.c.bf16 %v2891_v3, %v2890_v44 }
 0x480   :  { %4325 = vmatprep.mubr.bf16.mxu1 %v2938_v8 }
 0x481   :  { %4326 = vmatmul.mubr.bf16.gmra.mrb[0].mxu1 %v2939_v50 }
 0x486   :  { %v4251_v25 = vpop.f32.mrb[196].mxu1 }
 0x487   :  { %v2756_v11 = vadd.f32 %v4251_v25, %v6206_v48  ;;  %v2747_v33 = vpop.f32.mrb[197].mxu1 }
 0x488   :  { %v2748_v36 = vadd.f32 %v6206_v48, %v2747_v33  ;;  %v4252_v34 = vpop.f32.mrb[198].mxu1 }
 0x489   :  { %v2759_v32 = vadd.f32 %v4252_v34, %v6206_v48  ;;  %v2750_v56 = vpop.f32.mrb[199].mxu1  ;;  %v2896_v45 = vmax.f32 %v2756_v11, 0.0 }
 0x48a   :  { %v2751_v59 = vadd.f32 %v6206_v48, %v2750_v56  ;;  %v2894_v62 = vmax.f32 %v2748_v36, 0.0 }
 0x48b   :  { %v2897_v38 = vmax.f32 %v2759_v32, 0.0 }
 0x48c   :  { %v2895_v58 = vmax.f32 %v2751_v59, 0.0 }
 0x48d   :  { %v2941_v30 = vpack.c.bf16 %v2897_v38, %v2896_v45 }
 0x48e   :  { %v2940_v2 = vpack.c.bf16 %v2895_v58, %v2894_v62 }
 0x490   :  { %4329 = vmatprep.mubr.bf16.mxu1 %v2940_v2 }
 0x491   :  { %4330 = vmatmul.mubr.bf16.gmra.mrb[4].mxu1 %v2941_v30 }
 0x496   :  { %v4255_v42 = vpop.f32.mrb[200].mxu1 }
 0x497   :  { %v2772_v61 = vadd.f32 %v4255_v42, %v6206_v48  ;;  %v2763_v26 = vpop.f32.mrb[201].mxu1 }
 0x498   :  { %v2764_v51 = vadd.f32 %v6206_v48, %v2763_v26  ;;  %v4256_v1 = vpop.f32.mrb[202].mxu1 }
 0x499   :  { %v2775_v6 = vadd.f32 %v4256_v1, %v6206_v48  ;;  %v2766_v15 = vpop.f32.mrb[203].mxu1  ;;  %v2900_v49 = vmax.f32 %v2772_v61, 0.0 }
 0x49a   :  { %v2767_v17 = vadd.f32 %v6206_v48, %v2766_v15  ;;  %v2898_v52 = vmax.f32 %v2764_v51, 0.0 }
 0x49b   :  { %v2901_v43 = vmax.f32 %v2775_v6, 0.0 }
 0x49c   :  { %v2899_v39 = vmax.f32 %v2767_v17, 0.0 }
 0x49d   :  { %v2943_v19 = vpack.c.bf16 %v2901_v43, %v2900_v49 }
 0x49e   :  { %v2942_v28 = vpack.c.bf16 %v2899_v39, %v2898_v52 }
 0x4a0   :  { %4333 = vmatprep.mubr.bf16.mxu1 %v2942_v28 }
 0x4a1   :  { %4334 = vmatmul.mubr.bf16.gmra.mrb[8].mxu1 %v2943_v19 }
 0x4a6   :  { %v4259_v41 = vpop.f32.mrb[204].mxu1 }
 0x4a7   :  { %v2788_v40 = vadd.f32 %v4259_v41, %v6206_v48  ;;  %v2779_v16 = vpop.f32.mrb[205].mxu1 }
 0x4a8   :  { %v2780_v31 = vadd.f32 %v6206_v48, %v2779_v16  ;;  %v4260_v46 = vpop.f32.mrb[206].mxu1 }
 0x4a9   :  { %v2791_v9 = vadd.f32 %v4260_v46, %v6206_v48  ;;  %v2782_v0 = vpop.f32.mrb[207].mxu1  ;;  %v2904_v10 = vmax.f32 %v2788_v40, 0.0 }
 0x4aa   :  { %v2783_v20 = vadd.f32 %v6206_v48, %v2782_v0  ;;  %v2902_v21 = vmax.f32 %v2780_v31, 0.0 }
 0x4ab   :  { %v2905_v27 = vmax.f32 %v2791_v9, 0.0  ;;  %v6303_v9 = vld [vmem:[#allocation10] ss:$0 sm:$0xff] }
 0x4ac   :  { %v2903_v23 = vmax.f32 %v2783_v20, 0.0 }
 0x4ad   :  { %v2945_v54 = vpack.c.bf16 %v2905_v27, %v2904_v10 }
 0x4ae   :  { %v2944_v60 = vpack.c.bf16 %v2903_v23, %v2902_v21 }
 0x4b0   :  { %4337 = vmatprep.mubr.bf16.mxu1 %v2944_v60 }
 0x4b1   :  { %4338 = vmatmul.mubr.bf16.gmra.mrb[12].mxu1 %v2945_v54 }
 0x4b6   :  { %v4263_v18 = vpop.f32.mrb[208].mxu1 }
 0x4b7   :  { %v2804_v4 = vadd.f32 %v4263_v18, %v6206_v48  ;;  %v2795_v55 = vpop.f32.mrb[209].mxu1 }
 0x4b8   :  { %v2796_v7 = vadd.f32 %v6206_v48, %v2795_v55  ;;  %v4264_v57 = vpop.f32.mrb[210].mxu1 }
 0x4b9   :  { %v2807_v5 = vadd.f32 %v4264_v57, %v6206_v48  ;;  %v2798_v29 = vpop.f32.mrb[211].mxu1  ;;  %v2908_v47 = vmax.f32 %v2804_v4, 0.0 }
 0x4ba   :  { %v2799_v22 = vadd.f32 %v6206_v48, %v2798_v29  ;;  %v2906_v14 = vmax.f32 %v2796_v7, 0.0 }
 0x4bb   :  { %v2909_v13 = vmax.f32 %v2807_v5, 0.0 }
 0x4bc   :  { %v2907_v12 = vmax.f32 %v2799_v22, 0.0 }
 0x4bd   :  { %v2947_v35 = vpack.c.bf16 %v2909_v13, %v2908_v47 }
 0x4be   :  { %v2946_v53 = vpack.c.bf16 %v2907_v12, %v2906_v14 }
 0x4c0   :  { %4341 = vmatprep.mubr.bf16.mxu1 %v2946_v53 }
 0x4c1   :  { %4342 = vmatmul.mubr.bf16.gmra.mrb[16].mxu1 %v2947_v35 }
 0x4c6   :  { %v4267_v63 = vpop.f32.mrb[212].mxu1 }
 0x4c7   :  { %v2820_v37 = vadd.f32 %v4267_v63, %v6206_v48  ;;  %v2811_v24 = vpop.f32.mrb[213].mxu1 }
 0x4c8   :  { %v2812_v44 = vadd.f32 %v6206_v48, %v2811_v24  ;;  %v4268_v3 = vpop.f32.mrb[214].mxu1 }
 0x4c9   :  { %v2823_v50 = vadd.f32 %v4268_v3, %v6206_v48  ;;  %v2814_v8 = vpop.f32.mrb[215].mxu1  ;;  %v2912_v11 = vmax.f32 %v2820_v37, 0.0 }
 0x4ca   :  { %v2815_v25 = vadd.f32 %v6206_v48, %v2814_v8  ;;  %v2910_v36 = vmax.f32 %v2812_v44, 0.0 }
 0x4cb   :  { %v2913_v33 = vmax.f32 %v2823_v50, 0.0 }
 0x4cc   :  { %v2911_v34 = vmax.f32 %v2815_v25, 0.0 }
 0x4cd   :  { %v2949_v32 = vpack.c.bf16 %v2913_v33, %v2912_v11 }
 0x4ce   :  { %v2948_v56 = vpack.c.bf16 %v2911_v34, %v2910_v36 }
 0x4d0   :  { %4345 = vmatprep.mubr.bf16.mxu1 %v2948_v56 }
 0x4d1   :  { %4346 = vmatmul.mubr.bf16.gmra.mrb[20].mxu1 %v2949_v32 }
 0x4d6   :  { %v4271_v59 = vpop.f32.mrb[216].mxu1 }
 0x4d7   :  { %v2836_v45 = vadd.f32 %v4271_v59, %v6206_v48  ;;  %v2827_v38 = vpop.f32.mrb[217].mxu1 }
 0x4d8   :  { %v2828_v62 = vadd.f32 %v6206_v48, %v2827_v38  ;;  %v4272_v58 = vpop.f32.mrb[218].mxu1 }
 0x4d9   :  { %v2839_v30 = vadd.f32 %v4272_v58, %v6206_v48  ;;  %v2830_v2 = vpop.f32.mrb[219].mxu1  ;;  %v2916_v61 = vmax.f32 %v2836_v45, 0.0 }
 0x4da   :  { %v2831_v42 = vadd.f32 %v6206_v48, %v2830_v2  ;;  %v2914_v51 = vmax.f32 %v2828_v62, 0.0 }
 0x4db   :  { %v2917_v26 = vmax.f32 %v2839_v30, 0.0 }
 0x4dc   :  { %v2915_v1 = vmax.f32 %v2831_v42, 0.0 }
 0x4dd   :  { %v2951_v6 = vpack.c.bf16 %v2917_v26, %v2916_v61 }
 0x4de   :  { %v2950_v15 = vpack.c.bf16 %v2915_v1, %v2914_v51 }
 0x4e0   :  { %4349 = vmatprep.mubr.bf16.mxu1 %v2950_v15 }
 0x4e1   :  { %4350 = vmatmul.mubr.bf16.gmra.mrb[24].mxu1 %v2951_v6 }
 0x4e6   :  { %v4275_v17 = vpop.f32.mrb[220].mxu1 }
 0x4e7   :  { %v2852_v49 = vadd.f32 %v4275_v17, %v6206_v48  ;;  %v2843_v43 = vpop.f32.mrb[221].mxu1 }
 0x4e8   :  { %v2844_v52 = vadd.f32 %v6206_v48, %v2843_v43  ;;  %v4276_v39 = vpop.f32.mrb[222].mxu1 }
 0x4e9   :  { %v2855_v19 = vadd.f32 %v4276_v39, %v6206_v48  ;;  %v2846_v28 = vpop.f32.mrb[223].mxu1  ;;  %v2920_v40 = vmax.f32 %v2852_v49, 0.0 }
 0x4ea   :  { %v2847_v41 = vadd.f32 %v6206_v48, %v2846_v28  ;;  %v2918_v31 = vmax.f32 %v2844_v52, 0.0 }
 0x4eb   :  { %v2921_v16 = vmax.f32 %v2855_v19, 0.0 }
 0x4ec   :  { %v2919_v46 = vmax.f32 %v2847_v41, 0.0 }
 0x4ed   :  { %v2953_v0 = vpack.c.bf16 %v2921_v16, %v2920_v40 }
 0x4ee   :  { %v2952_v20 = vpack.c.bf16 %v2919_v46, %v2918_v31  ;;  %v4295_v10 = vpop.f32.mrb[224].mxu1 }
 0x4ef   :  { %v3068_v27 = vadd.f32 %v4295_v10, %v6303_v9  ;;  %v3059_v21 = vpop.f32.mrb[225].mxu1 }
 0x4f0   :  { %v3060_v23 = vadd.f32 %v6303_v9, %v3059_v21  ;;  %v4296_v54 = vpop.f32.mrb[226].mxu1  ;;  %4353 = vmatprep.mubr.bf16.mxu1 %v2952_v20 }
 0x4f1   :  { %v3071_v60 = vadd.f32 %v4296_v54, %v6303_v9  ;;  %v3062_v18 = vpop.f32.mrb[227].mxu1  ;;  %4354 = vmatmul.mubr.bf16.gmra.mrb[28].mxu1 %v2953_v0  ;;  %v3316_v4 = vmax.f32 %v3068_v27, 0.0 }
 0x4f2   :  { %v3063_v48 = vadd.f32 %v6303_v9, %v3062_v18  ;;  %v3314_v7 = vmax.f32 %v3060_v23, 0.0 }
 0x4f3   :  { %v3317_v55 = vmax.f32 %v3071_v60, 0.0 }
 0x4f4   :  { %v3315_v57 = vmax.f32 %v3063_v48, 0.0 }
 0x4f5   :  { %v3379_v5 = vpack.c.bf16 %v3317_v55, %v3316_v4 }
 0x4f6   :  { %v3378_v29 = vpack.c.bf16 %v3315_v57, %v3314_v7  ;;  %v4299_v22 = vpop.f32.mrb[228].mxu1 }
 0x4f7   :  { %v3084_v47 = vadd.f32 %v4299_v22, %v6303_v9  ;;  %v3075_v13 = vpop.f32.mrb[229].mxu1 }
 0x4f8   :  { %v3076_v14 = vadd.f32 %v6303_v9, %v3075_v13  ;;  %v4300_v12 = vpop.f32.mrb[230].mxu1  ;;  %4373 = vmatprep.mubr.bf16.mxu1 %v3378_v29 }
 0x4f9   :  { %v3087_v35 = vadd.f32 %v4300_v12, %v6303_v9  ;;  %v3078_v53 = vpop.f32.mrb[231].mxu1  ;;  %4374 = vmatmul.mubr.bf16.vlgmr.msra.gmra.mrb[32].mxu1 %v3379_v5  ;;  %v3320_v37 = vmax.f32 %v3084_v47, 0.0 }
 0x4fa   :  { %v3079_v63 = vadd.f32 %v6303_v9, %v3078_v53  ;;  %v3318_v44 = vmax.f32 %v3076_v14, 0.0 }
 0x4fb   :  { %v3321_v24 = vmax.f32 %v3087_v35, 0.0 }
 0x4fc   :  { %v3319_v3 = vmax.f32 %v3079_v63, 0.0 }
 0x4fd   :  { %v3381_v50 = vpack.c.bf16 %v3321_v24, %v3320_v37 }
 0x4fe   :  { %v3380_v8 = vpack.c.bf16 %v3319_v3, %v3318_v44  ;;  %v4303_v25 = vpop.f32.mrb[232].mxu1 }
 0x4ff   :  { %v3100_v11 = vadd.f32 %v4303_v25, %v6303_v9  ;;  %v3091_v33 = vpop.f32.mrb[233].mxu1 }
 0x500   :  { %v3092_v36 = vadd.f32 %v6303_v9, %v3091_v33  ;;  %v4304_v34 = vpop.f32.mrb[234].mxu1  ;;  %4377 = vmatprep.mubr.bf16.mxu1 %v3380_v8 }
 0x501   :  { %v3103_v32 = vadd.f32 %v4304_v34, %v6303_v9  ;;  %v3094_v56 = vpop.f32.mrb[235].mxu1  ;;  %4378 = vmatmul.mubr.bf16.gmra.mrb[36].mxu1 %v3381_v50  ;;  %v3324_v45 = vmax.f32 %v3100_v11, 0.0 }
 0x502   :  { %v3095_v59 = vadd.f32 %v6303_v9, %v3094_v56  ;;  %v3322_v62 = vmax.f32 %v3092_v36, 0.0 }
 0x503   :  { %v3325_v38 = vmax.f32 %v3103_v32, 0.0 }
 0x504   :  { %v3323_v58 = vmax.f32 %v3095_v59, 0.0 }
 0x505   :  { %v3383_v30 = vpack.c.bf16 %v3325_v38, %v3324_v45 }
 0x506   :  { %v3382_v2 = vpack.c.bf16 %v3323_v58, %v3322_v62  ;;  %v4307_v42 = vpop.f32.mrb[236].mxu1 }
 0x507   :  { %v3116_v61 = vadd.f32 %v4307_v42, %v6303_v9  ;;  %v3107_v26 = vpop.f32.mrb[237].mxu1 }
 0x508   :  { %v3108_v51 = vadd.f32 %v6303_v9, %v3107_v26  ;;  %v4308_v1 = vpop.f32.mrb[238].mxu1  ;;  %4381 = vmatprep.mubr.bf16.mxu1 %v3382_v2 }
 0x509   :  { %v3119_v6 = vadd.f32 %v4308_v1, %v6303_v9  ;;  %v3110_v15 = vpop.f32.mrb[239].mxu1  ;;  %4382 = vmatmul.mubr.bf16.gmra.mrb[40].mxu1 %v3383_v30  ;;  %v3328_v49 = vmax.f32 %v3116_v61, 0.0 }
 0x50a   :  { %v3111_v17 = vadd.f32 %v6303_v9, %v3110_v15  ;;  %v3326_v52 = vmax.f32 %v3108_v51, 0.0 }
 0x50b   :  { %v3329_v43 = vmax.f32 %v3119_v6, 0.0 }
 0x50c   :  { %v3327_v39 = vmax.f32 %v3111_v17, 0.0 }
 0x50d   :  { %v3385_v19 = vpack.c.bf16 %v3329_v43, %v3328_v49 }
 0x50e   :  { %v3384_v28 = vpack.c.bf16 %v3327_v39, %v3326_v52 }
 0x510   :  { %4385 = vmatprep.mubr.bf16.mxu1 %v3384_v28 }
 0x511   :  { %4386 = vmatmul.mubr.bf16.gmra.mrb[44].mxu1 %v3385_v19 }
 0x514   :  { %v4311_v41 = vpop.f32.mrb[240].mxu1 }
 0x515   :  { %v3132_v40 = vadd.f32 %v4311_v41, %v6303_v9  ;;  %v3123_v16 = vpop.f32.mrb[241].mxu1 }
 0x516   :  { %v3124_v31 = vadd.f32 %v6303_v9, %v3123_v16  ;;  %v4312_v46 = vpop.f32.mrb[242].mxu1 }
 0x517   :  { %v3135_v0 = vadd.f32 %v4312_v46, %v6303_v9  ;;  %v3126_v20 = vpop.f32.mrb[243].mxu1  ;;  %v3332_v27 = vmax.f32 %v3132_v40, 0.0 }
 0x518   :  { %v3127_v10 = vadd.f32 %v6303_v9, %v3126_v20  ;;  %v3330_v23 = vmax.f32 %v3124_v31, 0.0 }
 0x519   :  { %v3333_v21 = vmax.f32 %v3135_v0, 0.0 }
 0x51a   :  { %v3331_v54 = vmax.f32 %v3127_v10, 0.0 }
 0x51b   :  { %v3387_v60 = vpack.c.bf16 %v3333_v21, %v3332_v27 }
 0x51c   :  { %v3386_v18 = vpack.c.bf16 %v3331_v54, %v3330_v23 }
 0x51e   :  { %4389 = vmatprep.mubr.bf16.mxu1 %v3386_v18 }
 0x51f   :  { %4390 = vmatmul.mubr.bf16.gmra.mrb[48].mxu1 %v3387_v60 }
 0x524   :  { %v4315_v48 = vpop.f32.mrb[244].mxu1 }
 0x525   :  { %v3148_v4 = vadd.f32 %v4315_v48, %v6303_v9  ;;  %v3139_v55 = vpop.f32.mrb[245].mxu1 }
 0x526   :  { %v3140_v7 = vadd.f32 %v6303_v9, %v3139_v55  ;;  %v4316_v57 = vpop.f32.mrb[246].mxu1 }
 0x527   :  { %v3151_v5 = vadd.f32 %v4316_v57, %v6303_v9  ;;  %v3142_v29 = vpop.f32.mrb[247].mxu1  ;;  %v3336_v47 = vmax.f32 %v3148_v4, 0.0 }
 0x528   :  { %v3143_v22 = vadd.f32 %v6303_v9, %v3142_v29  ;;  %v3334_v14 = vmax.f32 %v3140_v7, 0.0 }
 0x529   :  { %v3337_v13 = vmax.f32 %v3151_v5, 0.0 }
 0x52a   :  { %v3335_v12 = vmax.f32 %v3143_v22, 0.0 }
 0x52b   :  { %v3389_v35 = vpack.c.bf16 %v3337_v13, %v3336_v47 }
 0x52c   :  { %v3388_v53 = vpack.c.bf16 %v3335_v12, %v3334_v14 }
 0x52e   :  { %4393 = vmatprep.mubr.bf16.mxu1 %v3388_v53 }
 0x52f   :  { %4394 = vmatmul.mubr.bf16.gmra.mrb[52].mxu1 %v3389_v35 }
 0x534   :  { %v4319_v63 = vpop.f32.mrb[248].mxu1 }
 0x535   :  { %v3164_v37 = vadd.f32 %v4319_v63, %v6303_v9  ;;  %v3155_v24 = vpop.f32.mrb[249].mxu1 }
 0x536   :  { %v3156_v44 = vadd.f32 %v6303_v9, %v3155_v24  ;;  %v4320_v3 = vpop.f32.mrb[250].mxu1 }
 0x537   :  { %v3167_v50 = vadd.f32 %v4320_v3, %v6303_v9  ;;  %v3158_v8 = vpop.f32.mrb[251].mxu1  ;;  %v3340_v11 = vmax.f32 %v3164_v37, 0.0 }
 0x538   :  { %v3159_v25 = vadd.f32 %v6303_v9, %v3158_v8  ;;  %v3338_v36 = vmax.f32 %v3156_v44, 0.0 }
 0x539   :  { %v3341_v33 = vmax.f32 %v3167_v50, 0.0 }
 0x53a   :  { %v3339_v34 = vmax.f32 %v3159_v25, 0.0 }
 0x53b   :  { %v3391_v32 = vpack.c.bf16 %v3341_v33, %v3340_v11 }
 0x53c   :  { %v3390_v56 = vpack.c.bf16 %v3339_v34, %v3338_v36 }
 0x53e   :  { %4397 = vmatprep.mubr.bf16.mxu1 %v3390_v56 }
 0x53f   :  { %4398 = vmatmul.mubr.bf16.gmra.mrb[56].mxu1 %v3391_v32 }
 0x544   :  { %v4323_v59 = vpop.f32.mrb[252].mxu1 }
 0x545   :  { %v3180_v45 = vadd.f32 %v4323_v59, %v6303_v9  ;;  %v3171_v38 = vpop.f32.mrb[253].mxu1 }
 0x546   :  { %v3172_v62 = vadd.f32 %v6303_v9, %v3171_v38  ;;  %v4324_v58 = vpop.f32.mrb[254].mxu1 }
 0x547   :  { %v3183_v30 = vadd.f32 %v4324_v58, %v6303_v9  ;;  %v3174_v2 = vpop.f32.mrb[255].mxu1  ;;  %v3344_v61 = vmax.f32 %v3180_v45, 0.0 }
 0x548   :  { %v3175_v42 = vadd.f32 %v6303_v9, %v3174_v2  ;;  %v3342_v51 = vmax.f32 %v3172_v62, 0.0 }
 0x549   :  { %v3345_v26 = vmax.f32 %v3183_v30, 0.0 }
 0x54a   :  { %v3343_v1 = vmax.f32 %v3175_v42, 0.0 }
 0x54b   :  { %v3393_v6 = vpack.c.bf16 %v3345_v26, %v3344_v61 }
 0x54c   :  { %v3392_v15 = vpack.c.bf16 %v3343_v1, %v3342_v51 }
 0x54e   :  { %4401 = vmatprep.mubr.bf16.mxu1 %v3392_v15 }
 0x54f   :  { %4402 = vmatmul.mubr.bf16.gmra.mrb[60].mxu1 %v3393_v6 }
 0x554   :  { %v4327_v17 = vpop.f32.mrb[0].mxu1 }
 0x555   :  { %v3196_v49 = vadd.f32 %v4327_v17, %v6303_v9  ;;  %v3187_v43 = vpop.f32.mrb[1].mxu1 }
 0x556   :  { %v3188_v52 = vadd.f32 %v6303_v9, %v3187_v43  ;;  %v4328_v39 = vpop.f32.mrb[2].mxu1 }
 0x557   :  { %v3199_v19 = vadd.f32 %v4328_v39, %v6303_v9  ;;  %v3190_v28 = vpop.f32.mrb[3].mxu1  ;;  %v3348_v40 = vmax.f32 %v3196_v49, 0.0 }
 0x558   :  { %v3191_v41 = vadd.f32 %v6303_v9, %v3190_v28  ;;  %v3346_v31 = vmax.f32 %v3188_v52, 0.0 }
 0x559   :  { %v3349_v16 = vmax.f32 %v3199_v19, 0.0 }
 0x55a   :  { %v3347_v46 = vmax.f32 %v3191_v41, 0.0 }
 0x55b   :  { %v3395_v0 = vpack.c.bf16 %v3349_v16, %v3348_v40 }
 0x55c   :  { %v3394_v20 = vpack.c.bf16 %v3347_v46, %v3346_v31 }
 0x55e   :  { %4405 = vmatprep.mubr.bf16.mxu1 %v3394_v20 }
 0x55f   :  { %4406 = vmatmul.mubr.bf16.gmra.mrb[64].mxu1 %v3395_v0 }
 0x564   :  { %v4331_v10 = vpop.f32.mrb[4].mxu1 }
 0x565   :  { %v3212_v27 = vadd.f32 %v4331_v10, %v6303_v9  ;;  %v3203_v21 = vpop.f32.mrb[5].mxu1 }
 0x566   :  { %v3204_v23 = vadd.f32 %v6303_v9, %v3203_v21  ;;  %v4332_v54 = vpop.f32.mrb[6].mxu1 }
 0x567   :  { %v3215_v60 = vadd.f32 %v4332_v54, %v6303_v9  ;;  %v3206_v18 = vpop.f32.mrb[7].mxu1  ;;  %v3352_v4 = vmax.f32 %v3212_v27, 0.0 }
 0x568   :  { %v3207_v48 = vadd.f32 %v6303_v9, %v3206_v18  ;;  %v3350_v7 = vmax.f32 %v3204_v23, 0.0 }
 0x569   :  { %v3353_v55 = vmax.f32 %v3215_v60, 0.0 }
 0x56a   :  { %v3351_v57 = vmax.f32 %v3207_v48, 0.0 }
 0x56b   :  { %v3397_v5 = vpack.c.bf16 %v3353_v55, %v3352_v4 }
 0x56c   :  { %v3396_v29 = vpack.c.bf16 %v3351_v57, %v3350_v7 }
 0x56e   :  { %4409 = vmatprep.mubr.bf16.mxu1 %v3396_v29 }
 0x56f   :  { %4410 = vmatmul.mubr.bf16.gmra.mrb[68].mxu1 %v3397_v5 }
 0x574   :  { %v4335_v22 = vpop.f32.mrb[8].mxu1 }
 0x575   :  { %v3228_v47 = vadd.f32 %v4335_v22, %v6303_v9  ;;  %v3219_v13 = vpop.f32.mrb[9].mxu1 }
 0x576   :  { %v3220_v14 = vadd.f32 %v6303_v9, %v3219_v13  ;;  %v4336_v12 = vpop.f32.mrb[10].mxu1 }
 0x577   :  { %v3231_v35 = vadd.f32 %v4336_v12, %v6303_v9  ;;  %v3222_v53 = vpop.f32.mrb[11].mxu1  ;;  %v3356_v37 = vmax.f32 %v3228_v47, 0.0 }
 0x578   :  { %v3223_v63 = vadd.f32 %v6303_v9, %v3222_v53  ;;  %v3354_v44 = vmax.f32 %v3220_v14, 0.0 }
 0x579   :  { %v3357_v24 = vmax.f32 %v3231_v35, 0.0 }
 0x57a   :  { %v3355_v3 = vmax.f32 %v3223_v63, 0.0 }
 0x57b   :  { %v3399_v50 = vpack.c.bf16 %v3357_v24, %v3356_v37 }
 0x57c   :  { %v3398_v8 = vpack.c.bf16 %v3355_v3, %v3354_v44 }
 0x57e   :  { %4413 = vmatprep.mubr.bf16.mxu1 %v3398_v8 }
 0x57f   :  { %4414 = vmatmul.mubr.bf16.gmra.mrb[72].mxu1 %v3399_v50 }
 0x584   :  { %v4339_v25 = vpop.f32.mrb[12].mxu1 }
 0x585   :  { %v3244_v11 = vadd.f32 %v4339_v25, %v6303_v9  ;;  %v3235_v33 = vpop.f32.mrb[13].mxu1 }
 0x586   :  { %v3236_v36 = vadd.f32 %v6303_v9, %v3235_v33  ;;  %v4340_v34 = vpop.f32.mrb[14].mxu1 }
 0x587   :  { %v3247_v32 = vadd.f32 %v4340_v34, %v6303_v9  ;;  %v3238_v56 = vpop.f32.mrb[15].mxu1  ;;  %v3360_v45 = vmax.f32 %v3244_v11, 0.0 }
 0x588   :  { %v3239_v59 = vadd.f32 %v6303_v9, %v3238_v56  ;;  %v3358_v62 = vmax.f32 %v3236_v36, 0.0 }
 0x589   :  { %v3361_v38 = vmax.f32 %v3247_v32, 0.0  ;;  %v6372_v32 = vld [vmem:[%s6460_s10] ss:$0 sm:$0xff]  ;;  %s5023_s10 = smov [#allocation11]  }
 0x58a   :  { %v3359_v58 = vmax.f32 %v3239_v59, 0.0  ;;  %s3903_s15 = sshll.u32 %s5023_s10, 4  ;;  %s3904_s15 = int_to_ptr.vmem [resolvable:$true] %s3903_s15 }
 0x58b   :  { %v3401_v30 = vpack.c.bf16 %v3361_v38, %v3360_v45  ;;  %s4983_s7 = scalar_lea.vmem %s3904_s15, 8192  ;;  %p4988_p13 = scmp.lt.s32.totalorder %s3904_s15, %s3904_s15 }
 0x58c   :  { %v3400_v2 = vpack.c.bf16 %v3359_v58, %v3358_v62  ;;  %p4984_p12 = scmp.ne.s32.totalorder %s3904_s15, %s4983_s7  ;;  %p4989_p0 = scmp.lt.s32.totalorder %s4983_s7, %s4983_s7 }
 0x58e   :  { %4417 = vmatprep.mubr.bf16.mxu1 %v3400_v2  ;;  %p4990_p1 = por %p4989_p0, %p4988_p13 }
 0x58f   :  { %4418 = vmatmul.mubr.bf16.gmra.mrb[76].mxu1 %v3401_v30 }
 0x590   :  { %p4991_p2 = pnand %p4990_p1, %p4984_p12 }
 0x594   :  { %v4343_v42 = vpop.f32.mrb[16].mxu1 }
 0x595   :  { %v3260_v61 = vadd.f32 %v4343_v42, %v6303_v9  ;;  %v3251_v26 = vpop.f32.mrb[17].mxu1 }
 0x596   :  { %v3252_v51 = vadd.f32 %v6303_v9, %v3251_v26  ;;  %v4344_v1 = vpop.f32.mrb[18].mxu1 }
 0x597   :  { %v3263_v6 = vadd.f32 %v4344_v1, %v6303_v9  ;;  %v3254_v15 = vpop.f32.mrb[19].mxu1  ;;  %v3364_v49 = vmax.f32 %v3260_v61, 0.0 }
 0x598   :  { %v3255_v17 = vadd.f32 %v6303_v9, %v3254_v15  ;;  %v3362_v52 = vmax.f32 %v3252_v51, 0.0 }
 0x599   :  { %v3365_v43 = vmax.f32 %v3263_v6, 0.0 }
 0x59a   :  { %v3363_v39 = vmax.f32 %v3255_v17, 0.0 }
 0x59b   :  { %v3403_v19 = vpack.c.bf16 %v3365_v43, %v3364_v49 }
 0x59c   :  { %v3402_v28 = vpack.c.bf16 %v3363_v39, %v3362_v52 }
 0x59e   :  { %4421 = vmatprep.mubr.bf16.mxu1 %v3402_v28 }
 0x59f   :  { %4422 = vmatmul.mubr.bf16.gmra.mrb[80].mxu1 %v3403_v19 }
 0x5a4   :  { %v4347_v41 = vpop.f32.mrb[20].mxu1 }
 0x5a5   :  { %v3276_v40 = vadd.f32 %v4347_v41, %v6303_v9  ;;  %v3267_v16 = vpop.f32.mrb[21].mxu1 }
 0x5a6   :  { %v3268_v31 = vadd.f32 %v6303_v9, %v3267_v16  ;;  %v4348_v46 = vpop.f32.mrb[22].mxu1 }
 0x5a7   :  { %v3279_v0 = vadd.f32 %v4348_v46, %v6303_v9  ;;  %v3270_v20 = vpop.f32.mrb[23].mxu1  ;;  %v3368_v27 = vmax.f32 %v3276_v40, 0.0 }
 0x5a8   :  { %v3271_v10 = vadd.f32 %v6303_v9, %v3270_v20  ;;  %v3366_v23 = vmax.f32 %v3268_v31, 0.0 }
 0x5a9   :  { %v3369_v21 = vmax.f32 %v3279_v0, 0.0 }
 0x5aa   :  { %v3367_v54 = vmax.f32 %v3271_v10, 0.0 }
 0x5ab   :  { %v3405_v60 = vpack.c.bf16 %v3369_v21, %v3368_v27 }
 0x5ac   :  { %v3404_v18 = vpack.c.bf16 %v3367_v54, %v3366_v23 }
 0x5ae   :  { %4425 = vmatprep.mubr.bf16.mxu1 %v3404_v18 }
 0x5af   :  { %4426 = vmatmul.mubr.bf16.gmra.mrb[84].mxu1 %v3405_v60 }
 0x5b4   :  { %v4351_v48 = vpop.f32.mrb[24].mxu1 }
 0x5b5   :  { %v3292_v4 = vadd.f32 %v4351_v48, %v6303_v9  ;;  %v3283_v55 = vpop.f32.mrb[25].mxu1 }
 0x5b6   :  { %v3284_v7 = vadd.f32 %v6303_v9, %v3283_v55  ;;  %v4352_v57 = vpop.f32.mrb[26].mxu1 }
 0x5b7   :  { %v3295_v5 = vadd.f32 %v4352_v57, %v6303_v9  ;;  %v3286_v29 = vpop.f32.mrb[27].mxu1  ;;  %v3372_v47 = vmax.f32 %v3292_v4, 0.0 }
 0x5b8   :  { %v3287_v22 = vadd.f32 %v6303_v9, %v3286_v29  ;;  %v3370_v14 = vmax.f32 %v3284_v7, 0.0 }
 0x5b9   :  { %v3373_v13 = vmax.f32 %v3295_v5, 0.0 }
 0x5ba   :  { %v3371_v12 = vmax.f32 %v3287_v22, 0.0 }
 0x5bb   :  { %v3407_v35 = vpack.c.bf16 %v3373_v13, %v3372_v47 }
 0x5bc   :  { %v3406_v53 = vpack.c.bf16 %v3371_v12, %v3370_v14 }
 0x5be   :  { %4429 = vmatprep.mubr.bf16.mxu1 %v3406_v53 }
 0x5bf   :  { %4430 = vmatmul.mubr.bf16.gmra.mrb[88].mxu1 %v3407_v35 }
 0x5c4   :  { %v4355_v63 = vpop.f32.mrb[28].mxu1 }
 0x5c5   :  { %v3308_v37 = vadd.f32 %v4355_v63, %v6303_v9  ;;  %v3299_v24 = vpop.f32.mrb[29].mxu1 }
 0x5c6   :  { %v3300_v44 = vadd.f32 %v6303_v9, %v3299_v24  ;;  %v4356_v3 = vpop.f32.mrb[30].mxu1 }
 0x5c7   :  { %v3311_v50 = vadd.f32 %v4356_v3, %v6303_v9  ;;  %v3302_v8 = vpop.f32.mrb[31].mxu1  ;;  %v3376_v11 = vmax.f32 %v3308_v37, 0.0 }
 0x5c8   :  { %v3303_v25 = vadd.f32 %v6303_v9, %v3302_v8  ;;  %v3374_v36 = vmax.f32 %v3300_v44, 0.0 }
 0x5c9   :  { %v3377_v33 = vmax.f32 %v3311_v50, 0.0 }
 0x5ca   :  { %v3375_v34 = vmax.f32 %v3303_v25, 0.0 }
 0x5cb   :  { %v3409_v56 = vpack.c.bf16 %v3377_v33, %v3376_v11 }
 0x5cc   :  { %v3408_v59 = vpack.c.bf16 %v3375_v34, %v3374_v36  ;;  %v4375_v45 = vpop.f32.mrb[32].mxu1 }
 0x5cd   :  { %v3524_v38 = vadd.f32 %v4375_v45, %v6372_v32  ;;  %v3515_v62 = vpop.f32.mrb[33].mxu1 }
 0x5ce   :  { %v3516_v58 = vadd.f32 %v6372_v32, %v3515_v62  ;;  %v4376_v30 = vpop.f32.mrb[34].mxu1  ;;  %4433 = vmatprep.mubr.bf16.mxu1 %v3408_v59 }
 0x5cf   :  { %4738 = vtanh.f32 %v3524_v38  ;;  %v3527_v9 = vadd.f32 %v4376_v30, %v6372_v32  ;;  %v3518_v2 = vpop.f32.mrb[35].mxu1  ;;  %4434 = vmatmul.mubr.bf16.gmra.mrb[92].mxu1 %v3409_v56 }
 0x5d0   :  { %4740 = vtanh.f32 %v3516_v58  ;;  %v3519_v42 = vadd.f32 %v6372_v32, %v3518_v2 }
 0x5d1   :  { %4742 = vtanh.f32 %v3527_v9 }
 0x5d2   :  { %4744 = vtanh.f32 %v3519_v42 }
 0x5d4   :  { %v4379_v61 = vpop.f32.mrb[36].mxu1 }
 0x5d5   :  { %v3540_v26 = vadd.f32 %v4379_v61, %v6372_v32  ;;  %v3531_v51 = vpop.f32.mrb[37].mxu1 }
 0x5d6   :  { %v3532_v1 = vadd.f32 %v6372_v32, %v3531_v51  ;;  %v4380_v6 = vpop.f32.mrb[38].mxu1 }
 0x5d7   :  { %4746 = vtanh.f32 %v3540_v26  ;;  %v3543_v15 = vadd.f32 %v4380_v6, %v6372_v32  ;;  %v3534_v17 = vpop.f32.mrb[39].mxu1 }
 0x5d8   :  { %4748 = vtanh.f32 %v3532_v1  ;;  %v3535_v49 = vadd.f32 %v6372_v32, %v3534_v17 }
 0x5d9   :  { %v4739_v43 = vpop.eup %4738  ;;  %4750 = vtanh.f32 %v3543_v15 }
 0x5da   :  { %v4741_v52 = vpop.eup %4740  ;;  %3836 = vst [vmem:[#allocation11 + $0x10] sm:$0xff] %v4739_v43  ;;  %4752 = vtanh.f32 %v3535_v49 }
 0x5db   :  { %v4743_v39 = vpop.eup %4742  ;;  %3834 = vst [vmem:[#allocation11] sm:$0xff] %v4741_v52 }
 0x5dc   :  { %v4745_v19 = vpop.eup %4744  ;;  %3837 = vst [vmem:[#allocation11 + $0x18] sm:$0xff] %v4743_v39  ;;  %v4383_v28 = vpop.f32.mrb[40].mxu1 }
 0x5dd   :  { %3835 = vst [vmem:[#allocation11 + $0x8] sm:$0xff] %v4745_v19  ;;  %v3556_v41 = vadd.f32 %v4383_v28, %v6372_v32  ;;  %v3547_v40 = vpop.f32.mrb[41].mxu1 }
 0x5de   :  { %v3548_v16 = vadd.f32 %v6372_v32, %v3547_v40  ;;  %v4384_v31 = vpop.f32.mrb[42].mxu1 }
 0x5df   :  { %4754 = vtanh.f32 %v3556_v41  ;;  %v3559_v46 = vadd.f32 %v4384_v31, %v6372_v32  ;;  %v3550_v0 = vpop.f32.mrb[43].mxu1 }
 0x5e0   :  { %4756 = vtanh.f32 %v3548_v16  ;;  %v3551_v20 = vadd.f32 %v6372_v32, %v3550_v0 }
 0x5e1   :  { %v4747_v10 = vpop.eup %4746  ;;  %4758 = vtanh.f32 %v3559_v46 }
 0x5e2   :  { %v4749_v27 = vpop.eup %4748  ;;  %3840 = vst [vmem:[#allocation11 + $0x30] sm:$0xff] %v4747_v10  ;;  %4760 = vtanh.f32 %v3551_v20 }
 0x5e3   :  { %v4751_v21 = vpop.eup %4750  ;;  %3838 = vst [vmem:[#allocation11 + $0x20] sm:$0xff] %v4749_v27 }
 0x5e4   :  { %v4753_v23 = vpop.eup %4752  ;;  %3841 = vst [vmem:[#allocation11 + $0x38] sm:$0xff] %v4751_v21  ;;  %v4387_v54 = vpop.f32.mrb[44].mxu1 }
 0x5e5   :  { %3839 = vst [vmem:[#allocation11 + $0x28] sm:$0xff] %v4753_v23  ;;  %v3572_v60 = vadd.f32 %v4387_v54, %v6372_v32  ;;  %v3563_v18 = vpop.f32.mrb[45].mxu1 }
 0x5e6   :  { %v3564_v48 = vadd.f32 %v6372_v32, %v3563_v18  ;;  %v4388_v4 = vpop.f32.mrb[46].mxu1 }
 0x5e7   :  { %4762 = vtanh.f32 %v3572_v60  ;;  %v3575_v55 = vadd.f32 %v4388_v4, %v6372_v32  ;;  %v3566_v7 = vpop.f32.mrb[47].mxu1 }
 0x5e8   :  { %4764 = vtanh.f32 %v3564_v48  ;;  %v3567_v57 = vadd.f32 %v6372_v32, %v3566_v7 }
 0x5e9   :  { %v4755_v5 = vpop.eup %4754  ;;  %4766 = vtanh.f32 %v3575_v55 }
 0x5ea   :  { %v4757_v29 = vpop.eup %4756  ;;  %3844 = vst [vmem:[#allocation11 + $0x50] sm:$0xff] %v4755_v5  ;;  %4768 = vtanh.f32 %v3567_v57 }
 0x5eb   :  { %v4759_v22 = vpop.eup %4758  ;;  %3842 = vst [vmem:[#allocation11 + $0x40] sm:$0xff] %v4757_v29 }
 0x5ec   :  { %v4761_v47 = vpop.eup %4760  ;;  %3845 = vst [vmem:[#allocation11 + $0x58] sm:$0xff] %v4759_v22 }
 0x5ed   :  { %3843 = vst [vmem:[#allocation11 + $0x48] sm:$0xff] %v4761_v47 }
 0x5f1   :  { %v4763_v13 = vpop.eup %4762 }
 0x5f2   :  { %v4765_v14 = vpop.eup %4764  ;;  %3848 = vst [vmem:[#allocation11 + $0x70] sm:$0xff] %v4763_v13  ;;  %v4391_v12 = vpop.f32.mrb[48].mxu1 }
 0x5f3   :  { %v4767_v35 = vpop.eup %4766  ;;  %3846 = vst [vmem:[#allocation11 + $0x60] sm:$0xff] %v4765_v14  ;;  %v3588_v53 = vadd.f32 %v4391_v12, %v6372_v32  ;;  %v3579_v63 = vpop.f32.mrb[49].mxu1 }
 0x5f4   :  { %v4769_v37 = vpop.eup %4768  ;;  %3849 = vst [vmem:[#allocation11 + $0x78] sm:$0xff] %v4767_v35  ;;  %v3580_v24 = vadd.f32 %v6372_v32, %v3579_v63  ;;  %v4392_v44 = vpop.f32.mrb[50].mxu1 }
 0x5f5   :  { %3847 = vst [vmem:[#allocation11 + $0x68] sm:$0xff] %v4769_v37  ;;  %4770 = vtanh.f32 %v3588_v53  ;;  %v3591_v3 = vadd.f32 %v4392_v44, %v6372_v32  ;;  %v3582_v50 = vpop.f32.mrb[51].mxu1 }
 0x5f6   :  { %4772 = vtanh.f32 %v3580_v24  ;;  %v3583_v8 = vadd.f32 %v6372_v32, %v3582_v50 }
 0x5f7   :  { %4774 = vtanh.f32 %v3591_v3 }
 0x5f8   :  { %4776 = vtanh.f32 %v3583_v8 }
 0x5ff   :  { %v4771_v25 = vpop.eup %4770 }
 0x600   :  { %v4773_v11 = vpop.eup %4772  ;;  %3852 = vst [vmem:[#allocation11 + $0x90] sm:$0xff] %v4771_v25 }
 0x601   :  { %v4775_v33 = vpop.eup %4774  ;;  %3850 = vst [vmem:[#allocation11 + $0x80] sm:$0xff] %v4773_v11 }
 0x602   :  { %v4777_v36 = vpop.eup %4776  ;;  %3853 = vst [vmem:[#allocation11 + $0x98] sm:$0xff] %v4775_v33  ;;  %v4395_v34 = vpop.f32.mrb[52].mxu1 }
 0x603   :  { %3851 = vst [vmem:[#allocation11 + $0x88] sm:$0xff] %v4777_v36  ;;  %v3604_v56 = vadd.f32 %v4395_v34, %v6372_v32  ;;  %v3595_v59 = vpop.f32.mrb[53].mxu1 }
 0x604   :  { %v3596_v45 = vadd.f32 %v6372_v32, %v3595_v59  ;;  %v4396_v38 = vpop.f32.mrb[54].mxu1 }
 0x605   :  { %4778 = vtanh.f32 %v3604_v56  ;;  %v3607_v62 = vadd.f32 %v4396_v38, %v6372_v32  ;;  %v3598_v58 = vpop.f32.mrb[55].mxu1 }
 0x606   :  { %4780 = vtanh.f32 %v3596_v45  ;;  %v3599_v30 = vadd.f32 %v6372_v32, %v3598_v58 }
 0x607   :  { %4782 = vtanh.f32 %v3607_v62 }
 0x608   :  { %4784 = vtanh.f32 %v3599_v30 }
 0x60f   :  { %v4779_v9 = vpop.eup %4778 }
 0x610   :  { %v4781_v2 = vpop.eup %4780  ;;  %3856 = vst [vmem:[#allocation11 + $0xb0] sm:$0xff] %v4779_v9 }
 0x611   :  { %v4783_v42 = vpop.eup %4782  ;;  %3854 = vst [vmem:[#allocation11 + $0xa0] sm:$0xff] %v4781_v2 }
 0x612   :  { %v4785_v61 = vpop.eup %4784  ;;  %3857 = vst [vmem:[#allocation11 + $0xb8] sm:$0xff] %v4783_v42  ;;  %v4399_v26 = vpop.f32.mrb[56].mxu1 }
 0x613   :  { %3855 = vst [vmem:[#allocation11 + $0xa8] sm:$0xff] %v4785_v61  ;;  %v3620_v51 = vadd.f32 %v4399_v26, %v6372_v32  ;;  %v3611_v1 = vpop.f32.mrb[57].mxu1 }
 0x614   :  { %v3612_v6 = vadd.f32 %v6372_v32, %v3611_v1  ;;  %v4400_v15 = vpop.f32.mrb[58].mxu1 }
 0x615   :  { %4786 = vtanh.f32 %v3620_v51  ;;  %v3623_v17 = vadd.f32 %v4400_v15, %v6372_v32  ;;  %v3614_v49 = vpop.f32.mrb[59].mxu1 }
 0x616   :  { %4788 = vtanh.f32 %v3612_v6  ;;  %v3615_v43 = vadd.f32 %v6372_v32, %v3614_v49 }
 0x617   :  { %4790 = vtanh.f32 %v3623_v17 }
 0x618   :  { %4792 = vtanh.f32 %v3615_v43 }
 0x61f   :  { %v4787_v52 = vpop.eup %4786 }
 0x620   :  { %v4789_v39 = vpop.eup %4788  ;;  %3860 = vst [vmem:[#allocation11 + $0xd0] sm:$0xff] %v4787_v52 }
 0x621   :  { %v4791_v19 = vpop.eup %4790  ;;  %3858 = vst [vmem:[#allocation11 + $0xc0] sm:$0xff] %v4789_v39 }
 0x622   :  { %v4793_v28 = vpop.eup %4792  ;;  %3861 = vst [vmem:[#allocation11 + $0xd8] sm:$0xff] %v4791_v19  ;;  %v4403_v41 = vpop.f32.mrb[60].mxu1 }
 0x623   :  { %3859 = vst [vmem:[#allocation11 + $0xc8] sm:$0xff] %v4793_v28  ;;  %v3636_v40 = vadd.f32 %v4403_v41, %v6372_v32  ;;  %v3627_v16 = vpop.f32.mrb[61].mxu1 }
 0x624   :  { %v3628_v31 = vadd.f32 %v6372_v32, %v3627_v16  ;;  %v4404_v46 = vpop.f32.mrb[62].mxu1 }
 0x625   :  { %4794 = vtanh.f32 %v3636_v40  ;;  %v3639_v0 = vadd.f32 %v4404_v46, %v6372_v32  ;;  %v3630_v20 = vpop.f32.mrb[63].mxu1 }
 0x626   :  { %4796 = vtanh.f32 %v3628_v31  ;;  %v3631_v10 = vadd.f32 %v6372_v32, %v3630_v20 }
 0x627   :  { %4798 = vtanh.f32 %v3639_v0 }
 0x628   :  { %4800 = vtanh.f32 %v3631_v10 }
 0x62f   :  { %v4795_v27 = vpop.eup %4794 }
 0x630   :  { %v4797_v21 = vpop.eup %4796  ;;  %3864 = vst [vmem:[#allocation11 + $0xf0] sm:$0xff] %v4795_v27 }
 0x631   :  { %v4799_v23 = vpop.eup %4798  ;;  %3862 = vst [vmem:[#allocation11 + $0xe0] sm:$0xff] %v4797_v21 }
 0x632   :  { %v4801_v54 = vpop.eup %4800  ;;  %3865 = vst [vmem:[#allocation11 + $0xf8] sm:$0xff] %v4799_v23  ;;  %v4407_v60 = vpop.f32.mrb[64].mxu1 }
 0x633   :  { %3863 = vst [vmem:[#allocation11 + $0xe8] sm:$0xff] %v4801_v54  ;;  %v3652_v18 = vadd.f32 %v4407_v60, %v6372_v32  ;;  %v3643_v48 = vpop.f32.mrb[65].mxu1 }
 0x634   :  { %v3644_v4 = vadd.f32 %v6372_v32, %v3643_v48  ;;  %v4408_v55 = vpop.f32.mrb[66].mxu1 }
 0x635   :  { %4802 = vtanh.f32 %v3652_v18  ;;  %v3655_v7 = vadd.f32 %v4408_v55, %v6372_v32  ;;  %v3646_v57 = vpop.f32.mrb[67].mxu1 }
 0x636   :  { %4804 = vtanh.f32 %v3644_v4  ;;  %v3647_v5 = vadd.f32 %v6372_v32, %v3646_v57 }
 0x637   :  { %4806 = vtanh.f32 %v3655_v7 }
 0x638   :  { %4808 = vtanh.f32 %v3647_v5 }
 0x63f   :  { %v4803_v29 = vpop.eup %4802 }
 0x640   :  { %v4805_v22 = vpop.eup %4804  ;;  %3868 = vst [vmem:[#allocation11 + $0x110] sm:$0xff] %v4803_v29 }
 0x641   :  { %v4807_v47 = vpop.eup %4806  ;;  %3866 = vst [vmem:[#allocation11 + $0x100] sm:$0xff] %v4805_v22 }
 0x642   :  { %v4809_v13 = vpop.eup %4808  ;;  %3869 = vst [vmem:[#allocation11 + $0x118] sm:$0xff] %v4807_v47  ;;  %v4411_v14 = vpop.f32.mrb[68].mxu1 }
 0x643   :  { %3867 = vst [vmem:[#allocation11 + $0x108] sm:$0xff] %v4809_v13  ;;  %v3668_v12 = vadd.f32 %v4411_v14, %v6372_v32  ;;  %v3659_v35 = vpop.f32.mrb[69].mxu1 }
 0x644   :  { %v3660_v53 = vadd.f32 %v6372_v32, %v3659_v35  ;;  %v4412_v63 = vpop.f32.mrb[70].mxu1 }
 0x645   :  { %4810 = vtanh.f32 %v3668_v12  ;;  %v3671_v37 = vadd.f32 %v4412_v63, %v6372_v32  ;;  %v3662_v24 = vpop.f32.mrb[71].mxu1 }
 0x646   :  { %4812 = vtanh.f32 %v3660_v53  ;;  %v3663_v44 = vadd.f32 %v6372_v32, %v3662_v24 }
 0x647   :  { %4814 = vtanh.f32 %v3671_v37 }
 0x648   :  { %4816 = vtanh.f32 %v3663_v44 }
 0x64f   :  { %v4811_v3 = vpop.eup %4810 }
 0x650   :  { %v4813_v50 = vpop.eup %4812  ;;  %3872 = vst [vmem:[#allocation11 + $0x130] sm:$0xff] %v4811_v3 }
 0x651   :  { %v4815_v8 = vpop.eup %4814  ;;  %3870 = vst [vmem:[#allocation11 + $0x120] sm:$0xff] %v4813_v50 }
 0x652   :  { %v4817_v25 = vpop.eup %4816  ;;  %3873 = vst [vmem:[#allocation11 + $0x138] sm:$0xff] %v4815_v8  ;;  %v4415_v11 = vpop.f32.mrb[72].mxu1 }
 0x653   :  { %3871 = vst [vmem:[#allocation11 + $0x128] sm:$0xff] %v4817_v25  ;;  %v3684_v33 = vadd.f32 %v4415_v11, %v6372_v32  ;;  %v3675_v36 = vpop.f32.mrb[73].mxu1 }
 0x654   :  { %v3676_v34 = vadd.f32 %v6372_v32, %v3675_v36  ;;  %v4416_v56 = vpop.f32.mrb[74].mxu1 }
 0x655   :  { %4818 = vtanh.f32 %v3684_v33  ;;  %v3687_v59 = vadd.f32 %v4416_v56, %v6372_v32  ;;  %v3678_v45 = vpop.f32.mrb[75].mxu1 }
 0x656   :  { %4820 = vtanh.f32 %v3676_v34  ;;  %v3679_v38 = vadd.f32 %v6372_v32, %v3678_v45 }
 0x657   :  { %4822 = vtanh.f32 %v3687_v59 }
 0x658   :  { %4824 = vtanh.f32 %v3679_v38 }
 0x65f   :  { %v4819_v62 = vpop.eup %4818 }
 0x660   :  { %v4821_v58 = vpop.eup %4820  ;;  %3876 = vst [vmem:[#allocation11 + $0x150] sm:$0xff] %v4819_v62 }
 0x661   :  { %v4823_v30 = vpop.eup %4822  ;;  %3874 = vst [vmem:[#allocation11 + $0x140] sm:$0xff] %v4821_v58 }
 0x662   :  { %v4825_v9 = vpop.eup %4824  ;;  %3877 = vst [vmem:[#allocation11 + $0x158] sm:$0xff] %v4823_v30  ;;  %v4419_v2 = vpop.f32.mrb[76].mxu1 }
 0x663   :  { %3875 = vst [vmem:[#allocation11 + $0x148] sm:$0xff] %v4825_v9  ;;  %v3700_v42 = vadd.f32 %v4419_v2, %v6372_v32  ;;  %v3691_v61 = vpop.f32.mrb[77].mxu1 }
 0x664   :  { %v3692_v26 = vadd.f32 %v6372_v32, %v3691_v61  ;;  %v4420_v51 = vpop.f32.mrb[78].mxu1 }
 0x665   :  { %4826 = vtanh.f32 %v3700_v42  ;;  %v3703_v1 = vadd.f32 %v4420_v51, %v6372_v32  ;;  %v3694_v6 = vpop.f32.mrb[79].mxu1 }
 0x666   :  { %4828 = vtanh.f32 %v3692_v26  ;;  %v3695_v15 = vadd.f32 %v6372_v32, %v3694_v6 }
 0x667   :  { %4830 = vtanh.f32 %v3703_v1 }
 0x668   :  { %4832 = vtanh.f32 %v3695_v15 }
 0x66f   :  { %v4827_v17 = vpop.eup %4826 }
 0x670   :  { %v4829_v49 = vpop.eup %4828  ;;  %3880 = vst [vmem:[#allocation11 + $0x170] sm:$0xff] %v4827_v17 }
 0x671   :  { %v4831_v43 = vpop.eup %4830  ;;  %3878 = vst [vmem:[#allocation11 + $0x160] sm:$0xff] %v4829_v49 }
 0x672   :  { %v4833_v52 = vpop.eup %4832  ;;  %3881 = vst [vmem:[#allocation11 + $0x178] sm:$0xff] %v4831_v43  ;;  %v4423_v39 = vpop.f32.mrb[80].mxu1 }
 0x673   :  { %3879 = vst [vmem:[#allocation11 + $0x168] sm:$0xff] %v4833_v52  ;;  %v3716_v19 = vadd.f32 %v4423_v39, %v6372_v32  ;;  %v3707_v28 = vpop.f32.mrb[81].mxu1 }
 0x674   :  { %v3708_v41 = vadd.f32 %v6372_v32, %v3707_v28  ;;  %v4424_v40 = vpop.f32.mrb[82].mxu1 }
 0x675   :  { %4834 = vtanh.f32 %v3716_v19  ;;  %v3719_v16 = vadd.f32 %v4424_v40, %v6372_v32  ;;  %v3710_v31 = vpop.f32.mrb[83].mxu1 }
 0x676   :  { %4836 = vtanh.f32 %v3708_v41  ;;  %v3711_v46 = vadd.f32 %v6372_v32, %v3710_v31 }
 0x677   :  { %4838 = vtanh.f32 %v3719_v16 }
 0x678   :  { %4840 = vtanh.f32 %v3711_v46 }
 0x67f   :  { %v4835_v0 = vpop.eup %4834 }
 0x680   :  { %v4837_v20 = vpop.eup %4836  ;;  %3884 = vst [vmem:[#allocation11 + $0x190] sm:$0xff] %v4835_v0 }
 0x681   :  { %v4839_v10 = vpop.eup %4838  ;;  %3882 = vst [vmem:[#allocation11 + $0x180] sm:$0xff] %v4837_v20 }
 0x682   :  { %v4841_v27 = vpop.eup %4840  ;;  %3885 = vst [vmem:[#allocation11 + $0x198] sm:$0xff] %v4839_v10  ;;  %v4427_v21 = vpop.f32.mrb[84].mxu1 }
 0x683   :  { %3883 = vst [vmem:[#allocation11 + $0x188] sm:$0xff] %v4841_v27  ;;  %v3732_v23 = vadd.f32 %v4427_v21, %v6372_v32  ;;  %v3723_v54 = vpop.f32.mrb[85].mxu1 }
 0x684   :  { %v3724_v60 = vadd.f32 %v6372_v32, %v3723_v54  ;;  %v4428_v18 = vpop.f32.mrb[86].mxu1 }
 0x685   :  { %4842 = vtanh.f32 %v3732_v23  ;;  %v3735_v48 = vadd.f32 %v4428_v18, %v6372_v32  ;;  %v3726_v4 = vpop.f32.mrb[87].mxu1 }
 0x686   :  { %4844 = vtanh.f32 %v3724_v60  ;;  %v3727_v55 = vadd.f32 %v6372_v32, %v3726_v4 }
 0x687   :  { %4846 = vtanh.f32 %v3735_v48 }
 0x688   :  { %4848 = vtanh.f32 %v3727_v55 }
 0x68f   :  { %v4843_v7 = vpop.eup %4842 }
 0x690   :  { %v4845_v57 = vpop.eup %4844  ;;  %3888 = vst [vmem:[#allocation11 + $0x1b0] sm:$0xff] %v4843_v7 }
 0x691   :  { %v4847_v5 = vpop.eup %4846  ;;  %3886 = vst [vmem:[#allocation11 + $0x1a0] sm:$0xff] %v4845_v57 }
 0x692   :  { %v4849_v29 = vpop.eup %4848  ;;  %3889 = vst [vmem:[#allocation11 + $0x1b8] sm:$0xff] %v4847_v5  ;;  %v4431_v22 = vpop.f32.mrb[88].mxu1 }
 0x693   :  { %3887 = vst [vmem:[#allocation11 + $0x1a8] sm:$0xff] %v4849_v29  ;;  %v3748_v47 = vadd.f32 %v4431_v22, %v6372_v32  ;;  %v3739_v13 = vpop.f32.mrb[89].mxu1 }
 0x694   :  { %v3740_v14 = vadd.f32 %v6372_v32, %v3739_v13  ;;  %v4432_v12 = vpop.f32.mrb[90].mxu1 }
 0x695   :  { %4850 = vtanh.f32 %v3748_v47  ;;  %v3751_v35 = vadd.f32 %v4432_v12, %v6372_v32  ;;  %v3742_v53 = vpop.f32.mrb[91].mxu1 }
 0x696   :  { %4852 = vtanh.f32 %v3740_v14  ;;  %v3743_v63 = vadd.f32 %v6372_v32, %v3742_v53 }
 0x697   :  { %4854 = vtanh.f32 %v3751_v35 }
 0x698   :  { %4856 = vtanh.f32 %v3743_v63 }
 0x69f   :  { %v4851_v37 = vpop.eup %4850 }
 0x6a0   :  { %v4853_v24 = vpop.eup %4852  ;;  %3892 = vst [vmem:[#allocation11 + $0x1d0] sm:$0xff] %v4851_v37 }
 0x6a1   :  { %v4855_v44 = vpop.eup %4854  ;;  %3890 = vst [vmem:[#allocation11 + $0x1c0] sm:$0xff] %v4853_v24 }
 0x6a2   :  { %v4857_v3 = vpop.eup %4856  ;;  %3893 = vst [vmem:[#allocation11 + $0x1d8] sm:$0xff] %v4855_v44  ;;  %v4435_v50 = vpop.f32.mrb[92].mxu1 }
 0x6a3   :  { %3891 = vst [vmem:[#allocation11 + $0x1c8] sm:$0xff] %v4857_v3  ;;  %v3764_v8 = vadd.f32 %v4435_v50, %v6372_v32  ;;  %v3755_v25 = vpop.f32.mrb[93].mxu1 }
 0x6a4   :  { %v3756_v11 = vadd.f32 %v6372_v32, %v3755_v25  ;;  %v4436_v33 = vpop.f32.mrb[94].mxu1 }
 0x6a5   :  { %4858 = vtanh.f32 %v3764_v8  ;;  %v3767_v36 = vadd.f32 %v4436_v33, %v6372_v32  ;;  %v3758_v34 = vpop.f32.mrb[95].mxu1 }
 0x6a6   :  { %4860 = vtanh.f32 %v3756_v11  ;;  %v3759_v56 = vadd.f32 %v6372_v32, %v3758_v34 }
 0x6a7   :  { %4862 = vtanh.f32 %v3767_v36 }
 0x6a8   :  { %4864 = vtanh.f32 %v3759_v56 }
 0x6af   :  { %v4859_v59 = vpop.eup %4858 }
 0x6b0   :  { %v4861_v45 = vpop.eup %4860  ;;  %3896 = vst [vmem:[#allocation11 + $0x1f0] sm:$0xff] %v4859_v59 }
 0x6b1   :  { %v4863_v38 = vpop.eup %4862  ;;  %3894 = vst [vmem:[#allocation11 + $0x1e0] sm:$0xff] %v4861_v45 }
 0x6b2   :  { %v4865_v62 = vpop.eup %4864  ;;  %3897 = vst [vmem:[#allocation11 + $0x1f8] sm:$0xff] %v4863_v38 }
 0x6b3   :  { %3895 = vst [vmem:[#allocation11 + $0x1e8] sm:$0xff] %v4865_v62 }
 0x6b4   :  { %4994 = shalt.err (!%p4991_p2)
}
 0x6b5   :  { %s4995_s17 = scalar_lea.hbm %s6461_s11, 8192 }
 0x6b6   :  { %p4996_p3 = scmp.ne.s32.totalorder %s6461_s11, %s4995_s17  ;;  %p4999_p4 = scmp.lt.u32.totalorder %s4995_s17, %s6461_s11 }
 0x6b8   :  { %p5001_p5 = pnand %p4999_p4, %p4996_p3 }
 0x6ba   :  { %5004 = shalt.err (!%p5001_p5)
}
 0x6bb   :  { %s5024_s4 = smov 128   ;;  %s5025_s5 = smov 8  }
 0x6bc   :  { %3909 = dma.vmem_to_hbm [thread:$0]  %s3904_s15, 8192, %s6461_s11, [#allocation4], %s5024_s4, %s5024_s4, %s5025_s5  }
 0x6bd   :  { %5011 = dma.done.wait [#allocation4], 8192  }
 0x6be   :  { %5012 = vsyncadd [#allocation4], 4294959104 }
 0x6bf   :  { %3913 = vsyncpa [#allocation3], 1 }
 0x6c0   :  { %3914 = vsyncpa [#allocation6], 1 }
 0x6c1   :  { %3915 = vsyncpa [#allocation9], 1 }
 0x6c2   :  { %3916 = vsyncpa [#allocation4], 1 }

// kernel: tpu_custom_call.1
= control target key start
LH: loop header
LB: loop body
LE: loop exit
PB: predicated region body
PF: predicated region fallthrough
CT: control target
= control target key end

     0   :  { %16 = vsyncpa [#allocation3], 0  ;;  %s6450_s0 = inlined_call_operand.vmem [shape: bf16[512,16], index: 0, kind: input, shape index: {}]   ;;  %s6451_s1 = inlined_call_operand.hbm [shape: bf16[16,512], index: 1, kind: input, shape index: {}]   ;;  %s6452_s2 = inlined_call_operand.hbm [shape: f32[1,512], index: 2, kind: input, shape index: {}]   ;;  %s6453_s3 = inlined_call_operand.vmem [shape: bf16[512,128], index: 3, kind: input, shape index: {}]   ;;  %s6454_s4 = inlined_call_operand.vmem [shape: f32[1,128], index: 4, kind: input, shape index: {}]   ;;  %s6455_s5 = inlined_call_operand.hbm [shape: bf16[128,128], index: 5, kind: input, shape index: {}]   ;;  %s6456_s6 = inlined_call_operand.vmem [shape: f32[1,128], index: 6, kind: input, shape index: {}]   ;;  %s6457_s7 = inlined_call_operand.hbm [shape: bf16[128,128], index: 7, kind: input, shape index: {}]   ;;  %s6458_s8 = inlined_call_operand.hbm [shape: f32[1,128], index: 8, kind: input, shape index: {}]   ;;  %s6459_s9 = inlined_call_operand.vmem [shape: bf16[128,128], index: 9, kind: input, shape index: {}]   ;;  %s6460_s10 = inlined_call_operand.vmem [shape: f32[1,128], index: 10, kind: input, shape index: {}]   ;;  %s6461_s11 = inlined_call_operand.hbm [shape: f32[512,128], index: 11, kind: output, shape index: {}]  }
   0x1   :  { %17 = vsyncpa [#allocation6], 0 }
   0x2   :  { %18 = vsyncpa [#allocation9], 0 }
   0x3   :  { %19 = vsyncpa [#allocation4], 0  ;;  %s5013_s17 = smov [#allocation5]   ;;  %s4873_s21 = scalar_lea.hbm %s6452_s2, 64 }
   0x4   :  { %s40_s18 = sshll.u32 %s5013_s17, 4  ;;  %p4874_p0 = scmp.ne.s32.totalorder %s6452_s2, %s4873_s21  ;;  %s41_s18 = int_to_ptr.vmem [resolvable:$true] %s40_s18 }
   0x5   :  { %p4877_p1 = scmp.lt.u32.totalorder %s4873_s21, %s6452_s2 }
   0x7   :  { %p4879_p2 = pnand %p4877_p1, %p4874_p0 }
   0x9   :  { %4882 = shalt.err (!%p4879_p2)
}
   0xa   :  { %s4883_s26 = scalar_lea.vmem %s41_s18, 64  ;;  %p4888_p4 = scmp.lt.s32.totalorder %s41_s18, %s41_s18 }
   0xb   :  { %p4884_p3 = scmp.ne.s32.totalorder %s41_s18, %s4883_s26  ;;  %p4889_p5 = scmp.lt.s32.totalorder %s4883_s26, %s4883_s26 }
   0xd   :  { %p4890_p6 = por %p4889_p5, %p4888_p4 }
   0xf   :  { %p4891_p7 = pnand %p4890_p6, %p4884_p3 }
  0x11   :  { %4894 = shalt.err (!%p4891_p7)
}
  0x12   :  { %43 = dma.hbm_to_vmem [thread:$0]  %s6452_s2, 64, %s41_s18, [#allocation6]  }
  0x13   :  { %s5014_s29 = smov [#allocation8]   ;;  %s5015_s12 = smov [#allocation2]  }
  0x14   :  { %s67_s30 = sshll.u32 %s5014_s29, 4  ;;  %s27_s13 = sshll.u32 %s5015_s12, 4  ;;  %s68_s30 = int_to_ptr.vmem [resolvable:$true] %s67_s30  ;;  %s28_s13 = int_to_ptr.vmem [resolvable:$true] %s27_s13 }
  0x15   :  { %s4895_s16 = scalar_lea.hbm %s6457_s7, 1024 }
  0x16   :  { %p4896_p8 = scmp.ne.s32.totalorder %s6457_s7, %s4895_s16  ;;  %p4899_p9 = scmp.lt.u32.totalorder %s4895_s16, %s6457_s7 }
  0x18   :  { %p4901_p10 = pnand %p4899_p9, %p4896_p8 }
  0x1a   :  { %4904 = shalt.err (!%p4901_p10)
}
  0x1b   :  { %s4905_s2 = scalar_lea.vmem %s68_s30, 1024  ;;  %p4910_p12 = scmp.lt.s32.totalorder %s68_s30, %s68_s30 }
  0x1c   :  { %p4906_p11 = scmp.ne.s32.totalorder %s68_s30, %s4905_s2  ;;  %p4911_p13 = scmp.lt.s32.totalorder %s4905_s2, %s4905_s2 }
  0x1e   :  { %p4912_p0 = por %p4911_p13, %p4910_p12 }
  0x20   :  { %p4913_p1 = pnand %p4912_p0, %p4906_p11 }
  0x22   :  { %4916 = shalt.err (!%p4913_p1)
}
  0x23   :  { %s5016_s18 = smov 64   ;;  %s5017_s22 = smov 4  }
  0x24   :  { %73 = dma.hbm_to_vmem [thread:$0]  %s6457_s7, 1024, %s68_s30, [#allocation9], %s5016_s18, %s5016_s18, %s5017_s22  }
  0x25   :  { %s4917_s27 = scalar_lea.hbm %s6451_s1, 512 }
  0x26   :  { %p4918_p2 = scmp.ne.s32.totalorder %s6451_s1, %s4917_s27  ;;  %p4921_p3 = scmp.lt.u32.totalorder %s4917_s27, %s6451_s1 }
  0x28   :  { %p4923_p4 = pnand %p4921_p3, %p4918_p2 }
  0x2a   :  { %4926 = shalt.err (!%p4923_p4)
}
  0x2b   :  { %s4927_s15 = scalar_lea.vmem %s28_s13, 512  ;;  %p4932_p6 = scmp.lt.s32.totalorder %s28_s13, %s28_s13 }
  0x2c   :  { %p4928_p5 = scmp.ne.s32.totalorder %s28_s13, %s4927_s15  ;;  %p4933_p7 = scmp.lt.s32.totalorder %s4927_s15, %s4927_s15 }
  0x2e   :  { %p4934_p8 = por %p4933_p7, %p4932_p6 }
  0x30   :  { %p4935_p9 = pnand %p4934_p8, %p4928_p5 }
  0x32   :  { %4938 = shalt.err (!%p4935_p9)
}
  0x33   :  { %s5018_s7 = smov 256   ;;  %s5019_s30 = smov 16  }
  0x34   :  { %33 = dma.hbm_to_vmem [thread:$0]  %s6451_s1, 512, %s28_s13, [#allocation3], %s5018_s7, %s5018_s7, %s5019_s30  }
  0x35   :  { %s5020_s19 = smov [#allocation7]   ;;  %s5021_s21 = smov [#allocation10]  }
  0x36   :  { %s53_s20 = sshll.u32 %s5020_s19, 4  ;;  %s80_s2 = sshll.u32 %s5021_s21, 4  ;;  %s54_s20 = int_to_ptr.vmem [resolvable:$true] %s53_s20  ;;  %s81_s2 = int_to_ptr.vmem [resolvable:$true] %s80_s2 }
  0x37   :  { %s4939_s25 = scalar_lea.hbm %s6455_s5, 1024 }
  0x38   :  { %p4940_p10 = scmp.ne.s32.totalorder %s6455_s5, %s4939_s25  ;;  %p4943_p11 = scmp.lt.u32.totalorder %s4939_s25, %s6455_s5 }
  0x3a   :  { %p4945_p12 = pnand %p4943_p11, %p4940_p10 }
  0x3c   :  { %4948 = shalt.err (!%p4945_p12)
}
  0x3d   :  { %s4949_s1 = scalar_lea.vmem %s54_s20, 1024  ;;  %p4954_p0 = scmp.lt.s32.totalorder %s54_s20, %s54_s20 }
  0x3e   :  { %p4950_p13 = scmp.ne.s32.totalorder %s54_s20, %s4949_s1  ;;  %p4955_p1 = scmp.lt.s32.totalorder %s4949_s1, %s4949_s1 }
  0x40   :  { %p4956_p2 = por %p4955_p1, %p4954_p0 }
  0x42   :  { %p4957_p3 = pnand %p4956_p2, %p4950_p13 }
  0x44   :  { %4960 = shalt.err (!%p4957_p3)
}
  0x45   :  { %59 = dma.hbm_to_vmem [thread:$0]  %s6455_s5, 1024, %s54_s20, [#allocation6], %s5016_s18, %s5016_s18, %s5017_s22  }
  0x46   :  { %s4961_s7 = scalar_lea.hbm %s6458_s8, 16 }
  0x47   :  { %p4962_p4 = scmp.ne.s32.totalorder %s6458_s8, %s4961_s7  ;;  %p4965_p5 = scmp.lt.u32.totalorder %s4961_s7, %s6458_s8 }
  0x49   :  { %p4967_p6 = pnand %p4965_p5, %p4962_p4 }
  0x4b   :  { %4970 = shalt.err (!%p4967_p6)
}
  0x4c   :  { %s4971_s21 = scalar_lea.vmem %s81_s2, 16  ;;  %s4975_s23 = scalar_lea.vmem %s81_s2, 32 }
  0x4d   :  { %p4972_p7 = scmp.ne.s32.totalorder %s81_s2, %s4971_s21  ;;  %p4976_p8 = scmp.lt.s32.totalorder %s81_s2, %s81_s2 }
  0x4e   :  { %p4977_p9 = scmp.lt.s32.totalorder %s4975_s23, %s4971_s21 }
  0x50   :  { %p4978_p10 = por %p4977_p9, %p4976_p8 }
  0x52   :  { %p4979_p11 = pnand %p4978_p10, %p4972_p7 }
  0x54   :  { %4982 = shalt.err (!%p4979_p11)
}
  0x55   :  { %83 = dma.hbm_to_vmem [thread:$0]  %s6458_s8, 16, %s81_s2, [#allocation9]  }
  0x56   :  { %5005 = dma.done.wait [#allocation3], 512  }
  0x57   :  { %5006 = vsyncadd [#allocation3], 4294966784 }
  0x58   :  { %5007 = dma.done.wait [#allocation6], 1088  }
  0x59   :  { %5008 = vsyncadd [#allocation6], 4294966208 }
  0x5a   :  { %5009 = dma.done.wait [#allocation9], 1040  }
  0x5b   :  { %5010 = vsyncadd [#allocation9], 4294966256  ;;  %v5022_v0 = vmov 0   ;;  %v4644_v1 = vld [vmem:[#allocation2 + $0x4] ss:$16 sps:$4 sm:$0xff]   ;;  %vm374_vm0 = vcmask 130048   ;;  %v174_v53 = vlaneseq }
  0x5c   :  { %503 = vmatprep.mubr.bf16.mxu0 %v5022_v0  ;;  %743 = vmatprep.mubr.bf16.mxu1 %v5022_v0  ;;  %v4646_v2 = vld [vmem:[#allocation2] ss:$16 sps:$4 sm:$0xff]   ;;  %v4654_v5 = vld [vmem:[%s6453_s3 + $0x8] sm:$0xff]   ;;  %v4659_v8 = vld [vmem:[%s6453_s3 + $0x18] sm:$0xff]  }
  0x5d   :  { %471 = vmatprep.subr.bf16.mxu0 %v4644_v1  ;;  %v5157_v3 = vld [vmem:[%s6450_s0] sm:$0xff]   ;;  %4437 = vmatprep.subr.bf16.mxu1 %v4644_v1  ;;  %v5173_v6 = vld [vmem:[%s6450_s0 + $0x8] sm:$0xff]   ;;  %v4656_v7 = vld [vmem:[%s6453_s3 + $0x10] sm:$0xff]   ;;  %v5483_v54 = vshrl.u32 %v174_v53, 7 }
  0x5e   :  { %472 = vmatpush1.bf16.msra.mxu0 %v4646_v2  ;;  %4438 = vmatpush1.bf16.msra.mxu1 %v4646_v2  ;;  %v4651_v4 = vld [vmem:[%s6453_s3] sm:$0xff]   ;;  %v5189_v9 = vld [vmem:[%s6450_s0 + $0x10] sm:$0xff]   ;;  %v4664_v11 = vld [vmem:[%s6453_s3 + $0x28] sm:$0xff]  }
  0x5f   :  { %1824 = vmatprep.subr.bf16.mxu0 %v5022_v0  ;;  %v4661_v10 = vld [vmem:[%s6453_s3 + $0x20] sm:$0xff]   ;;  %v5205_v12 = vld [vmem:[%s6450_s0 + $0x18] sm:$0xff]   ;;  %v4666_v13 = vld [vmem:[%s6453_s3 + $0x30] sm:$0xff]   ;;  %v176_v55 = vsub.s32 0, %v5483_v54  ;;  %v180_v57 = vsub.s32 1, %v5483_v54 }
  0x60   :  { %v4669_v14 = vld [vmem:[%s6453_s3 + $0x38] sm:$0xff]   ;;  %v5220_v15 = vld [vmem:[%s6450_s0 + $0x20] sm:$0xff]   ;;  %v4674_v17 = vld [vmem:[%s6453_s3 + $0x48] sm:$0xff]  }
  0x61   :  { %3953 = vmatmul.mubr.msk.bf16.vlgmr.msra.gmra.mrb[0].mxu0 %vm374_vm0, %v5157_v3  ;;  %v4671_v16 = vld [vmem:[%s6453_s3 + $0x40] sm:$0xff]   ;;  %v5236_v18 = vld [vmem:[%s6450_s0 + $0x28] sm:$0xff]   ;;  %v4676_v19 = vld [vmem:[%s6453_s3 + $0x50] sm:$0xff]  }
  0x62   :  { %513 = vmatprep.mubr.bf16.mxu0 %v5022_v0  ;;  %1825 = vmatpush1.bf16.msra.mxu0 %v4651_v4  ;;  %v4679_v20 = vld [vmem:[%s6453_s3 + $0x58] sm:$0xff]   ;;  %v5252_v21 = vld [vmem:[%s6450_s0 + $0x30] sm:$0xff]   ;;  %v4681_v22 = vld [vmem:[%s6453_s3 + $0x60] sm:$0xff]  }
  0x63   :  { %1826 = vmatprep.subr.bf16.mxu0 %v5022_v0  ;;  %v5265_v23 = vld [vmem:[%s6450_s0 + $0x38] sm:$0xff]   ;;  %v4684_v24 = vld [vmem:[%s6453_s3 + $0x68] sm:$0xff]   ;;  %v5276_v25 = vld [vmem:[%s6450_s0 + $0xc0] sm:$0xff]  }
  0x64   :  { %v4686_v26 = vld [vmem:[#allocation2 + $0x8] ss:$16 sps:$4 sm:$0xff]   ;;  %v4688_v27 = vld [vmem:[#allocation2 + $0xc] ss:$16 sps:$4 sm:$0xff]   ;;  %v5282_v28 = vld [vmem:[%s6450_s0 + $0x40] sm:$0xff]   ;;  %3977 = vmatmul.mubr.msk.bf16.vlgmr.msra.gmra.mrb[0].mxu1 %vm374_vm0, %v5276_v25 }
  0x65   :  { %v4690_v29 = vld [vmem:[%s6453_s3 + $0x70] sm:$0xff]   ;;  %824 = vmatprep.subr.bf16.mxu1 %v4688_v27  ;;  %753 = vmatprep.mubr.bf16.mxu1 %v5022_v0  ;;  %v4689_v30 = vld [vmem:[%s6450_s0 + $0xc8] sm:$0xff]   ;;  %v4692_v31 = vld [vmem:[%s6453_s3 + $0x78] sm:$0xff]  }
  0x66   :  { %1827 = vmatpush1.bf16.msra.mxu0 %v4654_v5  ;;  %825 = vmatpush1.bf16.msra.mxu1 %v4686_v26  ;;  %v5304_v32 = vld [vmem:[%s6450_s0 + $0x48] sm:$0xff]   ;;  %v4691_v33 = vld [vmem:[%s6450_s0 + $0xd0] sm:$0xff]   ;;  %v4693_v35 = vld [vmem:[%s6450_s0 + $0xd8] sm:$0xff]  }
  0x67   :  { %1828 = vmatprep.subr.bf16.mxu0 %v5022_v0  ;;  %v5320_v34 = vld [vmem:[%s6450_s0 + $0x50] sm:$0xff]   ;;  %v5331_v36 = vld [vmem:[%s6450_s0 + $0x58] sm:$0xff]   ;;  %v4694_v37 = vld [vmem:[%s6450_s0 + $0xe0] sm:$0xff]  }
  0x68   :  { %v5344_v38 = vld [vmem:[%s6450_s0 + $0x60] sm:$0xff]   ;;  %v4696_v39 = vld [vmem:[%s6450_s0 + $0xe8] sm:$0xff]   ;;  %v4697_v41 = vld [vmem:[%s6450_s0 + $0xf0] sm:$0xff]  }
  0x69   :  { %3954 = vmatmul.mubr.msk.bf16.gmra.mrb[4].mxu0 %vm374_vm0, %v5173_v6  ;;  %v5357_v40 = vld [vmem:[%s6450_s0 + $0x68] sm:$0xff]   ;;  %v5370_v42 = vld [vmem:[%s6450_s0 + $0x70] sm:$0xff]   ;;  %v4699_v43 = vld [vmem:[%s6450_s0 + $0xf8] sm:$0xff]  }
  0x6a   :  { %523 = vmatprep.mubr.bf16.mxu0 %v5022_v0  ;;  %1829 = vmatpush1.bf16.msra.mxu0 %v4656_v7  ;;  %v5383_v44 = vld [vmem:[%s6450_s0 + $0x78] sm:$0xff]   ;;  %v5393_v45 = vld [vmem:[%s6450_s0 + $0x80] sm:$0xff]   ;;  %v5404_v46 = vld [vmem:[%s6450_s0 + $0x88] sm:$0xff]  }
  0x6b   :  { %1830 = vmatprep.subr.bf16.mxu0 %v5022_v0  ;;  %v5415_v47 = vld [vmem:[%s6450_s0 + $0x90] sm:$0xff]   ;;  %v5426_v48 = vld [vmem:[%s6450_s0 + $0x98] sm:$0xff]   ;;  %v5437_v49 = vld [vmem:[%s6450_s0 + $0xa0] sm:$0xff]  }
  0x6c   :  { %3978 = vmatmul.mubr.msk.bf16.gmra.mrb[4].mxu1 %vm374_vm0, %v4689_v30  ;;  %v5448_v50 = vld [vmem:[%s6450_s0 + $0xa8] sm:$0xff]   ;;  %v5459_v51 = vld [vmem:[%s6450_s0 + $0xb0] sm:$0xff]   ;;  %v5470_v52 = vld [vmem:[%s6450_s0 + $0xb8] sm:$0xff]  }
  0x6d   :  { %763 = vmatprep.mubr.bf16.mxu1 %v5022_v0  ;;  %v5486_v56 = vld [vmem:[#allocation5] sm:$0xf] }
  0x6e   :  { %1831 = vmatpush1.bf16.msra.mxu0 %v4659_v8  ;;  %v5493_v58 = vrot.slane %v5486_v56, %v176_v55  ;;  %v5496_v59 = vrot.slane %v5486_v56, %v180_v57  ;;  %v4702_v57 = vld [vmem:[%s6453_s3 + $0xa0] sm:$0xff]  }
  0x6f   :  { %1832 = vmatprep.subr.bf16.mxu0 %v5022_v0 }
  0x71   :  { %3955 = vmatmul.mubr.msk.bf16.gmra.mrb[8].mxu0 %vm374_vm0, %v5189_v9 }
  0x72   :  { %533 = vmatprep.mubr.bf16.mxu0 %v5022_v0  ;;  %1833 = vmatpush1.bf16.msra.mxu0 %v4661_v10 }
  0x73   :  { %1834 = vmatprep.subr.bf16.mxu0 %v5022_v0 }
  0x74   :  { %3979 = vmatmul.mubr.msk.bf16.gmra.mrb[8].mxu1 %vm374_vm0, %v4691_v33 }
  0x75   :  { %773 = vmatprep.mubr.bf16.mxu1 %v5022_v0 }
  0x76   :  { %1835 = vmatpush1.bf16.msra.mxu0 %v4664_v11 }
  0x77   :  { %1836 = vmatprep.subr.bf16.mxu0 %v5022_v0 }
  0x79   :  { %3956 = vmatmul.mubr.msk.bf16.gmra.mrb[12].mxu0 %vm374_vm0, %v5205_v12 }
  0x7a   :  { %543 = vmatprep.mubr.bf16.mxu0 %v5022_v0  ;;  %1837 = vmatpush1.bf16.msra.mxu0 %v4666_v13 }
  0x7b   :  { %1838 = vmatprep.subr.bf16.mxu0 %v5022_v0 }
  0x7c   :  { %3980 = vmatmul.mubr.msk.bf16.gmra.mrb[12].mxu1 %vm374_vm0, %v4693_v35 }
  0x7d   :  { %783 = vmatprep.mubr.bf16.mxu1 %v5022_v0 }
  0x7e   :  { %1839 = vmatpush1.bf16.msra.mxu0 %v4669_v14 }
  0x7f   :  { %1840 = vmatprep.subr.bf16.mxu0 %v5022_v0 }
  0x81   :  { %3957 = vmatmul.mubr.msk.bf16.gmra.mrb[16].mxu0 %vm374_vm0, %v5220_v15 }
  0x82   :  { %553 = vmatprep.mubr.bf16.mxu0 %v5022_v0  ;;  %1841 = vmatpush1.bf16.msra.mxu0 %v4671_v16 }
  0x83   :  { %1842 = vmatprep.subr.bf16.mxu0 %v5022_v0 }
  0x84   :  { %3981 = vmatmul.mubr.msk.bf16.gmra.mrb[16].mxu1 %vm374_vm0, %v4694_v37  ;;  %v4701_v37 = vld [vmem:[%s6453_s3 + $0x98] sm:$0xff]  }
  0x85   :  { %793 = vmatprep.mubr.bf16.mxu1 %v5022_v0 }
  0x86   :  { %1843 = vmatpush1.bf16.msra.mxu0 %v4674_v17 }
  0x87   :  { %1844 = vmatprep.subr.bf16.mxu0 %v5022_v0 }
  0x89   :  { %3958 = vmatmul.mubr.msk.bf16.gmra.mrb[20].mxu0 %vm374_vm0, %v5236_v18 }
  0x8a   :  { %563 = vmatprep.mubr.bf16.mxu0 %v5022_v0  ;;  %1845 = vmatpush1.bf16.msra.mxu0 %v4676_v19 }
  0x8b   :  { %1846 = vmatprep.subr.bf16.mxu0 %v5022_v0 }
  0x8c   :  { %3982 = vmatmul.mubr.msk.bf16.gmra.mrb[20].mxu1 %vm374_vm0, %v4696_v39 }
  0x8d   :  { %803 = vmatprep.mubr.bf16.mxu1 %v5022_v0 }
  0x8e   :  { %1847 = vmatpush1.bf16.msra.mxu0 %v4679_v20  ;;  %v4698_v20 = vld [vmem:[%s6453_s3 + $0x88] sm:$0xff]  }
  0x8f   :  { %1848 = vmatprep.subr.bf16.mxu0 %v5022_v0 }
  0x91   :  { %3959 = vmatmul.mubr.msk.bf16.gmra.mrb[24].mxu0 %vm374_vm0, %v5252_v21 }
  0x92   :  { %573 = vmatprep.mubr.bf16.mxu0 %v5022_v0  ;;  %1849 = vmatpush1.bf16.msra.mxu0 %v4681_v22 }
  0x93   :  { %1850 = vmatprep.subr.bf16.mxu0 %v5022_v0 }
  0x94   :  { %3983 = vmatmul.mubr.msk.bf16.gmra.mrb[24].mxu1 %vm374_vm0, %v4697_v41 }
  0x95   :  { %813 = vmatprep.mubr.bf16.mxu1 %v5022_v0 }
  0x96   :  { %1851 = vmatpush1.bf16.msra.mxu0 %v4684_v24 }
  0x97   :  { %1852 = vmatprep.subr.bf16.mxu0 %v5022_v0 }
  0x99   :  { %3960 = vmatmul.mubr.msk.bf16.gmra.mrb[28].mxu0 %vm374_vm0, %v5265_v23 }
  0x9a   :  { %583 = vmatprep.mubr.bf16.mxu0 %v5022_v0  ;;  %1853 = vmatpush1.bf16.msra.mxu0 %v4690_v29  ;;  %v4700_v29 = vld [vmem:[%s6453_s3 + $0x90] sm:$0xff]  }
  0x9b   :  { %1854 = vmatprep.subr.bf16.mxu0 %v5022_v0 }
  0x9c   :  { %3984 = vmatmul.mubr.msk.bf16.gmra.mrb[28].mxu1 %vm374_vm0, %v4699_v43 }
  0x9d   :  { %856 = vmatprep.mubr.bf16.mxu1 %v5022_v0 }
  0x9e   :  { %1855 = vmatpush1.bf16.msra.mxu0 %v4692_v31 }
  0x9f   :  { %2113 = vmatprep.subr.bf16.mxu0 %v5022_v0 }
  0xa1   :  { %3961 = vmatmul.mubr.msk.bf16.gmra.mrb[32].mxu0 %vm374_vm0, %v5282_v28 }
  0xa2   :  { %593 = vmatprep.mubr.bf16.mxu0 %v5022_v0 }
  0xa4   :  { %3985 = vmatmul.mubr.msk.bf16.vlgmr.msra.gmra.mrb[32].mxu1 %vm374_vm0, %v5157_v3 }
  0xa5   :  { %866 = vmatprep.mubr.bf16.mxu1 %v5022_v0 }
  0xa9   :  { %3962 = vmatmul.mubr.msk.bf16.gmra.mrb[36].mxu0 %vm374_vm0, %v5304_v32 }
  0xaa   :  { %603 = vmatprep.mubr.bf16.mxu0 %v5022_v0 }
  0xac   :  { %3986 = vmatmul.mubr.msk.bf16.gmra.mrb[36].mxu1 %vm374_vm0, %v5173_v6 }
  0xad   :  { %876 = vmatprep.mubr.bf16.mxu1 %v5022_v0 }
  0xb1   :  { %3963 = vmatmul.mubr.msk.bf16.gmra.mrb[40].mxu0 %vm374_vm0, %v5320_v34 }
  0xb2   :  { %613 = vmatprep.mubr.bf16.mxu0 %v5022_v0 }
  0xb4   :  { %3987 = vmatmul.mubr.msk.bf16.gmra.mrb[40].mxu1 %vm374_vm0, %v5189_v9 }
  0xb5   :  { %886 = vmatprep.mubr.bf16.mxu1 %v5022_v0 }
  0xb9   :  { %3964 = vmatmul.mubr.msk.bf16.gmra.mrb[44].mxu0 %vm374_vm0, %v5331_v36 }
  0xba   :  { %623 = vmatprep.mubr.bf16.mxu0 %v5022_v0 }
  0xbc   :  { %3988 = vmatmul.mubr.msk.bf16.gmra.mrb[44].mxu1 %vm374_vm0, %v5205_v12  ;;  %v4695_v12 = vld [vmem:[%s6453_s3 + $0x80] sm:$0xff]  }
  0xbd   :  { %896 = vmatprep.mubr.bf16.mxu1 %v5022_v0 }
  0xc1   :  { %3965 = vmatmul.mubr.msk.bf16.gmra.mrb[48].mxu0 %vm374_vm0, %v5344_v38 }
  0xc2   :  { %633 = vmatprep.mubr.bf16.mxu0 %v5022_v0 }
  0xc4   :  { %3989 = vmatmul.mubr.msk.bf16.gmra.mrb[48].mxu1 %vm374_vm0, %v5220_v15 }
  0xc5   :  { %906 = vmatprep.mubr.bf16.mxu1 %v5022_v0 }
  0xc9   :  { %3966 = vmatmul.mubr.msk.bf16.gmra.mrb[52].mxu0 %vm374_vm0, %v5357_v40 }
  0xca   :  { %643 = vmatprep.mubr.bf16.mxu0 %v5022_v0 }
  0xcc   :  { %3990 = vmatmul.mubr.msk.bf16.gmra.mrb[52].mxu1 %vm374_vm0, %v5236_v18 }
  0xcd   :  { %916 = vmatprep.mubr.bf16.mxu1 %v5022_v0 }
  0xd1   :  { %3967 = vmatmul.mubr.msk.bf16.gmra.mrb[56].mxu0 %vm374_vm0, %v5370_v42 }
  0xd2   :  { %653 = vmatprep.mubr.bf16.mxu0 %v5022_v0 }
  0xd4   :  { %3991 = vmatmul.mubr.msk.bf16.gmra.mrb[56].mxu1 %vm374_vm0, %v5252_v21 }
  0xd5   :  { %926 = vmatprep.mubr.bf16.mxu1 %v5022_v0 }
  0xd9   :  { %3968 = vmatmul.mubr.msk.bf16.gmra.mrb[60].mxu0 %vm374_vm0, %v5383_v44 }
  0xda   :  { %663 = vmatprep.mubr.bf16.mxu0 %v5022_v0 }
  0xdc   :  { %3992 = vmatmul.mubr.msk.bf16.gmra.mrb[60].mxu1 %vm374_vm0, %v5265_v23 }
  0xdd   :  { %936 = vmatprep.mubr.bf16.mxu1 %v5022_v0 }
  0xe1   :  { %3969 = vmatmul.mubr.msk.bf16.gmra.mrb[64].mxu0 %vm374_vm0, %v5393_v45 }
  0xe2   :  { %673 = vmatprep.mubr.bf16.mxu0 %v5022_v0 }
  0xe4   :  { %3993 = vmatmul.mubr.msk.bf16.gmra.mrb[64].mxu1 %vm374_vm0, %v5282_v28 }
  0xe5   :  { %946 = vmatprep.mubr.bf16.mxu1 %v5022_v0 }
  0xe9   :  { %3970 = vmatmul.mubr.msk.bf16.gmra.mrb[68].mxu0 %vm374_vm0, %v5404_v46 }
  0xea   :  { %683 = vmatprep.mubr.bf16.mxu0 %v5022_v0 }
  0xec   :  { %3994 = vmatmul.mubr.msk.bf16.gmra.mrb[68].mxu1 %vm374_vm0, %v5304_v32 }
  0xed   :  { %956 = vmatprep.mubr.bf16.mxu1 %v5022_v0 }
  0xf1   :  { %3971 = vmatmul.mubr.msk.bf16.gmra.mrb[72].mxu0 %vm374_vm0, %v5415_v47 }
  0xf2   :  { %693 = vmatprep.mubr.bf16.mxu0 %v5022_v0 }
  0xf4   :  { %3995 = vmatmul.mubr.msk.bf16.gmra.mrb[72].mxu1 %vm374_vm0, %v5320_v34 }
  0xf5   :  { %966 = vmatprep.mubr.bf16.mxu1 %v5022_v0 }
  0xf9   :  { %3972 = vmatmul.mubr.msk.bf16.gmra.mrb[76].mxu0 %vm374_vm0, %v5426_v48 }
  0xfa   :  { %703 = vmatprep.mubr.bf16.mxu0 %v5022_v0 }
  0xfc   :  { %3996 = vmatmul.mubr.msk.bf16.gmra.mrb[76].mxu1 %vm374_vm0, %v5331_v36 }
  0xfd   :  { %976 = vmatprep.mubr.bf16.mxu1 %v5022_v0 }
 0x101   :  { %3973 = vmatmul.mubr.msk.bf16.gmra.mrb[80].mxu0 %vm374_vm0, %v5437_v49 }
 0x102   :  { %713 = vmatprep.mubr.bf16.mxu0 %v5022_v0 }
 0x104   :  { %3997 = vmatmul.mubr.msk.bf16.gmra.mrb[80].mxu1 %vm374_vm0, %v5344_v38 }
 0x105   :  { %986 = vmatprep.mubr.bf16.mxu1 %v5022_v0 }
 0x109   :  { %3974 = vmatmul.mubr.msk.bf16.gmra.mrb[84].mxu0 %vm374_vm0, %v5448_v50 }
 0x10a   :  { %723 = vmatprep.mubr.bf16.mxu0 %v5022_v0 }
 0x10c   :  { %3998 = vmatmul.mubr.msk.bf16.gmra.mrb[84].mxu1 %vm374_vm0, %v5357_v40 }
 0x10d   :  { %996 = vmatprep.mubr.bf16.mxu1 %v5022_v0 }
 0x111   :  { %3975 = vmatmul.mubr.msk.bf16.gmra.mrb[88].mxu0 %vm374_vm0, %v5459_v51 }
 0x112   :  { %733 = vmatprep.mubr.bf16.mxu0 %v5022_v0 }
 0x114   :  { %3999 = vmatmul.mubr.msk.bf16.gmra.mrb[88].mxu1 %vm374_vm0, %v5370_v42 }
 0x115   :  { %1006 = vmatprep.mubr.bf16.mxu1 %v5022_v0 }
 0x119   :  { %3976 = vmatmul.mubr.msk.bf16.gmra.mrb[92].mxu0 %vm374_vm0, %v5470_v52 }
 0x11c   :  { %4000 = vmatmul.mubr.msk.bf16.gmra.mrb[92].mxu1 %vm374_vm0, %v5383_v44 }
 0x11d   :  { %1016 = vmatprep.mubr.bf16.mxu1 %v5022_v0 }
 0x124   :  { %4001 = vmatmul.mubr.msk.bf16.gmra.mrb[96].mxu1 %vm374_vm0, %v5393_v45 }
 0x125   :  { %1026 = vmatprep.mubr.bf16.mxu1 %v5022_v0 }
 0x12c   :  { %4002 = vmatmul.mubr.msk.bf16.gmra.mrb[100].mxu1 %vm374_vm0, %v5404_v46 }
 0x12d   :  { %1036 = vmatprep.mubr.bf16.mxu1 %v5022_v0 }
 0x134   :  { %v505_v60 = vpop.f32.mrb[0].mxu0  ;;  %4003 = vmatmul.mubr.msk.bf16.gmra.mrb[104].mxu1 %vm374_vm0, %v5415_v47  ;;  %v4709_v47 = vld [vmem:[%s6453_s3 + $0xd8] sm:$0xff]  }
 0x135   :  { %v506_v61 = vadd.f32 %v505_v60, %v5493_v58  ;;  %v507_v62 = vpop.f32.mrb[1].mxu0  ;;  %1046 = vmatprep.mubr.bf16.mxu1 %v5022_v0 }
 0x136   :  { %v508_v63 = vadd.f32 %v507_v62, %v5496_v59  ;;  %v509_v1 = vpop.f32.mrb[2].mxu0 }
 0x137   :  { %v510_v2 = vadd.f32 %v509_v1, %v5493_v58  ;;  %v511_v3 = vpop.f32.mrb[3].mxu0  ;;  %v1177_v5 = vmax.f32 %v506_v61, 0.0 }
 0x138   :  { %v512_v4 = vadd.f32 %v511_v3, %v5496_v59  ;;  %v1178_v7 = vmax.f32 %v508_v63, 0.0 }
 0x139   :  { %v1181_v6 = vmax.f32 %v510_v2, 0.0 }
 0x13a   :  { %v1182_v8 = vmax.f32 %v512_v4, 0.0  ;;  %v4703_v4 = vld [vmem:[%s6453_s3 + $0xa8] sm:$0xff]  }
 0x13b   :  { %v1433_v9 = vpack.c.bf16 %v1181_v6, %v1177_v5 }
 0x13c   :  { %v1434_v10 = vpack.c.bf16 %v1182_v8, %v1178_v7  ;;  %v515_v11 = vpop.f32.mrb[4].mxu0  ;;  %4004 = vmatmul.mubr.msk.bf16.gmra.mrb[108].mxu1 %vm374_vm0, %v5426_v48 }
 0x13d   :  { %v516_v13 = vadd.f32 %v515_v11, %v5493_v58  ;;  %v517_v14 = vpop.f32.mrb[5].mxu0  ;;  %v4704_v11 = vld [vmem:[%s6453_s3 + $0xb0] sm:$0xff]   ;;  %1056 = vmatprep.mubr.bf16.mxu1 %v5022_v0 }
 0x13e   :  { %v518_v15 = vadd.f32 %v517_v14, %v5496_v59  ;;  %v519_v16 = vpop.f32.mrb[6].mxu0  ;;  %1856 = vmatprep.mubr.bf16.mxu0 %v1434_v10 }
 0x13f   :  { %v520_v17 = vadd.f32 %v519_v16, %v5493_v58  ;;  %v521_v18 = vpop.f32.mrb[7].mxu0  ;;  %1857 = vmatmul.mubr.bf16.vlgmr.msra.gmra.mrb[96].mxu0 %v1433_v9  ;;  %v1185_v21 = vmax.f32 %v516_v13, 0.0 }
 0x140   :  { %v522_v19 = vadd.f32 %v521_v18, %v5496_v59  ;;  %2114 = vmatpush1.bf16.msra.mxu0 %v4695_v12  ;;  %v1186_v23 = vmax.f32 %v518_v15, 0.0 }
 0x141   :  { %v1189_v22 = vmax.f32 %v520_v17, 0.0  ;;  %2115 = vmatprep.subr.bf16.mxu0 %v5022_v0 }
 0x142   :  { %v1190_v24 = vmax.f32 %v522_v19, 0.0  ;;  %v4705_v19 = vld [vmem:[%s6453_s3 + $0xb8] sm:$0xff]  }
 0x143   :  { %v1437_v26 = vpack.c.bf16 %v1189_v22, %v1185_v21 }
 0x144   :  { %v1438_v27 = vpack.c.bf16 %v1190_v24, %v1186_v23  ;;  %v525_v28 = vpop.f32.mrb[8].mxu0  ;;  %2116 = vmatpush1.bf16.msra.mxu0 %v4698_v20  ;;  %4005 = vmatmul.mubr.msk.bf16.gmra.mrb[112].mxu1 %vm374_vm0, %v5437_v49 }
 0x145   :  { %v526_v30 = vadd.f32 %v525_v28, %v5493_v58  ;;  %v527_v31 = vpop.f32.mrb[9].mxu0  ;;  %2117 = vmatprep.subr.bf16.mxu0 %v5022_v0  ;;  %1066 = vmatprep.mubr.bf16.mxu1 %v5022_v0 }
 0x146   :  { %v528_v32 = vadd.f32 %v527_v31, %v5496_v59  ;;  %v529_v33 = vpop.f32.mrb[10].mxu0  ;;  %1864 = vmatprep.mubr.bf16.mxu0 %v1438_v27  ;;  %v4706_v27 = vld [vmem:[%s6453_s3 + $0xc0] sm:$0xff]  }
 0x147   :  { %v530_v34 = vadd.f32 %v529_v33, %v5493_v58  ;;  %v531_v35 = vpop.f32.mrb[11].mxu0  ;;  %1865 = vmatmul.mubr.bf16.gmra.mrb[100].mxu0 %v1437_v26  ;;  %v1193_v38 = vmax.f32 %v526_v30, 0.0 }
 0x148   :  { %v532_v36 = vadd.f32 %v531_v35, %v5496_v59  ;;  %2118 = vmatpush1.bf16.msra.mxu0 %v4700_v29  ;;  %v1194_v41 = vmax.f32 %v528_v32, 0.0  ;;  %v4707_v35 = vld [vmem:[%s6453_s3 + $0xc8] sm:$0xff]  }
 0x149   :  { %v1197_v39 = vmax.f32 %v530_v34, 0.0  ;;  %2119 = vmatprep.subr.bf16.mxu0 %v5022_v0 }
 0x14a   :  { %v1198_v43 = vmax.f32 %v532_v36, 0.0 }
 0x14b   :  { %v1441_v40 = vpack.c.bf16 %v1197_v39, %v1193_v38 }
 0x14c   :  { %v1442_v53 = vpack.c.bf16 %v1198_v43, %v1194_v41  ;;  %v535_v55 = vpop.f32.mrb[12].mxu0  ;;  %2120 = vmatpush1.bf16.msra.mxu0 %v4701_v37  ;;  %4006 = vmatmul.mubr.msk.bf16.gmra.mrb[116].mxu1 %vm374_vm0, %v5448_v50 }
 0x14d   :  { %v536_v60 = vadd.f32 %v535_v55, %v5493_v58  ;;  %v537_v61 = vpop.f32.mrb[13].mxu0  ;;  %2121 = vmatprep.subr.bf16.mxu0 %v5022_v0  ;;  %1076 = vmatprep.mubr.bf16.mxu1 %v5022_v0 }
 0x14e   :  { %v538_v62 = vadd.f32 %v537_v61, %v5496_v59  ;;  %v539_v63 = vpop.f32.mrb[14].mxu0  ;;  %1872 = vmatprep.mubr.bf16.mxu0 %v1442_v53 }
 0x14f   :  { %v540_v1 = vadd.f32 %v539_v63, %v5493_v58  ;;  %v541_v2 = vpop.f32.mrb[15].mxu0  ;;  %1873 = vmatmul.mubr.bf16.gmra.mrb[104].mxu0 %v1441_v40  ;;  %v1201_v5 = vmax.f32 %v536_v60, 0.0  ;;  %v4708_v40 = vld [vmem:[%s6453_s3 + $0xd0] sm:$0xff]  }
 0x150   :  { %v542_v3 = vadd.f32 %v541_v2, %v5496_v59  ;;  %2122 = vmatpush1.bf16.msra.mxu0 %v4702_v57  ;;  %v1202_v7 = vmax.f32 %v538_v62, 0.0 }
 0x151   :  { %v1205_v6 = vmax.f32 %v540_v1, 0.0  ;;  %2123 = vmatprep.subr.bf16.mxu0 %v5022_v0 }
 0x152   :  { %v1206_v8 = vmax.f32 %v542_v3, 0.0 }
 0x153   :  { %v1445_v42 = vpack.c.bf16 %v1205_v6, %v1201_v5 }
 0x154   :  { %v1446_v9 = vpack.c.bf16 %v1206_v8, %v1202_v7  ;;  %v545_v10 = vpop.f32.mrb[16].mxu0  ;;  %2124 = vmatpush1.bf16.msra.mxu0 %v4703_v4  ;;  %4007 = vmatmul.mubr.msk.bf16.gmra.mrb[120].mxu1 %vm374_vm0, %v5459_v51 }
 0x155   :  { %v546_v12 = vadd.f32 %v545_v10, %v5493_v58  ;;  %v547_v13 = vpop.f32.mrb[17].mxu0  ;;  %2125 = vmatprep.subr.bf16.mxu0 %v5022_v0  ;;  %1086 = vmatprep.mubr.bf16.mxu1 %v5022_v0 }
 0x156   :  { %v548_v14 = vadd.f32 %v547_v13, %v5496_v59  ;;  %v549_v15 = vpop.f32.mrb[18].mxu0  ;;  %1880 = vmatprep.mubr.bf16.mxu0 %v1446_v9 }
 0x157   :  { %v550_v16 = vadd.f32 %v549_v15, %v5493_v58  ;;  %v551_v17 = vpop.f32.mrb[19].mxu0  ;;  %1881 = vmatmul.mubr.bf16.gmra.mrb[108].mxu0 %v1445_v42  ;;  %v1209_v20 = vmax.f32 %v546_v12, 0.0  ;;  %v745_v15 = vpop.f32.mrb[0].mxu1 }
 0x158   :  { %v552_v18 = vadd.f32 %v551_v17, %v5496_v59  ;;  %2126 = vmatpush1.bf16.msra.mxu0 %v4704_v11  ;;  %v1210_v22 = vmax.f32 %v548_v14, 0.0 }
 0x159   :  { %v1213_v21 = vmax.f32 %v550_v16, 0.0  ;;  %2127 = vmatprep.subr.bf16.mxu0 %v5022_v0 }
 0x15a   :  { %v1214_v23 = vmax.f32 %v552_v18, 0.0  ;;  %v747_v18 = vpop.f32.mrb[1].mxu1 }
 0x15b   :  { %v1449_v44 = vpack.c.bf16 %v1213_v21, %v1209_v20  ;;  %v749_v20 = vpop.f32.mrb[2].mxu1 }
 0x15c   :  { %v1450_v24 = vpack.c.bf16 %v1214_v23, %v1210_v22  ;;  %v555_v26 = vpop.f32.mrb[20].mxu0  ;;  %2128 = vmatpush1.bf16.msra.mxu0 %v4705_v19  ;;  %v746_v23 = vadd.f32 %v745_v15, %v5493_v58  ;;  %4008 = vmatmul.mubr.msk.bf16.gmra.mrb[124].mxu1 %vm374_vm0, %v5470_v52 }
 0x15d   :  { %v556_v28 = vadd.f32 %v555_v26, %v5493_v58  ;;  %v557_v29 = vpop.f32.mrb[21].mxu0  ;;  %2129 = vmatprep.subr.bf16.mxu0 %v5022_v0  ;;  %v751_v26 = vpop.f32.mrb[3].mxu1  ;;  %1096 = vmatprep.mubr.bf16.mxu1 %v5022_v0 }
 0x15e   :  { %v558_v30 = vadd.f32 %v557_v29, %v5496_v59  ;;  %v559_v31 = vpop.f32.mrb[22].mxu0  ;;  %1888 = vmatprep.mubr.bf16.mxu0 %v1450_v24  ;;  %v750_v24 = vadd.f32 %v749_v20, %v5493_v58  ;;  %v752_v29 = vadd.f32 %v751_v26, %v5496_v59 }
 0x15f   :  { %v560_v32 = vadd.f32 %v559_v31, %v5493_v58  ;;  %v561_v33 = vpop.f32.mrb[23].mxu0  ;;  %1889 = vmatmul.mubr.bf16.gmra.mrb[112].mxu0 %v1449_v44  ;;  %v1217_v36 = vmax.f32 %v556_v28, 0.0  ;;  %v748_v44 = vadd.f32 %v747_v18, %v5496_v59 }
 0x160   :  { %v562_v34 = vadd.f32 %v561_v33, %v5496_v59  ;;  %2130 = vmatpush1.bf16.msra.mxu0 %v4706_v27  ;;  %v1218_v38 = vmax.f32 %v558_v30, 0.0 }
 0x161   :  { %v1221_v37 = vmax.f32 %v560_v32, 0.0  ;;  %2131 = vmatprep.subr.bf16.mxu0 %v5022_v0  ;;  %v1369_v32 = vmax.f32 %v746_v23, 0.0  ;;  %v1370_v33 = vmax.f32 %v748_v44, 0.0 }
 0x162   :  { %v1222_v39 = vmax.f32 %v562_v34, 0.0  ;;  %v1373_v34 = vmax.f32 %v750_v24, 0.0 }
 0x163   :  { %v1453_v45 = vpack.c.bf16 %v1221_v37, %v1217_v36  ;;  %v1374_v37 = vmax.f32 %v752_v29, 0.0 }
 0x164   :  { %v1454_v41 = vpack.c.bf16 %v1222_v39, %v1218_v38  ;;  %v565_v43 = vpop.f32.mrb[24].mxu0  ;;  %2132 = vmatpush1.bf16.msra.mxu0 %v4707_v35  ;;  %v755_v38 = vpop.f32.mrb[4].mxu1  ;;  %4009 = vmatmul.mubr.msk.bf16.gmra.mrb[128].mxu1 %vm374_vm0, %v5276_v25 }
 0x165   :  { %v566_v53 = vadd.f32 %v565_v43, %v5493_v58  ;;  %v567_v55 = vpop.f32.mrb[25].mxu0  ;;  %2133 = vmatprep.subr.bf16.mxu0 %v5022_v0  ;;  %v5614_v43 = vpack.c.bf16 %v1373_v34, %v1369_v32  ;;  %1106 = vmatprep.mubr.bf16.mxu1 %v5022_v0 }
 0x166   :  { %v568_v57 = vadd.f32 %v567_v55, %v5496_v59  ;;  %v569_v60 = vpop.f32.mrb[26].mxu0  ;;  %1896 = vmatprep.mubr.bf16.mxu0 %v1454_v41  ;;  %v757_v41 = vpop.f32.mrb[5].mxu1 }
 0x167   :  { %v570_v61 = vadd.f32 %v569_v60, %v5493_v58  ;;  %v571_v62 = vpop.f32.mrb[27].mxu0  ;;  %1897 = vmatmul.mubr.bf16.gmra.mrb[116].mxu0 %v1453_v45  ;;  %v1225_v1 = vmax.f32 %v566_v53, 0.0  ;;  %v756_v45 = vadd.f32 %v755_v38, %v5493_v58  ;;  %v758_v55 = vadd.f32 %v757_v41, %v5496_v59 }
 0x168   :  { %v572_v63 = vadd.f32 %v571_v62, %v5496_v59  ;;  %2134 = vmatpush1.bf16.msra.mxu0 %v4708_v40  ;;  %v1226_v3 = vmax.f32 %v568_v57, 0.0  ;;  %v759_v57 = vpop.f32.mrb[6].mxu1  ;;  %v5617_v60 = vpack.c.bf16 %v1374_v37, %v1370_v33 }
 0x169   :  { %v1229_v2 = vmax.f32 %v570_v61, 0.0  ;;  %2135 = vmatprep.subr.bf16.mxu0 %v5022_v0  ;;  %v760_v62 = vadd.f32 %v759_v57, %v5493_v58 }
 0x16a   :  { %v1230_v4 = vmax.f32 %v572_v63, 0.0  ;;  %v761_v63 = vpop.f32.mrb[7].mxu1 }
 0x16b   :  { %v1457_v5 = vpack.c.bf16 %v1229_v2, %v1225_v1  ;;  %v1378_v2 = vmax.f32 %v758_v55, 0.0 }
 0x16c   :  { %v1458_v6 = vpack.c.bf16 %v1230_v4, %v1226_v3  ;;  %v575_v7 = vpop.f32.mrb[28].mxu0  ;;  %2136 = vmatpush1.bf16.msra.mxu0 %v4709_v47  ;;  %v762_v3 = vadd.f32 %v761_v63, %v5496_v59 }
 0x16d   :  { %v576_v46 = vadd.f32 %v575_v7, %v5493_v58  ;;  %v577_v8 = vpop.f32.mrb[29].mxu0  ;;  %2137 = vmatprep.subr.bf16.mxu0 %v5022_v0  ;;  %v1381_v7 = vmax.f32 %v760_v62, 0.0 }
 0x16e   :  { %v578_v42 = vadd.f32 %v577_v8, %v5496_v59  ;;  %v579_v9 = vpop.f32.mrb[30].mxu0  ;;  %1904 = vmatprep.mubr.bf16.mxu0 %v1458_v6  ;;  %v1377_v6 = vmax.f32 %v756_v45, 0.0 }
 0x16f   :  { %v580_v10 = vadd.f32 %v579_v9, %v5493_v58  ;;  %v581_v11 = vpop.f32.mrb[31].mxu0  ;;  %1905 = vmatmul.mubr.bf16.gmra.mrb[120].mxu0 %v1457_v5  ;;  %v1233_v13 = vmax.f32 %v576_v46, 0.0 }
 0x170   :  { %v582_v12 = vadd.f32 %v581_v11, %v5496_v59  ;;  %v1234_v16 = vmax.f32 %v578_v42, 0.0  ;;  %v1382_v42 = vmax.f32 %v762_v3, 0.0 }
 0x171   :  { %v1237_v14 = vmax.f32 %v580_v10, 0.0 }
 0x172   :  { %v1238_v17 = vmax.f32 %v582_v12, 0.0  ;;  %v5629_v15 = vpack.c.bf16 %v1382_v42, %v1378_v2 }
 0x173   :  { %v1461_v19 = vpack.c.bf16 %v1237_v14, %v1233_v13  ;;  %v4710_v13 = vld [vmem:[%s6453_s3 + $0xe0] sm:$0xff]   ;;  %v765_v14 = vpop.f32.mrb[8].mxu1 }
 0x174   :  { %v1462_v21 = vpack.c.bf16 %v1238_v17, %v1234_v16  ;;  %v585_v22 = vpop.f32.mrb[32].mxu0  ;;  %v766_v17 = vadd.f32 %v765_v14, %v5493_v58  ;;  %v767_v18 = vpop.f32.mrb[9].mxu1  ;;  %2138 = vmatpush1.bf16.msra.mxu0 %v4710_v13 }
 0x175   :  { %v586_v27 = vadd.f32 %v585_v22, %v5493_v58  ;;  %v587_v28 = vpop.f32.mrb[33].mxu0  ;;  %v768_v49 = vadd.f32 %v767_v18, %v5496_v59  ;;  %v769_v22 = vpop.f32.mrb[10].mxu1  ;;  %2139 = vmatprep.subr.bf16.mxu0 %v5022_v0 }
 0x176   :  { %v588_v30 = vadd.f32 %v587_v28, %v5496_v59  ;;  %v589_v31 = vpop.f32.mrb[34].mxu0  ;;  %1912 = vmatprep.mubr.bf16.mxu0 %v1462_v21  ;;  %v770_v44 = vadd.f32 %v769_v22, %v5493_v58  ;;  %v771_v24 = vpop.f32.mrb[11].mxu1 }
 0x177   :  { %v590_v35 = vadd.f32 %v589_v31, %v5493_v58  ;;  %v591_v36 = vpop.f32.mrb[35].mxu0  ;;  %1913 = vmatmul.mubr.bf16.gmra.mrb[124].mxu0 %v1461_v19  ;;  %v1241_v40 = vmax.f32 %v586_v27, 0.0  ;;  %v5634_v19 = vpack.c.bf16 %v1381_v7, %v1377_v6  ;;  %v1386_v27 = vmax.f32 %v768_v49, 0.0  ;;  %v775_v57 = vpop.f32.mrb[12].mxu1 }
 0x178   :  { %v592_v39 = vadd.f32 %v591_v36, %v5496_v59  ;;  %v1242_v48 = vmax.f32 %v588_v30, 0.0  ;;  %v772_v28 = vadd.f32 %v771_v24, %v5496_v59  ;;  %v1385_v31 = vmax.f32 %v766_v17, 0.0  ;;  %v777_v63 = vpop.f32.mrb[13].mxu1  ;;  %v4711_v17 = vld [vmem:[%s6453_s3 + $0xe8] sm:$0xff]  }
 0x179   :  { %v1245_v53 = vmax.f32 %v590_v35, 0.0  ;;  %v1389_v32 = vmax.f32 %v770_v44, 0.0  ;;  %v776_v62 = vadd.f32 %v775_v57, %v5493_v58  ;;  %v778_v2 = vadd.f32 %v777_v63, %v5496_v59  ;;  %v779_v50 = vpop.f32.mrb[14].mxu1  ;;  %2140 = vmatpush1.bf16.msra.mxu0 %v4711_v17 }
 0x17a   :  { %v1246_v61 = vmax.f32 %v592_v39, 0.0  ;;  %v1390_v35 = vmax.f32 %v772_v28, 0.0  ;;  %v780_v6 = vadd.f32 %v779_v50, %v5493_v58  ;;  %v781_v7 = vpop.f32.mrb[15].mxu1  ;;  %2141 = vmatprep.subr.bf16.mxu0 %v5022_v0 }
 0x17b   :  { %v1465_v1 = vpack.c.bf16 %v1245_v53, %v1241_v40  ;;  %v5649_v40 = vpack.c.bf16 %v1389_v32, %v1385_v31  ;;  %v1394_v42 = vmax.f32 %v778_v2, 0.0  ;;  %v785_v22 = vpop.f32.mrb[16].mxu1 }
 0x17c   :  { %v1466_v4 = vpack.c.bf16 %v1246_v61, %v1242_v48  ;;  %v595_v5 = vpop.f32.mrb[36].mxu0  ;;  %v5645_v45 = vpack.c.bf16 %v1390_v35, %v1386_v27  ;;  %v786_v51 = vadd.f32 %v785_v22, %v5493_v58  ;;  %v787_v24 = vpop.f32.mrb[17].mxu1 }
 0x17d   :  { %v596_v46 = vadd.f32 %v595_v5, %v5493_v58  ;;  %v597_v8 = vpop.f32.mrb[37].mxu0  ;;  %v1393_v5 = vmax.f32 %v776_v62, 0.0  ;;  %v788_v27 = vadd.f32 %v787_v24, %v5496_v59  ;;  %v789_v28 = vpop.f32.mrb[18].mxu1 }
 0x17e   :  { %v598_v9 = vadd.f32 %v597_v8, %v5496_v59  ;;  %v599_v10 = vpop.f32.mrb[38].mxu0  ;;  %1920 = vmatprep.mubr.bf16.mxu0 %v1466_v4  ;;  %v1401_v31 = vmax.f32 %v786_v51, 0.0  ;;  %v790_v32 = vadd.f32 %v789_v28, %v5493_v58 }
 0x17f   :  { %v600_v11 = vadd.f32 %v599_v10, %v5493_v58  ;;  %v601_v12 = vpop.f32.mrb[39].mxu0  ;;  %1921 = vmatmul.mubr.bf16.gmra.mrb[128].mxu0 %v1465_v1  ;;  %v1249_v20 = vmax.f32 %v596_v46, 0.0 }
 0x180   :  { %v602_v16 = vadd.f32 %v601_v12, %v5496_v59  ;;  %v1250_v47 = vmax.f32 %v598_v9, 0.0  ;;  %v782_v9 = vadd.f32 %v781_v7, %v5496_v59  ;;  %v1397_v12 = vmax.f32 %v780_v6, 0.0 }
 0x181   :  { %v1253_v21 = vmax.f32 %v600_v11, 0.0 }
 0x182   :  { %v1254_v23 = vmax.f32 %v602_v16, 0.0  ;;  %v1398_v16 = vmax.f32 %v782_v9, 0.0 }
 0x183   :  { %v1469_v26 = vpack.c.bf16 %v1253_v21, %v1249_v20  ;;  %v5665_v20 = vpack.c.bf16 %v1397_v12, %v1393_v5 }
 0x184   :  { %v1470_v29 = vpack.c.bf16 %v1254_v23, %v1250_v47  ;;  %v605_v30 = vpop.f32.mrb[40].mxu0  ;;  %v5667_v47 = vpack.c.bf16 %v1398_v16, %v1394_v42 }
 0x185   :  { %v606_v33 = vadd.f32 %v605_v30, %v5493_v58  ;;  %v607_v34 = vpop.f32.mrb[41].mxu0 }
 0x186   :  { %v608_v36 = vadd.f32 %v607_v34, %v5496_v59  ;;  %v609_v37 = vpop.f32.mrb[42].mxu0  ;;  %1928 = vmatprep.mubr.bf16.mxu0 %v1470_v29 }
 0x187   :  { %v610_v38 = vadd.f32 %v609_v37, %v5493_v58  ;;  %v611_v39 = vpop.f32.mrb[43].mxu0  ;;  %1929 = vmatmul.mubr.bf16.gmra.mrb[132].mxu0 %v1469_v26  ;;  %v1257_v53 = vmax.f32 %v606_v33, 0.0  ;;  %v791_v33 = vpop.f32.mrb[19].mxu1 }
 0x188   :  { %v612_v41 = vadd.f32 %v611_v39, %v5496_v59  ;;  %v1258_v48 = vmax.f32 %v608_v36, 0.0  ;;  %v1402_v36 = vmax.f32 %v788_v27, 0.0  ;;  %v792_v37 = vadd.f32 %v791_v33, %v5496_v59 }
 0x189   :  { %v1261_v55 = vmax.f32 %v610_v38, 0.0 }
 0x18a   :  { %v1262_v61 = vmax.f32 %v612_v41, 0.0  ;;  %v1405_v41 = vmax.f32 %v790_v32, 0.0  ;;  %v1406_v57 = vmax.f32 %v792_v37, 0.0 }
 0x18b   :  { %v1473_v1 = vpack.c.bf16 %v1261_v55, %v1257_v53 }
 0x18c   :  { %v1474_v3 = vpack.c.bf16 %v1262_v61, %v1258_v48  ;;  %v615_v4 = vpop.f32.mrb[44].mxu0  ;;  %v5681_v61 = vpack.c.bf16 %v1405_v41, %v1401_v31  ;;  %v5683_v2 = vpack.c.bf16 %v1406_v57, %v1402_v36 }
 0x18d   :  { %v616_v46 = vadd.f32 %v615_v4, %v5493_v58  ;;  %v617_v8 = vpop.f32.mrb[45].mxu0 }
 0x18e   :  { %v618_v10 = vadd.f32 %v617_v8, %v5496_v59  ;;  %v619_v11 = vpop.f32.mrb[46].mxu0  ;;  %1936 = vmatprep.mubr.bf16.mxu0 %v1474_v3 }
 0x18f   :  { %v620_v13 = vadd.f32 %v619_v11, %v5493_v58  ;;  %v621_v14 = vpop.f32.mrb[47].mxu0  ;;  %1937 = vmatmul.mubr.bf16.gmra.mrb[136].mxu0 %v1473_v1  ;;  %v1265_v21 = vmax.f32 %v616_v46, 0.0  ;;  %v795_v1 = vpop.f32.mrb[20].mxu1 }
 0x190   :  { %v622_v18 = vadd.f32 %v621_v14, %v5496_v59  ;;  %v1266_v23 = vmax.f32 %v618_v10, 0.0  ;;  %v796_v4 = vadd.f32 %v795_v1, %v5493_v58  ;;  %v797_v5 = vpop.f32.mrb[21].mxu1 }
 0x191   :  { %v1269_v49 = vmax.f32 %v620_v13, 0.0  ;;  %v798_v7 = vadd.f32 %v797_v5, %v5496_v59  ;;  %v799_v52 = vpop.f32.mrb[22].mxu1 }
 0x192   :  { %v1270_v44 = vmax.f32 %v622_v18, 0.0  ;;  %v1409_v42 = vmax.f32 %v796_v4, 0.0  ;;  %v800_v9 = vadd.f32 %v799_v52, %v5493_v58  ;;  %v801_v10 = vpop.f32.mrb[23].mxu1  ;;  %v4866_v4 = vld [vmem:[%s6450_s0 + $0xc8] sm:$0xff]  }
 0x193   :  { %v1477_v26 = vpack.c.bf16 %v1269_v49, %v1265_v21  ;;  %v1410_v13 = vmax.f32 %v798_v7, 0.0  ;;  %v802_v14 = vadd.f32 %v801_v10, %v5496_v59  ;;  %v805_v27 = vpop.f32.mrb[24].mxu1  ;;  %4010 = vmatmul.mubr.msk.bf16.gmra.mrb[132].mxu1 %vm374_vm0, %v4866_v4 }
 0x194   :  { %v1478_v29 = vpack.c.bf16 %v1270_v44, %v1266_v23  ;;  %v625_v30 = vpop.f32.mrb[48].mxu0  ;;  %v1413_v18 = vmax.f32 %v800_v9, 0.0  ;;  %v4712_v23 = vld [vmem:[%s6453_s3 + $0xf0] sm:$0xff]   ;;  %v806_v25 = vadd.f32 %v805_v27, %v5493_v58  ;;  %v807_v31 = vpop.f32.mrb[25].mxu1  ;;  %1116 = vmatprep.mubr.bf16.mxu1 %v5022_v0 }
 0x195   :  { %v626_v34 = vadd.f32 %v625_v30, %v5493_v58  ;;  %v627_v35 = vpop.f32.mrb[49].mxu0  ;;  %v1414_v22 = vmax.f32 %v802_v14, 0.0  ;;  %2142 = vmatpush1.bf16.msra.mxu0 %v4712_v23  ;;  %v808_v33 = vadd.f32 %v807_v31, %v5496_v59 }
 0x196   :  { %v628_v38 = vadd.f32 %v627_v35, %v5496_v59  ;;  %v629_v39 = vpop.f32.mrb[50].mxu0  ;;  %1944 = vmatprep.mubr.bf16.mxu0 %v1478_v29  ;;  %v5699_v51 = vpack.c.bf16 %v1413_v18, %v1409_v42  ;;  %2143 = vmatprep.subr.bf16.mxu0 %v5022_v0  ;;  %v1417_v37 = vmax.f32 %v806_v25, 0.0 }
 0x197   :  { %v630_v53 = vadd.f32 %v629_v39, %v5493_v58  ;;  %v631_v55 = vpop.f32.mrb[51].mxu0  ;;  %1945 = vmatmul.mubr.bf16.gmra.mrb[140].mxu0 %v1477_v26  ;;  %v1273_v62 = vmax.f32 %v626_v34, 0.0  ;;  %v5701_v28 = vpack.c.bf16 %v1414_v22, %v1410_v13  ;;  %v809_v34 = vpop.f32.mrb[26].mxu1 }
 0x198   :  { %v632_v48 = vadd.f32 %v631_v55, %v5496_v59  ;;  %v1274_v50 = vmax.f32 %v628_v38, 0.0  ;;  %v810_v38 = vadd.f32 %v809_v34, %v5493_v58  ;;  %v811_v39 = vpop.f32.mrb[27].mxu1  ;;  %v1418_v55 = vmax.f32 %v808_v33, 0.0  ;;  %v4713_v33 = vld [vmem:[%s6453_s3 + $0xf8] sm:$0xff]  }
 0x199   :  { %v1277_v63 = vmax.f32 %v630_v53, 0.0  ;;  %v812_v57 = vadd.f32 %v811_v39, %v5496_v59  ;;  %v184_v34 = vsub.s32 2, %v5483_v54  ;;  %2144 = vmatpush1.bf16.msra.mxu0 %v4713_v33 }
 0x19a   :  { %v1278_v3 = vmax.f32 %v632_v48, 0.0 }
 0x19b   :  { %v1481_v6 = vpack.c.bf16 %v1277_v63, %v1273_v62  ;;  %v1421_v63 = vmax.f32 %v810_v38, 0.0 }
 0x19c   :  { %v1482_v46 = vpack.c.bf16 %v1278_v3, %v1274_v50  ;;  %v635_v8 = vpop.f32.mrb[52].mxu0  ;;  %v1422_v3 = vmax.f32 %v812_v57, 0.0 }
 0x19d   :  { %v636_v11 = vadd.f32 %v635_v8, %v5493_v58  ;;  %v637_v12 = vpop.f32.mrb[53].mxu0 }
 0x19e   :  { %v638_v16 = vadd.f32 %v637_v12, %v5496_v59  ;;  %v639_v17 = vpop.f32.mrb[54].mxu0  ;;  %1952 = vmatprep.mubr.bf16.mxu0 %v1482_v46  ;;  %v815_v46 = vpop.f32.mrb[28].mxu1  ;;  %v5719_v8 = vpack.c.bf16 %v1422_v3, %v1418_v55 }
 0x19f   :  { %v640_v21 = vadd.f32 %v639_v17, %v5493_v58  ;;  %v641_v49 = vpop.f32.mrb[55].mxu0  ;;  %1953 = vmatmul.mubr.bf16.gmra.mrb[144].mxu0 %v1481_v6  ;;  %v1281_v24 = vmax.f32 %v636_v11, 0.0  ;;  %v5717_v6 = vpack.c.bf16 %v1421_v63, %v1417_v37  ;;  %v816_v10 = vadd.f32 %v815_v46, %v5493_v58  ;;  %v817_v11 = vpop.f32.mrb[29].mxu1 }
 0x1a0   :  { %v642_v44 = vadd.f32 %v641_v49, %v5496_v59  ;;  %v1282_v29 = vmax.f32 %v638_v16, 0.0  ;;  %v818_v13 = vadd.f32 %v817_v11, %v5496_v59  ;;  %v819_v14 = vpop.f32.mrb[30].mxu1 }
 0x1a1   :  { %v1285_v26 = vmax.f32 %v640_v21, 0.0  ;;  %v1425_v18 = vmax.f32 %v816_v10, 0.0  ;;  %v820_v21 = vadd.f32 %v819_v14, %v5493_v58  ;;  %v821_v49 = vpop.f32.mrb[31].mxu1 }
 0x1a2   :  { %v1286_v30 = vmax.f32 %v642_v44, 0.0  ;;  %v1426_v44 = vmax.f32 %v818_v13, 0.0 }
 0x1a3   :  { %v1485_v32 = vpack.c.bf16 %v1285_v26, %v1281_v24  ;;  %v822_v24 = vadd.f32 %v821_v49, %v5496_v59 }
 0x1a4   :  { %v1486_v35 = vpack.c.bf16 %v1286_v30, %v1282_v29  ;;  %v645_v36 = vpop.f32.mrb[56].mxu0  ;;  %v1429_v29 = vmax.f32 %v820_v21, 0.0 }
 0x1a5   :  { %v646_v41 = vadd.f32 %v645_v36, %v5493_v58  ;;  %v647_v53 = vpop.f32.mrb[57].mxu0  ;;  %v1430_v31 = vmax.f32 %v822_v24, 0.0  ;;  %v188_v36 = vsub.s32 3, %v5483_v54 }
 0x1a6   :  { %v648_v48 = vadd.f32 %v647_v53, %v5496_v59  ;;  %v649_v62 = vpop.f32.mrb[58].mxu0  ;;  %1960 = vmatprep.mubr.bf16.mxu0 %v1486_v35  ;;  %v5739_v37 = vpack.c.bf16 %v1429_v29, %v1425_v18  ;;  %v858_v53 = vpop.f32.mrb[32].mxu1  ;;  %v4868_v18 = vld [vmem:[%s6450_s0 + $0xd8] sm:$0xff]  }
 0x1a7   :  { %v650_v1 = vadd.f32 %v649_v62, %v5493_v58  ;;  %v651_v50 = vpop.f32.mrb[59].mxu0  ;;  %1961 = vmatmul.mubr.bf16.gmra.mrb[148].mxu0 %v1485_v32  ;;  %v1289_v7 = vmax.f32 %v646_v41, 0.0  ;;  %v4867_v32 = vld [vmem:[%s6450_s0 + $0xd0] sm:$0xff]   ;;  %v5742_v41 = vrot.slane %v5486_v56, %v184_v34  ;;  %v5744_v55 = vpack.c.bf16 %v1430_v31, %v1426_v44  ;;  %v860_v63 = vpop.f32.mrb[33].mxu1 }
 0x1a8   :  { %v652_v5 = vadd.f32 %v651_v50, %v5496_v59  ;;  %v1290_v42 = vmax.f32 %v648_v48, 0.0  ;;  %4011 = vmatmul.mubr.msk.bf16.gmra.mrb[136].mxu1 %vm374_vm0, %v4867_v32  ;;  %v5747_v62 = vrot.slane %v5486_v56, %v188_v36  ;;  %v862_v50 = vpop.f32.mrb[34].mxu1 }
 0x1a9   :  { %v1293_v52 = vmax.f32 %v650_v1, 0.0  ;;  %1126 = vmatprep.mubr.bf16.mxu1 %v5022_v0  ;;  %v859_v1 = vadd.f32 %v858_v53, %v5742_v41 }
 0x1aa   :  { %v1294_v9 = vmax.f32 %v652_v5, 0.0  ;;  %v861_v5 = vadd.f32 %v860_v63, %v5747_v62 }
 0x1ab   :  { %v1489_v12 = vpack.c.bf16 %v1293_v52, %v1289_v7  ;;  %v863_v7 = vadd.f32 %v862_v50, %v5742_v41  ;;  %v864_v52 = vpop.f32.mrb[35].mxu1 }
 0x1ac   :  { %v1490_v16 = vpack.c.bf16 %v1294_v9, %v1290_v42  ;;  %v655_v17 = vpop.f32.mrb[60].mxu0  ;;  %v1179_v9 = vmax.f32 %v859_v1, 0.0  ;;  %v865_v10 = vadd.f32 %v864_v52, %v5747_v62  ;;  %v868_v44 = vpop.f32.mrb[36].mxu1 }
 0x1ad   :  { %v656_v22 = vadd.f32 %v655_v17, %v5493_v58  ;;  %v657_v23 = vpop.f32.mrb[61].mxu0  ;;  %v1183_v13 = vmax.f32 %v863_v7, 0.0  ;;  %v869_v29 = vadd.f32 %v868_v44, %v5742_v41 }
 0x1ae   :  { %v658_v26 = vadd.f32 %v657_v23, %v5496_v59  ;;  %v659_v27 = vpop.f32.mrb[62].mxu0  ;;  %1968 = vmatprep.mubr.bf16.mxu0 %v1490_v16  ;;  %v1184_v17 = vmax.f32 %v865_v10, 0.0 }
 0x1af   :  { %v660_v30 = vadd.f32 %v659_v27, %v5493_v58  ;;  %v661_v25 = vpop.f32.mrb[63].mxu0  ;;  %1969 = vmatmul.mubr.bf16.gmra.mrb[152].mxu0 %v1489_v12  ;;  %v1297_v38 = vmax.f32 %v656_v22, 0.0  ;;  %v1180_v12 = vmax.f32 %v861_v5, 0.0  ;;  %v5761_v49 = vpack.c.bf16 %v1183_v13, %v1179_v9  ;;  %v4869_v5 = vld [vmem:[%s6450_s0 + $0xe0] sm:$0xff]  }
 0x1b0   :  { %v662_v35 = vadd.f32 %v661_v25, %v5496_v59  ;;  %v1298_v57 = vmax.f32 %v658_v26, 0.0  ;;  %4012 = vmatmul.mubr.msk.bf16.gmra.mrb[140].mxu1 %vm374_vm0, %v4868_v18 }
 0x1b1   :  { %v1301_v39 = vmax.f32 %v660_v30, 0.0  ;;  %1136 = vmatprep.mubr.bf16.mxu1 %v5022_v0  ;;  %v5764_v24 = vpack.c.bf16 %v1184_v17, %v1180_v12  ;;  %v870_v30 = vpop.f32.mrb[37].mxu1 }
 0x1b2   :  { %v1302_v48 = vmax.f32 %v662_v35, 0.0  ;;  %v871_v31 = vadd.f32 %v870_v30, %v5747_v62  ;;  %v872_v32 = vpop.f32.mrb[38].mxu1  ;;  %v1187_v35 = vmax.f32 %v869_v29, 0.0 }
 0x1b3   :  { %v1493_v54 = vpack.c.bf16 %v1301_v39, %v1297_v38  ;;  %v873_v36 = vadd.f32 %v872_v32, %v5742_v41  ;;  %v874_v38 = vpop.f32.mrb[39].mxu1 }
 0x1b4   :  { %v1494_v3 = vpack.c.bf16 %v1302_v48, %v1298_v57  ;;  %v665_v4 = vpop.f32.mrb[64].mxu0  ;;  %v1188_v57 = vmax.f32 %v871_v31, 0.0  ;;  %v875_v48 = vadd.f32 %v874_v38, %v5747_v62  ;;  %v878_v9 = vpop.f32.mrb[40].mxu1 }
 0x1b5   :  { %v666_v46 = vadd.f32 %v665_v4, %v5493_v58  ;;  %v667_v42 = vpop.f32.mrb[65].mxu0  ;;  %v1191_v1 = vmax.f32 %v873_v36, 0.0  ;;  %v879_v12 = vadd.f32 %v878_v9, %v5742_v41  ;;  %v880_v13 = vpop.f32.mrb[41].mxu1  ;;  %v4870_v36 = vld [vmem:[%s6450_s0 + $0xe8] sm:$0xff]  }
 0x1b6   :  { %v668_v56 = vadd.f32 %v667_v42, %v5496_v59  ;;  %v669_v11 = vpop.f32.mrb[66].mxu0  ;;  %1976 = vmatprep.mubr.bf16.mxu0 %v1494_v3  ;;  %v1192_v4 = vmax.f32 %v875_v48, 0.0  ;;  %v882_v17 = vpop.f32.mrb[42].mxu1 }
 0x1b7   :  { %v670_v14 = vadd.f32 %v669_v11, %v5493_v58  ;;  %v671_v16 = vpop.f32.mrb[67].mxu0  ;;  %1977 = vmatmul.mubr.bf16.gmra.mrb[156].mxu0 %v1493_v54  ;;  %v1305_v22 = vmax.f32 %v666_v46, 0.0  ;;  %v5779_v52 = vpack.c.bf16 %v1191_v1, %v1187_v35  ;;  %v884_v44 = vpop.f32.mrb[43].mxu1 }
 0x1b8   :  { %v672_v21 = vadd.f32 %v671_v16, %v5496_v59  ;;  %v1306_v26 = vmax.f32 %v668_v56, 0.0  ;;  %4013 = vmatmul.mubr.msk.bf16.gmra.mrb[144].mxu1 %vm374_vm0, %v4869_v5  ;;  %v5781_v10 = vpack.c.bf16 %v1192_v4, %v1188_v57  ;;  %v881_v16 = vadd.f32 %v880_v13, %v5747_v62  ;;  %v888_v48 = vpop.f32.mrb[44].mxu1 }
 0x1b9   :  { %v1309_v23 = vmax.f32 %v670_v14, 0.0  ;;  %1146 = vmatprep.mubr.bf16.mxu1 %v5022_v0  ;;  %v885_v30 = vadd.f32 %v884_v44, %v5747_v62 }
 0x1ba   :  { %v1310_v27 = vmax.f32 %v672_v21, 0.0  ;;  %v1196_v29 = vmax.f32 %v881_v16, 0.0 }
 0x1bb   :  { %v1497_v25 = vpack.c.bf16 %v1309_v23, %v1305_v22  ;;  %v1195_v22 = vmax.f32 %v879_v12, 0.0  ;;  %v883_v23 = vadd.f32 %v882_v17, %v5742_v41  ;;  %v1200_v35 = vmax.f32 %v885_v30, 0.0 }
 0x1bc   :  { %v1498_v33 = vpack.c.bf16 %v1310_v27, %v1306_v26  ;;  %v675_v34 = vpop.f32.mrb[68].mxu0 }
 0x1bd   :  { %v676_v39 = vadd.f32 %v675_v34, %v5493_v58  ;;  %v677_v53 = vpop.f32.mrb[69].mxu0  ;;  %v1199_v32 = vmax.f32 %v883_v23, 0.0 }
 0x1be   :  { %v678_v63 = vadd.f32 %v677_v53, %v5496_v59  ;;  %v679_v54 = vpop.f32.mrb[70].mxu0  ;;  %1984 = vmatprep.mubr.bf16.mxu0 %v1498_v33 }
 0x1bf   :  { %v680_v50 = vadd.f32 %v679_v54, %v5493_v58  ;;  %v681_v3 = vpop.f32.mrb[71].mxu0  ;;  %1985 = vmatmul.mubr.bf16.gmra.mrb[160].mxu0 %v1497_v25  ;;  %v1313_v46 = vmax.f32 %v676_v39, 0.0  ;;  %v5796_v39 = vpack.c.bf16 %v1199_v32, %v1195_v22 }
 0x1c0   :  { %v682_v7 = vadd.f32 %v681_v3, %v5496_v59  ;;  %v1314_v56 = vmax.f32 %v678_v63, 0.0  ;;  %4014 = vmatmul.mubr.msk.bf16.gmra.mrb[148].mxu1 %vm374_vm0, %v4870_v36  ;;  %v5798_v63 = vpack.c.bf16 %v1200_v35, %v1196_v29  ;;  %v890_v3 = vpop.f32.mrb[45].mxu1 }
 0x1c1   :  { %v1317_v42 = vmax.f32 %v680_v50, 0.0  ;;  %1156 = vmatprep.mubr.bf16.mxu1 %v5022_v0  ;;  %v889_v50 = vadd.f32 %v888_v48, %v5742_v41  ;;  %v891_v5 = vadd.f32 %v890_v3, %v5747_v62 }
 0x1c2   :  { %v1318_v11 = vmax.f32 %v682_v7, 0.0  ;;  %v892_v7 = vpop.f32.mrb[46].mxu1 }
 0x1c3   :  { %v1501_v14 = vpack.c.bf16 %v1317_v42, %v1313_v46  ;;  %v1203_v9 = vmax.f32 %v889_v50, 0.0 }
 0x1c4   :  { %v1502_v18 = vpack.c.bf16 %v1318_v11, %v1314_v56  ;;  %v685_v21 = vpop.f32.mrb[72].mxu0  ;;  %v893_v56 = vadd.f32 %v892_v7, %v5742_v41  ;;  %v894_v11 = vpop.f32.mrb[47].mxu1 }
 0x1c5   :  { %v686_v26 = vadd.f32 %v685_v21, %v5493_v58  ;;  %v687_v27 = vpop.f32.mrb[73].mxu0  ;;  %v895_v16 = vadd.f32 %v894_v11, %v5747_v62 }
 0x1c6   :  { %v688_v25 = vadd.f32 %v687_v27, %v5496_v59  ;;  %v689_v31 = vpop.f32.mrb[74].mxu0  ;;  %1992 = vmatprep.mubr.bf16.mxu0 %v1502_v18  ;;  %v1207_v21 = vmax.f32 %v893_v56, 0.0 }
 0x1c7   :  { %v690_v33 = vadd.f32 %v689_v31, %v5493_v58  ;;  %v691_v34 = vpop.f32.mrb[75].mxu0  ;;  %1993 = vmatmul.mubr.bf16.gmra.mrb[164].mxu0 %v1501_v14  ;;  %v1321_v53 = vmax.f32 %v686_v26, 0.0  ;;  %v1204_v14 = vmax.f32 %v891_v5, 0.0  ;;  %v1208_v44 = vmax.f32 %v895_v16, 0.0  ;;  %v4871_v26 = vld [vmem:[%s6450_s0 + $0xf0] sm:$0xff]   ;;  %v898_v31 = vpop.f32.mrb[48].mxu1 }
 0x1c8   :  { %v692_v38 = vadd.f32 %v691_v34, %v5496_v59  ;;  %v1322_v54 = vmax.f32 %v688_v25, 0.0  ;;  %4015 = vmatmul.mubr.msk.bf16.gmra.mrb[152].mxu1 %vm374_vm0, %v4871_v26  ;;  %v5813_v29 = vpack.c.bf16 %v1207_v21, %v1203_v9  ;;  %v899_v35 = vadd.f32 %v898_v31, %v5742_v41  ;;  %v900_v36 = vpop.f32.mrb[49].mxu1 }
 0x1c9   :  { %v1325_v57 = vmax.f32 %v690_v33, 0.0  ;;  %1166 = vmatprep.mubr.bf16.mxu1 %v5022_v0  ;;  %v5815_v32 = vpack.c.bf16 %v1208_v44, %v1204_v14 }
 0x1ca   :  { %v1326_v1 = vmax.f32 %v692_v38, 0.0 }
 0x1cb   :  { %v1505_v4 = vpack.c.bf16 %v1325_v57, %v1321_v53  ;;  %v901_v53 = vadd.f32 %v900_v36, %v5747_v62  ;;  %v902_v57 = vpop.f32.mrb[50].mxu1 }
 0x1cc   :  { %v1506_v46 = vpack.c.bf16 %v1326_v1, %v1322_v54  ;;  %v695_v42 = vpop.f32.mrb[76].mxu0  ;;  %v1211_v1 = vmax.f32 %v899_v35, 0.0  ;;  %v903_v0 = vadd.f32 %v902_v57, %v5742_v41  ;;  %v904_v50 = vpop.f32.mrb[51].mxu1 }
 0x1cd   :  { %v696_v12 = vadd.f32 %v695_v42, %v5493_v58  ;;  %v697_v13 = vpop.f32.mrb[77].mxu0  ;;  %v1212_v5 = vmax.f32 %v901_v53, 0.0  ;;  %v905_v7 = vadd.f32 %v904_v50, %v5747_v62  ;;  %v908_v21 = vpop.f32.mrb[52].mxu1 }
 0x1ce   :  { %v698_v17 = vadd.f32 %v697_v13, %v5496_v59  ;;  %v699_v18 = vpop.f32.mrb[78].mxu0  ;;  %2000 = vmatprep.mubr.bf16.mxu0 %v1506_v46  ;;  %v1215_v9 = vmax.f32 %v903_v0, 0.0  ;;  %v4872_v13 = vld [vmem:[%s6450_s0 + $0xf8] sm:$0xff]   ;;  %v909_v26 = vadd.f32 %v908_v21, %v5742_v41 }
 0x1cf   :  { %v700_v22 = vadd.f32 %v699_v18, %v5493_v58  ;;  %v701_v23 = vpop.f32.mrb[79].mxu0  ;;  %2001 = vmatmul.mubr.bf16.gmra.mrb[168].mxu0 %v1505_v4  ;;  %v1329_v30 = vmax.f32 %v696_v12, 0.0  ;;  %v1216_v12 = vmax.f32 %v905_v7, 0.0 }
 0x1d0   :  { %v702_v27 = vadd.f32 %v701_v23, %v5496_v59  ;;  %v1330_v33 = vmax.f32 %v698_v17, 0.0  ;;  %4016 = vmatmul.mubr.msk.bf16.gmra.mrb[156].mxu1 %vm374_vm0, %v4872_v13  ;;  %v5829_v16 = vpack.c.bf16 %v1215_v9, %v1211_v1  ;;  %v1219_v35 = vmax.f32 %v909_v26, 0.0 }
 0x1d1   :  { %v1333_v25 = vmax.f32 %v700_v22, 0.0  ;;  %v5831_v22 = vpack.c.bf16 %v1216_v12, %v1212_v5 }
 0x1d2   :  { %v1334_v34 = vmax.f32 %v702_v27, 0.0  ;;  %v910_v27 = vpop.f32.mrb[53].mxu1 }
 0x1d3   :  { %v1509_v38 = vpack.c.bf16 %v1333_v25, %v1329_v30  ;;  %v911_v25 = vadd.f32 %v910_v27, %v5747_v62  ;;  %v912_v31 = vpop.f32.mrb[54].mxu1 }
 0x1d4   :  { %v1510_v48 = vpack.c.bf16 %v1334_v34, %v1330_v33  ;;  %v705_v54 = vpop.f32.mrb[80].mxu0  ;;  %v913_v36 = vadd.f32 %v912_v31, %v5742_v41 }
 0x1d5   :  { %v706_v3 = vadd.f32 %v705_v54, %v5493_v58  ;;  %v707_v4 = vpop.f32.mrb[81].mxu0 }
 0x1d6   :  { %v708_v46 = vadd.f32 %v707_v4, %v5496_v59  ;;  %v709_v42 = vpop.f32.mrb[82].mxu0  ;;  %2008 = vmatprep.mubr.bf16.mxu0 %v1510_v48  ;;  %v1220_v48 = vmax.f32 %v911_v25, 0.0  ;;  %v1223_v50 = vmax.f32 %v913_v36, 0.0 }
 0x1d7   :  { %v710_v56 = vadd.f32 %v709_v42, %v5493_v58  ;;  %v711_v11 = vpop.f32.mrb[83].mxu0  ;;  %2009 = vmatmul.mubr.bf16.gmra.mrb[172].mxu0 %v1509_v38  ;;  %v1337_v17 = vmax.f32 %v706_v3, 0.0  ;;  %v914_v38 = vpop.f32.mrb[55].mxu1 }
 0x1d8   :  { %v712_v14 = vadd.f32 %v711_v11, %v5496_v59  ;;  %v1338_v23 = vmax.f32 %v708_v46, 0.0  ;;  %v915_v54 = vadd.f32 %v914_v38, %v5747_v62  ;;  %v5841_v46 = vpack.c.bf16 %v1223_v50, %v1219_v35 }
 0x1d9   :  { %v1341_v18 = vmax.f32 %v710_v56, 0.0  ;;  %v918_v56 = vpop.f32.mrb[56].mxu1 }
 0x1da   :  { %v1342_v44 = vmax.f32 %v712_v14, 0.0  ;;  %v1224_v5 = vmax.f32 %v915_v54, 0.0  ;;  %v919_v14 = vadd.f32 %v918_v56, %v5742_v41 }
 0x1db   :  { %v1513_v30 = vpack.c.bf16 %v1341_v18, %v1337_v17  ;;  %v920_v17 = vpop.f32.mrb[57].mxu1 }
 0x1dc   :  { %v1514_v33 = vpack.c.bf16 %v1342_v44, %v1338_v23  ;;  %v715_v34 = vpop.f32.mrb[84].mxu0  ;;  %v5843_v11 = vpack.c.bf16 %v1224_v5, %v1220_v48  ;;  %v921_v21 = vadd.f32 %v920_v17, %v5747_v62  ;;  %v922_v23 = vpop.f32.mrb[58].mxu1  ;;  %v1227_v27 = vmax.f32 %v919_v14, 0.0 }
 0x1dd   :  { %v716_v53 = vadd.f32 %v715_v34, %v5493_v58  ;;  %v717_v57 = vpop.f32.mrb[85].mxu0  ;;  %v924_v25 = vpop.f32.mrb[59].mxu1 }
 0x1de   :  { %v718_v1 = vadd.f32 %v717_v57, %v5496_v59  ;;  %v719_v0 = vpop.f32.mrb[86].mxu0  ;;  %2016 = vmatprep.mubr.bf16.mxu0 %v1514_v33  ;;  %v1228_v34 = vmax.f32 %v921_v21, 0.0  ;;  %v925_v35 = vadd.f32 %v924_v25, %v5747_v62 }
 0x1df   :  { %v720_v3 = vadd.f32 %v719_v0, %v5493_v58  ;;  %v721_v4 = vpop.f32.mrb[87].mxu0  ;;  %2017 = vmatmul.mubr.bf16.gmra.mrb[176].mxu0 %v1513_v30  ;;  %v1345_v42 = vmax.f32 %v716_v53, 0.0  ;;  %v923_v30 = vadd.f32 %v922_v23, %v5742_v41 }
 0x1e0   :  { %v722_v7 = vadd.f32 %v721_v4, %v5496_v59  ;;  %v1346_v12 = vmax.f32 %v718_v1, 0.0  ;;  %v1232_v54 = vmax.f32 %v925_v35, 0.0  ;;  %v928_v4 = vpop.f32.mrb[60].mxu1 }
 0x1e1   :  { %v1349_v9 = vmax.f32 %v720_v3, 0.0  ;;  %v1231_v53 = vmax.f32 %v923_v30, 0.0  ;;  %v930_v56 = vpop.f32.mrb[61].mxu1 }
 0x1e2   :  { %v1350_v13 = vmax.f32 %v722_v7, 0.0  ;;  %v5855_v5 = vpack.c.bf16 %v1232_v54, %v1228_v34  ;;  %v932_v14 = vpop.f32.mrb[62].mxu1 }
 0x1e3   :  { %v1517_v18 = vpack.c.bf16 %v1349_v9, %v1345_v42  ;;  %v5853_v0 = vpack.c.bf16 %v1231_v53, %v1227_v27  ;;  %v929_v9 = vadd.f32 %v928_v4, %v5742_v41  ;;  %v933_v23 = vadd.f32 %v932_v14, %v5742_v41 }
 0x1e4   :  { %v1518_v44 = vpack.c.bf16 %v1350_v13, %v1346_v12  ;;  %v725_v26 = vpop.f32.mrb[88].mxu0  ;;  %v931_v13 = vadd.f32 %v930_v56, %v5747_v62 }
 0x1e5   :  { %v726_v31 = vadd.f32 %v725_v26, %v5493_v58  ;;  %v727_v33 = vpop.f32.mrb[89].mxu0  ;;  %v1235_v21 = vmax.f32 %v929_v9, 0.0  ;;  %v1239_v34 = vmax.f32 %v933_v23, 0.0 }
 0x1e6   :  { %v728_v36 = vadd.f32 %v727_v33, %v5496_v59  ;;  %v729_v38 = vpop.f32.mrb[90].mxu0  ;;  %2024 = vmatprep.mubr.bf16.mxu0 %v1518_v44  ;;  %v934_v44 = vpop.f32.mrb[63].mxu1  ;;  %v1236_v30 = vmax.f32 %v931_v13, 0.0 }
 0x1e7   :  { %v730_v57 = vadd.f32 %v729_v38, %v5493_v58  ;;  %v731_v48 = vpop.f32.mrb[91].mxu0  ;;  %2025 = vmatmul.mubr.bf16.gmra.mrb[180].mxu0 %v1517_v18  ;;  %v1353_v50 = vmax.f32 %v726_v31, 0.0  ;;  %v935_v25 = vadd.f32 %v934_v44, %v5747_v62 }
 0x1e8   :  { %v732_v1 = vadd.f32 %v731_v48, %v5496_v59  ;;  %v1354_v7 = vmax.f32 %v728_v36, 0.0 }
 0x1e9   :  { %v1357_v3 = vmax.f32 %v730_v57, 0.0  ;;  %v1240_v38 = vmax.f32 %v935_v25, 0.0  ;;  %v5865_v57 = vpack.c.bf16 %v1239_v34, %v1235_v21 }
 0x1ea   :  { %v1358_v42 = vmax.f32 %v732_v1, 0.0  ;;  %v938_v1 = vpop.f32.mrb[64].mxu1 }
 0x1eb   :  { %v1521_v12 = vpack.c.bf16 %v1357_v3, %v1353_v50  ;;  %v5867_v50 = vpack.c.bf16 %v1240_v38, %v1236_v30 }
 0x1ec   :  { %v1522_v17 = vpack.c.bf16 %v1358_v42, %v1354_v7  ;;  %v735_v18 = vpop.f32.mrb[92].mxu0  ;;  %v939_v7 = vadd.f32 %v938_v1, %v5742_v41  ;;  %v940_v42 = vpop.f32.mrb[65].mxu1 }
 0x1ed   :  { %v736_v26 = vadd.f32 %v735_v18, %v5493_v58  ;;  %v737_v27 = vpop.f32.mrb[93].mxu0  ;;  %v942_v56 = vpop.f32.mrb[66].mxu1 }
 0x1ee   :  { %v738_v31 = vadd.f32 %v737_v27, %v5496_v59  ;;  %v739_v33 = vpop.f32.mrb[94].mxu0  ;;  %2032 = vmatprep.mubr.bf16.mxu0 %v1522_v17  ;;  %v1243_v13 = vmax.f32 %v939_v7, 0.0  ;;  %v944_v14 = vpop.f32.mrb[67].mxu1 }
 0x1ef   :  { %v740_v35 = vadd.f32 %v739_v33, %v5493_v58  ;;  %v741_v36 = vpop.f32.mrb[95].mxu0  ;;  %2033 = vmatmul.mubr.bf16.gmra.mrb[184].mxu0 %v1521_v12  ;;  %v1361_v48 = vmax.f32 %v736_v26, 0.0  ;;  %v941_v58 = vadd.f32 %v940_v42, %v5747_v62  ;;  %v945_v18 = vadd.f32 %v944_v14, %v5747_v62  ;;  %v948_v26 = vpop.f32.mrb[68].mxu1 }
 0x1f0   :  { %v742_v53 = vadd.f32 %v741_v36, %v5496_v59  ;;  %v1362_v3 = vmax.f32 %v738_v31, 0.0  ;;  %v943_v59 = vadd.f32 %v942_v56, %v5742_v41  ;;  %v949_v30 = vadd.f32 %v948_v26, %v5742_v41  ;;  %v950_v25 = vpop.f32.mrb[69].mxu1 }
 0x1f1   :  { %v1365_v54 = vmax.f32 %v740_v35, 0.0  ;;  %v1244_v17 = vmax.f32 %v941_v58, 0.0  ;;  %v1248_v23 = vmax.f32 %v945_v18, 0.0  ;;  %v951_v31 = vadd.f32 %v950_v25, %v5747_v62  ;;  %v952_v33 = vpop.f32.mrb[70].mxu1 }
 0x1f2   :  { %v1366_v4 = vmax.f32 %v742_v53, 0.0  ;;  %v1247_v21 = vmax.f32 %v943_v59, 0.0  ;;  %v1251_v34 = vmax.f32 %v949_v30, 0.0  ;;  %v953_v35 = vadd.f32 %v952_v33, %v5742_v41  ;;  %v954_v36 = vpop.f32.mrb[71].mxu1 }
 0x1f3   :  { %v1525_v9 = vpack.c.bf16 %v1365_v54, %v1361_v48  ;;  %v5876_v27 = vpack.c.bf16 %v1248_v23, %v1244_v17  ;;  %v1252_v38 = vmax.f32 %v951_v31, 0.0  ;;  %v955_v53 = vadd.f32 %v954_v36, %v5747_v62  ;;  %v958_v1 = vpop.f32.mrb[72].mxu1 }
 0x1f4   :  { %v1526_v12 = vpack.c.bf16 %v1366_v4, %v1362_v3  ;;  %v5874_v44 = vpack.c.bf16 %v1247_v21, %v1243_v13  ;;  %v1255_v48 = vmax.f32 %v953_v35, 0.0  ;;  %v959_v4 = vadd.f32 %v958_v1, %v5742_v41  ;;  %v960_v7 = vpop.f32.mrb[73].mxu1 }
 0x1f5   :  { %v961_v42 = vadd.f32 %v960_v7, %v5747_v62 }
 0x1f6   :  { %2040 = vmatprep.mubr.bf16.mxu0 %v1526_v12  ;;  %v5884_v54 = vpack.c.bf16 %v1255_v48, %v1251_v34  ;;  %v1259_v58 = vmax.f32 %v959_v4, 0.0 }
 0x1f7   :  { %2041 = vmatmul.mubr.bf16.gmra.mrb[188].mxu0 %v1525_v9  ;;  %v962_v9 = vpop.f32.mrb[74].mxu1  ;;  %v1260_v13 = vmax.f32 %v961_v42, 0.0 }
 0x1f8   :  { %2048 = vmatprep.mubr.bf16.mxu0 %v5617_v60  ;;  %v1256_v60 = vmax.f32 %v955_v53, 0.0  ;;  %v963_v56 = vadd.f32 %v962_v9, %v5742_v41  ;;  %v964_v12 = vpop.f32.mrb[75].mxu1 }
 0x1f9   :  { %v968_v17 = vpop.f32.mrb[76].mxu1 }
 0x1fa   :  { %v5886_v3 = vpack.c.bf16 %v1256_v60, %v1252_v38  ;;  %v1263_v59 = vmax.f32 %v963_v56, 0.0  ;;  %v969_v21 = vadd.f32 %v968_v17, %v5742_v41  ;;  %v970_v23 = vpop.f32.mrb[77].mxu1 }
 0x1fb   :  { %v971_v26 = vadd.f32 %v970_v23, %v5747_v62  ;;  %v972_v30 = vpop.f32.mrb[78].mxu1 }
 0x1fc   :  { %v5894_v14 = vpack.c.bf16 %v1263_v59, %v1259_v58  ;;  %v1267_v25 = vmax.f32 %v969_v21, 0.0  ;;  %v973_v31 = vadd.f32 %v972_v30, %v5742_v41  ;;  %v974_v33 = vpop.f32.mrb[79].mxu1 }
 0x1fd   :  { %v1268_v34 = vmax.f32 %v971_v26, 0.0  ;;  %v978_v38 = vpop.f32.mrb[80].mxu1 }
 0x1fe   :  { %v1271_v35 = vmax.f32 %v973_v31, 0.0  ;;  %v979_v48 = vadd.f32 %v978_v38, %v5742_v41  ;;  %v980_v60 = vpop.f32.mrb[81].mxu1 }
 0x1ff   :  { %2049 = vmatmul.mubr.bf16.gmra.mrb[192].mxu0 %v5614_v43  ;;  %v965_v43 = vadd.f32 %v964_v12, %v5747_v62  ;;  %v981_v1 = vadd.f32 %v980_v60, %v5747_v62  ;;  %v982_v4 = vpop.f32.mrb[82].mxu1  ;;  %v4714_v12 = vld [vmem:[#allocation7] sm:$0xff]  }
 0x200   :  { %2056 = vmatprep.mubr.bf16.mxu0 %v5629_v15  ;;  %v5904_v36 = vpack.c.bf16 %v1271_v35, %v1267_v25  ;;  %v1275_v7 = vmax.f32 %v979_v48, 0.0  ;;  %v983_v42 = vadd.f32 %v982_v4, %v5742_v41  ;;  %v984_v9 = vpop.f32.mrb[83].mxu1  ;;  %4197 = vmatprep.subr.bf16.mxu1 %v4714_v12 }
 0x201   :  { %v1264_v15 = vmax.f32 %v965_v43, 0.0  ;;  %v1276_v58 = vmax.f32 %v981_v1, 0.0  ;;  %v988_v43 = vpop.f32.mrb[84].mxu1  ;;  %4198 = vmatpush3.bf16.msra.mxu1 %v4714_v12 }
 0x202   :  { %v1279_v56 = vmax.f32 %v983_v42, 0.0  ;;  %v990_v17 = vpop.f32.mrb[85].mxu1 }
 0x203   :  { %v5896_v18 = vpack.c.bf16 %v1264_v15, %v1260_v13  ;;  %v989_v15 = vadd.f32 %v988_v43, %v5742_v41  ;;  %v991_v21 = vadd.f32 %v990_v17, %v5747_v62  ;;  %v992_v23 = vpop.f32.mrb[86].mxu1 }
 0x204   :  { %v5914_v13 = vpack.c.bf16 %v1279_v56, %v1275_v7  ;;  %v994_v30 = vpop.f32.mrb[87].mxu1 }
 0x205   :  { %v1283_v26 = vmax.f32 %v989_v15, 0.0  ;;  %v1284_v25 = vmax.f32 %v991_v21, 0.0 }
 0x207   :  { %2057 = vmatmul.mubr.bf16.gmra.mrb[196].mxu0 %v5634_v19  ;;  %v975_v19 = vadd.f32 %v974_v33, %v5747_v62 }
 0x208   :  { %2064 = vmatprep.mubr.bf16.mxu0 %v5645_v45 }
 0x209   :  { %v1272_v45 = vmax.f32 %v975_v19, 0.0  ;;  %v998_v19 = vpop.f32.mrb[88].mxu1 }
 0x20a   :  { %v1000_v38 = vpop.f32.mrb[89].mxu1 }
 0x20b   :  { %v5906_v53 = vpack.c.bf16 %v1272_v45, %v1268_v34  ;;  %v999_v45 = vadd.f32 %v998_v19, %v5742_v41  ;;  %v1001_v48 = vadd.f32 %v1000_v38, %v5747_v62  ;;  %v1002_v60 = vpop.f32.mrb[90].mxu1 }
 0x20c   :  { %v1003_v4 = vadd.f32 %v1002_v60, %v5742_v41  ;;  %v1004_v7 = vpop.f32.mrb[91].mxu1 }
 0x20d   :  { %v1291_v1 = vmax.f32 %v999_v45, 0.0  ;;  %v1292_v42 = vmax.f32 %v1001_v48, 0.0 }
 0x20f   :  { %2065 = vmatmul.mubr.bf16.gmra.mrb[200].mxu0 %v5649_v40  ;;  %v985_v40 = vadd.f32 %v984_v9, %v5747_v62  ;;  %v1295_v9 = vmax.f32 %v1003_v4, 0.0 }
 0x210   :  { %2072 = vmatprep.mubr.bf16.mxu0 %v5667_v47 }
 0x211   :  { %v1280_v47 = vmax.f32 %v985_v40, 0.0  ;;  %v1008_v40 = vpop.f32.mrb[92].mxu1 }
 0x212   :  { %v1010_v12 = vpop.f32.mrb[93].mxu1 }
 0x213   :  { %v5916_v59 = vpack.c.bf16 %v1280_v47, %v1276_v58  ;;  %v5934_v58 = vpack.c.bf16 %v1295_v9, %v1291_v1  ;;  %v1009_v47 = vadd.f32 %v1008_v40, %v5742_v41  ;;  %v1011_v43 = vadd.f32 %v1010_v12, %v5747_v62  ;;  %v1012_v15 = vpop.f32.mrb[94].mxu1 }
 0x214   :  { %v1013_v21 = vadd.f32 %v1012_v15, %v5742_v41 }
 0x215   :  { %v1299_v17 = vmax.f32 %v1009_v47, 0.0 }
 0x217   :  { %2073 = vmatmul.mubr.bf16.gmra.mrb[204].mxu0 %v5665_v20  ;;  %v993_v20 = vadd.f32 %v992_v23, %v5742_v41  ;;  %v1014_v23 = vpop.f32.mrb[95].mxu1 }
 0x218   :  { %2080 = vmatprep.mubr.bf16.mxu0 %v5683_v2  ;;  %v995_v2 = vadd.f32 %v994_v30, %v5747_v62 }
 0x219   :  { %v1287_v31 = vmax.f32 %v993_v20, 0.0  ;;  %v1303_v20 = vmax.f32 %v1013_v21, 0.0 }
 0x21a   :  { %v1288_v33 = vmax.f32 %v995_v2, 0.0 }
 0x21b   :  { %v5924_v34 = vpack.c.bf16 %v1287_v31, %v1283_v26  ;;  %v1300_v26 = vmax.f32 %v1011_v43, 0.0  ;;  %v5944_v30 = vpack.c.bf16 %v1303_v20, %v1299_v17 }
 0x21c   :  { %v5926_v35 = vpack.c.bf16 %v1288_v33, %v1284_v25  ;;  %v1018_v25 = vpop.f32.mrb[96].mxu1 }
 0x21d   :  { %v1019_v31 = vadd.f32 %v1018_v25, %v5742_v41  ;;  %v1020_v33 = vpop.f32.mrb[97].mxu1 }
 0x21e   :  { %v1021_v19 = vadd.f32 %v1020_v33, %v5747_v62  ;;  %v1022_v45 = vpop.f32.mrb[98].mxu1 }
 0x21f   :  { %2081 = vmatmul.mubr.bf16.gmra.mrb[208].mxu0 %v5681_v61  ;;  %v1005_v61 = vadd.f32 %v1004_v7, %v5747_v62  ;;  %v1307_v38 = vmax.f32 %v1019_v31, 0.0  ;;  %v1023_v48 = vadd.f32 %v1022_v45, %v5742_v41  ;;  %v1024_v60 = vpop.f32.mrb[99].mxu1  ;;  %v4715_v7 = vld [vmem:[#allocation7 + $0x8] sm:$0xff]  }
 0x220   :  { %2088 = vmatprep.mubr.bf16.mxu0 %v5701_v28  ;;  %v1308_v1 = vmax.f32 %v1021_v19, 0.0  ;;  %v1028_v9 = vpop.f32.mrb[100].mxu1  ;;  %4199 = vmatprep.subr.bf16.mxu1 %v4715_v7 }
 0x221   :  { %v1296_v28 = vmax.f32 %v1005_v61, 0.0  ;;  %v1311_v4 = vmax.f32 %v1023_v48, 0.0  ;;  %v1030_v40 = vpop.f32.mrb[101].mxu1  ;;  %4200 = vmatpush3.bf16.msra.mxu1 %v4715_v7 }
 0x222   :  { %v1031_v47 = vadd.f32 %v1030_v40, %v5747_v62  ;;  %v1032_v12 = vpop.f32.mrb[102].mxu1 }
 0x223   :  { %v5936_v56 = vpack.c.bf16 %v1296_v28, %v1292_v42  ;;  %v5954_v42 = vpack.c.bf16 %v1311_v4, %v1307_v38  ;;  %v1029_v28 = vadd.f32 %v1028_v9, %v5742_v41  ;;  %v1034_v15 = vpop.f32.mrb[103].mxu1 }
 0x224   :  { %v1316_v17 = vmax.f32 %v1031_v47, 0.0  ;;  %v1038_v20 = vpop.f32.mrb[104].mxu1 }
 0x225   :  { %v1315_v43 = vmax.f32 %v1029_v28, 0.0  ;;  %v1040_v25 = vpop.f32.mrb[105].mxu1 }
 0x226   :  { %v1041_v31 = vadd.f32 %v1040_v25, %v5747_v62  ;;  %v1042_v33 = vpop.f32.mrb[106].mxu1 }
 0x227   :  { %2089 = vmatmul.mubr.bf16.gmra.mrb[212].mxu0 %v5699_v51  ;;  %v1015_v51 = vadd.f32 %v1014_v23, %v5747_v62  ;;  %v1043_v45 = vadd.f32 %v1042_v33, %v5742_v41  ;;  %v1044_v38 = vpop.f32.mrb[107].mxu1 }
 0x228   :  { %2096 = vmatprep.mubr.bf16.mxu0 %v5719_v8  ;;  %v1324_v48 = vmax.f32 %v1041_v31, 0.0  ;;  %v1048_v4 = vpop.f32.mrb[108].mxu1 }
 0x229   :  { %v1304_v8 = vmax.f32 %v1015_v51, 0.0  ;;  %v1050_v7 = vpop.f32.mrb[109].mxu1 }
 0x22a   :  { %v1051_v9 = vadd.f32 %v1050_v7, %v5747_v62  ;;  %v1052_v28 = vpop.f32.mrb[110].mxu1 }
 0x22b   :  { %v5946_v2 = vpack.c.bf16 %v1304_v8, %v1300_v26  ;;  %v1039_v8 = vadd.f32 %v1038_v20, %v5742_v41  ;;  %v1053_v47 = vadd.f32 %v1052_v28, %v5742_v41 }
 0x22d   :  { %v1323_v19 = vmax.f32 %v1039_v8, 0.0 }
 0x22f   :  { %2097 = vmatmul.mubr.bf16.gmra.mrb[216].mxu0 %v5717_v6  ;;  %v1025_v6 = vadd.f32 %v1024_v60, %v5747_v62  ;;  %v1327_v60 = vmax.f32 %v1043_v45, 0.0  ;;  %v4716_v45 = vld [vmem:[#allocation7 + $0x10] sm:$0xff]  }
 0x230   :  { %2104 = vmatprep.mubr.bf16.mxu0 %v5744_v55  ;;  %4201 = vmatprep.subr.bf16.mxu1 %v4716_v45 }
 0x231   :  { %v1312_v55 = vmax.f32 %v1025_v6, 0.0  ;;  %4202 = vmatpush3.bf16.msra.mxu1 %v4716_v45 }
 0x233   :  { %v5956_v61 = vpack.c.bf16 %v1312_v55, %v1308_v1  ;;  %v5974_v1 = vpack.c.bf16 %v1327_v60, %v1323_v19  ;;  %v1049_v55 = vadd.f32 %v1048_v4, %v5742_v41 }
 0x235   :  { %v1331_v40 = vmax.f32 %v1049_v55, 0.0 }
 0x237   :  { %2105 = vmatmul.mubr.bf16.gmra.mrb[220].mxu0 %v5739_v37  ;;  %v1033_v37 = vadd.f32 %v1032_v12, %v5742_v41  ;;  %v1054_v12 = vpop.f32.mrb[111].mxu1 }
 0x238   :  { %2145 = vmatprep.mubr.bf16.mxu0 %v5764_v24  ;;  %v1035_v24 = vadd.f32 %v1034_v15, %v5747_v62 }
 0x239   :  { %v1319_v21 = vmax.f32 %v1033_v37, 0.0 }
 0x23a   :  { %v1320_v23 = vmax.f32 %v1035_v24, 0.0  ;;  %v1058_v24 = vpop.f32.mrb[112].mxu1 }
 0x23b   :  { %v5964_v26 = vpack.c.bf16 %v1319_v21, %v1315_v43  ;;  %v1332_v43 = vmax.f32 %v1051_v9, 0.0  ;;  %v1059_v21 = vadd.f32 %v1058_v24, %v5742_v41 }
 0x23c   :  { %v5966_v51 = vpack.c.bf16 %v1320_v23, %v1316_v17  ;;  %v1060_v23 = vpop.f32.mrb[113].mxu1 }
 0x23d   :  { %v1061_v20 = vadd.f32 %v1060_v23, %v5747_v62  ;;  %v1062_v8 = vpop.f32.mrb[114].mxu1  ;;  %v1339_v25 = vmax.f32 %v1059_v21, 0.0 }
 0x23e   :  { %v1063_v31 = vadd.f32 %v1062_v8, %v5742_v41  ;;  %v1064_v33 = vpop.f32.mrb[115].mxu1 }
 0x23f   :  { %2146 = vmatmul.mubr.bf16.vlgmr.msra.gmra.mrb[96].mxu0 %v5761_v49  ;;  %v1045_v49 = vadd.f32 %v1044_v38, %v5747_v62  ;;  %v1065_v19 = vadd.f32 %v1064_v33, %v5747_v62  ;;  %v1068_v60 = vpop.f32.mrb[116].mxu1 }
 0x240   :  { %2153 = vmatprep.mubr.bf16.mxu0 %v5781_v10  ;;  %v1070_v4 = vpop.f32.mrb[117].mxu1 }
 0x241   :  { %v1328_v10 = vmax.f32 %v1045_v49, 0.0  ;;  %v1344_v38 = vmax.f32 %v1065_v19, 0.0  ;;  %v1071_v55 = vadd.f32 %v1070_v4, %v5747_v62  ;;  %v1072_v7 = vpop.f32.mrb[118].mxu1 }
 0x242   :  { %v1074_v28 = vpop.f32.mrb[119].mxu1 }
 0x243   :  { %v5976_v6 = vpack.c.bf16 %v1328_v10, %v1324_v48  ;;  %v1069_v10 = vadd.f32 %v1068_v60, %v5742_v41 }
 0x245   :  { %v1347_v9 = vmax.f32 %v1069_v10, 0.0 }
 0x247   :  { %2154 = vmatmul.mubr.bf16.gmra.mrb[100].mxu0 %v5779_v52  ;;  %v1055_v52 = vadd.f32 %v1054_v12, %v5747_v62 }
 0x248   :  { %2161 = vmatprep.mubr.bf16.mxu0 %v5798_v63  ;;  %v1335_v63 = vmax.f32 %v1053_v47, 0.0 }
 0x249   :  { %v1336_v37 = vmax.f32 %v1055_v52, 0.0 }
 0x24a   :  { %v5984_v15 = vpack.c.bf16 %v1335_v63, %v1331_v40  ;;  %v1348_v40 = vmax.f32 %v1071_v55, 0.0  ;;  %v1078_v63 = vpop.f32.mrb[120].mxu1 }
 0x24b   :  { %v5986_v17 = vpack.c.bf16 %v1336_v37, %v1332_v43  ;;  %v1079_v37 = vadd.f32 %v1078_v63, %v5742_v41  ;;  %v1080_v24 = vpop.f32.mrb[121].mxu1 }
 0x24c   :  { %v1081_v21 = vadd.f32 %v1080_v24, %v5747_v62  ;;  %v1082_v23 = vpop.f32.mrb[122].mxu1 }
 0x24d   :  { %v1083_v8 = vadd.f32 %v1082_v23, %v5742_v41 }
 0x24f   :  { %2162 = vmatmul.mubr.bf16.gmra.mrb[104].mxu0 %v5796_v39  ;;  %v1340_v39 = vmax.f32 %v1061_v20, 0.0  ;;  %v1355_v20 = vmax.f32 %v1079_v37, 0.0 }
 0x250   :  { %2169 = vmatprep.mubr.bf16.mxu0 %v5815_v32  ;;  %v1343_v32 = vmax.f32 %v1063_v31, 0.0 }
 0x251   :  { %v5996_v49 = vpack.c.bf16 %v1344_v38, %v1340_v39 }
 0x252   :  { %v5994_v48 = vpack.c.bf16 %v1343_v32, %v1339_v25  ;;  %v1084_v25 = vpop.f32.mrb[123].mxu1 }
 0x253   :  { %v1085_v31 = vadd.f32 %v1084_v25, %v5747_v62  ;;  %v1088_v32 = vpop.f32.mrb[124].mxu1 }
 0x254   :  { %v1089_v45 = vadd.f32 %v1088_v32, %v5742_v41  ;;  %v1090_v38 = vpop.f32.mrb[125].mxu1 }
 0x255   :  { %v1360_v33 = vmax.f32 %v1085_v31, 0.0  ;;  %v1091_v60 = vadd.f32 %v1090_v38, %v5747_v62  ;;  %v1092_v10 = vpop.f32.mrb[126].mxu1 }
 0x256   :  { %v1363_v4 = vmax.f32 %v1089_v45, 0.0  ;;  %v1093_v55 = vadd.f32 %v1092_v10, %v5742_v41 }
 0x257   :  { %2170 = vmatmul.mubr.bf16.gmra.mrb[108].mxu0 %v5813_v29  ;;  %v1073_v29 = vadd.f32 %v1072_v7, %v5742_v41  ;;  %v1094_v7 = vpop.f32.mrb[127].mxu1 }
 0x258   :  { %2177 = vmatprep.mubr.bf16.mxu0 %v5831_v22  ;;  %v1075_v22 = vadd.f32 %v1074_v28, %v5747_v62 }
 0x259   :  { %v1351_v47 = vmax.f32 %v1073_v29, 0.0 }
 0x25a   :  { %v1352_v12 = vmax.f32 %v1075_v22, 0.0  ;;  %v1098_v22 = vpop.f32.mrb[128].mxu1 }
 0x25b   :  { %v6004_v43 = vpack.c.bf16 %v1351_v47, %v1347_v9  ;;  %v1095_v9 = vadd.f32 %v1094_v7, %v5747_v62  ;;  %v1099_v47 = vadd.f32 %v1098_v22, %v5742_v41 }
 0x25c   :  { %v6006_v52 = vpack.c.bf16 %v1352_v12, %v1348_v40  ;;  %v1100_v12 = vpop.f32.mrb[129].mxu1 }
 0x25d   :  { %v1368_v29 = vmax.f32 %v1095_v9, 0.0  ;;  %v1101_v63 = vadd.f32 %v1100_v12, %v5747_v62  ;;  %v1102_v37 = vpop.f32.mrb[130].mxu1  ;;  %v1371_v24 = vmax.f32 %v1099_v47, 0.0 }
 0x25e   :  { %v1104_v23 = vpop.f32.mrb[131].mxu1 }
 0x25f   :  { %2178 = vmatmul.mubr.bf16.gmra.mrb[112].mxu0 %v5829_v16  ;;  %v1356_v16 = vmax.f32 %v1081_v21, 0.0  ;;  %v1103_v21 = vadd.f32 %v1102_v37, %v5742_v41 }
 0x260   :  { %2185 = vmatprep.mubr.bf16.mxu0 %v5843_v11  ;;  %v1359_v11 = vmax.f32 %v1083_v8, 0.0  ;;  %v4717_v8 = vld [vmem:[#allocation7 + $0x18] sm:$0xff]  }
 0x261   :  { %v6016_v19 = vpack.c.bf16 %v1360_v33, %v1356_v16  ;;  %4203 = vmatprep.subr.bf16.mxu1 %v4717_v8 }
 0x262   :  { %v6014_v39 = vpack.c.bf16 %v1359_v11, %v1355_v20  ;;  %v1105_v20 = vadd.f32 %v1104_v23, %v5747_v62  ;;  %4204 = vmatpush3.bf16.msra.mxu1 %v4717_v8 }
 0x264   :  { %v1376_v25 = vmax.f32 %v1105_v20, 0.0 }
 0x266   :  { %v1108_v11 = vpop.f32.mrb[132].mxu1 }
 0x267   :  { %2186 = vmatmul.mubr.bf16.gmra.mrb[116].mxu0 %v5841_v46  ;;  %v1364_v46 = vmax.f32 %v1091_v60, 0.0  ;;  %v1109_v33 = vadd.f32 %v1108_v11, %v5742_v41  ;;  %v1110_v32 = vpop.f32.mrb[133].mxu1 }
 0x268   :  { %2193 = vmatprep.mubr.bf16.mxu0 %v5855_v5  ;;  %v1367_v5 = vmax.f32 %v1093_v55, 0.0  ;;  %v1111_v45 = vadd.f32 %v1110_v32, %v5747_v62  ;;  %v1112_v38 = vpop.f32.mrb[134].mxu1 }
 0x269   :  { %v6026_v40 = vpack.c.bf16 %v1368_v29, %v1364_v46  ;;  %v1379_v60 = vmax.f32 %v1109_v33, 0.0  ;;  %v1114_v10 = vpop.f32.mrb[135].mxu1 }
 0x26a   :  { %v6024_v28 = vpack.c.bf16 %v1367_v5, %v1363_v4  ;;  %v1380_v4 = vmax.f32 %v1111_v45, 0.0 }
 0x26f   :  { %2194 = vmatmul.mubr.bf16.gmra.mrb[120].mxu0 %v5853_v0  ;;  %v1372_v0 = vmax.f32 %v1101_v63, 0.0 }
 0x270   :  { %2201 = vmatprep.mubr.bf16.mxu0 %v5867_v50  ;;  %v1375_v50 = vmax.f32 %v1103_v21, 0.0 }
 0x271   :  { %v6036_v31 = vpack.c.bf16 %v1376_v25, %v1372_v0 }
 0x272   :  { %v6034_v16 = vpack.c.bf16 %v1375_v50, %v1371_v24 }
 0x277   :  { %2202 = vmatmul.mubr.bf16.gmra.mrb[124].mxu0 %v5865_v57  ;;  %v1113_v57 = vadd.f32 %v1112_v38, %v5742_v41 }
 0x278   :  { %2209 = vmatprep.mubr.bf16.mxu0 %v5876_v27  ;;  %v1115_v27 = vadd.f32 %v1114_v10, %v5747_v62 }
 0x279   :  { %v1383_v55 = vmax.f32 %v1113_v57, 0.0 }
 0x27a   :  { %v1384_v7 = vmax.f32 %v1115_v27, 0.0 }
 0x27b   :  { %v6044_v46 = vpack.c.bf16 %v1383_v55, %v1379_v60  ;;  %v1118_v5 = vpop.f32.mrb[136].mxu1 }
 0x27c   :  { %v6046_v9 = vpack.c.bf16 %v1384_v7, %v1380_v4  ;;  %v1119_v29 = vadd.f32 %v1118_v5, %v5742_v41  ;;  %v1120_v22 = vpop.f32.mrb[137].mxu1  ;;  %v4718_v4 = vld [vmem:[#allocation7 + $0x20] sm:$0xff]  }
 0x27d   :  { %v1121_v47 = vadd.f32 %v1120_v22, %v5747_v62  ;;  %v1122_v12 = vpop.f32.mrb[138].mxu1  ;;  %4205 = vmatprep.subr.bf16.mxu1 %v4718_v4 }
 0x27e   :  { %v1387_v63 = vmax.f32 %v1119_v29, 0.0  ;;  %v1123_v37 = vadd.f32 %v1122_v12, %v5742_v41  ;;  %v1124_v24 = vpop.f32.mrb[139].mxu1  ;;  %4206 = vmatpush3.bf16.msra.mxu1 %v4718_v4 }
 0x27f   :  { %2210 = vmatmul.mubr.bf16.gmra.mrb[128].mxu0 %v5874_v44  ;;  %v1388_v44 = vmax.f32 %v1121_v47, 0.0  ;;  %v1125_v21 = vadd.f32 %v1124_v24, %v5747_v62 }
 0x280   :  { %2217 = vmatprep.mubr.bf16.mxu0 %v5886_v3  ;;  %v1391_v3 = vmax.f32 %v1123_v37, 0.0 }
 0x281   :  { %v1392_v23 = vmax.f32 %v1125_v21, 0.0 }
 0x282   :  { %v6054_v0 = vpack.c.bf16 %v1391_v3, %v1387_v63  ;;  %v4720_v3 = vld [vmem:[#allocation7 + $0x30] sm:$0xff]  }
 0x283   :  { %v6056_v20 = vpack.c.bf16 %v1392_v23, %v1388_v44  ;;  %v1128_v50 = vpop.f32.mrb[140].mxu1 }
 0x284   :  { %v1129_v8 = vadd.f32 %v1128_v50, %v5742_v41  ;;  %v1130_v25 = vpop.f32.mrb[141].mxu1 }
 0x285   :  { %v1131_v11 = vadd.f32 %v1130_v25, %v5747_v62  ;;  %v1132_v33 = vpop.f32.mrb[142].mxu1 }
 0x286   :  { %v1395_v32 = vmax.f32 %v1129_v8, 0.0  ;;  %v1133_v45 = vadd.f32 %v1132_v33, %v5742_v41  ;;  %v1134_v38 = vpop.f32.mrb[143].mxu1 }
 0x287   :  { %2218 = vmatmul.mubr.bf16.gmra.mrb[132].mxu0 %v5884_v54  ;;  %v1396_v54 = vmax.f32 %v1131_v11, 0.0  ;;  %v1135_v60 = vadd.f32 %v1134_v38, %v5747_v62 }
 0x288   :  { %2225 = vmatprep.mubr.bf16.mxu0 %v5896_v18  ;;  %v1399_v18 = vmax.f32 %v1133_v45, 0.0  ;;  %v4721_v45 = vld [vmem:[#allocation7 + $0x38] sm:$0xff]  }
 0x289   :  { %v1400_v57 = vmax.f32 %v1135_v60, 0.0 }
 0x28a   :  { %v6064_v10 = vpack.c.bf16 %v1399_v18, %v1395_v32 }
 0x28b   :  { %v6066_v27 = vpack.c.bf16 %v1400_v57, %v1396_v54  ;;  %v1138_v55 = vpop.f32.mrb[144].mxu1 }
 0x28c   :  { %v1139_v7 = vadd.f32 %v1138_v55, %v5742_v41  ;;  %v1140_v5 = vpop.f32.mrb[145].mxu1 }
 0x28d   :  { %v1141_v29 = vadd.f32 %v1140_v5, %v5747_v62  ;;  %v1142_v22 = vpop.f32.mrb[146].mxu1 }
 0x28e   :  { %v1403_v47 = vmax.f32 %v1139_v7, 0.0  ;;  %v1144_v12 = vpop.f32.mrb[147].mxu1 }
 0x28f   :  { %2226 = vmatmul.mubr.bf16.gmra.mrb[136].mxu0 %v5894_v14  ;;  %v1143_v14 = vadd.f32 %v1142_v22, %v5742_v41  ;;  %v1404_v63 = vmax.f32 %v1141_v29, 0.0  ;;  %v1145_v37 = vadd.f32 %v1144_v12, %v5747_v62 }
 0x290   :  { %2233 = vmatprep.mubr.bf16.mxu0 %v5906_v53  ;;  %v4719_v53 = vld [vmem:[#allocation7 + $0x28] sm:$0xff]  }
 0x291   :  { %v1407_v24 = vmax.f32 %v1143_v14, 0.0  ;;  %4207 = vmatprep.subr.bf16.mxu1 %v4719_v53  ;;  %v1408_v44 = vmax.f32 %v1145_v37, 0.0 }
 0x292   :  { %4208 = vmatpush3.bf16.msra.mxu1 %v4719_v53 }
 0x293   :  { %v6074_v21 = vpack.c.bf16 %v1407_v24, %v1403_v47  ;;  %v6076_v23 = vpack.c.bf16 %v1408_v44, %v1404_v63  ;;  %v1148_v50 = vpop.f32.mrb[148].mxu1  ;;  %4209 = vmatprep.subr.bf16.mxu1 %v4720_v3 }
 0x294   :  { %v1149_v8 = vadd.f32 %v1148_v50, %v5742_v41  ;;  %v1150_v25 = vpop.f32.mrb[149].mxu1 }
 0x295   :  { %v1151_v11 = vadd.f32 %v1150_v25, %v5747_v62  ;;  %v1152_v33 = vpop.f32.mrb[150].mxu1 }
 0x296   :  { %4210 = vmatpush3.bf16.msra.mxu1 %v4720_v3  ;;  %v1153_v32 = vadd.f32 %v1152_v33, %v5742_v41 }
 0x297   :  { %2234 = vmatmul.mubr.bf16.gmra.mrb[140].mxu0 %v5904_v36  ;;  %v1411_v36 = vmax.f32 %v1149_v8, 0.0  ;;  %v1412_v38 = vmax.f32 %v1151_v11, 0.0  ;;  %4211 = vmatprep.subr.bf16.mxu1 %v4721_v45 }
 0x298   :  { %2241 = vmatprep.mubr.bf16.mxu0 %v5916_v59  ;;  %v1154_v59 = vpop.f32.mrb[151].mxu1  ;;  %v1415_v60 = vmax.f32 %v1153_v32, 0.0 }
 0x299   :  { %v1155_v54 = vadd.f32 %v1154_v59, %v5747_v62 }
 0x29a   :  { %4212 = vmatpush3.bf16.msra.mxu1 %v4721_v45  ;;  %v6084_v57 = vpack.c.bf16 %v1415_v60, %v1411_v36 }
 0x29b   :  { %v1416_v18 = vmax.f32 %v1155_v54, 0.0  ;;  %v1158_v55 = vpop.f32.mrb[152].mxu1 }
 0x29c   :  { %v1159_v7 = vadd.f32 %v1158_v55, %v5742_v41  ;;  %v1160_v5 = vpop.f32.mrb[153].mxu1 }
 0x29d   :  { %v6086_v4 = vpack.c.bf16 %v1416_v18, %v1412_v38  ;;  %v1161_v29 = vadd.f32 %v1160_v5, %v5747_v62  ;;  %v1162_v22 = vpop.f32.mrb[154].mxu1 }
 0x29e   :  { %v1419_v47 = vmax.f32 %v1159_v7, 0.0  ;;  %v1164_v14 = vpop.f32.mrb[155].mxu1 }
 0x29f   :  { %2242 = vmatmul.mubr.bf16.gmra.mrb[144].mxu0 %v5914_v13  ;;  %v1163_v13 = vadd.f32 %v1162_v22, %v5742_v41  ;;  %v1420_v12 = vmax.f32 %v1161_v29, 0.0 }
 0x2a0   :  { %2249 = vmatprep.mubr.bf16.mxu0 %v5926_v35  ;;  %v1165_v35 = vadd.f32 %v1164_v14, %v5747_v62 }
 0x2a1   :  { %v1423_v53 = vmax.f32 %v1163_v13, 0.0 }
 0x2a2   :  { %v1424_v63 = vmax.f32 %v1165_v35, 0.0 }
 0x2a3   :  { %v6094_v37 = vpack.c.bf16 %v1423_v53, %v1419_v47  ;;  %v1168_v44 = vpop.f32.mrb[156].mxu1 }
 0x2a4   :  { %v6096_v24 = vpack.c.bf16 %v1424_v63, %v1420_v12  ;;  %v1169_v3 = vadd.f32 %v1168_v44, %v5742_v41  ;;  %v1170_v50 = vpop.f32.mrb[157].mxu1 }
 0x2a5   :  { %v1171_v8 = vadd.f32 %v1170_v50, %v5747_v62  ;;  %v1172_v25 = vpop.f32.mrb[158].mxu1 }
 0x2a6   :  { %v1427_v11 = vmax.f32 %v1169_v3, 0.0  ;;  %v1173_v33 = vadd.f32 %v1172_v25, %v5742_v41  ;;  %v1174_v36 = vpop.f32.mrb[159].mxu1  ;;  %v6134_v41 = vld [vmem:[%s6454_s4] ss:$0 sm:$0xff] }
 0x2a7   :  { %2250 = vmatmul.mubr.bf16.gmra.mrb[148].mxu0 %v5924_v34  ;;  %v1428_v34 = vmax.f32 %v1171_v8, 0.0  ;;  %v1175_v32 = vadd.f32 %v1174_v36, %v5747_v62 }
 0x2a8   :  { %2257 = vmatprep.mubr.bf16.mxu0 %v5936_v56  ;;  %v1431_v56 = vmax.f32 %v1173_v33, 0.0 }
 0x2a9   :  { %v1432_v59 = vmax.f32 %v1175_v32, 0.0 }
 0x2aa   :  { %v6104_v45 = vpack.c.bf16 %v1431_v56, %v1427_v11 }
 0x2ab   :  { %v6106_v38 = vpack.c.bf16 %v1432_v59, %v1428_v34 }
 0x2af   :  { %2258 = vmatmul.mubr.bf16.gmra.mrb[152].mxu0 %v5934_v58 }
 0x2b0   :  { %2265 = vmatprep.mubr.bf16.mxu0 %v5946_v2 }
 0x2b7   :  { %2266 = vmatmul.mubr.bf16.gmra.mrb[156].mxu0 %v5944_v30 }
 0x2b8   :  { %2273 = vmatprep.mubr.bf16.mxu0 %v5956_v61 }
 0x2bf   :  { %2274 = vmatmul.mubr.bf16.gmra.mrb[160].mxu0 %v5954_v42 }
 0x2c0   :  { %2281 = vmatprep.mubr.bf16.mxu0 %v5966_v51 }
 0x2c7   :  { %2282 = vmatmul.mubr.bf16.gmra.mrb[164].mxu0 %v5964_v26 }
 0x2c8   :  { %2289 = vmatprep.mubr.bf16.mxu0 %v5976_v6 }
 0x2cf   :  { %2290 = vmatmul.mubr.bf16.gmra.mrb[168].mxu0 %v5974_v1 }
 0x2d0   :  { %2297 = vmatprep.mubr.bf16.mxu0 %v5986_v17 }
 0x2d7   :  { %2298 = vmatmul.mubr.bf16.gmra.mrb[172].mxu0 %v5984_v15 }
 0x2d8   :  { %2305 = vmatprep.mubr.bf16.mxu0 %v5996_v49 }
 0x2df   :  { %2306 = vmatmul.mubr.bf16.gmra.mrb[176].mxu0 %v5994_v48 }
 0x2e0   :  { %2313 = vmatprep.mubr.bf16.mxu0 %v6006_v52 }
 0x2e7   :  { %2314 = vmatmul.mubr.bf16.gmra.mrb[180].mxu0 %v6004_v43 }
 0x2e8   :  { %2321 = vmatprep.mubr.bf16.mxu0 %v6016_v19 }
 0x2ef   :  { %2322 = vmatmul.mubr.bf16.gmra.mrb[184].mxu0 %v6014_v39 }
 0x2f0   :  { %2329 = vmatprep.mubr.bf16.mxu0 %v6026_v40 }
 0x2f7   :  { %2330 = vmatmul.mubr.bf16.gmra.mrb[188].mxu0 %v6024_v28 }
 0x2f8   :  { %2337 = vmatprep.mubr.bf16.mxu0 %v6036_v31 }
 0x2ff   :  { %2338 = vmatmul.mubr.bf16.gmra.mrb[192].mxu0 %v6034_v16 }
 0x300   :  { %2345 = vmatprep.mubr.bf16.mxu0 %v6046_v9 }
 0x307   :  { %2346 = vmatmul.mubr.bf16.gmra.mrb[196].mxu0 %v6044_v46 }
 0x308   :  { %2353 = vmatprep.mubr.bf16.mxu0 %v6056_v20 }
 0x30f   :  { %2354 = vmatmul.mubr.bf16.gmra.mrb[200].mxu0 %v6054_v0 }
 0x310   :  { %2361 = vmatprep.mubr.bf16.mxu0 %v6066_v27 }
 0x312   :  { %v2147_v62 = vpop.f32.mrb[96].mxu0 }
 0x313   :  { %v4439_v58 = vadd.f32 %v6134_v41, %v2147_v62  ;;  %v2149_v30 = vpop.f32.mrb[97].mxu0 }
 0x314   :  { %v2150_v2 = vpop.f32.mrb[98].mxu0 }
 0x315   :  { %v4440_v42 = vadd.f32 %v6134_v41, %v2150_v2  ;;  %v2152_v61 = vpop.f32.mrb[99].mxu0  ;;  %v2402_v26 = vmax.f32 %v4439_v58, 0.0 }
 0x317   :  { %v2403_v51 = vmax.f32 %v4440_v42, 0.0  ;;  %2362 = vmatmul.mubr.bf16.gmra.mrb[204].mxu0 %v6064_v10 }
 0x318   :  { %2369 = vmatprep.mubr.bf16.mxu0 %v6076_v23 }
 0x319   :  { %v2466_v1 = vpack.c.bf16 %v2403_v51, %v2402_v26 }
 0x31a   :  { %v2155_v6 = vpop.f32.mrb[100].mxu0 }
 0x31b   :  { %v4441_v15 = vadd.f32 %v6134_v41, %v2155_v6  ;;  %v2157_v17 = vpop.f32.mrb[101].mxu0  ;;  %4213 = vmatprep.mubr.bf16.mxu1 %v2466_v1 }
 0x31c   :  { %v2158_v48 = vpop.f32.mrb[102].mxu0 }
 0x31d   :  { %v4442_v49 = vadd.f32 %v6134_v41, %v2158_v48  ;;  %v2160_v43 = vpop.f32.mrb[103].mxu0  ;;  %v2404_v52 = vmax.f32 %v4441_v15, 0.0 }
 0x31f   :  { %v2405_v39 = vmax.f32 %v4442_v49, 0.0  ;;  %2370 = vmatmul.mubr.bf16.gmra.mrb[208].mxu0 %v6074_v21 }
 0x320   :  { %2377 = vmatprep.mubr.bf16.mxu0 %v6086_v4 }
 0x321   :  { %v2467_v19 = vpack.c.bf16 %v2405_v39, %v2404_v52 }
 0x322   :  { %v2163_v28 = vpop.f32.mrb[104].mxu0 }
 0x323   :  { %v4443_v40 = vadd.f32 %v6134_v41, %v2163_v28  ;;  %v2165_v16 = vpop.f32.mrb[105].mxu0  ;;  %4214 = vmatmul.mubr.bf16.vlgmr.msra.gmra.mrb[160].mxu1 %v2467_v19 }
 0x324   :  { %v2166_v31 = vpop.f32.mrb[106].mxu0 }
 0x325   :  { %v4444_v46 = vadd.f32 %v6134_v41, %v2166_v31  ;;  %v2168_v9 = vpop.f32.mrb[107].mxu0  ;;  %v2406_v0 = vmax.f32 %v4443_v40, 0.0 }
 0x327   :  { %v2407_v20 = vmax.f32 %v4444_v46, 0.0  ;;  %2378 = vmatmul.mubr.bf16.gmra.mrb[212].mxu0 %v6084_v57 }
 0x328   :  { %2385 = vmatprep.mubr.bf16.mxu0 %v6096_v24 }
 0x329   :  { %v2468_v10 = vpack.c.bf16 %v2407_v20, %v2406_v0 }
 0x32a   :  { %v2171_v27 = vpop.f32.mrb[108].mxu0 }
 0x32b   :  { %v4445_v21 = vadd.f32 %v6134_v41, %v2171_v27  ;;  %v2173_v23 = vpop.f32.mrb[109].mxu0  ;;  %4217 = vmatprep.mubr.bf16.mxu1 %v2468_v10 }
 0x32c   :  { %v2174_v54 = vpop.f32.mrb[110].mxu0 }
 0x32d   :  { %v4446_v60 = vadd.f32 %v6134_v41, %v2174_v54  ;;  %v2176_v18 = vpop.f32.mrb[111].mxu0  ;;  %v2408_v4 = vmax.f32 %v4445_v21, 0.0 }
 0x32f   :  { %v2409_v55 = vmax.f32 %v4446_v60, 0.0  ;;  %2386 = vmatmul.mubr.bf16.gmra.mrb[216].mxu0 %v6094_v37 }
 0x330   :  { %2393 = vmatprep.mubr.bf16.mxu0 %v6106_v38 }
 0x331   :  { %v2469_v7 = vpack.c.bf16 %v2409_v55, %v2408_v4 }
 0x332   :  { %v2179_v57 = vpop.f32.mrb[112].mxu0 }
 0x333   :  { %v4447_v5 = vadd.f32 %v6134_v41, %v2179_v57  ;;  %v2181_v29 = vpop.f32.mrb[113].mxu0  ;;  %4218 = vmatmul.mubr.bf16.gmra.mrb[164].mxu1 %v2469_v7 }
 0x334   :  { %v2182_v22 = vpop.f32.mrb[114].mxu0 }
 0x335   :  { %v4448_v47 = vadd.f32 %v6134_v41, %v2182_v22  ;;  %v2184_v13 = vpop.f32.mrb[115].mxu0  ;;  %v2410_v14 = vmax.f32 %v4447_v5, 0.0 }
 0x337   :  { %v2411_v12 = vmax.f32 %v4448_v47, 0.0  ;;  %2394 = vmatmul.mubr.bf16.gmra.mrb[220].mxu0 %v6104_v45 }
 0x339   :  { %v2470_v35 = vpack.c.bf16 %v2411_v12, %v2410_v14 }
 0x33a   :  { %v2187_v53 = vpop.f32.mrb[116].mxu0 }
 0x33b   :  { %v4449_v63 = vadd.f32 %v6134_v41, %v2187_v53  ;;  %v2189_v37 = vpop.f32.mrb[117].mxu0  ;;  %4221 = vmatprep.mubr.bf16.mxu1 %v2470_v35 }
 0x33c   :  { %v2190_v24 = vpop.f32.mrb[118].mxu0 }
 0x33d   :  { %v4450_v44 = vadd.f32 %v6134_v41, %v2190_v24  ;;  %v2192_v3 = vpop.f32.mrb[119].mxu0  ;;  %v2412_v50 = vmax.f32 %v4449_v63, 0.0 }
 0x33f   :  { %v2413_v8 = vmax.f32 %v4450_v44, 0.0 }
 0x341   :  { %v2471_v25 = vpack.c.bf16 %v2413_v8, %v2412_v50 }
 0x342   :  { %v2195_v11 = vpop.f32.mrb[120].mxu0 }
 0x343   :  { %v4451_v33 = vadd.f32 %v6134_v41, %v2195_v11  ;;  %v2197_v36 = vpop.f32.mrb[121].mxu0  ;;  %4222 = vmatmul.mubr.bf16.gmra.mrb[168].mxu1 %v2471_v25  ;;  %v4722_v11 = vld [vmem:[#allocation8] sm:$0xff]  }
 0x344   :  { %v2198_v34 = vpop.f32.mrb[122].mxu0  ;;  %4277 = vmatprep.subr.bf16.mxu1 %v4722_v11 }
 0x345   :  { %v4452_v32 = vadd.f32 %v6134_v41, %v2198_v34  ;;  %v2200_v56 = vpop.f32.mrb[123].mxu0  ;;  %v2414_v59 = vmax.f32 %v4451_v33, 0.0  ;;  %4278 = vmatpush3.bf16.msra.mxu1 %v4722_v11 }
 0x347   :  { %v2415_v45 = vmax.f32 %v4452_v32, 0.0 }
 0x349   :  { %v2472_v38 = vpack.c.bf16 %v2415_v45, %v2414_v59  ;;  %v4723_v45 = vld [vmem:[#allocation8 + $0x8] sm:$0xff]  }
 0x34a   :  { %v2203_v62 = vpop.f32.mrb[124].mxu0  ;;  %4279 = vmatprep.subr.bf16.mxu1 %v4723_v45 }
 0x34b   :  { %v4453_v58 = vadd.f32 %v6134_v41, %v2203_v62  ;;  %v2205_v30 = vpop.f32.mrb[125].mxu0  ;;  %4225 = vmatprep.mubr.bf16.mxu1 %v2472_v38  ;;  %4280 = vmatpush3.bf16.msra.mxu1 %v4723_v45 }
 0x34c   :  { %v2206_v2 = vpop.f32.mrb[126].mxu0  ;;  %v4724_v30 = vld [vmem:[#allocation8 + $0x10] sm:$0xff]  }
 0x34d   :  { %v4454_v42 = vadd.f32 %v6134_v41, %v2206_v2  ;;  %v2208_v61 = vpop.f32.mrb[127].mxu0  ;;  %v2416_v26 = vmax.f32 %v4453_v58, 0.0  ;;  %4281 = vmatprep.subr.bf16.mxu1 %v4724_v30 }
 0x34f   :  { %v2417_v51 = vmax.f32 %v4454_v42, 0.0  ;;  %4282 = vmatpush3.bf16.msra.mxu1 %v4724_v30 }
 0x351   :  { %v2473_v1 = vpack.c.bf16 %v2417_v51, %v2416_v26 }
 0x352   :  { %v2211_v6 = vpop.f32.mrb[128].mxu0 }
 0x353   :  { %v4455_v15 = vadd.f32 %v6134_v41, %v2211_v6  ;;  %v2213_v17 = vpop.f32.mrb[129].mxu0  ;;  %4226 = vmatmul.mubr.bf16.gmra.mrb[172].mxu1 %v2473_v1  ;;  %v4725_v6 = vld [vmem:[#allocation8 + $0x18] sm:$0xff]  }
 0x354   :  { %v2214_v48 = vpop.f32.mrb[130].mxu0  ;;  %4283 = vmatprep.subr.bf16.mxu1 %v4725_v6 }
 0x355   :  { %v4456_v49 = vadd.f32 %v6134_v41, %v2214_v48  ;;  %v2216_v43 = vpop.f32.mrb[131].mxu0  ;;  %v2418_v52 = vmax.f32 %v4455_v15, 0.0  ;;  %4284 = vmatpush3.bf16.msra.mxu1 %v4725_v6 }
 0x357   :  { %v2419_v39 = vmax.f32 %v4456_v49, 0.0  ;;  %v4726_v49 = vld [vmem:[#allocation8 + $0x20] sm:$0xff]  }
 0x358   :  { %4285 = vmatprep.subr.bf16.mxu1 %v4726_v49 }
 0x359   :  { %v2474_v19 = vpack.c.bf16 %v2419_v39, %v2418_v52  ;;  %4286 = vmatpush3.bf16.msra.mxu1 %v4726_v49 }
 0x35a   :  { %v2219_v28 = vpop.f32.mrb[132].mxu0 }
 0x35b   :  { %v4457_v40 = vadd.f32 %v6134_v41, %v2219_v28  ;;  %v2221_v16 = vpop.f32.mrb[133].mxu0  ;;  %4229 = vmatprep.mubr.bf16.mxu1 %v2474_v19 }
 0x35c   :  { %v2222_v31 = vpop.f32.mrb[134].mxu0  ;;  %v4727_v16 = vld [vmem:[#allocation8 + $0x28] sm:$0xff]  }
 0x35d   :  { %v4458_v46 = vadd.f32 %v6134_v41, %v2222_v31  ;;  %v2224_v9 = vpop.f32.mrb[135].mxu0  ;;  %v2420_v0 = vmax.f32 %v4457_v40, 0.0  ;;  %4287 = vmatprep.subr.bf16.mxu1 %v4727_v16 }
 0x35e   :  { %4288 = vmatpush3.bf16.msra.mxu1 %v4727_v16 }
 0x35f   :  { %v2421_v20 = vmax.f32 %v4458_v46, 0.0 }
 0x361   :  { %v2475_v10 = vpack.c.bf16 %v2421_v20, %v2420_v0  ;;  %v4728_v0 = vld [vmem:[#allocation8 + $0x30] sm:$0xff]  }
 0x362   :  { %v2227_v27 = vpop.f32.mrb[136].mxu0  ;;  %4289 = vmatprep.subr.bf16.mxu1 %v4728_v0 }
 0x363   :  { %v4459_v21 = vadd.f32 %v6134_v41, %v2227_v27  ;;  %v2229_v23 = vpop.f32.mrb[137].mxu0  ;;  %4230 = vmatmul.mubr.bf16.gmra.mrb[176].mxu1 %v2475_v10 }
 0x364   :  { %v2230_v54 = vpop.f32.mrb[138].mxu0  ;;  %4290 = vmatpush3.bf16.msra.mxu1 %v4728_v0 }
 0x365   :  { %v4460_v60 = vadd.f32 %v6134_v41, %v2230_v54  ;;  %v2232_v18 = vpop.f32.mrb[139].mxu0  ;;  %v2422_v4 = vmax.f32 %v4459_v21, 0.0 }
 0x367   :  { %v2423_v55 = vmax.f32 %v4460_v60, 0.0  ;;  %v4729_v60 = vld [vmem:[#allocation8 + $0x38] sm:$0xff]  }
 0x368   :  { %4291 = vmatprep.subr.bf16.mxu1 %v4729_v60 }
 0x369   :  { %v2476_v7 = vpack.c.bf16 %v2423_v55, %v2422_v4  ;;  %4292 = vmatpush3.bf16.msra.mxu1 %v4729_v60 }
 0x36a   :  { %v2235_v57 = vpop.f32.mrb[140].mxu0 }
 0x36b   :  { %v4461_v5 = vadd.f32 %v6134_v41, %v2235_v57  ;;  %v2237_v29 = vpop.f32.mrb[141].mxu0  ;;  %4233 = vmatprep.mubr.bf16.mxu1 %v2476_v7 }
 0x36c   :  { %v2238_v22 = vpop.f32.mrb[142].mxu0 }
 0x36d   :  { %v4462_v47 = vadd.f32 %v6134_v41, %v2238_v22  ;;  %v2240_v13 = vpop.f32.mrb[143].mxu0  ;;  %v2424_v14 = vmax.f32 %v4461_v5, 0.0 }
 0x36f   :  { %v2425_v12 = vmax.f32 %v4462_v47, 0.0 }
 0x371   :  { %v2477_v35 = vpack.c.bf16 %v2425_v12, %v2424_v14 }
 0x372   :  { %v2243_v53 = vpop.f32.mrb[144].mxu0 }
 0x373   :  { %v4463_v63 = vadd.f32 %v6134_v41, %v2243_v53  ;;  %v2245_v37 = vpop.f32.mrb[145].mxu0  ;;  %4234 = vmatmul.mubr.bf16.gmra.mrb[180].mxu1 %v2477_v35 }
 0x374   :  { %v2246_v24 = vpop.f32.mrb[146].mxu0 }
 0x375   :  { %v4464_v44 = vadd.f32 %v6134_v41, %v2246_v24  ;;  %v2248_v3 = vpop.f32.mrb[147].mxu0  ;;  %v2426_v50 = vmax.f32 %v4463_v63, 0.0 }
 0x377   :  { %v2427_v8 = vmax.f32 %v4464_v44, 0.0 }
 0x379   :  { %v2478_v25 = vpack.c.bf16 %v2427_v8, %v2426_v50 }
 0x37a   :  { %v2251_v33 = vpop.f32.mrb[148].mxu0 }
 0x37b   :  { %v4465_v36 = vadd.f32 %v6134_v41, %v2251_v33  ;;  %v2253_v34 = vpop.f32.mrb[149].mxu0  ;;  %4237 = vmatprep.mubr.bf16.mxu1 %v2478_v25 }
 0x37c   :  { %v2254_v32 = vpop.f32.mrb[150].mxu0 }
 0x37d   :  { %v4466_v56 = vadd.f32 %v6134_v41, %v2254_v32  ;;  %v2256_v59 = vpop.f32.mrb[151].mxu0  ;;  %v2428_v38 = vmax.f32 %v4465_v36, 0.0 }
 0x37f   :  { %v2429_v62 = vmax.f32 %v4466_v56, 0.0 }
 0x381   :  { %v2479_v58 = vpack.c.bf16 %v2429_v62, %v2428_v38 }
 0x382   :  { %v2259_v2 = vpop.f32.mrb[152].mxu0 }
 0x383   :  { %v4467_v42 = vadd.f32 %v6134_v41, %v2259_v2  ;;  %v2261_v61 = vpop.f32.mrb[153].mxu0  ;;  %4238 = vmatmul.mubr.bf16.gmra.mrb[184].mxu1 %v2479_v58 }
 0x384   :  { %v2262_v26 = vpop.f32.mrb[154].mxu0 }
 0x385   :  { %v4468_v51 = vadd.f32 %v6134_v41, %v2262_v26  ;;  %v2264_v1 = vpop.f32.mrb[155].mxu0  ;;  %v2430_v15 = vmax.f32 %v4467_v42, 0.0 }
 0x387   :  { %v2431_v17 = vmax.f32 %v4468_v51, 0.0 }
 0x389   :  { %v2480_v48 = vpack.c.bf16 %v2431_v17, %v2430_v15 }
 0x38a   :  { %v2267_v43 = vpop.f32.mrb[156].mxu0 }
 0x38b   :  { %v4469_v52 = vadd.f32 %v6134_v41, %v2267_v43  ;;  %v2269_v39 = vpop.f32.mrb[157].mxu0  ;;  %4241 = vmatprep.mubr.bf16.mxu1 %v2480_v48 }
 0x38c   :  { %v2270_v19 = vpop.f32.mrb[158].mxu0 }
 0x38d   :  { %v4470_v28 = vadd.f32 %v6134_v41, %v2270_v19  ;;  %v2272_v40 = vpop.f32.mrb[159].mxu0  ;;  %v2432_v31 = vmax.f32 %v4469_v52, 0.0 }
 0x38f   :  { %v2433_v46 = vmax.f32 %v4470_v28, 0.0 }
 0x391   :  { %v2481_v9 = vpack.c.bf16 %v2433_v46, %v2432_v31 }
 0x392   :  { %v2275_v20 = vpop.f32.mrb[160].mxu0 }
 0x393   :  { %v4471_v10 = vadd.f32 %v6134_v41, %v2275_v20  ;;  %v2277_v27 = vpop.f32.mrb[161].mxu0  ;;  %4242 = vmatmul.mubr.bf16.gmra.mrb[188].mxu1 %v2481_v9 }
 0x394   :  { %v2278_v21 = vpop.f32.mrb[162].mxu0 }
 0x395   :  { %v4472_v23 = vadd.f32 %v6134_v41, %v2278_v21  ;;  %v2280_v54 = vpop.f32.mrb[163].mxu0  ;;  %v2434_v18 = vmax.f32 %v4471_v10, 0.0 }
 0x397   :  { %v2435_v4 = vmax.f32 %v4472_v23, 0.0 }
 0x399   :  { %v2482_v55 = vpack.c.bf16 %v2435_v4, %v2434_v18 }
 0x39a   :  { %v2283_v7 = vpop.f32.mrb[164].mxu0 }
 0x39b   :  { %v4473_v57 = vadd.f32 %v6134_v41, %v2283_v7  ;;  %v2285_v5 = vpop.f32.mrb[165].mxu0  ;;  %4245 = vmatprep.mubr.bf16.mxu1 %v2482_v55 }
 0x39c   :  { %v2286_v29 = vpop.f32.mrb[166].mxu0 }
 0x39d   :  { %v4474_v22 = vadd.f32 %v6134_v41, %v2286_v29  ;;  %v2288_v47 = vpop.f32.mrb[167].mxu0  ;;  %v2436_v13 = vmax.f32 %v4473_v57, 0.0 }
 0x39f   :  { %v2437_v14 = vmax.f32 %v4474_v22, 0.0 }
 0x3a1   :  { %v2483_v12 = vpack.c.bf16 %v2437_v14, %v2436_v13 }
 0x3a2   :  { %v2291_v35 = vpop.f32.mrb[168].mxu0 }
 0x3a3   :  { %v4475_v53 = vadd.f32 %v6134_v41, %v2291_v35  ;;  %v2293_v63 = vpop.f32.mrb[169].mxu0  ;;  %4246 = vmatmul.mubr.bf16.gmra.mrb[192].mxu1 %v2483_v12 }
 0x3a4   :  { %v2294_v37 = vpop.f32.mrb[170].mxu0 }
 0x3a5   :  { %v4476_v24 = vadd.f32 %v6134_v41, %v2294_v37  ;;  %v2296_v44 = vpop.f32.mrb[171].mxu0  ;;  %v2438_v3 = vmax.f32 %v4475_v53, 0.0 }
 0x3a7   :  { %v2439_v50 = vmax.f32 %v4476_v24, 0.0 }
 0x3a9   :  { %v2484_v8 = vpack.c.bf16 %v2439_v50, %v2438_v3 }
 0x3aa   :  { %v2299_v25 = vpop.f32.mrb[172].mxu0 }
 0x3ab   :  { %v4477_v11 = vadd.f32 %v6134_v41, %v2299_v25  ;;  %v2301_v33 = vpop.f32.mrb[173].mxu0  ;;  %4249 = vmatprep.mubr.bf16.mxu1 %v2484_v8 }
 0x3ac   :  { %v2302_v36 = vpop.f32.mrb[174].mxu0 }
 0x3ad   :  { %v4478_v34 = vadd.f32 %v6134_v41, %v2302_v36  ;;  %v2304_v32 = vpop.f32.mrb[175].mxu0  ;;  %v2440_v56 = vmax.f32 %v4477_v11, 0.0 }
 0x3af   :  { %v2441_v59 = vmax.f32 %v4478_v34, 0.0 }
 0x3b1   :  { %v2485_v45 = vpack.c.bf16 %v2441_v59, %v2440_v56 }
 0x3b2   :  { %v2307_v38 = vpop.f32.mrb[176].mxu0 }
 0x3b3   :  { %v4479_v62 = vadd.f32 %v6134_v41, %v2307_v38  ;;  %v2309_v58 = vpop.f32.mrb[177].mxu0  ;;  %4250 = vmatmul.mubr.bf16.gmra.mrb[196].mxu1 %v2485_v45 }
 0x3b4   :  { %v2310_v30 = vpop.f32.mrb[178].mxu0 }
 0x3b5   :  { %v4480_v2 = vadd.f32 %v6134_v41, %v2310_v30  ;;  %v2312_v42 = vpop.f32.mrb[179].mxu0  ;;  %v2442_v61 = vmax.f32 %v4479_v62, 0.0 }
 0x3b7   :  { %v2443_v26 = vmax.f32 %v4480_v2, 0.0 }
 0x3b9   :  { %v2486_v51 = vpack.c.bf16 %v2443_v26, %v2442_v61 }
 0x3ba   :  { %v2315_v1 = vpop.f32.mrb[180].mxu0 }
 0x3bb   :  { %v4481_v6 = vadd.f32 %v6134_v41, %v2315_v1  ;;  %v2317_v15 = vpop.f32.mrb[181].mxu0  ;;  %4253 = vmatprep.mubr.bf16.mxu1 %v2486_v51 }
 0x3bc   :  { %v2318_v17 = vpop.f32.mrb[182].mxu0 }
 0x3bd   :  { %v4482_v48 = vadd.f32 %v6134_v41, %v2318_v17  ;;  %v2320_v49 = vpop.f32.mrb[183].mxu0  ;;  %v2444_v43 = vmax.f32 %v4481_v6, 0.0 }
 0x3bf   :  { %v2445_v52 = vmax.f32 %v4482_v48, 0.0  ;;  %v6206_v48 = vld [vmem:[%s6456_s6] ss:$0 sm:$0xff] }
 0x3c1   :  { %v2487_v39 = vpack.c.bf16 %v2445_v52, %v2444_v43 }
 0x3c2   :  { %v2323_v19 = vpop.f32.mrb[184].mxu0 }
 0x3c3   :  { %v4483_v28 = vadd.f32 %v6134_v41, %v2323_v19  ;;  %v2325_v40 = vpop.f32.mrb[185].mxu0  ;;  %4254 = vmatmul.mubr.bf16.gmra.mrb[200].mxu1 %v2487_v39 }
 0x3c4   :  { %v2326_v16 = vpop.f32.mrb[186].mxu0 }
 0x3c5   :  { %v4484_v31 = vadd.f32 %v6134_v41, %v2326_v16  ;;  %v2328_v46 = vpop.f32.mrb[187].mxu0  ;;  %v2446_v9 = vmax.f32 %v4483_v28, 0.0 }
 0x3c7   :  { %v2447_v0 = vmax.f32 %v4484_v31, 0.0 }
 0x3c9   :  { %v2488_v20 = vpack.c.bf16 %v2447_v0, %v2446_v9 }
 0x3ca   :  { %v2331_v10 = vpop.f32.mrb[188].mxu0 }
 0x3cb   :  { %v4485_v27 = vadd.f32 %v6134_v41, %v2331_v10  ;;  %v2333_v21 = vpop.f32.mrb[189].mxu0  ;;  %4257 = vmatprep.mubr.bf16.mxu1 %v2488_v20 }
 0x3cc   :  { %v2334_v23 = vpop.f32.mrb[190].mxu0 }
 0x3cd   :  { %v4486_v54 = vadd.f32 %v6134_v41, %v2334_v23  ;;  %v2336_v60 = vpop.f32.mrb[191].mxu0  ;;  %v2448_v18 = vmax.f32 %v4485_v27, 0.0 }
 0x3cf   :  { %v2449_v4 = vmax.f32 %v4486_v54, 0.0 }
 0x3d1   :  { %v2489_v55 = vpack.c.bf16 %v2449_v4, %v2448_v18 }
 0x3d2   :  { %v2339_v7 = vpop.f32.mrb[192].mxu0 }
 0x3d3   :  { %v4487_v57 = vadd.f32 %v6134_v41, %v2339_v7  ;;  %v2341_v5 = vpop.f32.mrb[193].mxu0  ;;  %4258 = vmatmul.mubr.bf16.gmra.mrb[204].mxu1 %v2489_v55 }
 0x3d4   :  { %v2342_v29 = vpop.f32.mrb[194].mxu0 }
 0x3d5   :  { %v4488_v22 = vadd.f32 %v6134_v41, %v2342_v29  ;;  %v2344_v47 = vpop.f32.mrb[195].mxu0  ;;  %v2450_v13 = vmax.f32 %v4487_v57, 0.0 }
 0x3d7   :  { %v2451_v14 = vmax.f32 %v4488_v22, 0.0 }
 0x3d9   :  { %v2490_v12 = vpack.c.bf16 %v2451_v14, %v2450_v13 }
 0x3da   :  { %v2347_v35 = vpop.f32.mrb[196].mxu0 }
 0x3db   :  { %v4489_v53 = vadd.f32 %v6134_v41, %v2347_v35  ;;  %v2349_v63 = vpop.f32.mrb[197].mxu0  ;;  %4261 = vmatprep.mubr.bf16.mxu1 %v2490_v12 }
 0x3dc   :  { %v2350_v37 = vpop.f32.mrb[198].mxu0 }
 0x3dd   :  { %v4490_v24 = vadd.f32 %v6134_v41, %v2350_v37  ;;  %v2352_v44 = vpop.f32.mrb[199].mxu0  ;;  %v2452_v3 = vmax.f32 %v4489_v53, 0.0 }
 0x3df   :  { %v2453_v50 = vmax.f32 %v4490_v24, 0.0 }
 0x3e1   :  { %v2491_v8 = vpack.c.bf16 %v2453_v50, %v2452_v3 }
 0x3e2   :  { %v2355_v25 = vpop.f32.mrb[200].mxu0 }
 0x3e3   :  { %v4491_v11 = vadd.f32 %v6134_v41, %v2355_v25  ;;  %v2357_v33 = vpop.f32.mrb[201].mxu0  ;;  %4262 = vmatmul.mubr.bf16.gmra.mrb[208].mxu1 %v2491_v8 }
 0x3e4   :  { %v2358_v36 = vpop.f32.mrb[202].mxu0 }
 0x3e5   :  { %v4492_v34 = vadd.f32 %v6134_v41, %v2358_v36  ;;  %v2360_v32 = vpop.f32.mrb[203].mxu0  ;;  %v2454_v56 = vmax.f32 %v4491_v11, 0.0 }
 0x3e7   :  { %v2455_v59 = vmax.f32 %v4492_v34, 0.0 }
 0x3e9   :  { %v2492_v45 = vpack.c.bf16 %v2455_v59, %v2454_v56 }
 0x3ea   :  { %v2363_v38 = vpop.f32.mrb[204].mxu0 }
 0x3eb   :  { %v4493_v62 = vadd.f32 %v6134_v41, %v2363_v38  ;;  %v2365_v58 = vpop.f32.mrb[205].mxu0  ;;  %4265 = vmatprep.mubr.bf16.mxu1 %v2492_v45 }
 0x3ec   :  { %v2366_v30 = vpop.f32.mrb[206].mxu0 }
 0x3ed   :  { %v4494_v2 = vadd.f32 %v6134_v41, %v2366_v30  ;;  %v2368_v42 = vpop.f32.mrb[207].mxu0  ;;  %v2456_v61 = vmax.f32 %v4493_v62, 0.0 }
 0x3ef   :  { %v2457_v26 = vmax.f32 %v4494_v2, 0.0 }
 0x3f1   :  { %v2493_v51 = vpack.c.bf16 %v2457_v26, %v2456_v61 }
 0x3f2   :  { %v2371_v1 = vpop.f32.mrb[208].mxu0 }
 0x3f3   :  { %v4495_v6 = vadd.f32 %v6134_v41, %v2371_v1  ;;  %v2373_v15 = vpop.f32.mrb[209].mxu0  ;;  %4266 = vmatmul.mubr.bf16.gmra.mrb[212].mxu1 %v2493_v51 }
 0x3f4   :  { %v2374_v17 = vpop.f32.mrb[210].mxu0 }
 0x3f5   :  { %v4496_v49 = vadd.f32 %v6134_v41, %v2374_v17  ;;  %v2376_v43 = vpop.f32.mrb[211].mxu0  ;;  %v2458_v39 = vmax.f32 %v4495_v6, 0.0 }
 0x3f6   :  { %v4215_v52 = vpop.f32.mrb[160].mxu1 }
 0x3f7   :  { %v2459_v19 = vmax.f32 %v4496_v49, 0.0  ;;  %v2612_v28 = vadd.f32 %v4215_v52, %v6206_v48  ;;  %v2603_v40 = vpop.f32.mrb[161].mxu1 }
 0x3f8   :  { %v2604_v16 = vadd.f32 %v6206_v48, %v2603_v40  ;;  %v4216_v31 = vpop.f32.mrb[162].mxu1 }
 0x3f9   :  { %v2494_v46 = vpack.c.bf16 %v2459_v19, %v2458_v39  ;;  %v2615_v9 = vadd.f32 %v4216_v31, %v6206_v48  ;;  %v2606_v0 = vpop.f32.mrb[163].mxu1  ;;  %v2860_v27 = vmax.f32 %v2612_v28, 0.0 }
 0x3fa   :  { %v2607_v20 = vadd.f32 %v6206_v48, %v2606_v0  ;;  %v2379_v10 = vpop.f32.mrb[212].mxu0  ;;  %v2858_v60 = vmax.f32 %v2604_v16, 0.0 }
 0x3fb   :  { %v2861_v21 = vmax.f32 %v2615_v9, 0.0  ;;  %v4497_v23 = vadd.f32 %v6134_v41, %v2379_v10  ;;  %v2381_v54 = vpop.f32.mrb[213].mxu0  ;;  %4269 = vmatprep.mubr.bf16.mxu1 %v2494_v46 }
 0x3fc   :  { %v2859_v18 = vmax.f32 %v2607_v20, 0.0  ;;  %v2382_v4 = vpop.f32.mrb[214].mxu0 }
 0x3fd   :  { %v2923_v55 = vpack.c.bf16 %v2861_v21, %v2860_v27  ;;  %v4498_v7 = vadd.f32 %v6134_v41, %v2382_v4  ;;  %v2384_v57 = vpop.f32.mrb[215].mxu0  ;;  %v2460_v29 = vmax.f32 %v4497_v23, 0.0 }
 0x3fe   :  { %v2922_v5 = vpack.c.bf16 %v2859_v18, %v2858_v60 }
 0x3ff   :  { %v2461_v22 = vmax.f32 %v4498_v7, 0.0 }
 0x401   :  { %v2495_v47 = vpack.c.bf16 %v2461_v22, %v2460_v29 }
 0x402   :  { %v2387_v13 = vpop.f32.mrb[216].mxu0 }
 0x403   :  { %v4499_v14 = vadd.f32 %v6134_v41, %v2387_v13  ;;  %v2389_v12 = vpop.f32.mrb[217].mxu0  ;;  %4270 = vmatmul.mubr.bf16.gmra.mrb[216].mxu1 %v2495_v47 }
 0x404   :  { %v2390_v35 = vpop.f32.mrb[218].mxu0 }
 0x405   :  { %v4500_v53 = vadd.f32 %v6134_v41, %v2390_v35  ;;  %v2392_v63 = vpop.f32.mrb[219].mxu0  ;;  %v2462_v24 = vmax.f32 %v4499_v14, 0.0 }
 0x406   :  { %v4219_v37 = vpop.f32.mrb[164].mxu1 }
 0x407   :  { %v2463_v44 = vmax.f32 %v4500_v53, 0.0  ;;  %v2628_v3 = vadd.f32 %v4219_v37, %v6206_v48  ;;  %v2619_v50 = vpop.f32.mrb[165].mxu1 }
 0x408   :  { %v2620_v8 = vadd.f32 %v6206_v48, %v2619_v50  ;;  %v4220_v25 = vpop.f32.mrb[166].mxu1 }
 0x409   :  { %v2496_v11 = vpack.c.bf16 %v2463_v44, %v2462_v24  ;;  %v2631_v33 = vadd.f32 %v4220_v25, %v6206_v48  ;;  %v2622_v36 = vpop.f32.mrb[167].mxu1  ;;  %v2864_v56 = vmax.f32 %v2628_v3, 0.0 }
 0x40a   :  { %v2623_v34 = vadd.f32 %v6206_v48, %v2622_v36  ;;  %v2395_v32 = vpop.f32.mrb[220].mxu0  ;;  %v2862_v62 = vmax.f32 %v2620_v8, 0.0 }
 0x40b   :  { %v2865_v59 = vmax.f32 %v2631_v33, 0.0  ;;  %v4501_v45 = vadd.f32 %v6134_v41, %v2395_v32  ;;  %v2397_v38 = vpop.f32.mrb[221].mxu0  ;;  %4273 = vmatprep.mubr.bf16.mxu1 %v2496_v11 }
 0x40c   :  { %v2863_v58 = vmax.f32 %v2623_v34, 0.0  ;;  %v2398_v30 = vpop.f32.mrb[222].mxu0 }
 0x40d   :  { %v2925_v2 = vpack.c.bf16 %v2865_v59, %v2864_v56  ;;  %v4502_v42 = vadd.f32 %v6134_v41, %v2398_v30  ;;  %v2400_v61 = vpop.f32.mrb[223].mxu0  ;;  %v2464_v51 = vmax.f32 %v4501_v45, 0.0 }
 0x40e   :  { %v2924_v26 = vpack.c.bf16 %v2863_v58, %v2862_v62 }
 0x40f   :  { %v2465_v1 = vmax.f32 %v4502_v42, 0.0 }
 0x411   :  { %v2497_v6 = vpack.c.bf16 %v2465_v1, %v2464_v51 }
 0x413   :  { %4274 = vmatmul.mubr.bf16.gmra.mrb[220].mxu1 %v2497_v6 }
 0x414   :  { %4293 = vmatprep.mubr.bf16.mxu1 %v2922_v5 }
 0x416   :  { %v4223_v15 = vpop.f32.mrb[168].mxu1 }
 0x417   :  { %v2644_v17 = vadd.f32 %v4223_v15, %v6206_v48  ;;  %v2635_v49 = vpop.f32.mrb[169].mxu1 }
 0x418   :  { %v2636_v43 = vadd.f32 %v6206_v48, %v2635_v49  ;;  %v4224_v52 = vpop.f32.mrb[170].mxu1 }
 0x419   :  { %v2647_v39 = vadd.f32 %v4224_v52, %v6206_v48  ;;  %v2638_v19 = vpop.f32.mrb[171].mxu1  ;;  %v2868_v41 = vmax.f32 %v2644_v17, 0.0  ;;  %v4731_v52 = vld [vmem:[%s6459_s9 + $0x8] sm:$0xff]  }
 0x41a   :  { %v2639_v28 = vadd.f32 %v6206_v48, %v2638_v19  ;;  %v2866_v16 = vmax.f32 %v2636_v43, 0.0 }
 0x41b   :  { %v2869_v40 = vmax.f32 %v2647_v39, 0.0  ;;  %4294 = vmatmul.mubr.bf16.vlgmr.msra.gmra.mrb[224].mxu1 %v2923_v55 }
 0x41c   :  { %v2867_v31 = vmax.f32 %v2639_v28, 0.0  ;;  %4297 = vmatprep.mubr.bf16.mxu1 %v2924_v26  ;;  %v4730_v26 = vld [vmem:[%s6459_s9] sm:$0xff]  }
 0x41d   :  { %v2927_v46 = vpack.c.bf16 %v2869_v40, %v2868_v41  ;;  %4357 = vmatprep.subr.bf16.mxu1 %v4730_v26  ;;  %v4732_v40 = vld [vmem:[%s6459_s9 + $0x10] sm:$0xff]  }
 0x41e   :  { %v2926_v9 = vpack.c.bf16 %v2867_v31, %v2866_v16  ;;  %4358 = vmatpush3.bf16.msra.mxu1 %v4730_v26  ;;  %v4733_v16 = vld [vmem:[%s6459_s9 + $0x18] sm:$0xff]  }
 0x41f   :  { %4359 = vmatprep.subr.bf16.mxu1 %v4731_v52 }
 0x422   :  { %4360 = vmatpush3.bf16.msra.mxu1 %v4731_v52 }
 0x423   :  { %4298 = vmatmul.mubr.bf16.gmra.mrb[228].mxu1 %v2925_v2  ;;  %4361 = vmatprep.subr.bf16.mxu1 %v4732_v40 }
 0x424   :  { %4301 = vmatprep.mubr.bf16.mxu1 %v2926_v9 }
 0x426   :  { %v4227_v0 = vpop.f32.mrb[172].mxu1  ;;  %4362 = vmatpush3.bf16.msra.mxu1 %v4732_v40 }
 0x427   :  { %v2660_v20 = vadd.f32 %v4227_v0, %v6206_v48  ;;  %v2651_v10 = vpop.f32.mrb[173].mxu1  ;;  %4363 = vmatprep.subr.bf16.mxu1 %v4733_v16  ;;  %v4734_v0 = vld [vmem:[%s6459_s9 + $0x20] sm:$0xff]  }
 0x428   :  { %v2652_v27 = vadd.f32 %v6206_v48, %v2651_v10  ;;  %v4228_v21 = vpop.f32.mrb[174].mxu1 }
 0x429   :  { %v2663_v23 = vadd.f32 %v4228_v21, %v6206_v48  ;;  %v2654_v54 = vpop.f32.mrb[175].mxu1  ;;  %v2872_v18 = vmax.f32 %v2660_v20, 0.0 }
 0x42a   :  { %v2655_v60 = vadd.f32 %v6206_v48, %v2654_v54  ;;  %v2870_v55 = vmax.f32 %v2652_v27, 0.0  ;;  %4364 = vmatpush3.bf16.msra.mxu1 %v4733_v16 }
 0x42b   :  { %v2873_v4 = vmax.f32 %v2663_v23, 0.0  ;;  %4302 = vmatmul.mubr.bf16.gmra.mrb[232].mxu1 %v2927_v46  ;;  %4365 = vmatprep.subr.bf16.mxu1 %v4734_v0 }
 0x42c   :  { %v2871_v7 = vmax.f32 %v2655_v60, 0.0 }
 0x42d   :  { %v2929_v57 = vpack.c.bf16 %v2873_v4, %v2872_v18  ;;  %v4735_v18 = vld [vmem:[%s6459_s9 + $0x28] sm:$0xff]  }
 0x42e   :  { %v2928_v5 = vpack.c.bf16 %v2871_v7, %v2870_v55  ;;  %4366 = vmatpush3.bf16.msra.mxu1 %v4734_v0 }
 0x42f   :  { %4367 = vmatprep.subr.bf16.mxu1 %v4735_v18 }
 0x430   :  { %4305 = vmatprep.mubr.bf16.mxu1 %v2928_v5  ;;  %v4736_v5 = vld [vmem:[%s6459_s9 + $0x30] sm:$0xff]  }
 0x432   :  { %4368 = vmatpush3.bf16.msra.mxu1 %v4735_v18 }
 0x433   :  { %4306 = vmatmul.mubr.bf16.gmra.mrb[236].mxu1 %v2929_v57  ;;  %4369 = vmatprep.subr.bf16.mxu1 %v4736_v5 }
 0x436   :  { %v4231_v29 = vpop.f32.mrb[176].mxu1  ;;  %4370 = vmatpush3.bf16.msra.mxu1 %v4736_v5 }
 0x437   :  { %v2676_v22 = vadd.f32 %v4231_v29, %v6206_v48  ;;  %v2667_v47 = vpop.f32.mrb[177].mxu1  ;;  %v4737_v29 = vld [vmem:[%s6459_s9 + $0x38] sm:$0xff]  }
 0x438   :  { %v2668_v13 = vadd.f32 %v6206_v48, %v2667_v47  ;;  %v4232_v14 = vpop.f32.mrb[178].mxu1  ;;  %4371 = vmatprep.subr.bf16.mxu1 %v4737_v29 }
 0x439   :  { %v2679_v12 = vadd.f32 %v4232_v14, %v6206_v48  ;;  %v2670_v35 = vpop.f32.mrb[179].mxu1  ;;  %v2876_v63 = vmax.f32 %v2676_v22, 0.0 }
 0x43a   :  { %v2671_v53 = vadd.f32 %v6206_v48, %v2670_v35  ;;  %v2874_v24 = vmax.f32 %v2668_v13, 0.0  ;;  %4372 = vmatpush3.bf16.msra.mxu1 %v4737_v29 }
 0x43b   :  { %v2877_v37 = vmax.f32 %v2679_v12, 0.0 }
 0x43c   :  { %v2875_v44 = vmax.f32 %v2671_v53, 0.0 }
 0x43d   :  { %v2931_v3 = vpack.c.bf16 %v2877_v37, %v2876_v63 }
 0x43e   :  { %v2930_v50 = vpack.c.bf16 %v2875_v44, %v2874_v24 }
 0x440   :  { %4309 = vmatprep.mubr.bf16.mxu1 %v2930_v50 }
 0x441   :  { %4310 = vmatmul.mubr.bf16.gmra.mrb[240].mxu1 %v2931_v3 }
 0x446   :  { %v4235_v8 = vpop.f32.mrb[180].mxu1 }
 0x447   :  { %v2692_v25 = vadd.f32 %v4235_v8, %v6206_v48  ;;  %v2683_v11 = vpop.f32.mrb[181].mxu1 }
 0x448   :  { %v2684_v33 = vadd.f32 %v6206_v48, %v2683_v11  ;;  %v4236_v36 = vpop.f32.mrb[182].mxu1 }
 0x449   :  { %v2695_v34 = vadd.f32 %v4236_v36, %v6206_v48  ;;  %v2686_v32 = vpop.f32.mrb[183].mxu1  ;;  %v2880_v59 = vmax.f32 %v2692_v25, 0.0 }
 0x44a   :  { %v2687_v56 = vadd.f32 %v6206_v48, %v2686_v32  ;;  %v2878_v38 = vmax.f32 %v2684_v33, 0.0 }
 0x44b   :  { %v2881_v45 = vmax.f32 %v2695_v34, 0.0 }
 0x44c   :  { %v2879_v62 = vmax.f32 %v2687_v56, 0.0 }
 0x44d   :  { %v2933_v58 = vpack.c.bf16 %v2881_v45, %v2880_v59 }
 0x44e   :  { %v2932_v30 = vpack.c.bf16 %v2879_v62, %v2878_v38 }
 0x450   :  { %4313 = vmatprep.mubr.bf16.mxu1 %v2932_v30 }
 0x451   :  { %4314 = vmatmul.mubr.bf16.gmra.mrb[244].mxu1 %v2933_v58 }
 0x456   :  { %v4239_v2 = vpop.f32.mrb[184].mxu1 }
 0x457   :  { %v2708_v42 = vadd.f32 %v4239_v2, %v6206_v48  ;;  %v2699_v61 = vpop.f32.mrb[185].mxu1 }
 0x458   :  { %v2700_v51 = vadd.f32 %v6206_v48, %v2699_v61  ;;  %v4240_v1 = vpop.f32.mrb[186].mxu1 }
 0x459   :  { %v2711_v6 = vadd.f32 %v4240_v1, %v6206_v48  ;;  %v2702_v15 = vpop.f32.mrb[187].mxu1  ;;  %v2884_v49 = vmax.f32 %v2708_v42, 0.0 }
 0x45a   :  { %v2703_v17 = vadd.f32 %v6206_v48, %v2702_v15  ;;  %v2882_v39 = vmax.f32 %v2700_v51, 0.0 }
 0x45b   :  { %v2885_v43 = vmax.f32 %v2711_v6, 0.0 }
 0x45c   :  { %v2883_v19 = vmax.f32 %v2703_v17, 0.0 }
 0x45d   :  { %v2935_v28 = vpack.c.bf16 %v2885_v43, %v2884_v49 }
 0x45e   :  { %v2934_v41 = vpack.c.bf16 %v2883_v19, %v2882_v39 }
 0x460   :  { %4317 = vmatprep.mubr.bf16.mxu1 %v2934_v41 }
 0x461   :  { %4318 = vmatmul.mubr.bf16.gmra.mrb[248].mxu1 %v2935_v28 }
 0x466   :  { %v4243_v31 = vpop.f32.mrb[188].mxu1 }
 0x467   :  { %v2724_v46 = vadd.f32 %v4243_v31, %v6206_v48  ;;  %v2715_v9 = vpop.f32.mrb[189].mxu1 }
 0x468   :  { %v2716_v20 = vadd.f32 %v6206_v48, %v2715_v9  ;;  %v4244_v10 = vpop.f32.mrb[190].mxu1 }
 0x469   :  { %v2727_v27 = vadd.f32 %v4244_v10, %v6206_v48  ;;  %v2718_v21 = vpop.f32.mrb[191].mxu1  ;;  %v2888_v54 = vmax.f32 %v2724_v46, 0.0 }
 0x46a   :  { %v2719_v23 = vadd.f32 %v6206_v48, %v2718_v21  ;;  %v2886_v4 = vmax.f32 %v2716_v20, 0.0 }
 0x46b   :  { %v2889_v60 = vmax.f32 %v2727_v27, 0.0 }
 0x46c   :  { %v2887_v55 = vmax.f32 %v2719_v23, 0.0 }
 0x46d   :  { %v2937_v7 = vpack.c.bf16 %v2889_v60, %v2888_v54 }
 0x46e   :  { %v2936_v57 = vpack.c.bf16 %v2887_v55, %v2886_v4 }
 0x470   :  { %4321 = vmatprep.mubr.bf16.mxu1 %v2936_v57 }
 0x471   :  { %4322 = vmatmul.mubr.bf16.gmra.mrb[252].mxu1 %v2937_v7 }
 0x476   :  { %v4247_v22 = vpop.f32.mrb[192].mxu1 }
 0x477   :  { %v2740_v47 = vadd.f32 %v4247_v22, %v6206_v48  ;;  %v2731_v13 = vpop.f32.mrb[193].mxu1 }
 0x478   :  { %v2732_v14 = vadd.f32 %v6206_v48, %v2731_v13  ;;  %v4248_v12 = vpop.f32.mrb[194].mxu1 }
 0x479   :  { %v2743_v35 = vadd.f32 %v4248_v12, %v6206_v48  ;;  %v2734_v53 = vpop.f32.mrb[195].mxu1  ;;  %v2892_v37 = vmax.f32 %v2740_v47, 0.0 }
 0x47a   :  { %v2735_v63 = vadd.f32 %v6206_v48, %v2734_v53  ;;  %v2890_v44 = vmax.f32 %v2732_v14, 0.0 }
 0x47b   :  { %v2893_v24 = vmax.f32 %v2743_v35, 0.0 }
 0x47c   :  { %v2891_v3 = vmax.f32 %v2735_v63, 0.0 }
 0x47d   :  { %v2939_v50 = vpack.c.bf16 %v2893_v24, %v2892_v37 }
 0x47e   :  { %v2938_v8 = vpack.c.bf16 %v2891_v3, %v2890_v44 }
 0x480   :  { %4325 = vmatprep.mubr.bf16.mxu1 %v2938_v8 }
 0x481   :  { %4326 = vmatmul.mubr.bf16.gmra.mrb[0].mxu1 %v2939_v50 }
 0x486   :  { %v4251_v25 = vpop.f32.mrb[196].mxu1 }
 0x487   :  { %v2756_v11 = vadd.f32 %v4251_v25, %v6206_v48  ;;  %v2747_v33 = vpop.f32.mrb[197].mxu1 }
 0x488   :  { %v2748_v36 = vadd.f32 %v6206_v48, %v2747_v33  ;;  %v4252_v34 = vpop.f32.mrb[198].mxu1 }
 0x489   :  { %v2759_v32 = vadd.f32 %v4252_v34, %v6206_v48  ;;  %v2750_v56 = vpop.f32.mrb[199].mxu1  ;;  %v2896_v45 = vmax.f32 %v2756_v11, 0.0 }
 0x48a   :  { %v2751_v59 = vadd.f32 %v6206_v48, %v2750_v56  ;;  %v2894_v62 = vmax.f32 %v2748_v36, 0.0 }
 0x48b   :  { %v2897_v38 = vmax.f32 %v2759_v32, 0.0 }
 0x48c   :  { %v2895_v58 = vmax.f32 %v2751_v59, 0.0 }
 0x48d   :  { %v2941_v30 = vpack.c.bf16 %v2897_v38, %v2896_v45 }
 0x48e   :  { %v2940_v2 = vpack.c.bf16 %v2895_v58, %v2894_v62 }
 0x490   :  { %4329 = vmatprep.mubr.bf16.mxu1 %v2940_v2 }
 0x491   :  { %4330 = vmatmul.mubr.bf16.gmra.mrb[4].mxu1 %v2941_v30 }
 0x496   :  { %v4255_v42 = vpop.f32.mrb[200].mxu1 }
 0x497   :  { %v2772_v61 = vadd.f32 %v4255_v42, %v6206_v48  ;;  %v2763_v26 = vpop.f32.mrb[201].mxu1 }
 0x498   :  { %v2764_v51 = vadd.f32 %v6206_v48, %v2763_v26  ;;  %v4256_v1 = vpop.f32.mrb[202].mxu1 }
 0x499   :  { %v2775_v6 = vadd.f32 %v4256_v1, %v6206_v48  ;;  %v2766_v15 = vpop.f32.mrb[203].mxu1  ;;  %v2900_v49 = vmax.f32 %v2772_v61, 0.0 }
 0x49a   :  { %v2767_v17 = vadd.f32 %v6206_v48, %v2766_v15  ;;  %v2898_v52 = vmax.f32 %v2764_v51, 0.0 }
 0x49b   :  { %v2901_v43 = vmax.f32 %v2775_v6, 0.0 }
 0x49c   :  { %v2899_v39 = vmax.f32 %v2767_v17, 0.0 }
 0x49d   :  { %v2943_v19 = vpack.c.bf16 %v2901_v43, %v2900_v49 }
 0x49e   :  { %v2942_v28 = vpack.c.bf16 %v2899_v39, %v2898_v52 }
 0x4a0   :  { %4333 = vmatprep.mubr.bf16.mxu1 %v2942_v28 }
 0x4a1   :  { %4334 = vmatmul.mubr.bf16.gmra.mrb[8].mxu1 %v2943_v19 }
 0x4a6   :  { %v4259_v41 = vpop.f32.mrb[204].mxu1 }
 0x4a7   :  { %v2788_v40 = vadd.f32 %v4259_v41, %v6206_v48  ;;  %v2779_v16 = vpop.f32.mrb[205].mxu1 }
 0x4a8   :  { %v2780_v31 = vadd.f32 %v6206_v48, %v2779_v16  ;;  %v4260_v46 = vpop.f32.mrb[206].mxu1 }
 0x4a9   :  { %v2791_v9 = vadd.f32 %v4260_v46, %v6206_v48  ;;  %v2782_v0 = vpop.f32.mrb[207].mxu1  ;;  %v2904_v10 = vmax.f32 %v2788_v40, 0.0 }
 0x4aa   :  { %v2783_v20 = vadd.f32 %v6206_v48, %v2782_v0  ;;  %v2902_v21 = vmax.f32 %v2780_v31, 0.0 }
 0x4ab   :  { %v2905_v27 = vmax.f32 %v2791_v9, 0.0  ;;  %v6303_v9 = vld [vmem:[#allocation10] ss:$0 sm:$0xff] }
 0x4ac   :  { %v2903_v23 = vmax.f32 %v2783_v20, 0.0 }
 0x4ad   :  { %v2945_v54 = vpack.c.bf16 %v2905_v27, %v2904_v10 }
 0x4ae   :  { %v2944_v60 = vpack.c.bf16 %v2903_v23, %v2902_v21 }
 0x4b0   :  { %4337 = vmatprep.mubr.bf16.mxu1 %v2944_v60 }
 0x4b1   :  { %4338 = vmatmul.mubr.bf16.gmra.mrb[12].mxu1 %v2945_v54 }
 0x4b6   :  { %v4263_v18 = vpop.f32.mrb[208].mxu1 }
 0x4b7   :  { %v2804_v4 = vadd.f32 %v4263_v18, %v6206_v48  ;;  %v2795_v55 = vpop.f32.mrb[209].mxu1 }
 0x4b8   :  { %v2796_v7 = vadd.f32 %v6206_v48, %v2795_v55  ;;  %v4264_v57 = vpop.f32.mrb[210].mxu1 }
 0x4b9   :  { %v2807_v5 = vadd.f32 %v4264_v57, %v6206_v48  ;;  %v2798_v29 = vpop.f32.mrb[211].mxu1  ;;  %v2908_v47 = vmax.f32 %v2804_v4, 0.0 }
 0x4ba   :  { %v2799_v22 = vadd.f32 %v6206_v48, %v2798_v29  ;;  %v2906_v14 = vmax.f32 %v2796_v7, 0.0 }
 0x4bb   :  { %v2909_v13 = vmax.f32 %v2807_v5, 0.0 }
 0x4bc   :  { %v2907_v12 = vmax.f32 %v2799_v22, 0.0 }
 0x4bd   :  { %v2947_v35 = vpack.c.bf16 %v2909_v13, %v2908_v47 }
 0x4be   :  { %v2946_v53 = vpack.c.bf16 %v2907_v12, %v2906_v14 }
 0x4c0   :  { %4341 = vmatprep.mubr.bf16.mxu1 %v2946_v53 }
 0x4c1   :  { %4342 = vmatmul.mubr.bf16.gmra.mrb[16].mxu1 %v2947_v35 }
 0x4c6   :  { %v4267_v63 = vpop.f32.mrb[212].mxu1 }
 0x4c7   :  { %v2820_v37 = vadd.f32 %v4267_v63, %v6206_v48  ;;  %v2811_v24 = vpop.f32.mrb[213].mxu1 }
 0x4c8   :  { %v2812_v44 = vadd.f32 %v6206_v48, %v2811_v24  ;;  %v4268_v3 = vpop.f32.mrb[214].mxu1 }
 0x4c9   :  { %v2823_v50 = vadd.f32 %v4268_v3, %v6206_v48  ;;  %v2814_v8 = vpop.f32.mrb[215].mxu1  ;;  %v2912_v11 = vmax.f32 %v2820_v37, 0.0 }
 0x4ca   :  { %v2815_v25 = vadd.f32 %v6206_v48, %v2814_v8  ;;  %v2910_v36 = vmax.f32 %v2812_v44, 0.0 }
 0x4cb   :  { %v2913_v33 = vmax.f32 %v2823_v50, 0.0 }
 0x4cc   :  { %v2911_v34 = vmax.f32 %v2815_v25, 0.0 }
 0x4cd   :  { %v2949_v32 = vpack.c.bf16 %v2913_v33, %v2912_v11 }
 0x4ce   :  { %v2948_v56 = vpack.c.bf16 %v2911_v34, %v2910_v36 }
 0x4d0   :  { %4345 = vmatprep.mubr.bf16.mxu1 %v2948_v56 }
 0x4d1   :  { %4346 = vmatmul.mubr.bf16.gmra.mrb[20].mxu1 %v2949_v32 }
 0x4d6   :  { %v4271_v59 = vpop.f32.mrb[216].mxu1 }
 0x4d7   :  { %v2836_v45 = vadd.f32 %v4271_v59, %v6206_v48  ;;  %v2827_v38 = vpop.f32.mrb[217].mxu1 }
 0x4d8   :  { %v2828_v62 = vadd.f32 %v6206_v48, %v2827_v38  ;;  %v4272_v58 = vpop.f32.mrb[218].mxu1 }
 0x4d9   :  { %v2839_v30 = vadd.f32 %v4272_v58, %v6206_v48  ;;  %v2830_v2 = vpop.f32.mrb[219].mxu1  ;;  %v2916_v61 = vmax.f32 %v2836_v45, 0.0 }
 0x4da   :  { %v2831_v42 = vadd.f32 %v6206_v48, %v2830_v2  ;;  %v2914_v51 = vmax.f32 %v2828_v62, 0.0 }
 0x4db   :  { %v2917_v26 = vmax.f32 %v2839_v30, 0.0 }
 0x4dc   :  { %v2915_v1 = vmax.f32 %v2831_v42, 0.0 }
 0x4dd   :  { %v2951_v6 = vpack.c.bf16 %v2917_v26, %v2916_v61 }
 0x4de   :  { %v2950_v15 = vpack.c.bf16 %v2915_v1, %v2914_v51 }
 0x4e0   :  { %4349 = vmatprep.mubr.bf16.mxu1 %v2950_v15 }
 0x4e1   :  { %4350 = vmatmul.mubr.bf16.gmra.mrb[24].mxu1 %v2951_v6 }
 0x4e6   :  { %v4275_v17 = vpop.f32.mrb[220].mxu1 }
 0x4e7   :  { %v2852_v49 = vadd.f32 %v4275_v17, %v6206_v48  ;;  %v2843_v43 = vpop.f32.mrb[221].mxu1 }
 0x4e8   :  { %v2844_v52 = vadd.f32 %v6206_v48, %v2843_v43  ;;  %v4276_v39 = vpop.f32.mrb[222].mxu1 }
 0x4e9   :  { %v2855_v19 = vadd.f32 %v4276_v39, %v6206_v48  ;;  %v2846_v28 = vpop.f32.mrb[223].mxu1  ;;  %v2920_v40 = vmax.f32 %v2852_v49, 0.0 }
 0x4ea   :  { %v2847_v41 = vadd.f32 %v6206_v48, %v2846_v28  ;;  %v2918_v31 = vmax.f32 %v2844_v52, 0.0 }
 0x4eb   :  { %v2921_v16 = vmax.f32 %v2855_v19, 0.0 }
 0x4ec   :  { %v2919_v46 = vmax.f32 %v2847_v41, 0.0 }
 0x4ed   :  { %v2953_v0 = vpack.c.bf16 %v2921_v16, %v2920_v40 }
 0x4ee   :  { %v2952_v20 = vpack.c.bf16 %v2919_v46, %v2918_v31  ;;  %v4295_v10 = vpop.f32.mrb[224].mxu1 }
 0x4ef   :  { %v3068_v27 = vadd.f32 %v4295_v10, %v6303_v9  ;;  %v3059_v21 = vpop.f32.mrb[225].mxu1 }
 0x4f0   :  { %v3060_v23 = vadd.f32 %v6303_v9, %v3059_v21  ;;  %v4296_v54 = vpop.f32.mrb[226].mxu1  ;;  %4353 = vmatprep.mubr.bf16.mxu1 %v2952_v20 }
 0x4f1   :  { %v3071_v60 = vadd.f32 %v4296_v54, %v6303_v9  ;;  %v3062_v18 = vpop.f32.mrb[227].mxu1  ;;  %4354 = vmatmul.mubr.bf16.gmra.mrb[28].mxu1 %v2953_v0  ;;  %v3316_v4 = vmax.f32 %v3068_v27, 0.0 }
 0x4f2   :  { %v3063_v48 = vadd.f32 %v6303_v9, %v3062_v18  ;;  %v3314_v7 = vmax.f32 %v3060_v23, 0.0 }
 0x4f3   :  { %v3317_v55 = vmax.f32 %v3071_v60, 0.0 }
 0x4f4   :  { %v3315_v57 = vmax.f32 %v3063_v48, 0.0 }
 0x4f5   :  { %v3379_v5 = vpack.c.bf16 %v3317_v55, %v3316_v4 }
 0x4f6   :  { %v3378_v29 = vpack.c.bf16 %v3315_v57, %v3314_v7  ;;  %v4299_v22 = vpop.f32.mrb[228].mxu1 }
 0x4f7   :  { %v3084_v47 = vadd.f32 %v4299_v22, %v6303_v9  ;;  %v3075_v13 = vpop.f32.mrb[229].mxu1 }
 0x4f8   :  { %v3076_v14 = vadd.f32 %v6303_v9, %v3075_v13  ;;  %v4300_v12 = vpop.f32.mrb[230].mxu1  ;;  %4373 = vmatprep.mubr.bf16.mxu1 %v3378_v29 }
 0x4f9   :  { %v3087_v35 = vadd.f32 %v4300_v12, %v6303_v9  ;;  %v3078_v53 = vpop.f32.mrb[231].mxu1  ;;  %4374 = vmatmul.mubr.bf16.vlgmr.msra.gmra.mrb[32].mxu1 %v3379_v5  ;;  %v3320_v37 = vmax.f32 %v3084_v47, 0.0 }
 0x4fa   :  { %v3079_v63 = vadd.f32 %v6303_v9, %v3078_v53  ;;  %v3318_v44 = vmax.f32 %v3076_v14, 0.0 }
 0x4fb   :  { %v3321_v24 = vmax.f32 %v3087_v35, 0.0 }
 0x4fc   :  { %v3319_v3 = vmax.f32 %v3079_v63, 0.0 }
 0x4fd   :  { %v3381_v50 = vpack.c.bf16 %v3321_v24, %v3320_v37 }
 0x4fe   :  { %v3380_v8 = vpack.c.bf16 %v3319_v3, %v3318_v44  ;;  %v4303_v25 = vpop.f32.mrb[232].mxu1 }
 0x4ff   :  { %v3100_v11 = vadd.f32 %v4303_v25, %v6303_v9  ;;  %v3091_v33 = vpop.f32.mrb[233].mxu1 }
 0x500   :  { %v3092_v36 = vadd.f32 %v6303_v9, %v3091_v33  ;;  %v4304_v34 = vpop.f32.mrb[234].mxu1  ;;  %4377 = vmatprep.mubr.bf16.mxu1 %v3380_v8 }
 0x501   :  { %v3103_v32 = vadd.f32 %v4304_v34, %v6303_v9  ;;  %v3094_v56 = vpop.f32.mrb[235].mxu1  ;;  %4378 = vmatmul.mubr.bf16.gmra.mrb[36].mxu1 %v3381_v50  ;;  %v3324_v45 = vmax.f32 %v3100_v11, 0.0 }
 0x502   :  { %v3095_v59 = vadd.f32 %v6303_v9, %v3094_v56  ;;  %v3322_v62 = vmax.f32 %v3092_v36, 0.0 }
 0x503   :  { %v3325_v38 = vmax.f32 %v3103_v32, 0.0 }
 0x504   :  { %v3323_v58 = vmax.f32 %v3095_v59, 0.0 }
 0x505   :  { %v3383_v30 = vpack.c.bf16 %v3325_v38, %v3324_v45 }
 0x506   :  { %v3382_v2 = vpack.c.bf16 %v3323_v58, %v3322_v62  ;;  %v4307_v42 = vpop.f32.mrb[236].mxu1 }
 0x507   :  { %v3116_v61 = vadd.f32 %v4307_v42, %v6303_v9  ;;  %v3107_v26 = vpop.f32.mrb[237].mxu1 }
 0x508   :  { %v3108_v51 = vadd.f32 %v6303_v9, %v3107_v26  ;;  %v4308_v1 = vpop.f32.mrb[238].mxu1  ;;  %4381 = vmatprep.mubr.bf16.mxu1 %v3382_v2 }
 0x509   :  { %v3119_v6 = vadd.f32 %v4308_v1, %v6303_v9  ;;  %v3110_v15 = vpop.f32.mrb[239].mxu1  ;;  %4382 = vmatmul.mubr.bf16.gmra.mrb[40].mxu1 %v3383_v30  ;;  %v3328_v49 = vmax.f32 %v3116_v61, 0.0 }
 0x50a   :  { %v3111_v17 = vadd.f32 %v6303_v9, %v3110_v15  ;;  %v3326_v52 = vmax.f32 %v3108_v51, 0.0 }
 0x50b   :  { %v3329_v43 = vmax.f32 %v3119_v6, 0.0 }
 0x50c   :  { %v3327_v39 = vmax.f32 %v3111_v17, 0.0 }
 0x50d   :  { %v3385_v19 = vpack.c.bf16 %v3329_v43, %v3328_v49 }
 0x50e   :  { %v3384_v28 = vpack.c.bf16 %v3327_v39, %v3326_v52 }
 0x510   :  { %4385 = vmatprep.mubr.bf16.mxu1 %v3384_v28 }
 0x511   :  { %4386 = vmatmul.mubr.bf16.gmra.mrb[44].mxu1 %v3385_v19 }
 0x514   :  { %v4311_v41 = vpop.f32.mrb[240].mxu1 }
 0x515   :  { %v3132_v40 = vadd.f32 %v4311_v41, %v6303_v9  ;;  %v3123_v16 = vpop.f32.mrb[241].mxu1 }
 0x516   :  { %v3124_v31 = vadd.f32 %v6303_v9, %v3123_v16  ;;  %v4312_v46 = vpop.f32.mrb[242].mxu1 }
 0x517   :  { %v3135_v0 = vadd.f32 %v4312_v46, %v6303_v9  ;;  %v3126_v20 = vpop.f32.mrb[243].mxu1  ;;  %v3332_v27 = vmax.f32 %v3132_v40, 0.0 }
 0x518   :  { %v3127_v10 = vadd.f32 %v6303_v9, %v3126_v20  ;;  %v3330_v23 = vmax.f32 %v3124_v31, 0.0 }
 0x519   :  { %v3333_v21 = vmax.f32 %v3135_v0, 0.0 }
 0x51a   :  { %v3331_v54 = vmax.f32 %v3127_v10, 0.0 }
 0x51b   :  { %v3387_v60 = vpack.c.bf16 %v3333_v21, %v3332_v27 }
 0x51c   :  { %v3386_v18 = vpack.c.bf16 %v3331_v54, %v3330_v23 }
 0x51e   :  { %4389 = vmatprep.mubr.bf16.mxu1 %v3386_v18 }
 0x51f   :  { %4390 = vmatmul.mubr.bf16.gmra.mrb[48].mxu1 %v3387_v60 }
 0x524   :  { %v4315_v48 = vpop.f32.mrb[244].mxu1 }
 0x525   :  { %v3148_v4 = vadd.f32 %v4315_v48, %v6303_v9  ;;  %v3139_v55 = vpop.f32.mrb[245].mxu1 }
 0x526   :  { %v3140_v7 = vadd.f32 %v6303_v9, %v3139_v55  ;;  %v4316_v57 = vpop.f32.mrb[246].mxu1 }
 0x527   :  { %v3151_v5 = vadd.f32 %v4316_v57, %v6303_v9  ;;  %v3142_v29 = vpop.f32.mrb[247].mxu1  ;;  %v3336_v47 = vmax.f32 %v3148_v4, 0.0 }
 0x528   :  { %v3143_v22 = vadd.f32 %v6303_v9, %v3142_v29  ;;  %v3334_v14 = vmax.f32 %v3140_v7, 0.0 }
 0x529   :  { %v3337_v13 = vmax.f32 %v3151_v5, 0.0 }
 0x52a   :  { %v3335_v12 = vmax.f32 %v3143_v22, 0.0 }
 0x52b   :  { %v3389_v35 = vpack.c.bf16 %v3337_v13, %v3336_v47 }
 0x52c   :  { %v3388_v53 = vpack.c.bf16 %v3335_v12, %v3334_v14 }
 0x52e   :  { %4393 = vmatprep.mubr.bf16.mxu1 %v3388_v53 }
 0x52f   :  { %4394 = vmatmul.mubr.bf16.gmra.mrb[52].mxu1 %v3389_v35 }
 0x534   :  { %v4319_v63 = vpop.f32.mrb[248].mxu1 }
 0x535   :  { %v3164_v37 = vadd.f32 %v4319_v63, %v6303_v9  ;;  %v3155_v24 = vpop.f32.mrb[249].mxu1 }
 0x536   :  { %v3156_v44 = vadd.f32 %v6303_v9, %v3155_v24  ;;  %v4320_v3 = vpop.f32.mrb[250].mxu1 }
 0x537   :  { %v3167_v50 = vadd.f32 %v4320_v3, %v6303_v9  ;;  %v3158_v8 = vpop.f32.mrb[251].mxu1  ;;  %v3340_v11 = vmax.f32 %v3164_v37, 0.0 }
 0x538   :  { %v3159_v25 = vadd.f32 %v6303_v9, %v3158_v8  ;;  %v3338_v36 = vmax.f32 %v3156_v44, 0.0 }
 0x539   :  { %v3341_v33 = vmax.f32 %v3167_v50, 0.0 }
 0x53a   :  { %v3339_v34 = vmax.f32 %v3159_v25, 0.0 }
 0x53b   :  { %v3391_v32 = vpack.c.bf16 %v3341_v33, %v3340_v11 }
 0x53c   :  { %v3390_v56 = vpack.c.bf16 %v3339_v34, %v3338_v36 }
 0x53e   :  { %4397 = vmatprep.mubr.bf16.mxu1 %v3390_v56 }
 0x53f   :  { %4398 = vmatmul.mubr.bf16.gmra.mrb[56].mxu1 %v3391_v32 }
 0x544   :  { %v4323_v59 = vpop.f32.mrb[252].mxu1 }
 0x545   :  { %v3180_v45 = vadd.f32 %v4323_v59, %v6303_v9  ;;  %v3171_v38 = vpop.f32.mrb[253].mxu1 }
 0x546   :  { %v3172_v62 = vadd.f32 %v6303_v9, %v3171_v38  ;;  %v4324_v58 = vpop.f32.mrb[254].mxu1 }
 0x547   :  { %v3183_v30 = vadd.f32 %v4324_v58, %v6303_v9  ;;  %v3174_v2 = vpop.f32.mrb[255].mxu1  ;;  %v3344_v61 = vmax.f32 %v3180_v45, 0.0 }
 0x548   :  { %v3175_v42 = vadd.f32 %v6303_v9, %v3174_v2  ;;  %v3342_v51 = vmax.f32 %v3172_v62, 0.0 }
 0x549   :  { %v3345_v26 = vmax.f32 %v3183_v30, 0.0 }
 0x54a   :  { %v3343_v1 = vmax.f32 %v3175_v42, 0.0 }
 0x54b   :  { %v3393_v6 = vpack.c.bf16 %v3345_v26, %v3344_v61 }
 0x54c   :  { %v3392_v15 = vpack.c.bf16 %v3343_v1, %v3342_v51 }
 0x54e   :  { %4401 = vmatprep.mubr.bf16.mxu1 %v3392_v15 }
 0x54f   :  { %4402 = vmatmul.mubr.bf16.gmra.mrb[60].mxu1 %v3393_v6 }
 0x554   :  { %v4327_v17 = vpop.f32.mrb[0].mxu1 }
 0x555   :  { %v3196_v49 = vadd.f32 %v4327_v17, %v6303_v9  ;;  %v3187_v43 = vpop.f32.mrb[1].mxu1 }
 0x556   :  { %v3188_v52 = vadd.f32 %v6303_v9, %v3187_v43  ;;  %v4328_v39 = vpop.f32.mrb[2].mxu1 }
 0x557   :  { %v3199_v19 = vadd.f32 %v4328_v39, %v6303_v9  ;;  %v3190_v28 = vpop.f32.mrb[3].mxu1  ;;  %v3348_v40 = vmax.f32 %v3196_v49, 0.0 }
 0x558   :  { %v3191_v41 = vadd.f32 %v6303_v9, %v3190_v28  ;;  %v3346_v31 = vmax.f32 %v3188_v52, 0.0 }
 0x559   :  { %v3349_v16 = vmax.f32 %v3199_v19, 0.0 }
 0x55a   :  { %v3347_v46 = vmax.f32 %v3191_v41, 0.0 }
 0x55b   :  { %v3395_v0 = vpack.c.bf16 %v3349_v16, %v3348_v40 }
 0x55c   :  { %v3394_v20 = vpack.c.bf16 %v3347_v46, %v3346_v31 }
 0x55e   :  { %4405 = vmatprep.mubr.bf16.mxu1 %v3394_v20 }
 0x55f   :  { %4406 = vmatmul.mubr.bf16.gmra.mrb[64].mxu1 %v3395_v0 }
 0x564   :  { %v4331_v10 = vpop.f32.mrb[4].mxu1 }
 0x565   :  { %v3212_v27 = vadd.f32 %v4331_v10, %v6303_v9  ;;  %v3203_v21 = vpop.f32.mrb[5].mxu1 }
 0x566   :  { %v3204_v23 = vadd.f32 %v6303_v9, %v3203_v21  ;;  %v4332_v54 = vpop.f32.mrb[6].mxu1 }
 0x567   :  { %v3215_v60 = vadd.f32 %v4332_v54, %v6303_v9  ;;  %v3206_v18 = vpop.f32.mrb[7].mxu1  ;;  %v3352_v4 = vmax.f32 %v3212_v27, 0.0 }
 0x568   :  { %v3207_v48 = vadd.f32 %v6303_v9, %v3206_v18  ;;  %v3350_v7 = vmax.f32 %v3204_v23, 0.0 }
 0x569   :  { %v3353_v55 = vmax.f32 %v3215_v60, 0.0 }
 0x56a   :  { %v3351_v57 = vmax.f32 %v3207_v48, 0.0 }
 0x56b   :  { %v3397_v5 = vpack.c.bf16 %v3353_v55, %v3352_v4 }
 0x56c   :  { %v3396_v29 = vpack.c.bf16 %v3351_v57, %v3350_v7 }
 0x56e   :  { %4409 = vmatprep.mubr.bf16.mxu1 %v3396_v29 }
 0x56f   :  { %4410 = vmatmul.mubr.bf16.gmra.mrb[68].mxu1 %v3397_v5 }
 0x574   :  { %v4335_v22 = vpop.f32.mrb[8].mxu1 }
 0x575   :  { %v3228_v47 = vadd.f32 %v4335_v22, %v6303_v9  ;;  %v3219_v13 = vpop.f32.mrb[9].mxu1 }
 0x576   :  { %v3220_v14 = vadd.f32 %v6303_v9, %v3219_v13  ;;  %v4336_v12 = vpop.f32.mrb[10].mxu1 }
 0x577   :  { %v3231_v35 = vadd.f32 %v4336_v12, %v6303_v9  ;;  %v3222_v53 = vpop.f32.mrb[11].mxu1  ;;  %v3356_v37 = vmax.f32 %v3228_v47, 0.0 }
 0x578   :  { %v3223_v63 = vadd.f32 %v6303_v9, %v3222_v53  ;;  %v3354_v44 = vmax.f32 %v3220_v14, 0.0 }
 0x579   :  { %v3357_v24 = vmax.f32 %v3231_v35, 0.0 }
 0x57a   :  { %v3355_v3 = vmax.f32 %v3223_v63, 0.0 }
 0x57b   :  { %v3399_v50 = vpack.c.bf16 %v3357_v24, %v3356_v37 }
 0x57c   :  { %v3398_v8 = vpack.c.bf16 %v3355_v3, %v3354_v44 }
 0x57e   :  { %4413 = vmatprep.mubr.bf16.mxu1 %v3398_v8 }
 0x57f   :  { %4414 = vmatmul.mubr.bf16.gmra.mrb[72].mxu1 %v3399_v50 }
 0x584   :  { %v4339_v25 = vpop.f32.mrb[12].mxu1 }
 0x585   :  { %v3244_v11 = vadd.f32 %v4339_v25, %v6303_v9  ;;  %v3235_v33 = vpop.f32.mrb[13].mxu1 }
 0x586   :  { %v3236_v36 = vadd.f32 %v6303_v9, %v3235_v33  ;;  %v4340_v34 = vpop.f32.mrb[14].mxu1 }
 0x587   :  { %v3247_v32 = vadd.f32 %v4340_v34, %v6303_v9  ;;  %v3238_v56 = vpop.f32.mrb[15].mxu1  ;;  %v3360_v45 = vmax.f32 %v3244_v11, 0.0 }
 0x588   :  { %v3239_v59 = vadd.f32 %v6303_v9, %v3238_v56  ;;  %v3358_v62 = vmax.f32 %v3236_v36, 0.0 }
 0x589   :  { %v3361_v38 = vmax.f32 %v3247_v32, 0.0  ;;  %v6372_v32 = vld [vmem:[%s6460_s10] ss:$0 sm:$0xff]  ;;  %s5023_s10 = smov [#allocation11]  }
 0x58a   :  { %v3359_v58 = vmax.f32 %v3239_v59, 0.0  ;;  %s3903_s15 = sshll.u32 %s5023_s10, 4  ;;  %s3904_s15 = int_to_ptr.vmem [resolvable:$true] %s3903_s15 }
 0x58b   :  { %v3401_v30 = vpack.c.bf16 %v3361_v38, %v3360_v45  ;;  %s4983_s7 = scalar_lea.vmem %s3904_s15, 8192  ;;  %p4988_p13 = scmp.lt.s32.totalorder %s3904_s15, %s3904_s15 }
 0x58c   :  { %v3400_v2 = vpack.c.bf16 %v3359_v58, %v3358_v62  ;;  %p4984_p12 = scmp.ne.s32.totalorder %s3904_s15, %s4983_s7  ;;  %p4989_p0 = scmp.lt.s32.totalorder %s4983_s7, %s4983_s7 }
 0x58e   :  { %4417 = vmatprep.mubr.bf16.mxu1 %v3400_v2  ;;  %p4990_p1 = por %p4989_p0, %p4988_p13 }
 0x58f   :  { %4418 = vmatmul.mubr.bf16.gmra.mrb[76].mxu1 %v3401_v30 }
 0x590   :  { %p4991_p2 = pnand %p4990_p1, %p4984_p12 }
 0x594   :  { %v4343_v42 = vpop.f32.mrb[16].mxu1 }
 0x595   :  { %v3260_v61 = vadd.f32 %v4343_v42, %v6303_v9  ;;  %v3251_v26 = vpop.f32.mrb[17].mxu1 }
 0x596   :  { %v3252_v51 = vadd.f32 %v6303_v9, %v3251_v26  ;;  %v4344_v1 = vpop.f32.mrb[18].mxu1 }
 0x597   :  { %v3263_v6 = vadd.f32 %v4344_v1, %v6303_v9  ;;  %v3254_v15 = vpop.f32.mrb[19].mxu1  ;;  %v3364_v49 = vmax.f32 %v3260_v61, 0.0 }
 0x598   :  { %v3255_v17 = vadd.f32 %v6303_v9, %v3254_v15  ;;  %v3362_v52 = vmax.f32 %v3252_v51, 0.0 }
 0x599   :  { %v3365_v43 = vmax.f32 %v3263_v6, 0.0 }
 0x59a   :  { %v3363_v39 = vmax.f32 %v3255_v17, 0.0 }
 0x59b   :  { %v3403_v19 = vpack.c.bf16 %v3365_v43, %v3364_v49 }
 0x59c   :  { %v3402_v28 = vpack.c.bf16 %v3363_v39, %v3362_v52 }
 0x59e   :  { %4421 = vmatprep.mubr.bf16.mxu1 %v3402_v28 }
 0x59f   :  { %4422 = vmatmul.mubr.bf16.gmra.mrb[80].mxu1 %v3403_v19 }
 0x5a4   :  { %v4347_v41 = vpop.f32.mrb[20].mxu1 }
 0x5a5   :  { %v3276_v40 = vadd.f32 %v4347_v41, %v6303_v9  ;;  %v3267_v16 = vpop.f32.mrb[21].mxu1 }
 0x5a6   :  { %v3268_v31 = vadd.f32 %v6303_v9, %v3267_v16  ;;  %v4348_v46 = vpop.f32.mrb[22].mxu1 }
 0x5a7   :  { %v3279_v0 = vadd.f32 %v4348_v46, %v6303_v9  ;;  %v3270_v20 = vpop.f32.mrb[23].mxu1  ;;  %v3368_v27 = vmax.f32 %v3276_v40, 0.0 }
 0x5a8   :  { %v3271_v10 = vadd.f32 %v6303_v9, %v3270_v20  ;;  %v3366_v23 = vmax.f32 %v3268_v31, 0.0 }
 0x5a9   :  { %v3369_v21 = vmax.f32 %v3279_v0, 0.0 }
 0x5aa   :  { %v3367_v54 = vmax.f32 %v3271_v10, 0.0 }
 0x5ab   :  { %v3405_v60 = vpack.c.bf16 %v3369_v21, %v3368_v27 }
 0x5ac   :  { %v3404_v18 = vpack.c.bf16 %v3367_v54, %v3366_v23 }
 0x5ae   :  { %4425 = vmatprep.mubr.bf16.mxu1 %v3404_v18 }
 0x5af   :  { %4426 = vmatmul.mubr.bf16.gmra.mrb[84].mxu1 %v3405_v60 }
 0x5b4   :  { %v4351_v48 = vpop.f32.mrb[24].mxu1 }
 0x5b5   :  { %v3292_v4 = vadd.f32 %v4351_v48, %v6303_v9  ;;  %v3283_v55 = vpop.f32.mrb[25].mxu1 }
 0x5b6   :  { %v3284_v7 = vadd.f32 %v6303_v9, %v3283_v55  ;;  %v4352_v57 = vpop.f32.mrb[26].mxu1 }
 0x5b7   :  { %v3295_v5 = vadd.f32 %v4352_v57, %v6303_v9  ;;  %v3286_v29 = vpop.f32.mrb[27].mxu1  ;;  %v3372_v47 = vmax.f32 %v3292_v4, 0.0 }
 0x5b8   :  { %v3287_v22 = vadd.f32 %v6303_v9, %v3286_v29  ;;  %v3370_v14 = vmax.f32 %v3284_v7, 0.0 }
 0x5b9   :  { %v3373_v13 = vmax.f32 %v3295_v5, 0.0 }
 0x5ba   :  { %v3371_v12 = vmax.f32 %v3287_v22, 0.0 }
 0x5bb   :  { %v3407_v35 = vpack.c.bf16 %v3373_v13, %v3372_v47 }
 0x5bc   :  { %v3406_v53 = vpack.c.bf16 %v3371_v12, %v3370_v14 }
 0x5be   :  { %4429 = vmatprep.mubr.bf16.mxu1 %v3406_v53 }
 0x5bf   :  { %4430 = vmatmul.mubr.bf16.gmra.mrb[88].mxu1 %v3407_v35 }
 0x5c4   :  { %v4355_v63 = vpop.f32.mrb[28].mxu1 }
 0x5c5   :  { %v3308_v37 = vadd.f32 %v4355_v63, %v6303_v9  ;;  %v3299_v24 = vpop.f32.mrb[29].mxu1 }
 0x5c6   :  { %v3300_v44 = vadd.f32 %v6303_v9, %v3299_v24  ;;  %v4356_v3 = vpop.f32.mrb[30].mxu1 }
 0x5c7   :  { %v3311_v50 = vadd.f32 %v4356_v3, %v6303_v9  ;;  %v3302_v8 = vpop.f32.mrb[31].mxu1  ;;  %v3376_v11 = vmax.f32 %v3308_v37, 0.0 }
 0x5c8   :  { %v3303_v25 = vadd.f32 %v6303_v9, %v3302_v8  ;;  %v3374_v36 = vmax.f32 %v3300_v44, 0.0 }
 0x5c9   :  { %v3377_v33 = vmax.f32 %v3311_v50, 0.0 }
 0x5ca   :  { %v3375_v34 = vmax.f32 %v3303_v25, 0.0 }
 0x5cb   :  { %v3409_v56 = vpack.c.bf16 %v3377_v33, %v3376_v11 }
 0x5cc   :  { %v3408_v59 = vpack.c.bf16 %v3375_v34, %v3374_v36  ;;  %v4375_v45 = vpop.f32.mrb[32].mxu1 }
 0x5cd   :  { %v3524_v38 = vadd.f32 %v4375_v45, %v6372_v32  ;;  %v3515_v62 = vpop.f32.mrb[33].mxu1 }
 0x5ce   :  { %v3516_v58 = vadd.f32 %v6372_v32, %v3515_v62  ;;  %v4376_v30 = vpop.f32.mrb[34].mxu1  ;;  %4433 = vmatprep.mubr.bf16.mxu1 %v3408_v59 }
 0x5cf   :  { %4738 = vtanh.f32 %v3524_v38  ;;  %v3527_v9 = vadd.f32 %v4376_v30, %v6372_v32  ;;  %v3518_v2 = vpop.f32.mrb[35].mxu1  ;;  %4434 = vmatmul.mubr.bf16.gmra.mrb[92].mxu1 %v3409_v56 }
 0x5d0   :  { %4740 = vtanh.f32 %v3516_v58  ;;  %v3519_v42 = vadd.f32 %v6372_v32, %v3518_v2 }
 0x5d1   :  { %4742 = vtanh.f32 %v3527_v9 }
 0x5d2   :  { %4744 = vtanh.f32 %v3519_v42 }
 0x5d4   :  { %v4379_v61 = vpop.f32.mrb[36].mxu1 }
 0x5d5   :  { %v3540_v26 = vadd.f32 %v4379_v61, %v6372_v32  ;;  %v3531_v51 = vpop.f32.mrb[37].mxu1 }
 0x5d6   :  { %v3532_v1 = vadd.f32 %v6372_v32, %v3531_v51  ;;  %v4380_v6 = vpop.f32.mrb[38].mxu1 }
 0x5d7   :  { %4746 = vtanh.f32 %v3540_v26  ;;  %v3543_v15 = vadd.f32 %v4380_v6, %v6372_v32  ;;  %v3534_v17 = vpop.f32.mrb[39].mxu1 }
 0x5d8   :  { %4748 = vtanh.f32 %v3532_v1  ;;  %v3535_v49 = vadd.f32 %v6372_v32, %v3534_v17 }
 0x5d9   :  { %v4739_v43 = vpop.eup %4738  ;;  %4750 = vtanh.f32 %v3543_v15 }
 0x5da   :  { %v4741_v52 = vpop.eup %4740  ;;  %3836 = vst [vmem:[#allocation11 + $0x10] sm:$0xff] %v4739_v43  ;;  %4752 = vtanh.f32 %v3535_v49 }
 0x5db   :  { %v4743_v39 = vpop.eup %4742  ;;  %3834 = vst [vmem:[#allocation11] sm:$0xff] %v4741_v52 }
 0x5dc   :  { %v4745_v19 = vpop.eup %4744  ;;  %3837 = vst [vmem:[#allocation11 + $0x18] sm:$0xff] %v4743_v39  ;;  %v4383_v28 = vpop.f32.mrb[40].mxu1 }
 0x5dd   :  { %3835 = vst [vmem:[#allocation11 + $0x8] sm:$0xff] %v4745_v19  ;;  %v3556_v41 = vadd.f32 %v4383_v28, %v6372_v32  ;;  %v3547_v40 = vpop.f32.mrb[41].mxu1 }
 0x5de   :  { %v3548_v16 = vadd.f32 %v6372_v32, %v3547_v40  ;;  %v4384_v31 = vpop.f32.mrb[42].mxu1 }
 0x5df   :  { %4754 = vtanh.f32 %v3556_v41  ;;  %v3559_v46 = vadd.f32 %v4384_v31, %v6372_v32  ;;  %v3550_v0 = vpop.f32.mrb[43].mxu1 }
 0x5e0   :  { %4756 = vtanh.f32 %v3548_v16  ;;  %v3551_v20 = vadd.f32 %v6372_v32, %v3550_v0 }
 0x5e1   :  { %v4747_v10 = vpop.eup %4746  ;;  %4758 = vtanh.f32 %v3559_v46 }
 0x5e2   :  { %v4749_v27 = vpop.eup %4748  ;;  %3840 = vst [vmem:[#allocation11 + $0x30] sm:$0xff] %v4747_v10  ;;  %4760 = vtanh.f32 %v3551_v20 }
 0x5e3   :  { %v4751_v21 = vpop.eup %4750  ;;  %3838 = vst [vmem:[#allocation11 + $0x20] sm:$0xff] %v4749_v27 }
 0x5e4   :  { %v4753_v23 = vpop.eup %4752  ;;  %3841 = vst [vmem:[#allocation11 + $0x38] sm:$0xff] %v4751_v21  ;;  %v4387_v54 = vpop.f32.mrb[44].mxu1 }
 0x5e5   :  { %3839 = vst [vmem:[#allocation11 + $0x28] sm:$0xff] %v4753_v23  ;;  %v3572_v60 = vadd.f32 %v4387_v54, %v6372_v32  ;;  %v3563_v18 = vpop.f32.mrb[45].mxu1 }
 0x5e6   :  { %v3564_v48 = vadd.f32 %v6372_v32, %v3563_v18  ;;  %v4388_v4 = vpop.f32.mrb[46].mxu1 }
 0x5e7   :  { %4762 = vtanh.f32 %v3572_v60  ;;  %v3575_v55 = vadd.f32 %v4388_v4, %v6372_v32  ;;  %v3566_v7 = vpop.f32.mrb[47].mxu1 }
 0x5e8   :  { %4764 = vtanh.f32 %v3564_v48  ;;  %v3567_v57 = vadd.f32 %v6372_v32, %v3566_v7 }
 0x5e9   :  { %v4755_v5 = vpop.eup %4754  ;;  %4766 = vtanh.f32 %v3575_v55 }
 0x5ea   :  { %v4757_v29 = vpop.eup %4756  ;;  %3844 = vst [vmem:[#allocation11 + $0x50] sm:$0xff] %v4755_v5  ;;  %4768 = vtanh.f32 %v3567_v57 }
 0x5eb   :  { %v4759_v22 = vpop.eup %4758  ;;  %3842 = vst [vmem:[#allocation11 + $0x40] sm:$0xff] %v4757_v29 }
 0x5ec   :  { %v4761_v47 = vpop.eup %4760  ;;  %3845 = vst [vmem:[#allocation11 + $0x58] sm:$0xff] %v4759_v22 }
 0x5ed   :  { %3843 = vst [vmem:[#allocation11 + $0x48] sm:$0xff] %v4761_v47 }
 0x5f1   :  { %v4763_v13 = vpop.eup %4762 }
 0x5f2   :  { %v4765_v14 = vpop.eup %4764  ;;  %3848 = vst [vmem:[#allocation11 + $0x70] sm:$0xff] %v4763_v13  ;;  %v4391_v12 = vpop.f32.mrb[48].mxu1 }
 0x5f3   :  { %v4767_v35 = vpop.eup %4766  ;;  %3846 = vst [vmem:[#allocation11 + $0x60] sm:$0xff] %v4765_v14  ;;  %v3588_v53 = vadd.f32 %v4391_v12, %v6372_v32  ;;  %v3579_v63 = vpop.f32.mrb[49].mxu1 }
 0x5f4   :  { %v4769_v37 = vpop.eup %4768  ;;  %3849 = vst [vmem:[#allocation11 + $0x78] sm:$0xff] %v4767_v35  ;;  %v3580_v24 = vadd.f32 %v6372_v32, %v3579_v63  ;;  %v4392_v44 = vpop.f32.mrb[50].mxu1 }
 0x5f5   :  { %3847 = vst [vmem:[#allocation11 + $0x68] sm:$0xff] %v4769_v37  ;;  %4770 = vtanh.f32 %v3588_v53  ;;  %v3591_v3 = vadd.f32 %v4392_v44, %v6372_v32  ;;  %v3582_v50 = vpop.f32.mrb[51].mxu1 }
 0x5f6   :  { %4772 = vtanh.f32 %v3580_v24  ;;  %v3583_v8 = vadd.f32 %v6372_v32, %v3582_v50 }
 0x5f7   :  { %4774 = vtanh.f32 %v3591_v3 }
 0x5f8   :  { %4776 = vtanh.f32 %v3583_v8 }
 0x5ff   :  { %v4771_v25 = vpop.eup %4770 }
 0x600   :  { %v4773_v11 = vpop.eup %4772  ;;  %3852 = vst [vmem:[#allocation11 + $0x90] sm:$0xff] %v4771_v25 }
 0x601   :  { %v4775_v33 = vpop.eup %4774  ;;  %3850 = vst [vmem:[#allocation11 + $0x80] sm:$0xff] %v4773_v11 }
 0x602   :  { %v4777_v36 = vpop.eup %4776  ;;  %3853 = vst [vmem:[#allocation11 + $0x98] sm:$0xff] %v4775_v33  ;;  %v4395_v34 = vpop.f32.mrb[52].mxu1 }
 0x603   :  { %3851 = vst [vmem:[#allocation11 + $0x88] sm:$0xff] %v4777_v36  ;;  %v3604_v56 = vadd.f32 %v4395_v34, %v6372_v32  ;;  %v3595_v59 = vpop.f32.mrb[53].mxu1 }
 0x604   :  { %v3596_v45 = vadd.f32 %v6372_v32, %v3595_v59  ;;  %v4396_v38 = vpop.f32.mrb[54].mxu1 }
 0x605   :  { %4778 = vtanh.f32 %v3604_v56  ;;  %v3607_v62 = vadd.f32 %v4396_v38, %v6372_v32  ;;  %v3598_v58 = vpop.f32.mrb[55].mxu1 }
 0x606   :  { %4780 = vtanh.f32 %v3596_v45  ;;  %v3599_v30 = vadd.f32 %v6372_v32, %v3598_v58 }
 0x607   :  { %4782 = vtanh.f32 %v3607_v62 }
 0x608   :  { %4784 = vtanh.f32 %v3599_v30 }
 0x60f   :  { %v4779_v9 = vpop.eup %4778 }
 0x610   :  { %v4781_v2 = vpop.eup %4780  ;;  %3856 = vst [vmem:[#allocation11 + $0xb0] sm:$0xff] %v4779_v9 }
 0x611   :  { %v4783_v42 = vpop.eup %4782  ;;  %3854 = vst [vmem:[#allocation11 + $0xa0] sm:$0xff] %v4781_v2 }
 0x612   :  { %v4785_v61 = vpop.eup %4784  ;;  %3857 = vst [vmem:[#allocation11 + $0xb8] sm:$0xff] %v4783_v42  ;;  %v4399_v26 = vpop.f32.mrb[56].mxu1 }
 0x613   :  { %3855 = vst [vmem:[#allocation11 + $0xa8] sm:$0xff] %v4785_v61  ;;  %v3620_v51 = vadd.f32 %v4399_v26, %v6372_v32  ;;  %v3611_v1 = vpop.f32.mrb[57].mxu1 }
 0x614   :  { %v3612_v6 = vadd.f32 %v6372_v32, %v3611_v1  ;;  %v4400_v15 = vpop.f32.mrb[58].mxu1 }
 0x615   :  { %4786 = vtanh.f32 %v3620_v51  ;;  %v3623_v17 = vadd.f32 %v4400_v15, %v6372_v32  ;;  %v3614_v49 = vpop.f32.mrb[59].mxu1 }
 0x616   :  { %4788 = vtanh.f32 %v3612_v6  ;;  %v3615_v43 = vadd.f32 %v6372_v32, %v3614_v49 }
 0x617   :  { %4790 = vtanh.f32 %v3623_v17 }
 0x618   :  { %4792 = vtanh.f32 %v3615_v43 }
 0x61f   :  { %v4787_v52 = vpop.eup %4786 }
 0x620   :  { %v4789_v39 = vpop.eup %4788  ;;  %3860 = vst [vmem:[#allocation11 + $0xd0] sm:$0xff] %v4787_v52 }
 0x621   :  { %v4791_v19 = vpop.eup %4790  ;;  %3858 = vst [vmem:[#allocation11 + $0xc0] sm:$0xff] %v4789_v39 }
 0x622   :  { %v4793_v28 = vpop.eup %4792  ;;  %3861 = vst [vmem:[#allocation11 + $0xd8] sm:$0xff] %v4791_v19  ;;  %v4403_v41 = vpop.f32.mrb[60].mxu1 }
 0x623   :  { %3859 = vst [vmem:[#allocation11 + $0xc8] sm:$0xff] %v4793_v28  ;;  %v3636_v40 = vadd.f32 %v4403_v41, %v6372_v32  ;;  %v3627_v16 = vpop.f32.mrb[61].mxu1 }
 0x624   :  { %v3628_v31 = vadd.f32 %v6372_v32, %v3627_v16  ;;  %v4404_v46 = vpop.f32.mrb[62].mxu1 }
 0x625   :  { %4794 = vtanh.f32 %v3636_v40  ;;  %v3639_v0 = vadd.f32 %v4404_v46, %v6372_v32  ;;  %v3630_v20 = vpop.f32.mrb[63].mxu1 }
 0x626   :  { %4796 = vtanh.f32 %v3628_v31  ;;  %v3631_v10 = vadd.f32 %v6372_v32, %v3630_v20 }
 0x627   :  { %4798 = vtanh.f32 %v3639_v0 }
 0x628   :  { %4800 = vtanh.f32 %v3631_v10 }
 0x62f   :  { %v4795_v27 = vpop.eup %4794 }
 0x630   :  { %v4797_v21 = vpop.eup %4796  ;;  %3864 = vst [vmem:[#allocation11 + $0xf0] sm:$0xff] %v4795_v27 }
 0x631   :  { %v4799_v23 = vpop.eup %4798  ;;  %3862 = vst [vmem:[#allocation11 + $0xe0] sm:$0xff] %v4797_v21 }
 0x632   :  { %v4801_v54 = vpop.eup %4800  ;;  %3865 = vst [vmem:[#allocation11 + $0xf8] sm:$0xff] %v4799_v23  ;;  %v4407_v60 = vpop.f32.mrb[64].mxu1 }
 0x633   :  { %3863 = vst [vmem:[#allocation11 + $0xe8] sm:$0xff] %v4801_v54  ;;  %v3652_v18 = vadd.f32 %v4407_v60, %v6372_v32  ;;  %v3643_v48 = vpop.f32.mrb[65].mxu1 }
 0x634   :  { %v3644_v4 = vadd.f32 %v6372_v32, %v3643_v48  ;;  %v4408_v55 = vpop.f32.mrb[66].mxu1 }
 0x635   :  { %4802 = vtanh.f32 %v3652_v18  ;;  %v3655_v7 = vadd.f32 %v4408_v55, %v6372_v32  ;;  %v3646_v57 = vpop.f32.mrb[67].mxu1 }
 0x636   :  { %4804 = vtanh.f32 %v3644_v4  ;;  %v3647_v5 = vadd.f32 %v6372_v32, %v3646_v57 }
 0x637   :  { %4806 = vtanh.f32 %v3655_v7 }
 0x638   :  { %4808 = vtanh.f32 %v3647_v5 }
 0x63f   :  { %v4803_v29 = vpop.eup %4802 }
 0x640   :  { %v4805_v22 = vpop.eup %4804  ;;  %3868 = vst [vmem:[#allocation11 + $0x110] sm:$0xff] %v4803_v29 }
 0x641   :  { %v4807_v47 = vpop.eup %4806  ;;  %3866 = vst [vmem:[#allocation11 + $0x100] sm:$0xff] %v4805_v22 }
 0x642   :  { %v4809_v13 = vpop.eup %4808  ;;  %3869 = vst [vmem:[#allocation11 + $0x118] sm:$0xff] %v4807_v47  ;;  %v4411_v14 = vpop.f32.mrb[68].mxu1 }
 0x643   :  { %3867 = vst [vmem:[#allocation11 + $0x108] sm:$0xff] %v4809_v13  ;;  %v3668_v12 = vadd.f32 %v4411_v14, %v6372_v32  ;;  %v3659_v35 = vpop.f32.mrb[69].mxu1 }
 0x644   :  { %v3660_v53 = vadd.f32 %v6372_v32, %v3659_v35  ;;  %v4412_v63 = vpop.f32.mrb[70].mxu1 }
 0x645   :  { %4810 = vtanh.f32 %v3668_v12  ;;  %v3671_v37 = vadd.f32 %v4412_v63, %v6372_v32  ;;  %v3662_v24 = vpop.f32.mrb[71].mxu1 }
 0x646   :  { %4812 = vtanh.f32 %v3660_v53  ;;  %v3663_v44 = vadd.f32 %v6372_v32, %v3662_v24 }
 0x647   :  { %4814 = vtanh.f32 %v3671_v37 }
 0x648   :  { %4816 = vtanh.f32 %v3663_v44 }
 0x64f   :  { %v4811_v3 = vpop.eup %4810 }
 0x650   :  { %v4813_v50 = vpop.eup %4812  ;;  %3872 = vst [vmem:[#allocation11 + $0x130] sm:$0xff] %v4811_v3 }
 0x651   :  { %v4815_v8 = vpop.eup %4814  ;;  %3870 = vst [vmem:[#allocation11 + $0x120] sm:$0xff] %v4813_v50 }
 0x652   :  { %v4817_v25 = vpop.eup %4816  ;;  %3873 = vst [vmem:[#allocation11 + $0x138] sm:$0xff] %v4815_v8  ;;  %v4415_v11 = vpop.f32.mrb[72].mxu1 }
 0x653   :  { %3871 = vst [vmem:[#allocation11 + $0x128] sm:$0xff] %v4817_v25  ;;  %v3684_v33 = vadd.f32 %v4415_v11, %v6372_v32  ;;  %v3675_v36 = vpop.f32.mrb[73].mxu1 }
 0x654   :  { %v3676_v34 = vadd.f32 %v6372_v32, %v3675_v36  ;;  %v4416_v56 = vpop.f32.mrb[74].mxu1 }
 0x655   :  { %4818 = vtanh.f32 %v3684_v33  ;;  %v3687_v59 = vadd.f32 %v4416_v56, %v6372_v32  ;;  %v3678_v45 = vpop.f32.mrb[75].mxu1 }
 0x656   :  { %4820 = vtanh.f32 %v3676_v34  ;;  %v3679_v38 = vadd.f32 %v6372_v32, %v3678_v45 }
 0x657   :  { %4822 = vtanh.f32 %v3687_v59 }
 0x658   :  { %4824 = vtanh.f32 %v3679_v38 }
 0x65f   :  { %v4819_v62 = vpop.eup %4818 }
 0x660   :  { %v4821_v58 = vpop.eup %4820  ;;  %3876 = vst [vmem:[#allocation11 + $0x150] sm:$0xff] %v4819_v62 }
 0x661   :  { %v4823_v30 = vpop.eup %4822  ;;  %3874 = vst [vmem:[#allocation11 + $0x140] sm:$0xff] %v4821_v58 }
 0x662   :  { %v4825_v9 = vpop.eup %4824  ;;  %3877 = vst [vmem:[#allocation11 + $0x158] sm:$0xff] %v4823_v30  ;;  %v4419_v2 = vpop.f32.mrb[76].mxu1 }
 0x663   :  { %3875 = vst [vmem:[#allocation11 + $0x148] sm:$0xff] %v4825_v9  ;;  %v3700_v42 = vadd.f32 %v4419_v2, %v6372_v32  ;;  %v3691_v61 = vpop.f32.mrb[77].mxu1 }
 0x664   :  { %v3692_v26 = vadd.f32 %v6372_v32, %v3691_v61  ;;  %v4420_v51 = vpop.f32.mrb[78].mxu1 }
 0x665   :  { %4826 = vtanh.f32 %v3700_v42  ;;  %v3703_v1 = vadd.f32 %v4420_v51, %v6372_v32  ;;  %v3694_v6 = vpop.f32.mrb[79].mxu1 }
 0x666   :  { %4828 = vtanh.f32 %v3692_v26  ;;  %v3695_v15 = vadd.f32 %v6372_v32, %v3694_v6 }
 0x667   :  { %4830 = vtanh.f32 %v3703_v1 }
 0x668   :  { %4832 = vtanh.f32 %v3695_v15 }
 0x66f   :  { %v4827_v17 = vpop.eup %4826 }
 0x670   :  { %v4829_v49 = vpop.eup %4828  ;;  %3880 = vst [vmem:[#allocation11 + $0x170] sm:$0xff] %v4827_v17 }
 0x671   :  { %v4831_v43 = vpop.eup %4830  ;;  %3878 = vst [vmem:[#allocation11 + $0x160] sm:$0xff] %v4829_v49 }
 0x672   :  { %v4833_v52 = vpop.eup %4832  ;;  %3881 = vst [vmem:[#allocation11 + $0x178] sm:$0xff] %v4831_v43  ;;  %v4423_v39 = vpop.f32.mrb[80].mxu1 }
 0x673   :  { %3879 = vst [vmem:[#allocation11 + $0x168] sm:$0xff] %v4833_v52  ;;  %v3716_v19 = vadd.f32 %v4423_v39, %v6372_v32  ;;  %v3707_v28 = vpop.f32.mrb[81].mxu1 }
 0x674   :  { %v3708_v41 = vadd.f32 %v6372_v32, %v3707_v28  ;;  %v4424_v40 = vpop.f32.mrb[82].mxu1 }
 0x675   :  { %4834 = vtanh.f32 %v3716_v19  ;;  %v3719_v16 = vadd.f32 %v4424_v40, %v6372_v32  ;;  %v3710_v31 = vpop.f32.mrb[83].mxu1 }
 0x676   :  { %4836 = vtanh.f32 %v3708_v41  ;;  %v3711_v46 = vadd.f32 %v6372_v32, %v3710_v31 }
 0x677   :  { %4838 = vtanh.f32 %v3719_v16 }
 0x678   :  { %4840 = vtanh.f32 %v3711_v46 }
 0x67f   :  { %v4835_v0 = vpop.eup %4834 }
 0x680   :  { %v4837_v20 = vpop.eup %4836  ;;  %3884 = vst [vmem:[#allocation11 + $0x190] sm:$0xff] %v4835_v0 }
 0x681   :  { %v4839_v10 = vpop.eup %4838  ;;  %3882 = vst [vmem:[#allocation11 + $0x180] sm:$0xff] %v4837_v20 }
 0x682   :  { %v4841_v27 = vpop.eup %4840  ;;  %3885 = vst [vmem:[#allocation11 + $0x198] sm:$0xff] %v4839_v10  ;;  %v4427_v21 = vpop.f32.mrb[84].mxu1 }
 0x683   :  { %3883 = vst [vmem:[#allocation11 + $0x188] sm:$0xff] %v4841_v27  ;;  %v3732_v23 = vadd.f32 %v4427_v21, %v6372_v32  ;;  %v3723_v54 = vpop.f32.mrb[85].mxu1 }
 0x684   :  { %v3724_v60 = vadd.f32 %v6372_v32, %v3723_v54  ;;  %v4428_v18 = vpop.f32.mrb[86].mxu1 }
 0x685   :  { %4842 = vtanh.f32 %v3732_v23  ;;  %v3735_v48 = vadd.f32 %v4428_v18, %v6372_v32  ;;  %v3726_v4 = vpop.f32.mrb[87].mxu1 }
 0x686   :  { %4844 = vtanh.f32 %v3724_v60  ;;  %v3727_v55 = vadd.f32 %v6372_v32, %v3726_v4 }
 0x687   :  { %4846 = vtanh.f32 %v3735_v48 }
 0x688   :  { %4848 = vtanh.f32 %v3727_v55 }
 0x68f   :  { %v4843_v7 = vpop.eup %4842 }
 0x690   :  { %v4845_v57 = vpop.eup %4844  ;;  %3888 = vst [vmem:[#allocation11 + $0x1b0] sm:$0xff] %v4843_v7 }
 0x691   :  { %v4847_v5 = vpop.eup %4846  ;;  %3886 = vst [vmem:[#allocation11 + $0x1a0] sm:$0xff] %v4845_v57 }
 0x692   :  { %v4849_v29 = vpop.eup %4848  ;;  %3889 = vst [vmem:[#allocation11 + $0x1b8] sm:$0xff] %v4847_v5  ;;  %v4431_v22 = vpop.f32.mrb[88].mxu1 }
 0x693   :  { %3887 = vst [vmem:[#allocation11 + $0x1a8] sm:$0xff] %v4849_v29  ;;  %v3748_v47 = vadd.f32 %v4431_v22, %v6372_v32  ;;  %v3739_v13 = vpop.f32.mrb[89].mxu1 }
 0x694   :  { %v3740_v14 = vadd.f32 %v6372_v32, %v3739_v13  ;;  %v4432_v12 = vpop.f32.mrb[90].mxu1 }
 0x695   :  { %4850 = vtanh.f32 %v3748_v47  ;;  %v3751_v35 = vadd.f32 %v4432_v12, %v6372_v32  ;;  %v3742_v53 = vpop.f32.mrb[91].mxu1 }
 0x696   :  { %4852 = vtanh.f32 %v3740_v14  ;;  %v3743_v63 = vadd.f32 %v6372_v32, %v3742_v53 }
 0x697   :  { %4854 = vtanh.f32 %v3751_v35 }
 0x698   :  { %4856 = vtanh.f32 %v3743_v63 }
 0x69f   :  { %v4851_v37 = vpop.eup %4850 }
 0x6a0   :  { %v4853_v24 = vpop.eup %4852  ;;  %3892 = vst [vmem:[#allocation11 + $0x1d0] sm:$0xff] %v4851_v37 }
 0x6a1   :  { %v4855_v44 = vpop.eup %4854  ;;  %3890 = vst [vmem:[#allocation11 + $0x1c0] sm:$0xff] %v4853_v24 }
 0x6a2   :  { %v4857_v3 = vpop.eup %4856  ;;  %3893 = vst [vmem:[#allocation11 + $0x1d8] sm:$0xff] %v4855_v44  ;;  %v4435_v50 = vpop.f32.mrb[92].mxu1 }
 0x6a3   :  { %3891 = vst [vmem:[#allocation11 + $0x1c8] sm:$0xff] %v4857_v3  ;;  %v3764_v8 = vadd.f32 %v4435_v50, %v6372_v32  ;;  %v3755_v25 = vpop.f32.mrb[93].mxu1 }
 0x6a4   :  { %v3756_v11 = vadd.f32 %v6372_v32, %v3755_v25  ;;  %v4436_v33 = vpop.f32.mrb[94].mxu1 }
 0x6a5   :  { %4858 = vtanh.f32 %v3764_v8  ;;  %v3767_v36 = vadd.f32 %v4436_v33, %v6372_v32  ;;  %v3758_v34 = vpop.f32.mrb[95].mxu1 }
 0x6a6   :  { %4860 = vtanh.f32 %v3756_v11  ;;  %v3759_v56 = vadd.f32 %v6372_v32, %v3758_v34 }
 0x6a7   :  { %4862 = vtanh.f32 %v3767_v36 }
 0x6a8   :  { %4864 = vtanh.f32 %v3759_v56 }
 0x6af   :  { %v4859_v59 = vpop.eup %4858 }
 0x6b0   :  { %v4861_v45 = vpop.eup %4860  ;;  %3896 = vst [vmem:[#allocation11 + $0x1f0] sm:$0xff] %v4859_v59 }
 0x6b1   :  { %v4863_v38 = vpop.eup %4862  ;;  %3894 = vst [vmem:[#allocation11 + $0x1e0] sm:$0xff] %v4861_v45 }
 0x6b2   :  { %v4865_v62 = vpop.eup %4864  ;;  %3897 = vst [vmem:[#allocation11 + $0x1f8] sm:$0xff] %v4863_v38 }
 0x6b3   :  { %3895 = vst [vmem:[#allocation11 + $0x1e8] sm:$0xff] %v4865_v62 }
 0x6b4   :  { %4994 = shalt.err (!%p4991_p2)
}
 0x6b5   :  { %s4995_s17 = scalar_lea.hbm %s6461_s11, 8192 }
 0x6b6   :  { %p4996_p3 = scmp.ne.s32.totalorder %s6461_s11, %s4995_s17  ;;  %p4999_p4 = scmp.lt.u32.totalorder %s4995_s17, %s6461_s11 }
 0x6b8   :  { %p5001_p5 = pnand %p4999_p4, %p4996_p3 }
 0x6ba   :  { %5004 = shalt.err (!%p5001_p5)
}
 0x6bb   :  { %s5024_s4 = smov 128   ;;  %s5025_s5 = smov 8  }
 0x6bc   :  { %3909 = dma.vmem_to_hbm [thread:$0]  %s3904_s15, 8192, %s6461_s11, [#allocation4], %s5024_s4, %s5024_s4, %s5025_s5  }
 0x6bd   :  { %5011 = dma.done.wait [#allocation4], 8192  }
 0x6be   :  { %5012 = vsyncadd [#allocation4], 4294959104 }
 0x6bf   :  { %3913 = vsyncpa [#allocation3], 1 }
 0x6c0   :  { %3914 = vsyncpa [#allocation6], 1 }
 0x6c1   :  { %3915 = vsyncpa [#allocation9], 1 }
 0x6c2   :  { %3916 = vsyncpa [#allocation4], 1 }

</bundles_post_ra>
